<compile_context>
chip_gen: v7x
topology: tpu7x:2x2x1
jax: 0.10.0
libtpu: 0.0.40
codegen_flags: <defaults>
</compile_context>

<pallas_src>
import functools

import jax
import jax.numpy as jnp
from jax.experimental import pallas as pl
from jax.experimental.pallas import tpu as pltpu


# Point-tile size: big enough for ~85% of HBM roofline, small enough that every
# fused kernel stays well under the scoped-VMEM limits on v5e/v6e/v7x.
_POINT_TILE = 512
_VMEM_LIMIT = 32 * 1024 * 1024


def _round_up(x, m):
    return (x + m - 1) // m * m


def _choose_tile(n):
    """Returns (tm, n_padded) with tm | n_padded, tm % 8 == 0, n_padded >= n."""
    n8 = _round_up(n, 8)
    tm = min(_POINT_TILE, n8)
    return tm, _round_up(n, tm)


# ----------------------------------------------------------------------------
# Kernel 1: fused 3-layer per-point MLP + global max over points.
#   h = L3(L2(L1(x)));  out[b] = max over valid points of h
# Grid: (B, n_point_tiles); the output block is resident across the tile axis.
# ----------------------------------------------------------------------------
def _mlp3_max_kernel(x_ref, w1_ref, b1_ref, w2_ref, b2_ref, w3_ref, b3_ref,
                     o_ref, *, n_valid, tm, relu3):
    i = pl.program_id(1)

    @pl.when(i == 0)
    def _init():
        o_ref[...] = jnp.full(o_ref.shape, -jnp.inf, jnp.float32)

    x = x_ref[0]                                                   # (tm, 8)
    h = jnp.maximum(
        jnp.dot(x, w1_ref[0], preferred_element_type=jnp.float32) + b1_ref[...],
        0.0)                                                       # (tm, 64)
    h = jnp.maximum(
        jnp.dot(h, w2_ref[...], preferred_element_type=jnp.float32) + b2_ref[...],
        0.0)                                                       # (tm, 128)
    h = jnp.dot(h, w3_ref[...], preferred_element_type=jnp.float32) + b3_ref[...]
    if relu3:
        h = jnp.maximum(h, 0.0)                                    # (tm, 1024)

    # Mask padded point rows out of the max.
    row = i * tm + jax.lax.broadcasted_iota(jnp.int32, (tm, 1), 0)
    h = jnp.where(row < n_valid, h, -jnp.inf)
    tile_max = jnp.max(h, axis=0, keepdims=True)                   # (1, Cout)
    o_ref[0] = jnp.maximum(o_ref[0], tile_max)


def mlp3_max(x_pad, w1, b1, w2, b2, w3, b3, *, n_valid, tm, relu3, per_batch_w1):
    B, npad, cin = x_pad.shape
    c1, c2, c3 = w1.shape[-1], w2.shape[-1], w3.shape[-1]
    ntiles = npad // tm
    w1_map = (lambda b, i: (b, 0, 0)) if per_batch_w1 else (lambda b, i: (0, 0, 0))
    return pl.pallas_call(
        functools.partial(_mlp3_max_kernel, n_valid=n_valid, tm=tm, relu3=relu3),
        out_shape=jax.ShapeDtypeStruct((B, 1, c3), jnp.float32),
        grid=(B, ntiles),
        in_specs=[
            pl.BlockSpec((1, tm, cin), lambda b, i: (b, i, 0)),
            pl.BlockSpec((1, cin, c1), w1_map),
            pl.BlockSpec((1, c1), lambda b, i: (0, 0)),
            pl.BlockSpec((c1, c2), lambda b, i: (0, 0)),
            pl.BlockSpec((1, c2), lambda b, i: (0, 0)),
            pl.BlockSpec((c2, c3), lambda b, i: (0, 0)),
            pl.BlockSpec((1, c3), lambda b, i: (0, 0)),
        ],
        out_specs=pl.BlockSpec((1, 1, c3), lambda b, i: (b, 0, 0)),
        compiler_params=pltpu.CompilerParams(
            dimension_semantics=("parallel", "arbitrary"),
            vmem_limit_bytes=_VMEM_LIMIT),
    )(x_pad, w1, b1, w2, b2, w3, b3)


# ----------------------------------------------------------------------------
# Kernel 2: fused small FC chain (STN regression head), single block.
# ----------------------------------------------------------------------------
def _fc3_kernel(g_ref, w1_ref, b1_ref, w2_ref, b2_ref, w3_ref, b3_ref, o_ref):
    h = jnp.maximum(
        jnp.dot(g_ref[...], w1_ref[...], preferred_element_type=jnp.float32)
        + b1_ref[...], 0.0)
    h = jnp.maximum(
        jnp.dot(h, w2_ref[...], preferred_element_type=jnp.float32)
        + b2_ref[...], 0.0)
    o_ref[...] = (jnp.dot(h, w3_ref[...], preferred_element_type=jnp.float32)
                  + b3_ref[...])


def fc3(g, w1, b1, w2, b2, w3, b3):
    B, c0 = g.shape
    h1, h2, k = w1.shape[1], w2.shape[1], w3.shape[1]
    return pl.pallas_call(
        _fc3_kernel,
        out_shape=jax.ShapeDtypeStruct((B, k), jnp.float32),
        grid=(1,),
        in_specs=[
            pl.BlockSpec((B, c0), lambda i: (0, 0)),
            pl.BlockSpec((c0, h1), lambda i: (0, 0)),
            pl.BlockSpec((1, h1), lambda i: (0, 0)),
            pl.BlockSpec((h1, h2), lambda i: (0, 0)),
            pl.BlockSpec((1, h2), lambda i: (0, 0)),
            pl.BlockSpec((h2, k), lambda i: (0, 0)),
            pl.BlockSpec((1, k), lambda i: (0, 0)),
        ],
        out_specs=pl.BlockSpec((B, k), lambda i: (0, 0)),
        compiler_params=pltpu.CompilerParams(dimension_semantics=("arbitrary",)),
    )(g, w1, b1, w2, b2, w3, b3)


# ----------------------------------------------------------------------------
# Kernel 3: tiny per-batch linear (global-feature part of seg conv1): g @ Wg + b.
# ----------------------------------------------------------------------------
def _linear_kernel(x_ref, w_ref, b_ref, o_ref):
    o_ref[...] = (jnp.dot(x_ref[...], w_ref[...], preferred_element_type=jnp.float32)
                  + b_ref[...])


def linear_small(x, w, b):
    M, cin = x.shape
    cout = w.shape[1]
    return pl.pallas_call(
        _linear_kernel,
        out_shape=jax.ShapeDtypeStruct((M, cout), jnp.float32),
        grid=(1,),
        in_specs=[
            pl.BlockSpec((M, cin), lambda i: (0, 0)),
            pl.BlockSpec((cin, cout), lambda i: (0, 0)),
            pl.BlockSpec((1, cout), lambda i: (0, 0)),
        ],
        out_specs=pl.BlockSpec((M, cout), lambda i: (0, 0)),
        compiler_params=pltpu.CompilerParams(dimension_semantics=("arbitrary",)),
    )(x, w, b)


# ----------------------------------------------------------------------------
# Kernel 4: fused segmentation head.
#   pointfeat = relu(x @ W1fold_b + b1)             (recomputed, never stored)
#   a1 = relu(pointfeat @ Wseg1_pf + gW_b)          (gW_b = g_b @ Wseg1_g + b_seg1)
#   a2 = relu(a1 @ W2 + b2); a3 = relu(a2 @ W3 + b3)
#   logits = a3 @ W4_pad + b4_pad;  out = log_softmax over first num_class lanes
# ----------------------------------------------------------------------------
def _seg_head_kernel(x_ref, w1_ref, b1_ref, gw_ref, wpf_ref, w2_ref, b2_ref,
                     w3_ref, b3_ref, w4_ref, b4_ref, o_ref, *, num_class):
    x = x_ref[0]                                                   # (tm, 8)
    pf = jnp.maximum(
        jnp.dot(x, w1_ref[0], preferred_element_type=jnp.float32) + b1_ref[...],
        0.0)                                                       # (tm, 64)
    h = jnp.maximum(
        jnp.dot(pf, wpf_ref[...], preferred_element_type=jnp.float32) + gw_ref[0],
        0.0)                                                       # (tm, 512)
    h = jnp.maximum(
        jnp.dot(h, w2_ref[...], preferred_element_type=jnp.float32) + b2_ref[...],
        0.0)                                                       # (tm, 256)
    h = jnp.maximum(
        jnp.dot(h, w3_ref[...], preferred_element_type=jnp.float32) + b3_ref[...],
        0.0)                                                       # (tm, 128)
    logits = (jnp.dot(h, w4_ref[...], preferred_element_type=jnp.float32)
              + b4_ref[...])                                       # (tm, Kpad)

    # Masked (lane-dense) log_softmax over the first num_class lanes.
    lane = jax.lax.broadcasted_iota(jnp.int32, logits.shape, 1)
    valid = lane < num_class
    m = jnp.max(jnp.where(valid, logits, -jnp.inf), axis=-1, keepdims=True)
    s = logits - m
    lse = jnp.log(jnp.sum(jnp.where(valid, jnp.exp(s), 0.0), axis=-1, keepdims=True))
    o_ref[0] = jnp.where(valid, s - lse, 0.0)


def seg_head(x_pad, w1, b1, gw, wpf, w2, b2, w3, b3, w4, b4, *, num_class, tm):
    B, npad, cin = x_pad.shape
    c1 = w1.shape[-1]
    d1, d2, d3 = wpf.shape[-1], w2.shape[-1], w3.shape[-1]
    kpad = w4.shape[-1]
    ntiles = npad // tm
    return pl.pallas_call(
        functools.partial(_seg_head_kernel, num_class=num_class),
        out_shape=jax.ShapeDtypeStruct((B, npad, kpad), jnp.float32),
        grid=(B, ntiles),
        in_specs=[
            pl.BlockSpec((1, tm, cin), lambda b, i: (b, i, 0)),
            pl.BlockSpec((1, cin, c1), lambda b, i: (b, 0, 0)),
            pl.BlockSpec((1, c1), lambda b, i: (0, 0)),
            pl.BlockSpec((1, 1, d1), lambda b, i: (b, 0, 0)),
            pl.BlockSpec((c1, d1), lambda b, i: (0, 0)),
            pl.BlockSpec((d1, d2), lambda b, i: (0, 0)),
            pl.BlockSpec((1, d2), lambda b, i: (0, 0)),
            pl.BlockSpec((d2, d3), lambda b, i: (0, 0)),
            pl.BlockSpec((1, d3), lambda b, i: (0, 0)),
            pl.BlockSpec((d3, kpad), lambda b, i: (0, 0)),
            pl.BlockSpec((1, kpad), lambda b, i: (0, 0)),
        ],
        out_specs=pl.BlockSpec((1, tm, kpad), lambda b, i: (b, i, 0)),
        compiler_params=pltpu.CompilerParams(
            dimension_semantics=("parallel", "parallel"),
            vmem_limit_bytes=_VMEM_LIMIT),
    )(x_pad, w1, b1, gw, wpf, w2, b2, w3, b3, w4, b4)


# ----------------------------------------------------------------------------
# Deterministic parameter construction (Conv1d(k=1)/Linear + eval-BN folded)
# ----------------------------------------------------------------------------
def _affine_layer(key, cin, cout, with_bn=True):
    ks = jax.random.split(key, 6)
    w = jax.random.normal(ks[0], (cin, cout), jnp.float32) / jnp.sqrt(cin)
    b = 0.01 * jax.random.normal(ks[1], (cout,), jnp.float32)
    if with_bn:
        gamma = 1.0 + 0.1 * jax.random.normal(ks[2], (cout,), jnp.float32)
        beta = 0.1 * jax.random.normal(ks[3], (cout,), jnp.float32)
        mean = 0.1 * jax.random.normal(ks[4], (cout,), jnp.float32)
        var = 1.0 + 0.1 * jax.random.uniform(ks[5], (cout,), jnp.float32)
        scale = gamma * jax.lax.rsqrt(var + 1e-5)
        w = w * scale[None, :]
        b = (b - mean) * scale + beta
    return w, b.reshape(1, cout)


def init_params(key, num_class):
    layers = [
        # STN3d
        ("stn_c1", 3, 64, True), ("stn_c2", 64, 128, True), ("stn_c3", 128, 1024, True),
        ("stn_f1", 1024, 512, True), ("stn_f2", 512, 256, True), ("stn_f3", 256, 9, False),
        # PointNetEncoder
        ("enc_c1", 3, 64, True), ("enc_c2", 64, 128, True), ("enc_c3", 128, 1024, True),
        # Segmentation head
        ("seg_c1", 1088, 512, True), ("seg_c2", 512, 256, True),
        ("seg_c3", 256, 128, True), ("seg_c4", 128, num_class, False),
    ]
    keys = jax.random.split(key, len(layers))
    return {name: _affine_layer(k, ci, co, bn)
            for (name, ci, co, bn), k in zip(layers, keys)}


def prepare_params(p, num_class):
    """One-time padding / splitting / identity-fold so kernels get lane-dense,
    sublane-aligned operands (no per-call jnp.pad on activations/weights)."""
    q = {}
    # STN conv chain: Cin 3 -> 8 (zero rows), shared weight gets a leading axis.
    w, b = p["stn_c1"]
    q["stn_c1_w"] = jnp.pad(w, ((0, 5), (0, 0)))[None]        # (1, 8, 64)
    q["stn_c1_b"] = b
    q["stn_c2"], q["stn_c3"] = p["stn_c2"], p["stn_c3"]
    q["stn_f1"], q["stn_f2"] = p["stn_f1"], p["stn_f2"]
    # STN fc3: pad Cout 9 -> 128 (lane-dense) and fold the 3x3 identity into bias.
    w3, b3 = p["stn_f3"]
    iden = jnp.eye(3, dtype=jnp.float32).reshape(1, 9)
    q["stn_f3"] = (jnp.pad(w3, ((0, 0), (0, 128 - 9))),
                   jnp.pad(b3 + iden, ((0, 0), (0, 128 - 9))))
    # Encoder: keep the raw (3, 64) conv1 weight for the per-batch transform fold.
    q["enc_c1_w_raw"], q["enc_c1_b"] = p["enc_c1"]
    q["enc_c2"], q["enc_c3"] = p["enc_c2"], p["enc_c3"]
    # Seg conv1 split: rows [0:1024] multiply the global feature, [1024:1088] pointfeat.
    w1, b1 = p["seg_c1"]
    q["seg_c1_g"] = (w1[:1024], b1)
    q["seg_c1_pf"] = w1[1024:]
    q["seg_c2"], q["seg_c3"] = p["seg_c2"], p["seg_c3"]
    # Seg conv4: pad num_class -> multiple of 128 lanes (zero weight/bias columns).
    w4, b4 = p["seg_c4"]
    kpad = _round_up(max(num_class, 1), 128) - num_class
    q["seg_c4"] = (jnp.pad(w4, ((0, 0), (0, kpad))),
                   jnp.pad(b4, ((0, 0), (0, kpad))))
    return q


# ----------------------------------------------------------------------------
# Forward pass (glue in plain JAX, all heavy compute in the fused Pallas kernels)
# ----------------------------------------------------------------------------
def pointnet_seg_forward(x_bcn, q, *, num_class):
    B, _, N = x_bcn.shape
    tm, npad = _choose_tile(N)

    # (B, 3, N) -> channels-last, pad Cin 3->8 and points N->npad once.
    x = jnp.transpose(x_bcn, (0, 2, 1))                           # (B, N, 3)
    x = jnp.pad(x, ((0, 0), (0, npad - N), (0, 5)))               # (B, npad, 8)

    # ---- STN3d: fused conv chain + fused global max, then fused FC head ----
    g_stn = mlp3_max(x, q["stn_c1_w"], q["stn_c1_b"], *q["stn_c2"], *q["stn_c3"],
                     n_valid=N, tm=tm, relu3=True, per_batch_w1=False)
    g_stn = g_stn.reshape(B, 1024)
    t = fc3(g_stn, *q["stn_f1"], *q["stn_f2"], *q["stn_f3"])      # (B, 128), iden folded
    trans = t[:, :9].reshape(B, 3, 3)

    # ---- Encoder: fold the per-batch 3x3 transform into conv1's weight ----
    # x @ trans @ W1 == x @ (trans @ W1)  (exact; replaces the bmm kernel).
    w1f = jnp.einsum("bij,jk->bik", trans, q["enc_c1_w_raw"])     # (B, 3, 64)
    w1f = jnp.pad(w1f, ((0, 0), (0, 5), (0, 0)))                  # (B, 8, 64)
    g = mlp3_max(x, w1f, q["enc_c1_b"], *q["enc_c2"], *q["enc_c3"],
                 n_valid=N, tm=tm, relu3=False, per_batch_w1=True)
    g = g.reshape(B, 1024)                                        # global feature

    # ---- Seg head: precompute the global-feature part of seg conv1 ----
    gw = linear_small(g, *q["seg_c1_g"]).reshape(B, 1, 512)       # g @ Wg + b_seg1

    out_pad = seg_head(x, w1f, q["enc_c1_b"], gw, q["seg_c1_pf"],
                       *q["seg_c2"], *q["seg_c3"], *q["seg_c4"],
                       num_class=num_class, tm=tm)                # (B, npad, Kpad)
    out = out_pad[:, :N, :num_class]
    # feature_transform=False -> trans_feat is None (matches reference).
    return out, None


if __name__ == "__main__":
    num_class = 4
    B, N = 2, 16
    key = jax.random.PRNGKey(0)
    kp, kx = jax.random.split(key)
    raw_params = init_params(kp, num_class)
    params = prepare_params(raw_params, num_class)
    x = jax.random.normal(kx, (B, 3, N), jnp.float32)   # (B, C=3, n_pts) like PyTorch

    fwd = jax.jit(functools.partial(pointnet_seg_forward, num_class=num_class))
    out, trans_feat = fwd(x, params)
    out = jax.block_until_ready(out)

    assert out.shape == (B, N, num_class)
    assert trans_feat is None
    # log_softmax rows must exponentiate-sum to ~1
    assert bool(jnp.allclose(jnp.sum(jnp.exp(out), axis=-1), 1.0, atol=1e-4))
    print("KERNEL_OK")
</pallas_src>

<mosaic_0001>
module attributes {stable_mosaic.version = 11 : i64} {
  func.func @_mlp3_max_kernel(%arg0: i32, %arg1: i32, %arg2: memref<1x16x8xf32, #tpu.memory_space<vmem>>, %arg3: memref<1x8x64xf32, #tpu.memory_space<vmem>>, %arg4: memref<1x64xf32, #tpu.memory_space<vmem>>, %arg5: memref<64x128xf32, #tpu.memory_space<vmem>>, %arg6: memref<1x128xf32, #tpu.memory_space<vmem>>, %arg7: memref<128x1024xf32, #tpu.memory_space<vmem>>, %arg8: memref<1x1024xf32, #tpu.memory_space<vmem>>, %arg9: memref<1x1x1024xf32, #tpu.memory_space<vmem>>) attributes {dimension_semantics = [#tpu.dimension_semantics<parallel>, #tpu.dimension_semantics<arbitrary>], iteration_bounds = array<i64: 2, 1>, scalar_prefetch = 0 : i64, scratch_operands = 0 : i64, tpu.core_type = #tpu.core_type<tc>, window_params = [{transform_indices = @transform_0, window_bounds = array<i64: 1, 16, 8>}, {pipeline_mode = #tpu.pipeline_mode<synchronous>, transform_indices = @transform_1, window_bounds = array<i64: 1, 8, 64>}, {pipeline_mode = #tpu.pipeline_mode<synchronous>, transform_indices = @transform_2, window_bounds = array<i64: 1, 64>}, {pipeline_mode = #tpu.pipeline_mode<synchronous>, transform_indices = @transform_3, window_bounds = array<i64: 64, 128>}, {pipeline_mode = #tpu.pipeline_mode<synchronous>, transform_indices = @transform_4, window_bounds = array<i64: 1, 128>}, {pipeline_mode = #tpu.pipeline_mode<synchronous>, transform_indices = @transform_5, window_bounds = array<i64: 128, 1024>}, {pipeline_mode = #tpu.pipeline_mode<synchronous>, transform_indices = @transform_6, window_bounds = array<i64: 1, 1024>}, {transform_indices = @transform_7, window_bounds = array<i64: 1, 1, 1024>}]} {
    %c0_i32 = arith.constant 0 : i32
    %0 = arith.cmpi eq, %arg1, %c0_i32 : i32
    %1 = arith.extui %0 : i1 to i32
    %c0_i32_0 = arith.constant 0 : i32
    %2 = arith.cmpi ne, %1, %c0_i32_0 : i32
    scf.if %2 {
      %cst_30 = arith.constant 0xFF800000 : f32
      %45 = vector.broadcast %cst_30 : f32 to vector<1x1x1024xf32>
      %c0_31 = arith.constant 0 : index
      %c0_32 = arith.constant 0 : index
      %c0_33 = arith.constant 0 : index
      %46 = vector.load %arg9[%c0_31, %c0_32, %c0_33] : memref<1x1x1024xf32, #tpu.memory_space<vmem>>, vector<1x1x1024xf32>
      tpu.vector_store %arg9[%c0_31, %c0_32, %c0_33], %45 {strides = array<i32>} : memref<1x1x1024xf32, #tpu.memory_space<vmem>>, vector<1x1x1024xf32>,
    } else {
    }
    %c0 = arith.constant 0 : index
    %c0_1 = arith.constant 0 : index
    %c0_2 = arith.constant 0 : index
    %3 = vector.load %arg2[%c0, %c0_1, %c0_2] : memref<1x16x8xf32, #tpu.memory_space<vmem>>, vector<1x16x8xf32>
    %4 = vector.shape_cast %3 : vector<1x16x8xf32> to vector<16x8xf32>
    %c0_3 = arith.constant 0 : index
    %c0_4 = arith.constant 0 : index
    %c0_5 = arith.constant 0 : index
    %5 = vector.load %arg3[%c0_3, %c0_4, %c0_5] : memref<1x8x64xf32, #tpu.memory_space<vmem>>, vector<1x8x64xf32>
    %6 = vector.shape_cast %5 : vector<1x8x64xf32> to vector<8x64xf32>
    %cst = arith.constant dense<0.000000e+00> : vector<16x64xf32>
    %7 = tpu.matmul %4, %6, %cst {dimension_numbers = #tpu.dot_dimension_numbers<[1], [0], [0], [1], [0, 0, 1, 1], [], []>} : vector<16x8xf32>, vector<8x64xf32>, vector<16x64xf32> -> vector<16x64xf32>
    %c0_6 = arith.constant 0 : index
    %c0_7 = arith.constant 0 : index
    %8 = vector.load %arg4[%c0_6, %c0_7] : memref<1x64xf32, #tpu.memory_space<vmem>>, vector<1x64xf32>
    %9 = vector.broadcast %8 : vector<1x64xf32> to vector<16x64xf32>
    %10 = arith.addf %7, %9 : vector<16x64xf32>
    %cst_8 = arith.constant 0.000000e+00 : f32
    %11 = vector.broadcast %cst_8 : f32 to vector<16x64xf32>
    %12 = arith.maximumf %10, %11 : vector<16x64xf32>
    %c0_9 = arith.constant 0 : index
    %c0_10 = arith.constant 0 : index
    %13 = vector.load %arg5[%c0_9, %c0_10] : memref<64x128xf32, #tpu.memory_space<vmem>>, vector<64x128xf32>
    %cst_11 = arith.constant dense<0.000000e+00> : vector<16x128xf32>
    %14 = tpu.matmul %12, %13, %cst_11 {dimension_numbers = #tpu.dot_dimension_numbers<[1], [0], [0], [1], [0, 0, 1, 1], [], []>} : vector<16x64xf32>, vector<64x128xf32>, vector<16x128xf32> -> vector<16x128xf32>
    %c0_12 = arith.constant 0 : index
    %c0_13 = arith.constant 0 : index
    %15 = vector.load %arg6[%c0_12, %c0_13] : memref<1x128xf32, #tpu.memory_space<vmem>>, vector<1x128xf32>
    %16 = vector.broadcast %15 : vector<1x128xf32> to vector<16x128xf32>
    %17 = arith.addf %14, %16 : vector<16x128xf32>
    %cst_14 = arith.constant 0.000000e+00 : f32
    %18 = vector.broadcast %cst_14 : f32 to vector<16x128xf32>
    %19 = arith.maximumf %17, %18 : vector<16x128xf32>
    %c0_15 = arith.constant 0 : index
    %c0_16 = arith.constant 0 : index
    %20 = vector.load %arg7[%c0_15, %c0_16] : memref<128x1024xf32, #tpu.memory_space<vmem>>, vector<128x1024xf32>
    %cst_17 = arith.constant dense<0.000000e+00> : vector<16x1024xf32>
    %21 = tpu.matmul %19, %20, %cst_17 {dimension_numbers = #tpu.dot_dimension_numbers<[1], [0], [0], [1], [0, 0, 1, 1], [], []>} : vector<16x128xf32>, vector<128x1024xf32>, vector<16x1024xf32> -> vector<16x1024xf32>
    %c0_18 = arith.constant 0 : index
    %c0_19 = arith.constant 0 : index
    %22 = vector.load %arg8[%c0_18, %c0_19] : memref<1x1024xf32, #tpu.memory_space<vmem>>, vector<1x1024xf32>
    %23 = vector.broadcast %22 : vector<1x1024xf32> to vector<16x1024xf32>
    %24 = arith.addf %21, %23 : vector<16x1024xf32>
    %cst_20 = arith.constant 0.000000e+00 : f32
    %25 = vector.broadcast %cst_20 : f32 to vector<16x1024xf32>
    %26 = arith.maximumf %24, %25 : vector<16x1024xf32>
    %c16_i32 = arith.constant 16 : i32
    %27 = arith.muli %arg1, %c16_i32 : i32
    %28 = tpu.iota {dimensions = array<i32: 0>} : vector<16x1xi32>
    %29 = vector.broadcast %27 : i32 to vector<16x1xi32>
    %30 = arith.addi %29, %28 : vector<16x1xi32>
    %c16_i32_21 = arith.constant 16 : i32
    %31 = vector.broadcast %c16_i32_21 : i32 to vector<16x1xi32>
    %32 = arith.cmpi slt, %30, %31 : vector<16x1xi32>
    %cst_22 = arith.constant 0xFF800000 : f32
    %33 = vector.shape_cast %32 : vector<16x1xi1> to vector<16x1xi1>
    %34 = vector.broadcast %33 : vector<16x1xi1> to vector<16x1024xi1>
    %35 = vector.broadcast %cst_22 : f32 to vector<16x1024xf32>
    %36 = arith.select %34, %26, %35 : vector<16x1024xi1>, vector<16x1024xf32>
    %cst_23 = arith.constant dense<0xFF800000> : vector<1024xf32>
    %37 = vector.multi_reduction <maximumf>, %36, %cst_23 [0] : vector<16x1024xf32> to vector<1024xf32>
    %38 = vector.shape_cast %37 : vector<1024xf32> to vector<1x1024xf32>
    %c0_24 = arith.constant 0 : index
    %c0_25 = arith.constant 0 : index
    %c0_26 = arith.constant 0 : index
    %39 = vector.load %arg9[%c0_24, %c0_25, %c0_26] : memref<1x1x1024xf32, #tpu.memory_space<vmem>>, vector<1x1x1024xf32>
    %40 = vector.shape_cast %39 : vector<1x1x1024xf32> to vector<1x1024xf32>
    %41 = arith.maximumf %40, %38 : vector<1x1024xf32>
    %c0_27 = arith.constant 0 : index
    %c0_28 = arith.constant 0 : index
    %c0_29 = arith.constant 0 : index
    %42 = vector.load %arg9[%c0_27, %c0_28, %c0_29] : memref<1x1x1024xf32, #tpu.memory_space<vmem>>, vector<1x1x1024xf32>
    %43 = vector.shape_cast %42 : vector<1x1x1024xf32> to vector<1x1024xf32>
    %44 = vector.shape_cast %41 : vector<1x1024xf32> to vector<1x1x1024xf32>
    tpu.vector_store %arg9[%c0_27, %c0_28, %c0_29], %44 {strides = array<i32>} : memref<1x1x1024xf32, #tpu.memory_space<vmem>>, vector<1x1x1024xf32>,
    return
  }
  func.func @transform_0(%arg0: i32, %arg1: i32) -> (i32, i32, i32) {
    %c0_i32 = arith.constant 0 : i32
    %c0_i32_0 = arith.constant 0 : i32
    return %arg0, %arg1, %c0_i32 : i32, i32, i32
  }
  func.func @transform_1(%arg0: i32, %arg1: i32) -> (i32, i32, i32) {
    %c0_i32 = arith.constant 0 : i32
    %c0_i32_0 = arith.constant 0 : i32
    %c0_i32_1 = arith.constant 0 : i32
    %c0_i32_2 = arith.constant 0 : i32
    return %c0_i32, %c0_i32_0, %c0_i32_1 : i32, i32, i32
  }
  func.func @transform_2(%arg0: i32, %arg1: i32) -> (i32, i32) {
    %c0_i32 = arith.constant 0 : i32
    %c0_i32_0 = arith.constant 0 : i32
    %c0_i32_1 = arith.constant 0 : i32
    return %c0_i32, %c0_i32_0 : i32, i32
  }
  func.func @transform_3(%arg0: i32, %arg1: i32) -> (i32, i32) {
    %c0_i32 = arith.constant 0 : i32
    %c0_i32_0 = arith.constant 0 : i32
    %c0_i32_1 = arith.constant 0 : i32
    return %c0_i32, %c0_i32_0 : i32, i32
  }
  func.func @transform_4(%arg0: i32, %arg1: i32) -> (i32, i32) {
    %c0_i32 = arith.constant 0 : i32
    %c0_i32_0 = arith.constant 0 : i32
    %c0_i32_1 = arith.constant 0 : i32
    return %c0_i32, %c0_i32_0 : i32, i32
  }
  func.func @transform_5(%arg0: i32, %arg1: i32) -> (i32, i32) {
    %c0_i32 = arith.constant 0 : i32
    %c0_i32_0 = arith.constant 0 : i32
    %c0_i32_1 = arith.constant 0 : i32
    return %c0_i32, %c0_i32_0 : i32, i32
  }
  func.func @transform_6(%arg0: i32, %arg1: i32) -> (i32, i32) {
    %c0_i32 = arith.constant 0 : i32
    %c0_i32_0 = arith.constant 0 : i32
    %c0_i32_1 = arith.constant 0 : i32
    return %c0_i32, %c0_i32_0 : i32, i32
  }
  func.func @transform_7(%arg0: i32, %arg1: i32) -> (i32, i32, i32) {
    %c0_i32 = arith.constant 0 : i32
    %c0_i32_0 = arith.constant 0 : i32
    %c0_i32_1 = arith.constant 0 : i32
    return %arg0, %c0_i32, %c0_i32_0 : i32, i32, i32
  }
}

module attributes {stable_mosaic.version = 11 : i64} {
  func.func @_fc3_kernel(%arg0: i32, %arg1: memref<2x1024xf32, #tpu.memory_space<vmem>>, %arg2: memref<1024x512xf32, #tpu.memory_space<vmem>>, %arg3: memref<1x512xf32, #tpu.memory_space<vmem>>, %arg4: memref<512x256xf32, #tpu.memory_space<vmem>>, %arg5: memref<1x256xf32, #tpu.memory_space<vmem>>, %arg6: memref<256x128xf32, #tpu.memory_space<vmem>>, %arg7: memref<1x128xf32, #tpu.memory_space<vmem>>, %arg8: memref<2x128xf32, #tpu.memory_space<vmem>>) attributes {dimension_semantics = [#tpu.dimension_semantics<arbitrary>], iteration_bounds = array<i64: 1>, scalar_prefetch = 0 : i64, scratch_operands = 0 : i64, tpu.core_type = #tpu.core_type<tc>, window_params = [{pipeline_mode = #tpu.pipeline_mode<synchronous>, transform_indices = @transform_0, window_bounds = array<i64: 2, 1024>}, {pipeline_mode = #tpu.pipeline_mode<synchronous>, transform_indices = @transform_1, window_bounds = array<i64: 1024, 512>}, {pipeline_mode = #tpu.pipeline_mode<synchronous>, transform_indices = @transform_2, window_bounds = array<i64: 1, 512>}, {pipeline_mode = #tpu.pipeline_mode<synchronous>, transform_indices = @transform_3, window_bounds = array<i64: 512, 256>}, {pipeline_mode = #tpu.pipeline_mode<synchronous>, transform_indices = @transform_4, window_bounds = array<i64: 1, 256>}, {pipeline_mode = #tpu.pipeline_mode<synchronous>, transform_indices = @transform_5, window_bounds = array<i64: 256, 128>}, {pipeline_mode = #tpu.pipeline_mode<synchronous>, transform_indices = @transform_6, window_bounds = array<i64: 1, 128>}, {pipeline_mode = #tpu.pipeline_mode<synchronous>, transform_indices = @transform_7, window_bounds = array<i64: 2, 128>}]} {
    %c0 = arith.constant 0 : index
    %c0_0 = arith.constant 0 : index
    %0 = vector.load %arg1[%c0, %c0_0] : memref<2x1024xf32, #tpu.memory_space<vmem>>, vector<2x1024xf32>
    %c0_1 = arith.constant 0 : index
    %c0_2 = arith.constant 0 : index
    %1 = vector.load %arg2[%c0_1, %c0_2] : memref<1024x512xf32, #tpu.memory_space<vmem>>, vector<1024x512xf32>
    %cst = arith.constant dense<0.000000e+00> : vector<2x512xf32>
    %2 = tpu.matmul %0, %1, %cst {dimension_numbers = #tpu.dot_dimension_numbers<[1], [0], [0], [1], [0, 0, 1, 1], [], []>} : vector<2x1024xf32>, vector<1024x512xf32>, vector<2x512xf32> -> vector<2x512xf32>
    %c0_3 = arith.constant 0 : index
    %c0_4 = arith.constant 0 : index
    %3 = vector.load %arg3[%c0_3, %c0_4] : memref<1x512xf32, #tpu.memory_space<vmem>>, vector<1x512xf32>
    %4 = vector.broadcast %3 : vector<1x512xf32> to vector<2x512xf32>
    %5 = arith.addf %2, %4 : vector<2x512xf32>
    %cst_5 = arith.constant 0.000000e+00 : f32
    %6 = vector.broadcast %cst_5 : f32 to vector<2x512xf32>
    %7 = arith.maximumf %5, %6 : vector<2x512xf32>
    %c0_6 = arith.constant 0 : index
    %c0_7 = arith.constant 0 : index
    %8 = vector.load %arg4[%c0_6, %c0_7] : memref<512x256xf32, #tpu.memory_space<vmem>>, vector<512x256xf32>
    %cst_8 = arith.constant dense<0.000000e+00> : vector<2x256xf32>
    %9 = tpu.matmul %7, %8, %cst_8 {dimension_numbers = #tpu.dot_dimension_numbers<[1], [0], [0], [1], [0, 0, 1, 1], [], []>} : vector<2x512xf32>, vector<512x256xf32>, vector<2x256xf32> -> vector<2x256xf32>
    %c0_9 = arith.constant 0 : index
    %c0_10 = arith.constant 0 : index
    %10 = vector.load %arg5[%c0_9, %c0_10] : memref<1x256xf32, #tpu.memory_space<vmem>>, vector<1x256xf32>
    %11 = vector.broadcast %10 : vector<1x256xf32> to vector<2x256xf32>
    %12 = arith.addf %9, %11 : vector<2x256xf32>
    %cst_11 = arith.constant 0.000000e+00 : f32
    %13 = vector.broadcast %cst_11 : f32 to vector<2x256xf32>
    %14 = arith.maximumf %12, %13 : vector<2x256xf32>
    %c0_12 = arith.constant 0 : index
    %c0_13 = arith.constant 0 : index
    %15 = vector.load %arg6[%c0_12, %c0_13] : memref<256x128xf32, #tpu.memory_space<vmem>>, vector<256x128xf32>
    %cst_14 = arith.constant dense<0.000000e+00> : vector<2x128xf32>
    %16 = tpu.matmul %14, %15, %cst_14 {dimension_numbers = #tpu.dot_dimension_numbers<[1], [0], [0], [1], [0, 0, 1, 1], [], []>} : vector<2x256xf32>, vector<256x128xf32>, vector<2x128xf32> -> vector<2x128xf32>
    %c0_15 = arith.constant 0 : index
    %c0_16 = arith.constant 0 : index
    %17 = vector.load %arg7[%c0_15, %c0_16] : memref<1x128xf32, #tpu.memory_space<vmem>>, vector<1x128xf32>
    %18 = vector.broadcast %17 : vector<1x128xf32> to vector<2x128xf32>
    %19 = arith.addf %16, %18 : vector<2x128xf32>
    %c0_17 = arith.constant 0 : index
    %c0_18 = arith.constant 0 : index
    %20 = vector.load %arg8[%c0_17, %c0_18] : memref<2x128xf32, #tpu.memory_space<vmem>>, vector<2x128xf32>
    tpu.vector_store %arg8[%c0_17, %c0_18], %19 {strides = array<i32>} : memref<2x128xf32, #tpu.memory_space<vmem>>, vector<2x128xf32>,
    return
  }
  func.func @transform_0(%arg0: i32) -> (i32, i32) {
    %c0_i32 = arith.constant 0 : i32
    %c0_i32_0 = arith.constant 0 : i32
    %c0_i32_1 = arith.constant 0 : i32
    return %c0_i32, %c0_i32_0 : i32, i32
  }
  func.func @transform_1(%arg0: i32) -> (i32, i32) {
    %c0_i32 = arith.constant 0 : i32
    %c0_i32_0 = arith.constant 0 : i32
    %c0_i32_1 = arith.constant 0 : i32
    return %c0_i32, %c0_i32_0 : i32, i32
  }
  func.func @transform_2(%arg0: i32) -> (i32, i32) {
    %c0_i32 = arith.constant 0 : i32
    %c0_i32_0 = arith.constant 0 : i32
    %c0_i32_1 = arith.constant 0 : i32
    return %c0_i32, %c0_i32_0 : i32, i32
  }
  func.func @transform_3(%arg0: i32) -> (i32, i32) {
    %c0_i32 = arith.constant 0 : i32
    %c0_i32_0 = arith.constant 0 : i32
    %c0_i32_1 = arith.constant 0 : i32
    return %c0_i32, %c0_i32_0 : i32, i32
  }
  func.func @transform_4(%arg0: i32) -> (i32, i32) {
    %c0_i32 = arith.constant 0 : i32
    %c0_i32_0 = arith.constant 0 : i32
    %c0_i32_1 = arith.constant 0 : i32
    return %c0_i32, %c0_i32_0 : i32, i32
  }
  func.func @transform_5(%arg0: i32) -> (i32, i32) {
    %c0_i32 = arith.constant 0 : i32
    %c0_i32_0 = arith.constant 0 : i32
    %c0_i32_1 = arith.constant 0 : i32
    return %c0_i32, %c0_i32_0 : i32, i32
  }
  func.func @transform_6(%arg0: i32) -> (i32, i32) {
    %c0_i32 = arith.constant 0 : i32
    %c0_i32_0 = arith.constant 0 : i32
    %c0_i32_1 = arith.constant 0 : i32
    return %c0_i32, %c0_i32_0 : i32, i32
  }
  func.func @transform_7(%arg0: i32) -> (i32, i32) {
    %c0_i32 = arith.constant 0 : i32
    %c0_i32_0 = arith.constant 0 : i32
    %c0_i32_1 = arith.constant 0 : i32
    return %c0_i32, %c0_i32_0 : i32, i32
  }
}

module attributes {stable_mosaic.version = 11 : i64} {
  func.func @_mlp3_max_kernel(%arg0: i32, %arg1: i32, %arg2: memref<1x16x8xf32, #tpu.memory_space<vmem>>, %arg3: memref<1x8x64xf32, #tpu.memory_space<vmem>>, %arg4: memref<1x64xf32, #tpu.memory_space<vmem>>, %arg5: memref<64x128xf32, #tpu.memory_space<vmem>>, %arg6: memref<1x128xf32, #tpu.memory_space<vmem>>, %arg7: memref<128x1024xf32, #tpu.memory_space<vmem>>, %arg8: memref<1x1024xf32, #tpu.memory_space<vmem>>, %arg9: memref<1x1x1024xf32, #tpu.memory_space<vmem>>) attributes {dimension_semantics = [#tpu.dimension_semantics<parallel>, #tpu.dimension_semantics<arbitrary>], iteration_bounds = array<i64: 2, 1>, scalar_prefetch = 0 : i64, scratch_operands = 0 : i64, tpu.core_type = #tpu.core_type<tc>, window_params = [{transform_indices = @transform_0, window_bounds = array<i64: 1, 16, 8>}, {transform_indices = @transform_1, window_bounds = array<i64: 1, 8, 64>}, {pipeline_mode = #tpu.pipeline_mode<synchronous>, transform_indices = @transform_2, window_bounds = array<i64: 1, 64>}, {pipeline_mode = #tpu.pipeline_mode<synchronous>, transform_indices = @transform_3, window_bounds = array<i64: 64, 128>}, {pipeline_mode = #tpu.pipeline_mode<synchronous>, transform_indices = @transform_4, window_bounds = array<i64: 1, 128>}, {pipeline_mode = #tpu.pipeline_mode<synchronous>, transform_indices = @transform_5, window_bounds = array<i64: 128, 1024>}, {pipeline_mode = #tpu.pipeline_mode<synchronous>, transform_indices = @transform_6, window_bounds = array<i64: 1, 1024>}, {transform_indices = @transform_7, window_bounds = array<i64: 1, 1, 1024>}]} {
    %c0_i32 = arith.constant 0 : i32
    %0 = arith.cmpi eq, %arg1, %c0_i32 : i32
    %1 = arith.extui %0 : i1 to i32
    %c0_i32_0 = arith.constant 0 : i32
    %2 = arith.cmpi ne, %1, %c0_i32_0 : i32
    scf.if %2 {
      %cst_29 = arith.constant 0xFF800000 : f32
      %43 = vector.broadcast %cst_29 : f32 to vector<1x1x1024xf32>
      %c0_30 = arith.constant 0 : index
      %c0_31 = arith.constant 0 : index
      %c0_32 = arith.constant 0 : index
      %44 = vector.load %arg9[%c0_30, %c0_31, %c0_32] : memref<1x1x1024xf32, #tpu.memory_space<vmem>>, vector<1x1x1024xf32>
      tpu.vector_store %arg9[%c0_30, %c0_31, %c0_32], %43 {strides = array<i32>} : memref<1x1x1024xf32, #tpu.memory_space<vmem>>, vector<1x1x1024xf32>,
    } else {
    }
    %c0 = arith.constant 0 : index
    %c0_1 = arith.constant 0 : index
    %c0_2 = arith.constant 0 : index
    %3 = vector.load %arg2[%c0, %c0_1, %c0_2] : memref<1x16x8xf32, #tpu.memory_space<vmem>>, vector<1x16x8xf32>
    %4 = vector.shape_cast %3 : vector<1x16x8xf32> to vector<16x8xf32>
    %c0_3 = arith.constant 0 : index
    %c0_4 = arith.constant 0 : index
    %c0_5 = arith.constant 0 : index
    %5 = vector.load %arg3[%c0_3, %c0_4, %c0_5] : memref<1x8x64xf32, #tpu.memory_space<vmem>>, vector<1x8x64xf32>
    %6 = vector.shape_cast %5 : vector<1x8x64xf32> to vector<8x64xf32>
    %cst = arith.constant dense<0.000000e+00> : vector<16x64xf32>
    %7 = tpu.matmul %4, %6, %cst {dimension_numbers = #tpu.dot_dimension_numbers<[1], [0], [0], [1], [0, 0, 1, 1], [], []>} : vector<16x8xf32>, vector<8x64xf32>, vector<16x64xf32> -> vector<16x64xf32>
    %c0_6 = arith.constant 0 : index
    %c0_7 = arith.constant 0 : index
    %8 = vector.load %arg4[%c0_6, %c0_7] : memref<1x64xf32, #tpu.memory_space<vmem>>, vector<1x64xf32>
    %9 = vector.broadcast %8 : vector<1x64xf32> to vector<16x64xf32>
    %10 = arith.addf %7, %9 : vector<16x64xf32>
    %cst_8 = arith.constant 0.000000e+00 : f32
    %11 = vector.broadcast %cst_8 : f32 to vector<16x64xf32>
    %12 = arith.maximumf %10, %11 : vector<16x64xf32>
    %c0_9 = arith.constant 0 : index
    %c0_10 = arith.constant 0 : index
    %13 = vector.load %arg5[%c0_9, %c0_10] : memref<64x128xf32, #tpu.memory_space<vmem>>, vector<64x128xf32>
    %cst_11 = arith.constant dense<0.000000e+00> : vector<16x128xf32>
    %14 = tpu.matmul %12, %13, %cst_11 {dimension_numbers = #tpu.dot_dimension_numbers<[1], [0], [0], [1], [0, 0, 1, 1], [], []>} : vector<16x64xf32>, vector<64x128xf32>, vector<16x128xf32> -> vector<16x128xf32>
    %c0_12 = arith.constant 0 : index
    %c0_13 = arith.constant 0 : index
    %15 = vector.load %arg6[%c0_12, %c0_13] : memref<1x128xf32, #tpu.memory_space<vmem>>, vector<1x128xf32>
    %16 = vector.broadcast %15 : vector<1x128xf32> to vector<16x128xf32>
    %17 = arith.addf %14, %16 : vector<16x128xf32>
    %cst_14 = arith.constant 0.000000e+00 : f32
    %18 = vector.broadcast %cst_14 : f32 to vector<16x128xf32>
    %19 = arith.maximumf %17, %18 : vector<16x128xf32>
    %c0_15 = arith.constant 0 : index
    %c0_16 = arith.constant 0 : index
    %20 = vector.load %arg7[%c0_15, %c0_16] : memref<128x1024xf32, #tpu.memory_space<vmem>>, vector<128x1024xf32>
    %cst_17 = arith.constant dense<0.000000e+00> : vector<16x1024xf32>
    %21 = tpu.matmul %19, %20, %cst_17 {dimension_numbers = #tpu.dot_dimension_numbers<[1], [0], [0], [1], [0, 0, 1, 1], [], []>} : vector<16x128xf32>, vector<128x1024xf32>, vector<16x1024xf32> -> vector<16x1024xf32>
    %c0_18 = arith.constant 0 : index
    %c0_19 = arith.constant 0 : index
    %22 = vector.load %arg8[%c0_18, %c0_19] : memref<1x1024xf32, #tpu.memory_space<vmem>>, vector<1x1024xf32>
    %23 = vector.broadcast %22 : vector<1x1024xf32> to vector<16x1024xf32>
    %24 = arith.addf %21, %23 : vector<16x1024xf32>
    %c16_i32 = arith.constant 16 : i32
    %25 = arith.muli %arg1, %c16_i32 : i32
    %26 = tpu.iota {dimensions = array<i32: 0>} : vector<16x1xi32>
    %27 = vector.broadcast %25 : i32 to vector<16x1xi32>
    %28 = arith.addi %27, %26 : vector<16x1xi32>
    %c16_i32_20 = arith.constant 16 : i32
    %29 = vector.broadcast %c16_i32_20 : i32 to vector<16x1xi32>
    %30 = arith.cmpi slt, %28, %29 : vector<16x1xi32>
    %cst_21 = arith.constant 0xFF800000 : f32
    %31 = vector.shape_cast %30 : vector<16x1xi1> to vector<16x1xi1>
    %32 = vector.broadcast %31 : vector<16x1xi1> to vector<16x1024xi1>
    %33 = vector.broadcast %cst_21 : f32 to vector<16x1024xf32>
    %34 = arith.select %32, %24, %33 : vector<16x1024xi1>, vector<16x1024xf32>
    %cst_22 = arith.constant dense<0xFF800000> : vector<1024xf32>
    %35 = vector.multi_reduction <maximumf>, %34, %cst_22 [0] : vector<16x1024xf32> to vector<1024xf32>
    %36 = vector.shape_cast %35 : vector<1024xf32> to vector<1x1024xf32>
    %c0_23 = arith.constant 0 : index
    %c0_24 = arith.constant 0 : index
    %c0_25 = arith.constant 0 : index
    %37 = vector.load %arg9[%c0_23, %c0_24, %c0_25] : memref<1x1x1024xf32, #tpu.memory_space<vmem>>, vector<1x1x1024xf32>
    %38 = vector.shape_cast %37 : vector<1x1x1024xf32> to vector<1x1024xf32>
    %39 = arith.maximumf %38, %36 : vector<1x1024xf32>
    %c0_26 = arith.constant 0 : index
    %c0_27 = arith.constant 0 : index
    %c0_28 = arith.constant 0 : index
    %40 = vector.load %arg9[%c0_26, %c0_27, %c0_28] : memref<1x1x1024xf32, #tpu.memory_space<vmem>>, vector<1x1x1024xf32>
    %41 = vector.shape_cast %40 : vector<1x1x1024xf32> to vector<1x1024xf32>
    %42 = vector.shape_cast %39 : vector<1x1024xf32> to vector<1x1x1024xf32>
    tpu.vector_store %arg9[%c0_26, %c0_27, %c0_28], %42 {strides = array<i32>} : memref<1x1x1024xf32, #tpu.memory_space<vmem>>, vector<1x1x1024xf32>,
    return
  }
  func.func @transform_0(%arg0: i32, %arg1: i32) -> (i32, i32, i32) {
    %c0_i32 = arith.constant 0 : i32
    %c0_i32_0 = arith.constant 0 : i32
    return %arg0, %arg1, %c0_i32 : i32, i32, i32
  }
  func.func @transform_1(%arg0: i32, %arg1: i32) -> (i32, i32, i32) {
    %c0_i32 = arith.constant 0 : i32
    %c0_i32_0 = arith.constant 0 : i32
    %c0_i32_1 = arith.constant 0 : i32
    return %arg0, %c0_i32, %c0_i32_0 : i32, i32, i32
  }
  func.func @transform_2(%arg0: i32, %arg1: i32) -> (i32, i32) {
    %c0_i32 = arith.constant 0 : i32
    %c0_i32_0 = arith.constant 0 : i32
    %c0_i32_1 = arith.constant 0 : i32
    return %c0_i32, %c0_i32_0 : i32, i32
  }
  func.func @transform_3(%arg0: i32, %arg1: i32) -> (i32, i32) {
    %c0_i32 = arith.constant 0 : i32
    %c0_i32_0 = arith.constant 0 : i32
    %c0_i32_1 = arith.constant 0 : i32
    return %c0_i32, %c0_i32_0 : i32, i32
  }
  func.func @transform_4(%arg0: i32, %arg1: i32) -> (i32, i32) {
    %c0_i32 = arith.constant 0 : i32
    %c0_i32_0 = arith.constant 0 : i32
    %c0_i32_1 = arith.constant 0 : i32
    return %c0_i32, %c0_i32_0 : i32, i32
  }
  func.func @transform_5(%arg0: i32, %arg1: i32) -> (i32, i32) {
    %c0_i32 = arith.constant 0 : i32
    %c0_i32_0 = arith.constant 0 : i32
    %c0_i32_1 = arith.constant 0 : i32
    return %c0_i32, %c0_i32_0 : i32, i32
  }
  func.func @transform_6(%arg0: i32, %arg1: i32) -> (i32, i32) {
    %c0_i32 = arith.constant 0 : i32
    %c0_i32_0 = arith.constant 0 : i32
    %c0_i32_1 = arith.constant 0 : i32
    return %c0_i32, %c0_i32_0 : i32, i32
  }
  func.func @transform_7(%arg0: i32, %arg1: i32) -> (i32, i32, i32) {
    %c0_i32 = arith.constant 0 : i32
    %c0_i32_0 = arith.constant 0 : i32
    %c0_i32_1 = arith.constant 0 : i32
    return %arg0, %c0_i32, %c0_i32_0 : i32, i32, i32
  }
}

module attributes {stable_mosaic.version = 11 : i64} {
  func.func @_linear_kernel(%arg0: i32, %arg1: memref<2x1024xf32, #tpu.memory_space<vmem>>, %arg2: memref<1024x512xf32, #tpu.memory_space<vmem>>, %arg3: memref<1x512xf32, #tpu.memory_space<vmem>>, %arg4: memref<2x512xf32, #tpu.memory_space<vmem>>) attributes {dimension_semantics = [#tpu.dimension_semantics<arbitrary>], iteration_bounds = array<i64: 1>, scalar_prefetch = 0 : i64, scratch_operands = 0 : i64, tpu.core_type = #tpu.core_type<tc>, window_params = [{pipeline_mode = #tpu.pipeline_mode<synchronous>, transform_indices = @transform_0, window_bounds = array<i64: 2, 1024>}, {pipeline_mode = #tpu.pipeline_mode<synchronous>, transform_indices = @transform_1, window_bounds = array<i64: 1024, 512>}, {pipeline_mode = #tpu.pipeline_mode<synchronous>, transform_indices = @transform_2, window_bounds = array<i64: 1, 512>}, {pipeline_mode = #tpu.pipeline_mode<synchronous>, transform_indices = @transform_3, window_bounds = array<i64: 2, 512>}]} {
    %c0 = arith.constant 0 : index
    %c0_0 = arith.constant 0 : index
    %0 = vector.load %arg1[%c0, %c0_0] : memref<2x1024xf32, #tpu.memory_space<vmem>>, vector<2x1024xf32>
    %c0_1 = arith.constant 0 : index
    %c0_2 = arith.constant 0 : index
    %1 = vector.load %arg2[%c0_1, %c0_2] : memref<1024x512xf32, #tpu.memory_space<vmem>>, vector<1024x512xf32>
    %cst = arith.constant dense<0.000000e+00> : vector<2x512xf32>
    %2 = tpu.matmul %0, %1, %cst {dimension_numbers = #tpu.dot_dimension_numbers<[1], [0], [0], [1], [0, 0, 1, 1], [], []>} : vector<2x1024xf32>, vector<1024x512xf32>, vector<2x512xf32> -> vector<2x512xf32>
    %c0_3 = arith.constant 0 : index
    %c0_4 = arith.constant 0 : index
    %3 = vector.load %arg3[%c0_3, %c0_4] : memref<1x512xf32, #tpu.memory_space<vmem>>, vector<1x512xf32>
    %4 = vector.broadcast %3 : vector<1x512xf32> to vector<2x512xf32>
    %5 = arith.addf %2, %4 : vector<2x512xf32>
    %c0_5 = arith.constant 0 : index
    %c0_6 = arith.constant 0 : index
    %6 = vector.load %arg4[%c0_5, %c0_6] : memref<2x512xf32, #tpu.memory_space<vmem>>, vector<2x512xf32>
    tpu.vector_store %arg4[%c0_5, %c0_6], %5 {strides = array<i32>} : memref<2x512xf32, #tpu.memory_space<vmem>>, vector<2x512xf32>,
    return
  }
  func.func @transform_0(%arg0: i32) -> (i32, i32) {
    %c0_i32 = arith.constant 0 : i32
    %c0_i32_0 = arith.constant 0 : i32
    %c0_i32_1 = arith.constant 0 : i32
    return %c0_i32, %c0_i32_0 : i32, i32
  }
  func.func @transform_1(%arg0: i32) -> (i32, i32) {
    %c0_i32 = arith.constant 0 : i32
    %c0_i32_0 = arith.constant 0 : i32
    %c0_i32_1 = arith.constant 0 : i32
    return %c0_i32, %c0_i32_0 : i32, i32
  }
  func.func @transform_2(%arg0: i32) -> (i32, i32) {
    %c0_i32 = arith.constant 0 : i32
    %c0_i32_0 = arith.constant 0 : i32
    %c0_i32_1 = arith.constant 0 : i32
    return %c0_i32, %c0_i32_0 : i32, i32
  }
  func.func @transform_3(%arg0: i32) -> (i32, i32) {
    %c0_i32 = arith.constant 0 : i32
    %c0_i32_0 = arith.constant 0 : i32
    %c0_i32_1 = arith.constant 0 : i32
    return %c0_i32, %c0_i32_0 : i32, i32
  }
}

module attributes {stable_mosaic.version = 11 : i64} {
  func.func @_seg_head_kernel(%arg0: i32, %arg1: i32, %arg2: memref<1x16x8xf32, #tpu.memory_space<vmem>>, %arg3: memref<1x8x64xf32, #tpu.memory_space<vmem>>, %arg4: memref<1x64xf32, #tpu.memory_space<vmem>>, %arg5: memref<1x1x512xf32, #tpu.memory_space<vmem>>, %arg6: memref<64x512xf32, #tpu.memory_space<vmem>>, %arg7: memref<512x256xf32, #tpu.memory_space<vmem>>, %arg8: memref<1x256xf32, #tpu.memory_space<vmem>>, %arg9: memref<256x128xf32, #tpu.memory_space<vmem>>, %arg10: memref<1x128xf32, #tpu.memory_space<vmem>>, %arg11: memref<128x128xf32, #tpu.memory_space<vmem>>, %arg12: memref<1x128xf32, #tpu.memory_space<vmem>>, %arg13: memref<1x16x128xf32, #tpu.memory_space<vmem>>) attributes {dimension_semantics = [#tpu.dimension_semantics<parallel>, #tpu.dimension_semantics<parallel>], iteration_bounds = array<i64: 2, 1>, scalar_prefetch = 0 : i64, scratch_operands = 0 : i64, tpu.core_type = #tpu.core_type<tc>, window_params = [{transform_indices = @transform_0, window_bounds = array<i64: 1, 16, 8>}, {transform_indices = @transform_1, window_bounds = array<i64: 1, 8, 64>}, {pipeline_mode = #tpu.pipeline_mode<synchronous>, transform_indices = @transform_2, window_bounds = array<i64: 1, 64>}, {transform_indices = @transform_3, window_bounds = array<i64: 1, 1, 512>}, {pipeline_mode = #tpu.pipeline_mode<synchronous>, transform_indices = @transform_4, window_bounds = array<i64: 64, 512>}, {pipeline_mode = #tpu.pipeline_mode<synchronous>, transform_indices = @transform_5, window_bounds = array<i64: 512, 256>}, {pipeline_mode = #tpu.pipeline_mode<synchronous>, transform_indices = @transform_6, window_bounds = array<i64: 1, 256>}, {pipeline_mode = #tpu.pipeline_mode<synchronous>, transform_indices = @transform_7, window_bounds = array<i64: 256, 128>}, {pipeline_mode = #tpu.pipeline_mode<synchronous>, transform_indices = @transform_8, window_bounds = array<i64: 1, 128>}, {pipeline_mode = #tpu.pipeline_mode<synchronous>, transform_indices = @transform_9, window_bounds = array<i64: 128, 128>}, {pipeline_mode = #tpu.pipeline_mode<synchronous>, transform_indices = @transform_10, window_bounds = array<i64: 1, 128>}, {transform_indices = @transform_11, window_bounds = array<i64: 1, 16, 128>}]} {
    %c0 = arith.constant 0 : index
    %c0_0 = arith.constant 0 : index
    %c0_1 = arith.constant 0 : index
    %0 = vector.load %arg2[%c0, %c0_0, %c0_1] : memref<1x16x8xf32, #tpu.memory_space<vmem>>, vector<1x16x8xf32>
    %1 = vector.shape_cast %0 : vector<1x16x8xf32> to vector<16x8xf32>
    %c0_2 = arith.constant 0 : index
    %c0_3 = arith.constant 0 : index
    %c0_4 = arith.constant 0 : index
    %2 = vector.load %arg3[%c0_2, %c0_3, %c0_4] : memref<1x8x64xf32, #tpu.memory_space<vmem>>, vector<1x8x64xf32>
    %3 = vector.shape_cast %2 : vector<1x8x64xf32> to vector<8x64xf32>
    %cst = arith.constant dense<0.000000e+00> : vector<16x64xf32>
    %4 = tpu.matmul %1, %3, %cst {dimension_numbers = #tpu.dot_dimension_numbers<[1], [0], [0], [1], [0, 0, 1, 1], [], []>} : vector<16x8xf32>, vector<8x64xf32>, vector<16x64xf32> -> vector<16x64xf32>
    %c0_5 = arith.constant 0 : index
    %c0_6 = arith.constant 0 : index
    %5 = vector.load %arg4[%c0_5, %c0_6] : memref<1x64xf32, #tpu.memory_space<vmem>>, vector<1x64xf32>
    %6 = vector.broadcast %5 : vector<1x64xf32> to vector<16x64xf32>
    %7 = arith.addf %4, %6 : vector<16x64xf32>
    %cst_7 = arith.constant 0.000000e+00 : f32
    %8 = vector.broadcast %cst_7 : f32 to vector<16x64xf32>
    %9 = arith.maximumf %7, %8 : vector<16x64xf32>
    %c0_8 = arith.constant 0 : index
    %c0_9 = arith.constant 0 : index
    %10 = vector.load %arg6[%c0_8, %c0_9] : memref<64x512xf32, #tpu.memory_space<vmem>>, vector<64x512xf32>
    %cst_10 = arith.constant dense<0.000000e+00> : vector<16x512xf32>
    %11 = tpu.matmul %9, %10, %cst_10 {dimension_numbers = #tpu.dot_dimension_numbers<[1], [0], [0], [1], [0, 0, 1, 1], [], []>} : vector<16x64xf32>, vector<64x512xf32>, vector<16x512xf32> -> vector<16x512xf32>
    %c0_11 = arith.constant 0 : index
    %c0_12 = arith.constant 0 : index
    %c0_13 = arith.constant 0 : index
    %12 = vector.load %arg5[%c0_11, %c0_12, %c0_13] : memref<1x1x512xf32, #tpu.memory_space<vmem>>, vector<1x1x512xf32>
    %13 = vector.shape_cast %12 : vector<1x1x512xf32> to vector<1x512xf32>
    %14 = vector.broadcast %13 : vector<1x512xf32> to vector<16x512xf32>
    %15 = arith.addf %11, %14 : vector<16x512xf32>
    %cst_14 = arith.constant 0.000000e+00 : f32
    %16 = vector.broadcast %cst_14 : f32 to vector<16x512xf32>
    %17 = arith.maximumf %15, %16 : vector<16x512xf32>
    %c0_15 = arith.constant 0 : index
    %c0_16 = arith.constant 0 : index
    %18 = vector.load %arg7[%c0_15, %c0_16] : memref<512x256xf32, #tpu.memory_space<vmem>>, vector<512x256xf32>
    %cst_17 = arith.constant dense<0.000000e+00> : vector<16x256xf32>
    %19 = tpu.matmul %17, %18, %cst_17 {dimension_numbers = #tpu.dot_dimension_numbers<[1], [0], [0], [1], [0, 0, 1, 1], [], []>} : vector<16x512xf32>, vector<512x256xf32>, vector<16x256xf32> -> vector<16x256xf32>
    %c0_18 = arith.constant 0 : index
    %c0_19 = arith.constant 0 : index
    %20 = vector.load %arg8[%c0_18, %c0_19] : memref<1x256xf32, #tpu.memory_space<vmem>>, vector<1x256xf32>
    %21 = vector.broadcast %20 : vector<1x256xf32> to vector<16x256xf32>
    %22 = arith.addf %19, %21 : vector<16x256xf32>
    %cst_20 = arith.constant 0.000000e+00 : f32
    %23 = vector.broadcast %cst_20 : f32 to vector<16x256xf32>
    %24 = arith.maximumf %22, %23 : vector<16x256xf32>
    %c0_21 = arith.constant 0 : index
    %c0_22 = arith.constant 0 : index
    %25 = vector.load %arg9[%c0_21, %c0_22] : memref<256x128xf32, #tpu.memory_space<vmem>>, vector<256x128xf32>
    %cst_23 = arith.constant dense<0.000000e+00> : vector<16x128xf32>
    %26 = tpu.matmul %24, %25, %cst_23 {dimension_numbers = #tpu.dot_dimension_numbers<[1], [0], [0], [1], [0, 0, 1, 1], [], []>} : vector<16x256xf32>, vector<256x128xf32>, vector<16x128xf32> -> vector<16x128xf32>
    %c0_24 = arith.constant 0 : index
    %c0_25 = arith.constant 0 : index
    %27 = vector.load %arg10[%c0_24, %c0_25] : memref<1x128xf32, #tpu.memory_space<vmem>>, vector<1x128xf32>
    %28 = vector.broadcast %27 : vector<1x128xf32> to vector<16x128xf32>
    %29 = arith.addf %26, %28 : vector<16x128xf32>
    %cst_26 = arith.constant 0.000000e+00 : f32
    %30 = vector.broadcast %cst_26 : f32 to vector<16x128xf32>
    %31 = arith.maximumf %29, %30 : vector<16x128xf32>
    %c0_27 = arith.constant 0 : index
    %c0_28 = arith.constant 0 : index
    %32 = vector.load %arg11[%c0_27, %c0_28] : memref<128x128xf32, #tpu.memory_space<vmem>>, vector<128x128xf32>
    %cst_29 = arith.constant dense<0.000000e+00> : vector<16x128xf32>
    %33 = tpu.matmul %31, %32, %cst_29 {dimension_numbers = #tpu.dot_dimension_numbers<[1], [0], [0], [1], [0, 0, 1, 1], [], []>} : vector<16x128xf32>, vector<128x128xf32>, vector<16x128xf32> -> vector<16x128xf32>
    %c0_30 = arith.constant 0 : index
    %c0_31 = arith.constant 0 : index
    %34 = vector.load %arg12[%c0_30, %c0_31] : memref<1x128xf32, #tpu.memory_space<vmem>>, vector<1x128xf32>
    %35 = vector.broadcast %34 : vector<1x128xf32> to vector<16x128xf32>
    %36 = arith.addf %33, %35 : vector<16x128xf32>
    %37 = tpu.iota {dimensions = array<i32: 1>} : vector<16x128xi32>
    %c4_i32 = arith.constant 4 : i32
    %38 = vector.broadcast %c4_i32 : i32 to vector<16x128xi32>
    %39 = arith.cmpi slt, %37, %38 : vector<16x128xi32>
    %cst_32 = arith.constant 0xFF800000 : f32
    %40 = vector.broadcast %cst_32 : f32 to vector<16x128xf32>
    %41 = arith.select %39, %36, %40 : vector<16x128xi1>, vector<16x128xf32>
    %cst_33 = arith.constant dense<0xFF800000> : vector<16xf32>
    %42 = vector.multi_reduction <maximumf>, %41, %cst_33 [1] : vector<16x128xf32> to vector<16xf32>
    %43 = vector.shape_cast %42 : vector<16xf32> to vector<16x1xf32>
    %44 = vector.broadcast %43 : vector<16x1xf32> to vector<16x128xf32>
    %45 = arith.subf %36, %44 : vector<16x128xf32>
    %46 = math.exp %45 : vector<16x128xf32>
    %cst_34 = arith.constant 0.000000e+00 : f32
    %47 = vector.broadcast %cst_34 : f32 to vector<16x128xf32>
    %48 = arith.select %39, %46, %47 : vector<16x128xi1>, vector<16x128xf32>
    %cst_35 = arith.constant dense<0.000000e+00> : vector<16xf32>
    %49 = vector.multi_reduction <add>, %48, %cst_35 [1] : vector<16x128xf32> to vector<16xf32>
    %50 = vector.shape_cast %49 : vector<16xf32> to vector<16x1xf32>
    %51 = math.log %50 : vector<16x1xf32>
    %52 = vector.broadcast %51 : vector<16x1xf32> to vector<16x128xf32>
    %53 = arith.subf %45, %52 : vector<16x128xf32>
    %cst_36 = arith.constant 0.000000e+00 : f32
    %54 = vector.broadcast %cst_36 : f32 to vector<16x128xf32>
    %55 = arith.select %39, %53, %54 : vector<16x128xi1>, vector<16x128xf32>
    %c0_37 = arith.constant 0 : index
    %c0_38 = arith.constant 0 : index
    %c0_39 = arith.constant 0 : index
    %56 = vector.load %arg13[%c0_37, %c0_38, %c0_39] : memref<1x16x128xf32, #tpu.memory_space<vmem>>, vector<1x16x128xf32>
    %57 = vector.shape_cast %56 : vector<1x16x128xf32> to vector<16x128xf32>
    %58 = vector.shape_cast %55 : vector<16x128xf32> to vector<1x16x128xf32>
    tpu.vector_store %arg13[%c0_37, %c0_38, %c0_39], %58 {strides = array<i32>} : memref<1x16x128xf32, #tpu.memory_space<vmem>>, vector<1x16x128xf32>,
    return
  }
  func.func @transform_0(%arg0: i32, %arg1: i32) -> (i32, i32, i32) {
    %c0_i32 = arith.constant 0 : i32
    %c0_i32_0 = arith.constant 0 : i32
    return %arg0, %arg1, %c0_i32 : i32, i32, i32
  }
  func.func @transform_1(%arg0: i32, %arg1: i32) -> (i32, i32, i32) {
    %c0_i32 = arith.constant 0 : i32
    %c0_i32_0 = arith.constant 0 : i32
    %c0_i32_1 = arith.constant 0 : i32
    return %arg0, %c0_i32, %c0_i32_0 : i32, i32, i32
  }
  func.func @transform_2(%arg0: i32, %arg1: i32) -> (i32, i32) {
    %c0_i32 = arith.constant 0 : i32
    %c0_i32_0 = arith.constant 0 : i32
    %c0_i32_1 = arith.constant 0 : i32
    return %c0_i32, %c0_i32_0 : i32, i32
  }
  func.func @transform_3(%arg0: i32, %arg1: i32) -> (i32, i32, i32) {
    %c0_i32 = arith.constant 0 : i32
    %c0_i32_0 = arith.constant 0 : i32
    %c0_i32_1 = arith.constant 0 : i32
    return %arg0, %c0_i32, %c0_i32_0 : i32, i32, i32
  }
  func.func @transform_4(%arg0: i32, %arg1: i32) -> (i32, i32) {
    %c0_i32 = arith.constant 0 : i32
    %c0_i32_0 = arith.constant 0 : i32
    %c0_i32_1 = arith.constant 0 : i32
    return %c0_i32, %c0_i32_0 : i32, i32
  }
  func.func @transform_5(%arg0: i32, %arg1: i32) -> (i32, i32) {
    %c0_i32 = arith.constant 0 : i32
    %c0_i32_0 = arith.constant 0 : i32
    %c0_i32_1 = arith.constant 0 : i32
    return %c0_i32, %c0_i32_0 : i32, i32
  }
  func.func @transform_6(%arg0: i32, %arg1: i32) -> (i32, i32) {
    %c0_i32 = arith.constant 0 : i32
    %c0_i32_0 = arith.constant 0 : i32
    %c0_i32_1 = arith.constant 0 : i32
    return %c0_i32, %c0_i32_0 : i32, i32
  }
  func.func @transform_7(%arg0: i32, %arg1: i32) -> (i32, i32) {
    %c0_i32 = arith.constant 0 : i32
    %c0_i32_0 = arith.constant 0 : i32
    %c0_i32_1 = arith.constant 0 : i32
    return %c0_i32, %c0_i32_0 : i32, i32
  }
  func.func @transform_8(%arg0: i32, %arg1: i32) -> (i32, i32) {
    %c0_i32 = arith.constant 0 : i32
    %c0_i32_0 = arith.constant 0 : i32
    %c0_i32_1 = arith.constant 0 : i32
    return %c0_i32, %c0_i32_0 : i32, i32
  }
  func.func @transform_9(%arg0: i32, %arg1: i32) -> (i32, i32) {
    %c0_i32 = arith.constant 0 : i32
    %c0_i32_0 = arith.constant 0 : i32
    %c0_i32_1 = arith.constant 0 : i32
    return %c0_i32, %c0_i32_0 : i32, i32
  }
  func.func @transform_10(%arg0: i32, %arg1: i32) -> (i32, i32) {
    %c0_i32 = arith.constant 0 : i32
    %c0_i32_0 = arith.constant 0 : i32
    %c0_i32_1 = arith.constant 0 : i32
    return %c0_i32, %c0_i32_0 : i32, i32
  }
  func.func @transform_11(%arg0: i32, %arg1: i32) -> (i32, i32, i32) {
    %c0_i32 = arith.constant 0 : i32
    %c0_i32_0 = arith.constant 0 : i32
    return %arg0, %arg1, %c0_i32 : i32, i32, i32
  }
}

</mosaic_0001>

<bundles_post_ra>
// kernel: pointnet_seg_forward.7
= control target key start
LH: loop header
LB: loop body
LE: loop exit
PB: predicated region body
PF: predicated region fallthrough
CT: control target
= control target key end

     0   :  { %s1515_s24 = smov 0   ;;  %s1517_s25 = smov 0   ;;  %s2025_s0 = inlined_call_operand.vmem [shape: f32[2,16,8], index: 0, kind: input, shape index: {}]   ;;  %s2026_s1 = inlined_call_operand.vmem [shape: f32[2,8,64], index: 1, kind: input, shape index: {}]   ;;  %s2027_s2 = inlined_call_operand.vmem [shape: f32[1,64], index: 2, kind: input, shape index: {}]   ;;  %s2028_s3 = inlined_call_operand.vmem [shape: f32[64,128], index: 3, kind: input, shape index: {}]   ;;  %s2029_s4 = inlined_call_operand.vmem [shape: f32[1,128], index: 4, kind: input, shape index: {}]   ;;  %s2030_s5 = inlined_call_operand.vmem [shape: f32[128,1024], index: 5, kind: input, shape index: {}]   ;;  %s2031_s6 = inlined_call_operand.vmem [shape: f32[1,1024], index: 6, kind: input, shape index: {}]   ;;  %s2032_s7 = inlined_call_operand.vmem [shape: f32[2,1,1024], index: 7, kind: output, shape index: {}]  }
   0x1   :  { %s1519_s26 = smov 0  }
   0x2 LB: > { %s29_s27 = sadd.s32 1, %s1467_s25  ;;  %p1227_p0 = scmp.ge.s32.totalorder %s1471_s26, 1  ;;  %s1471_s26 = sphi %s1519_s26, %s17_s26   ;;  %s1467_s25 = sphi %s1517_s25, %s2034_s25   ;;  %s1463_s24 = sphi %s1515_s24, %s2033_s24  }
   0x3   : > { %p31_p1 = scmp.ge.s32.totalorder %s29_s27, 2  ;;  %p265_p2 = scmp.lt.s32.totalorder %s1471_s26, 3 }
   0x5   : > { %s2036_s27 = smov (%p31_p1, %s29_s27), 0  ;;  %p266_p3 = pnand %p1227_p0, %p265_p2 }
   0x6   : > { %p305_p4 = scmp.lt.s32.totalorder (!%p266_p3), %s1463_s24, 1  ;;  %v421_v0 = vld [vmem:[%s2028_s3] sm:$0xff] (!%p266_p3)  ;;  %v422_v1 = vld [vmem:[%s2028_s3 + $0x8] sm:$0xff] (!%p266_p3)  ;;  %v423_v2 = vld [vmem:[%s2028_s3 + $0x10] sm:$0xff] (!%p266_p3)  ;;  %vm337_vm0 = vcmask (!%p266_p3), 64512   ;;  %vm436_vm1 = vcmask (!%p266_p3), 523264  }
   0x7   : > { %269 = sbr.rel (%p266_p3) target bundleno = 731 (0x2db), region = 48  ;;  %v1278_v3 = vpack.c.bf16 (!%p266_p3), %v422_v1, %v421_v0  ;;  %v424_v4 = vld [vmem:[%s2028_s3 + $0x18] sm:$0xff] (!%p266_p3)  ;;  %v425_v6 = vld [vmem:[%s2028_s3 + $0x20] sm:$0xff] (!%p266_p3)  ;;  %v426_v7 = vld [vmem:[%s2028_s3 + $0x28] sm:$0xff] (!%p266_p3) }
   0x8   : > { %v1282_v5 = vpack.c.bf16 (!%p266_p3), %v424_v4, %v423_v2  ;;  %v1286_v9 = vpack.c.bf16 (!%p266_p3), %v426_v7, %v425_v6  ;;  %v427_v12 = vld [vmem:[%s2028_s3 + $0x30] sm:$0xff] (!%p266_p3)  ;;  %v428_v13 = vld [vmem:[%s2028_s3 + $0x38] sm:$0xff] (!%p266_p3)  ;;  %v521_v15 = vld [vmem:[%s2030_s5 + $0x8] sm:$0xff] (!%p266_p3) }
   0x9   : > { %1279 = vmatprep.subr.bf16.mxu1 (!%p266_p3), %v1278_v3  ;;  %v1290_v14 = vpack.c.bf16 (!%p266_p3), %v428_v13, %v427_v12  ;;  %v529_v16 = vld [vmem:[%s2030_s5 + $0x48] sm:$0xff] (!%p266_p3)  ;;  %v523_v17 = vld [vmem:[%s2030_s5 + $0x18] sm:$0xff] (!%p266_p3)  ;;  %v520_v20 = vld [vmem:[%s2030_s5] sm:$0xff] (!%p266_p3) }
   0xa   : > { %1281 = vmatpush3.bf16.msra.mxu1 (!%p266_p3), %v1278_v3  ;;  %v1294_v18 = vpack.c.bf16 (!%p266_p3), %v529_v16, %v521_v15  ;;  %v531_v19 = vld [vmem:[%s2030_s5 + $0x58] sm:$0xff] (!%p266_p3)  ;;  %v528_v21 = vld [vmem:[%s2030_s5 + $0x40] sm:$0xff] (!%p266_p3)  ;;  %v537_v24 = vld [vmem:[%s2030_s5 + $0x88] sm:$0xff] (!%p266_p3) }
   0xb   : > { %1283 = vmatprep.subr.bf16.mxu1 (!%p266_p3), %v1282_v5  ;;  %v1326_v22 = vpack.c.bf16 (!%p266_p3), %v531_v19, %v523_v17  ;;  %v1296_v23 = vpack.c.bf16 (!%p266_p3), %v528_v21, %v520_v20  ;;  %v545_v25 = vld [vmem:[%s2030_s5 + $0xc8] sm:$0xff] (!%p266_p3)  ;;  %v536_v27 = vld [vmem:[%s2030_s5 + $0x80] sm:$0xff] (!%p266_p3)  ;;  %v522_v0 = vld [vmem:[%s2030_s5 + $0x10] sm:$0xff] (!%p266_p3) }
   0xc   : > { %v1298_v26 = vpack.c.bf16 (!%p266_p3), %v545_v25, %v537_v24  ;;  %v544_v28 = vld [vmem:[%s2030_s5 + $0xc0] sm:$0xff] (!%p266_p3)  ;;  %v553_v30 = vld [vmem:[%s2030_s5 + $0x108] sm:$0xff] (!%p266_p3)  ;;  %v530_v1 = vld [vmem:[%s2030_s5 + $0x50] sm:$0xff] (!%p266_p3) }
   0xd   : > { %v1300_v29 = vpack.c.bf16 (!%p266_p3), %v544_v28, %v536_v27  ;;  %v561_v31 = vld [vmem:[%s2030_s5 + $0x148] sm:$0xff] (!%p266_p3)  ;;  %v552_v33 = vld [vmem:[%s2030_s5 + $0x100] sm:$0xff] (!%p266_p3)  ;;  %v539_v3 = vld [vmem:[%s2030_s5 + $0x98] sm:$0xff] (!%p266_p3)  ;;  %v1328_v6 = vpack.c.bf16 (!%p266_p3), %v530_v1, %v522_v0 }
   0xe   : > { %s2038_s24 = smov (!%p305_p4, %s1463_s24), 1  ;;  %1285 = vmatpush3.bf16.msra.mxu1 %v1282_v5  ;;  %v1302_v32 = vpack.c.bf16 %v561_v31, %v553_v30  ;;  %v560_v34 = vld [vmem:[%s2030_s5 + $0x140] sm:$0xff]  ;;  %v569_v36 = vld [vmem:[%s2030_s5 + $0x188] sm:$0xff]  ;;  %v547_v4 = vld [vmem:[%s2030_s5 + $0xd8] sm:$0xff] }
   0xf   : > { %s1230_s17 = sshll.u32 %s2038_s24, 3  ;;  %s1240_s18 = sshll.u32 %s2038_s24, 4  ;;  %1287 = vmatprep.subr.bf16.mxu1 %v1286_v9  ;;  %v1304_v35 = vpack.c.bf16 %v560_v34, %v552_v33  ;;  %v577_v37 = vld [vmem:[%s2030_s5 + $0x1c8] sm:$0xff]  ;;  %v568_v39 = vld [vmem:[%s2030_s5 + $0x180] sm:$0xff]  ;;  %v563_v12 = vld [vmem:[%s2030_s5 + $0x158] sm:$0xff] }
  0x10   : > { %s317_s21 = scalar_lea.vmem %s2026_s1, %s1230_s17  ;;  %s312_s28 = scalar_lea.vmem %s2025_s0, %s1240_s18  ;;  %v1306_v38 = vpack.c.bf16 %v577_v37, %v569_v36  ;;  %v576_v40 = vld [vmem:[%s2030_s5 + $0x1c0] sm:$0xff]  ;;  %v585_v42 = vld [vmem:[%s2030_s5 + $0x208] sm:$0xff]  ;;  %v554_v15 = vld [vmem:[%s2030_s5 + $0x110] sm:$0xff] }
  0x11   : > { %v329_v8 = vld [vmem:[%s317_s21] sm:$0xff]  ;;  %v328_v11 = vld [vmem:[%s312_s28 + $0x8] sm:$0xff]  ;;  %v1308_v41 = vpack.c.bf16 %v576_v40, %v568_v39  ;;  %v562_v16 = vld [vmem:[%s2030_s5 + $0x150] sm:$0xff]  ;;  %s321_s23 = scalar_lea.vmem %s2032_s7, %s1230_s17 }
  0x12   : > { %1254 = vmatprep.subr.mxu0 %v329_v8  ;;  %v327_v10 = vld [vmem:[%s312_s28] sm:$0xff]  ;;  %1289 = vmatpush3.bf16.msra.mxu1 %v1286_v9  ;;  %v593_v43 = vld [vmem:[%s2030_s5 + $0x248] sm:$0xff]  ;;  %v538_v9 = vld [vmem:[%s2030_s5 + $0x90] sm:$0xff]  ;;  %v1336_v19 = vpack.c.bf16 %v562_v16, %v554_v15 }
  0x13   : > { %1255 = vmatpush3.msra.mxu0 %v329_v8  ;;  %1256 = vmatprep.mubr.msk.f32.mxu0 %vm337_vm0, %v327_v10  ;;  %v1310_v44 = vpack.c.bf16 %v593_v43, %v585_v42  ;;  %v584_v45 = vld [vmem:[%s2030_s5 + $0x200] sm:$0xff]  ;;  %v601_v48 = vld [vmem:[%s2030_s5 + $0x288] sm:$0xff]  ;;  %v1330_v8 = vpack.c.bf16 %v547_v4, %v539_v3  ;;  %v546_v10 = vld [vmem:[%s2030_s5 + $0xd0] sm:$0xff] }
  0x14   : > { %1257 = vmatmul.mubr.msk.f32.vlgmr.msra.gmra.mrb[0].mxu0 %vm337_vm0, %v328_v11  ;;  %1291 = vmatprep.subr.bf16.mxu1 %v1290_v14  ;;  %v592_v46 = vld [vmem:[%s2030_s5 + $0x240] sm:$0xff]  ;;  %v609_v49 = vld [vmem:[%s2030_s5 + $0x2c8] sm:$0xff]  ;;  %v555_v11 = vld [vmem:[%s2030_s5 + $0x118] sm:$0xff]  ;;  %v1332_v13 = vpack.c.bf16 %v546_v10, %v538_v9 }
  0x15   : > { %1295 = vmatprep.subr.bf16.mxu0 %v1294_v18  ;;  %v1312_v47 = vpack.c.bf16 %v592_v46, %v584_v45  ;;  %v1314_v50 = vpack.c.bf16 %v609_v49, %v601_v48  ;;  %v600_v51 = vld [vmem:[%s2030_s5 + $0x280] sm:$0xff]  ;;  %v617_v54 = vld [vmem:[%s2030_s5 + $0x308] sm:$0xff]  ;;  %v571_v17 = vld [vmem:[%s2030_s5 + $0x198] sm:$0xff] }
  0x16   : > { %1293 = vmatpush3.bf16.msra.mxu1 %v1290_v14  ;;  %1297 = vmatpush1.bf16.msra.mxu0 %v1296_v23  ;;  %v608_v52 = vld [vmem:[%s2030_s5 + $0x2c0] sm:$0xff]  ;;  %v625_v55 = vld [vmem:[%s2030_s5 + $0x348] sm:$0xff]  ;;  %v1334_v14 = vpack.c.bf16 %v563_v12, %v555_v11  ;;  %v579_v18 = vld [vmem:[%s2030_s5 + $0x1d8] sm:$0xff] }
  0x17   : > { %1327 = vmatprep.subr.bf16.mxu1 %v1326_v22  ;;  %1299 = vmatprep.subr.bf16.mxu0 %v1298_v26  ;;  %v1316_v53 = vpack.c.bf16 %v608_v52, %v600_v51  ;;  %v1318_v56 = vpack.c.bf16 %v625_v55, %v617_v54  ;;  %v616_v57 = vld [vmem:[%s2030_s5 + $0x300] sm:$0xff]  ;;  %v1338_v20 = vpack.c.bf16 %v579_v18, %v571_v17  ;;  %v570_v21 = vld [vmem:[%s2030_s5 + $0x190] sm:$0xff]  ;;  %v587_v23 = vld [vmem:[%s2030_s5 + $0x218] sm:$0xff] }
  0x18   : > { %v624_v58 = vld [vmem:[%s2030_s5 + $0x340] sm:$0xff]  ;;  %v578_v22 = vld [vmem:[%s2030_s5 + $0x1d0] sm:$0xff]  ;;  %v595_v24 = vld [vmem:[%s2030_s5 + $0x258] sm:$0xff] }
  0x19   : > { %v1320_v59 = vpack.c.bf16 %v624_v58, %v616_v57  ;;  %v1232_v60 = vld [vmem:[%s2027_s2] ss:$0 sm:$0xff]  ;;  %v1340_v25 = vpack.c.bf16 %v578_v22, %v570_v21  ;;  %v1342_v26 = vpack.c.bf16 %v595_v24, %v587_v23  ;;  %v586_v27 = vld [vmem:[%s2030_s5 + $0x210] sm:$0xff]  ;;  %v611_v30 = vld [vmem:[%s2030_s5 + $0x2d8] sm:$0xff] }
  0x1a   : > { %1301 = vmatpush1.bf16.msra.mxu0 %v1300_v29  ;;  %v594_v28 = vld [vmem:[%s2030_s5 + $0x250] sm:$0xff]  ;;  %v603_v29 = vld [vmem:[%s2030_s5 + $0x298] sm:$0xff]  ;;  %v633_v42 = vld [vmem:[%s2030_s5 + $0x388] sm:$0xff] }
  0x1b   : > { %1303 = vmatprep.subr.bf16.mxu0 %v1302_v32  ;;  %v1344_v31 = vpack.c.bf16 %v594_v28, %v586_v27  ;;  %v1346_v32 = vpack.c.bf16 %v611_v30, %v603_v29  ;;  %v602_v33 = vld [vmem:[%s2030_s5 + $0x290] sm:$0xff]  ;;  %v627_v36 = vld [vmem:[%s2030_s5 + $0x358] sm:$0xff]  ;;  %v641_v43 = vld [vmem:[%s2030_s5 + $0x3c8] sm:$0xff] }
  0x1c   : > { %v610_v34 = vld [vmem:[%s2030_s5 + $0x2d0] sm:$0xff]  ;;  %v1322_v45 = vpack.c.bf16 %v641_v43, %v633_v42  ;;  %v643_v46 = vld [vmem:[%s2030_s5 + $0x3d8] sm:$0xff]  ;;  %v640_v48 = vld [vmem:[%s2030_s5 + $0x3c0] sm:$0xff] }
  0x1d   : > { %v1348_v37 = vpack.c.bf16 %v610_v34, %v602_v33  ;;  %v618_v39 = vld [vmem:[%s2030_s5 + $0x310] sm:$0xff]  ;;  %v525_v54 = vld [vmem:[%s2030_s5 + $0x28] sm:$0xff]  ;;  %v535_v58 = vld [vmem:[%s2030_s5 + $0x78] sm:$0xff] }
  0x1e   : > { %1305 = vmatpush1.bf16.msra.mxu0 %v1304_v35  ;;  %v619_v35 = vld [vmem:[%s2030_s5 + $0x318] sm:$0xff]  ;;  %v626_v40 = vld [vmem:[%s2030_s5 + $0x350] sm:$0xff]  ;;  %v533_v55 = vld [vmem:[%s2030_s5 + $0x68] sm:$0xff] }
  0x1f   : > { %1307 = vmatprep.subr.bf16.mxu0 %v1306_v38  ;;  %v1350_v38 = vpack.c.bf16 %v627_v36, %v619_v35  ;;  %v634_v51 = vld [vmem:[%s2030_s5 + $0x390] sm:$0xff]  ;;  %v1358_v57 = vpack.c.bf16 %v533_v55, %v525_v54  ;;  %v532_v0 = vld [vmem:[%s2030_s5 + $0x60] sm:$0xff]  ;;  %v541_v4 = vld [vmem:[%s2030_s5 + $0xa8] sm:$0xff] }
  0x20   : > { %v642_v52 = vld [vmem:[%s2030_s5 + $0x3d0] sm:$0xff]  ;;  %v540_v11 = vld [vmem:[%s2030_s5 + $0xa0] sm:$0xff]  ;;  %v557_v17 = vld [vmem:[%s2030_s5 + $0x128] sm:$0xff] }
  0x21   : > { %v526_v1 = vld [vmem:[%s2030_s5 + $0x30] sm:$0xff]  ;;  %v548_v12 = vld [vmem:[%s2030_s5 + $0xe0] sm:$0xff]  ;;  %v559_v21 = vld [vmem:[%s2030_s5 + $0x138] sm:$0xff] }
  0x22   : > { %1309 = vmatpush1.bf16.msra.mxu0 %v1308_v41  ;;  %v1352_v41 = vpack.c.bf16 %v626_v40, %v618_v39  ;;  %v542_v15 = vld [vmem:[%s2030_s5 + $0xb0] sm:$0xff]  ;;  %v567_v22 = vld [vmem:[%s2030_s5 + $0x178] sm:$0xff]  ;;  %v1364_v23 = vpack.c.bf16 %v548_v12, %v540_v11  ;;  %v581_v33 = vld [vmem:[%s2030_s5 + $0x1e8] sm:$0xff] }
  0x23   : > { %1311 = vmatprep.subr.bf16.mxu0 %v1310_v44  ;;  %v635_v44 = vld [vmem:[%s2030_s5 + $0x398] sm:$0xff]  ;;  %v550_v16 = vld [vmem:[%s2030_s5 + $0xf0] sm:$0xff]  ;;  %v1398_v29 = vpack.c.bf16 %v567_v22, %v559_v21  ;;  %v580_v39 = vld [vmem:[%s2030_s5 + $0x1e0] sm:$0xff] }
  0x24   : > { %v1354_v49 = vpack.c.bf16 %v643_v46, %v635_v44  ;;  %v1396_v24 = vpack.c.bf16 %v550_v16, %v542_v15  ;;  %v558_v30 = vld [vmem:[%s2030_s5 + $0x130] sm:$0xff]  ;;  %v575_v34 = vld [vmem:[%s2030_s5 + $0x1b8] sm:$0xff]  ;;  %v589_v44 = vld [vmem:[%s2030_s5 + $0x228] sm:$0xff] }
  0x25   : > { %v583_v35 = vld [vmem:[%s2030_s5 + $0x1f8] sm:$0xff]  ;;  %v574_v42 = vld [vmem:[%s2030_s5 + $0x1b0] sm:$0xff]  ;;  %v620_v11 = vld [vmem:[%s2030_s5 + $0x320] sm:$0xff] }
  0x26   : > { %1313 = vmatpush1.bf16.msra.mxu0 %v1312_v47  ;;  %v632_v47 = vld [vmem:[%s2030_s5 + $0x380] sm:$0xff]  ;;  %v582_v43 = vld [vmem:[%s2030_s5 + $0x1f0] sm:$0xff]  ;;  %v591_v46 = vld [vmem:[%s2030_s5 + $0x238] sm:$0xff] }
  0x27   : > { %1315 = vmatprep.subr.bf16.mxu0 %v1314_v50  ;;  %v1324_v50 = vpack.c.bf16 %v640_v48, %v632_v47  ;;  %v599_v47 = vld [vmem:[%s2030_s5 + $0x278] sm:$0xff]  ;;  %v590_v54 = vld [vmem:[%s2030_s5 + $0x230] sm:$0xff]  ;;  %v628_v12 = vld [vmem:[%s2030_s5 + $0x360] sm:$0xff] }
  0x28   : > { %v598_v55 = vld [vmem:[%s2030_s5 + $0x270] sm:$0xff]  ;;  %v647_v21 = vld [vmem:[%s2030_s5 + $0x3f8] sm:$0xff]  ;;  %v1384_v22 = vpack.c.bf16 %v628_v12, %v620_v11 }
  0x29   : > { %v622_v16 = vld [vmem:[%s2030_s5 + $0x330] sm:$0xff] }
  0x2a   : > { %1317 = vmatpush1.bf16.msra.mxu0 %v1316_v53  ;;  %v1356_v53 = vpack.c.bf16 %v642_v52, %v634_v51  ;;  %v596_v51 = vld [vmem:[%s2030_s5 + $0x260] sm:$0xff] }
  0x2b   : > { %1319 = vmatprep.subr.bf16.mxu0 %v1318_v56  ;;  %v527_v56 = vld [vmem:[%s2030_s5 + $0x38] sm:$0xff] }
  0x2e   : > { %1321 = vmatpush1.bf16.msra.mxu0 %v1320_v59  ;;  %v1390_v59 = vpack.c.bf16 %v535_v58, %v527_v56  ;;  %v605_v56 = vld [vmem:[%s2030_s5 + $0x2a8] sm:$0xff]  ;;  %v607_v58 = vld [vmem:[%s2030_s5 + $0x2b8] sm:$0xff] }
  0x2f   : > { %1323 = vmatprep.subr.bf16.mxu0 %v1322_v45  ;;  %v597_v45 = vld [vmem:[%s2030_s5 + $0x268] sm:$0xff] }
  0x30   : > { %v1374_v52 = vpack.c.bf16 %v597_v45, %v589_v44 }
  0x32   : > { %1325 = vmatpush1.bf16.msra.mxu0 %v1324_v50  ;;  %v588_v50 = vld [vmem:[%s2030_s5 + $0x220] sm:$0xff] }
  0x33   : > { %1359 = vmatprep.subr.bf16.mxu0 %v1358_v57  ;;  %v613_v57 = vld [vmem:[%s2030_s5 + $0x2e8] sm:$0xff] }
  0xe7   : > { %v1258_v61 = vpop.f32.mrb[0].mxu0 }
  0xe8   : > { %v416_v62 = vadd.f32 %v1258_v61, %v1232_v60  ;;  %v410_v63 = vpop.f32.mrb[1].mxu0  ;;  %v1235_v61 = vld [vmem:[%s2029_s4] ss:$0 sm:$0xff] }
  0xe9   : > { %v411_v2 = vadd.f32 %v1232_v60, %v410_v63  ;;  %v1473_v60 = vmov 0.0  }
  0xea   : > { %v420_v7 = vmax.f32 %v416_v62, 0.0  ;;  %754 = vmatprep.mubr.f32.mxu0 %v1473_v60  ;;  %v524_v62 = vld [vmem:[%s2030_s5 + $0x20] sm:$0xff] }
  0xeb   : > { %v419_v5 = vmax.f32 %v411_v2, 0.0  ;;  %v534_v2 = vld [vmem:[%s2030_s5 + $0x70] sm:$0xff]  ;;  %v1360_v9 = vpack.c.bf16 %v532_v0, %v524_v62  ;;  %v1408_v62 = vpack.c.bf16 %v598_v55, %v590_v54  ;;  %v612_v0 = vld [vmem:[%s2030_s5 + $0x2e0] sm:$0xff] }
  0xec   : > { %v1392_v10 = vpack.c.bf16 %v534_v2, %v526_v1  ;;  %v1378_v1 = vpack.c.bf16 %v613_v57, %v605_v56 }
  0xed   : > { %1275 = vmatprep.mubr.msk.f32.mxu1 %vm436_vm1, %v419_v5 }
  0xee   : > { %1276 = vmatmul.mubr.msk.f32.vlgmr.msra.gmra.mrb[0].mxu1 %vm436_vm1, %v420_v7  ;;  %v543_v7 = vld [vmem:[%s2030_s5 + $0xb8] sm:$0xff] }
  0xef   : > { %1329 = vmatpush1.bf16.msra.mxu1 %v1328_v6  ;;  %831 = vmatprep.mubr.f32.mxu1 %v1473_v60  ;;  %v549_v6 = vld [vmem:[%s2030_s5 + $0xe8] sm:$0xff] }
  0xf0   : > { %1331 = vmatprep.subr.bf16.mxu1 %v1330_v8  ;;  %v551_v8 = vld [vmem:[%s2030_s5 + $0xf8] sm:$0xff]  ;;  %v1362_v18 = vpack.c.bf16 %v549_v6, %v541_v4  ;;  %v614_v4 = vld [vmem:[%s2030_s5 + $0x2f0] sm:$0xff]  ;;  %v629_v6 = vld [vmem:[%s2030_s5 + $0x368] sm:$0xff] }
  0xf3   : > { %1333 = vmatpush1.bf16.msra.mxu1 %v1332_v13 }
  0xf4   : > { %1335 = vmatprep.subr.bf16.mxu1 %v1334_v14 }
  0xf7   : > { %1337 = vmatpush1.bf16.msra.mxu1 %v1336_v19  ;;  %v1394_v19 = vpack.c.bf16 %v551_v8, %v543_v7  ;;  %v623_v7 = vld [vmem:[%s2030_s5 + $0x338] sm:$0xff] }
  0xf8   : > { %1339 = vmatprep.subr.bf16.mxu1 %v1338_v20  ;;  %v565_v20 = vld [vmem:[%s2030_s5 + $0x168] sm:$0xff]  ;;  %v631_v8 = vld [vmem:[%s2030_s5 + $0x378] sm:$0xff] }
  0xf9   : > { %v1366_v28 = vpack.c.bf16 %v565_v20, %v557_v17  ;;  %v1414_v15 = vpack.c.bf16 %v631_v8, %v623_v7  ;;  %v630_v17 = vld [vmem:[%s2030_s5 + $0x370] sm:$0xff]  ;;  %v639_v20 = vld [vmem:[%s2030_s5 + $0x3b8] sm:$0xff] }
  0xfb   : > { %1341 = vmatpush1.bf16.msra.mxu1 %v1340_v25  ;;  %v556_v25 = vld [vmem:[%s2030_s5 + $0x120] sm:$0xff] }
  0xfc   : > { %1343 = vmatprep.subr.bf16.mxu1 %v1342_v26  ;;  %v564_v26 = vld [vmem:[%s2030_s5 + $0x160] sm:$0xff] }
  0xfd   : > { %v1368_v36 = vpack.c.bf16 %v564_v26, %v556_v25  ;;  %v1418_v26 = vpack.c.bf16 %v647_v21, %v639_v20 }
  0xff   : > { %1345 = vmatpush1.bf16.msra.mxu1 %v1344_v31  ;;  %v566_v31 = vld [vmem:[%s2030_s5 + $0x170] sm:$0xff] }
 0x100   : > { %1347 = vmatprep.subr.bf16.mxu1 %v1346_v32  ;;  %v573_v32 = vld [vmem:[%s2030_s5 + $0x1a8] sm:$0xff] }
 0x101   : > { %v1370_v40 = vpack.c.bf16 %v581_v33, %v573_v32  ;;  %v650_v33 = vlaneseq }
 0x103   : > { %1349 = vmatpush1.bf16.msra.mxu1 %v1348_v37  ;;  %v1400_v37 = vpack.c.bf16 %v566_v31, %v558_v30  ;;  %v646_v30 = vld [vmem:[%s2030_s5 + $0x3f0] sm:$0xff] }
 0x104   : > { %1351 = vmatprep.subr.bf16.mxu1 %v1350_v38  ;;  %v572_v38 = vld [vmem:[%s2030_s5 + $0x1a0] sm:$0xff] }
 0x105   : > { %v1372_v48 = vpack.c.bf16 %v580_v39, %v572_v38 }
 0x107   : > { %1353 = vmatpush1.bf16.msra.mxu1 %v1352_v41  ;;  %v1402_v41 = vpack.c.bf16 %v583_v35, %v575_v34  ;;  %v1979_v34 = vshrl.u32 %v650_v33, 7 }
 0x108   : > { %1355 = vmatprep.subr.bf16.mxu1 %v1354_v49  ;;  %v1404_v49 = vpack.c.bf16 %v582_v43, %v574_v42 }
 0x109   : > { %v652_v35 = vsub.s32 0, %v1979_v34  ;;  %v668_v33 = vsub.s32 4, %v1979_v34 }
 0x10b   : > { %1357 = vmatpush1.bf16.msra.mxu1 %v1356_v53  ;;  %v1406_v53 = vpack.c.bf16 %v599_v47, %v591_v46 }
 0x10c   : > { %1391 = vmatprep.subr.bf16.mxu1 %v1390_v59  ;;  %v615_v59 = vld [vmem:[%s2030_s5 + $0x2f8] sm:$0xff] }
 0x10d   : > { %v1410_v2 = vpack.c.bf16 %v615_v59, %v607_v58 }
 0x1c1   : > { %v1277_v63 = vpop.f32.mrb[0].mxu1 }
 0x1c2   : > { %v509_v3 = vpop.f32.mrb[1].mxu1  ;;  %v515_v13 = vadd.f32 %v1277_v63, %v1235_v61  ;;  %v604_v63 = vld [vmem:[%s2030_s5 + $0x2a0] sm:$0xff] }
 0x1c3   : > { %v510_v5 = vadd.f32 %v1235_v61, %v509_v3  ;;  %v1376_v61 = vpack.c.bf16 %v596_v51, %v588_v50  ;;  %v606_v3 = vld [vmem:[%s2030_s5 + $0x2b0] sm:$0xff] }
 0x1c4   : > { %v1839_v27 = vmax.f32 %v515_v13, 0.0 }
 0x1c5   : > { %v1811_v14 = vmax.f32 %v510_v5, 0.0  ;;  %v621_v5 = vld [vmem:[%s2030_s5 + $0x328] sm:$0xff] }
 0x1c6   : > { %v1382_v13 = vpack.c.bf16 %v629_v6, %v621_v5  ;;  %v1474_v5 = vmov 1966171168  }
 0x1c7   : > { %755 = vmatmul.mubr.f32.vlgmr.msra.gmra.mrb[2].mxu0 %v1811_v14  ;;  %832 = vmatmul.mubr.f32.vlgmr.msra.gmra.mrb[2].mxu1 %v1811_v14  ;;  %v1097_v6 = vunpack.c.l.s4 %v1474_v5 }
 0x1c8   : > { %1361 = vmatpush1.bf16.msra.mxu0 %v1360_v9  ;;  %1393 = vmatpush1.bf16.msra.mxu1 %v1392_v10  ;;  %v1380_v9 = vpack.c.bf16 %v612_v0, %v604_v63  ;;  %v1412_v10 = vpack.c.bf16 %v614_v4, %v606_v3 }
 0x1c9   : > { %760 = vmatprep.mubr.f32.mxu0 %v1473_v60  ;;  %837 = vmatprep.mubr.f32.mxu1 %v1473_v60 }
 0x1ca   : > { %1363 = vmatprep.subr.bf16.mxu0 %v1362_v18  ;;  %1395 = vmatprep.subr.bf16.mxu1 %v1394_v19  ;;  %v637_v18 = vld [vmem:[%s2030_s5 + $0x3a8] sm:$0xff] }
 0x1cb   : > { %761 = vmatmul.mubr.f32.gmra.mrb[4].mxu0 %v1839_v27  ;;  %838 = vmatmul.mubr.f32.gmra.mrb[4].mxu1 %v1839_v27  ;;  %v645_v19 = vld [vmem:[%s2030_s5 + $0x3e8] sm:$0xff] }
 0x1cc   : > { %1365 = vmatpush1.bf16.msra.mxu0 %v1364_v23  ;;  %1397 = vmatpush1.bf16.msra.mxu1 %v1396_v24  ;;  %v1416_v23 = vpack.c.bf16 %v630_v17, %v622_v16  ;;  %v636_v24 = vld [vmem:[%s2030_s5 + $0x3a0] sm:$0xff]  ;;  %v1386_v25 = vpack.c.bf16 %v645_v19, %v637_v18  ;;  %v1098_v16 = vunpack.c.0.s8 %v1097_v6 }
 0x1cd   : > { %1367 = vmatprep.subr.bf16.mxu0 %v1366_v28  ;;  %1399 = vmatprep.subr.bf16.mxu1 %v1398_v29  ;;  %v644_v28 = vld [vmem:[%s2030_s5 + $0x3e0] sm:$0xff]  ;;  %v638_v29 = vld [vmem:[%s2030_s5 + $0x3b0] sm:$0xff] }
 0x1ce   : > { %908 = vmatprep.mubr.f32.mxu0 %v1473_v60  ;;  %985 = vmatprep.mubr.f32.mxu1 %v1473_v60  ;;  %v1388_v31 = vpack.c.bf16 %v644_v28, %v636_v24  ;;  %v1420_v32 = vpack.c.bf16 %v646_v30, %v638_v29 }
 0x1d0   : > { %1369 = vmatpush1.bf16.msra.mxu0 %v1368_v36  ;;  %1401 = vmatpush1.bf16.msra.mxu1 %v1400_v37  ;;  %v660_v36 = vsub.s32 2, %v1979_v34  ;;  %v1986_v37 = vld [vmem:[%s2031_s6] sm:$0xff] }
 0x1d1   : > { %1371 = vmatprep.subr.bf16.mxu0 %v1370_v40  ;;  %1403 = vmatprep.subr.bf16.mxu1 %v1402_v41 }
 0x1d2   : > { %v661_v40 = vrot.slane %v1986_v37, %v660_v36  ;;  %v672_v36 = vsub.s32 5, %v1979_v34 }
 0x1d4   : > { %1373 = vmatpush1.bf16.msra.mxu0 %v1372_v48  ;;  %1405 = vmatpush1.bf16.msra.mxu1 %v1404_v49 }
 0x1d5   : > { %1375 = vmatprep.subr.bf16.mxu0 %v1374_v52  ;;  %1407 = vmatprep.subr.bf16.mxu1 %v1406_v53 }
 0x1d8   : > { %1377 = vmatpush1.bf16.msra.mxu0 %v1376_v61  ;;  %1409 = vmatpush1.bf16.msra.mxu1 %v1408_v62 }
 0x1d9   : > { %1379 = vmatprep.subr.bf16.mxu0 %v1378_v1  ;;  %1411 = vmatprep.subr.bf16.mxu1 %v1410_v2 }
 0x1dc   : > { %1381 = vmatpush1.bf16.msra.mxu0 %v1380_v9  ;;  %1413 = vmatpush1.bf16.msra.mxu1 %v1412_v10 }
 0x1dd   : > { %1383 = vmatprep.subr.bf16.mxu0 %v1382_v13  ;;  %1415 = vmatprep.subr.bf16.mxu1 %v1414_v15 }
 0x1e0   : > { %1385 = vmatpush1.bf16.msra.mxu0 %v1384_v22  ;;  %1417 = vmatpush1.bf16.msra.mxu1 %v1416_v23 }
 0x1e1   : > { %1387 = vmatprep.subr.bf16.mxu0 %v1386_v25  ;;  %1419 = vmatprep.subr.bf16.mxu1 %v1418_v26  ;;  %v1995_v25 = vsub.s32 %v1098_v16, %v1979_v34 }
 0x1e4   : > { %1389 = vmatpush1.bf16.msra.mxu0 %v1388_v31  ;;  %1421 = vmatpush1.bf16.msra.mxu1 %v1420_v32 }
 0x1e7   : > { %909 = vmatmul.mubr.f32.vlgmr.msra.gmra.mrb[6].mxu0 %v1811_v14  ;;  %986 = vmatmul.mubr.f32.vlgmr.msra.gmra.mrb[6].mxu1 %v1811_v14  ;;  %v656_v14 = vsub.s32 1, %v1979_v34 }
 0x1e8   : > { %914 = vmatprep.mubr.f32.mxu0 %v1473_v60  ;;  %991 = vmatprep.mubr.f32.mxu1 %v1473_v60  ;;  %v664_v60 = vsub.s32 3, %v1979_v34 }
 0x1e9   : > { %v657_v43 = vrot.slane %v1986_v37, %v656_v14  ;;  %v680_v14 = vsub.s32 7, %v1979_v34 }
 0x1ea   : > { %v665_v44 = vrot.slane %v1986_v37, %v664_v60 }
 0x1eb   : > { %915 = vmatmul.mubr.f32.gmra.mrb[8].mxu0 %v1839_v27  ;;  %992 = vmatmul.mubr.f32.gmra.mrb[8].mxu1 %v1839_v27  ;;  %v653_v27 = vrot.slane %v1986_v37, %v652_v35  ;;  %v676_v35 = vsub.s32 6, %v1979_v34 }
 0x29a   : > { %v756_v38 = vpop.f32.mrb[2].mxu0  ;;  %v833_v39 = vpop.f32.mrb[2].mxu1 }
 0x29b   : > { %v758_v41 = vpop.f32.mrb[3].mxu0  ;;  %v835_v42 = vpop.f32.mrb[3].mxu1  ;;  %v757_v47 = vadd.f32 %v756_v38, %v653_v27  ;;  %v834_v48 = vadd.f32 %v833_v39, %v661_v40  ;;  %v669_v39 = vrot.slane %v1986_v37, %v668_v33 }
 0x29c   : > { %v759_v53 = vadd.f32 %v758_v41, %v657_v43  ;;  %v836_v54 = vadd.f32 %v835_v42, %v665_v44  ;;  %v673_v42 = vrot.slane %v1986_v37, %v672_v36 }
 0x29e   : > { %v762_v45 = vpop.f32.mrb[4].mxu0  ;;  %v839_v46 = vpop.f32.mrb[4].mxu1 }
 0x29f   : > { %v763_v49 = vadd.f32 %v762_v45, %v653_v27  ;;  %v840_v50 = vadd.f32 %v839_v46, %v661_v40  ;;  %v764_v51 = vpop.f32.mrb[5].mxu0  ;;  %v841_v52 = vpop.f32.mrb[5].mxu1  ;;  %v677_v27 = vrot.slane %v1986_v37, %v676_v35 }
 0x2a0   : > { %v765_v55 = vadd.f32 %v764_v51, %v657_v43  ;;  %v842_v56 = vadd.f32 %v841_v52, %v665_v44  ;;  %v681_v43 = vrot.slane %v1986_v37, %v680_v14 }
 0x2a1   : > { %v1027_v57 = vmax.f32 %v757_v47, %v763_v49  ;;  %v1041_v58 = vmax.f32 %v834_v48, %v840_v50 }
 0x2a2   : > { %v1034_v59 = vmax.f32 %v759_v53, %v765_v55  ;;  %v1048_v61 = vmax.f32 %v836_v54, %v842_v56 }
 0x2a3   : > { %v1028_v62 = vrot.slane %v1027_v57, 4  ;;  %v1042_v63 = vrot.slane %v1041_v58, 4 }
 0x2a4   : > { %v1035_v0 = vrot.slane %v1034_v59, 4  ;;  %v1049_v1 = vrot.slane %v1048_v61, 4 }
 0x2a5   : > { %v1029_v2 = vmax.f32 %v1027_v57, %v1028_v62  ;;  %v1043_v3 = vmax.f32 %v1041_v58, %v1042_v63 }
 0x2a6   : > { %v1036_v4 = vmax.f32 %v1034_v59, %v1035_v0  ;;  %v1050_v7 = vmax.f32 %v1048_v61, %v1049_v1 }
 0x2a7   : > { %v1030_v8 = vrot.slane %v1029_v2, 2  ;;  %v1044_v9 = vrot.slane %v1043_v3, 2 }
 0x2a8   : > { %v1037_v10 = vrot.slane %v1036_v4, 2  ;;  %v1051_v11 = vrot.slane %v1050_v7, 2 }
 0x2a9   : > { %v1031_v12 = vmax.f32 %v1029_v2, %v1030_v8  ;;  %v1045_v13 = vmax.f32 %v1043_v3, %v1044_v9 }
 0x2aa   : > { %v1038_v15 = vmax.f32 %v1036_v4, %v1037_v10  ;;  %v1052_v17 = vmax.f32 %v1050_v7, %v1051_v11 }
 0x2ab   : > { %v1032_v18 = vrot.slane %v1031_v12, 1  ;;  %v1046_v19 = vrot.slane %v1045_v13, 1 }
 0x2ac   : > { %v1039_v20 = vrot.slane %v1038_v15, 1  ;;  %v1053_v21 = vrot.slane %v1052_v17, 1 }
 0x2ad   : > { %v1033_v22 = vmax.f32 %v1031_v12, %v1032_v18  ;;  %v1047_v23 = vmax.f32 %v1045_v13, %v1046_v19 }
 0x2ae   : > { %v1040_v24 = vmax.f32 %v1038_v15, %v1039_v20  ;;  %v1054_v26 = vmax.f32 %v1052_v17, %v1053_v21 }
 0x2b0   : > { %v1092_v28 = vcombine.low %v1033_v22, %v1040_v24  ;;  %v1093_v29 = vcombine.low %v1047_v23, %v1054_v26 }
 0x2b2   : > { %v1102_v30 = vrot.slane %v1092_v28, %v1995_v25  ;;  %v1109_v31 = vrot.slane %v1093_v29, %v1995_v25 }
 0x2b4   : > { %v1124_v32 = vcombine.low %v1102_v30, %v1109_v31 }
 0x2b6   : > { %v1132_v26 = vrot.slane %v1124_v32, %v1995_v25 }
 0x2ba   : > { %v910_v60 = vpop.f32.mrb[6].mxu0  ;;  %v987_v38 = vpop.f32.mrb[6].mxu1 }
 0x2bb   : > { %v912_v40 = vpop.f32.mrb[7].mxu0  ;;  %v989_v41 = vpop.f32.mrb[7].mxu1  ;;  %v911_v46 = vadd.f32 %v910_v60, %v669_v39  ;;  %v988_v47 = vadd.f32 %v987_v38, %v677_v27 }
 0x2bc   : > { %v913_v51 = vadd.f32 %v912_v40, %v673_v42  ;;  %v990_v52 = vadd.f32 %v989_v41, %v681_v43 }
 0x2be   : > { %v916_v44 = vpop.f32.mrb[8].mxu0  ;;  %v993_v45 = vpop.f32.mrb[8].mxu1 }
 0x2bf   : > { %v917_v48 = vadd.f32 %v916_v44, %v669_v39  ;;  %v994_v49 = vadd.f32 %v993_v45, %v677_v27  ;;  %v918_v50 = vpop.f32.mrb[9].mxu0  ;;  %v995_v34 = vpop.f32.mrb[9].mxu1 }
 0x2c0   : > { %v919_v53 = vadd.f32 %v918_v50, %v673_v42  ;;  %v996_v54 = vadd.f32 %v995_v34, %v681_v43 }
 0x2c1   : > { %v1055_v55 = vmax.f32 %v911_v46, %v917_v48  ;;  %v1069_v56 = vmax.f32 %v988_v47, %v994_v49 }
 0x2c2   : > { %v1062_v57 = vmax.f32 %v913_v51, %v919_v53  ;;  %v1076_v58 = vmax.f32 %v990_v52, %v996_v54 }
 0x2c3   : > { %v1056_v59 = vrot.slane %v1055_v55, 4  ;;  %v1070_v61 = vrot.slane %v1069_v56, 4 }
 0x2c4   : > { %v1063_v62 = vrot.slane %v1062_v57, 4  ;;  %v1077_v37 = vrot.slane %v1076_v58, 4 }
 0x2c5   : > { %v1057_v63 = vmax.f32 %v1055_v55, %v1056_v59  ;;  %v1071_v0 = vmax.f32 %v1069_v56, %v1070_v61 }
 0x2c6   : > { %v1064_v1 = vmax.f32 %v1062_v57, %v1063_v62  ;;  %v1078_v2 = vmax.f32 %v1076_v58, %v1077_v37 }
 0x2c7   : > { %v1058_v3 = vrot.slane %v1057_v63, 2  ;;  %v1072_v4 = vrot.slane %v1071_v0, 2 }
 0x2c8   : > { %v1065_v5 = vrot.slane %v1064_v1, 2  ;;  %v1079_v6 = vrot.slane %v1078_v2, 2 }
 0x2c9   : > { %v1059_v7 = vmax.f32 %v1057_v63, %v1058_v3  ;;  %v1073_v8 = vmax.f32 %v1071_v0, %v1072_v4 }
 0x2ca   : > { %v1066_v9 = vmax.f32 %v1064_v1, %v1065_v5  ;;  %v1080_v10 = vmax.f32 %v1078_v2, %v1079_v6 }
 0x2cb   : > { %v1060_v11 = vrot.slane %v1059_v7, 1  ;;  %v1074_v12 = vrot.slane %v1073_v8, 1 }
 0x2cc   : > { %v1067_v13 = vrot.slane %v1066_v9, 1  ;;  %v1081_v15 = vrot.slane %v1080_v10, 1 }
 0x2cd   : > { %v1061_v16 = vmax.f32 %v1059_v7, %v1060_v11  ;;  %v1075_v17 = vmax.f32 %v1073_v8, %v1074_v12 }
 0x2ce   : > { %v1068_v18 = vmax.f32 %v1066_v9, %v1067_v13  ;;  %v1082_v19 = vmax.f32 %v1080_v10, %v1081_v15 }
 0x2d0   : > { %v1094_v20 = vcombine.low %v1061_v16, %v1068_v18  ;;  %v1095_v21 = vcombine.low %v1075_v17, %v1082_v19 }
 0x2d2   : > { %v1116_v22 = vrot.slane %v1094_v20, %v1995_v25  ;;  %v1123_v23 = vrot.slane %v1095_v21, %v1995_v25 }
 0x2d4   : > { %v1125_v24 = vcombine.low %v1116_v22, %v1123_v23 }
 0x2d6   : > { %v1139_v28 = vrot.slane %v1125_v24, %v1995_v25 }
 0x2d8   : > { %v1140_v29 = vcombine.low %v1132_v26, %v1139_v28 }
 0x2da   : > { %1143 = vst [vmem:[%s321_s23] sm:$0xff] %v1140_v29 }
 0x2db PF: > { %s17_s26 = sadd.s32 1, %s1471_s26   ;;  %s2033_s24 = smov %s1467_s25 }
 0x2dc   : > { %p14_p5 = scmp.ge.s32.totalorder %s17_s26, 4   ;;  %s2034_s25 = smov %s2036_s27 }
 0x2de   :  { %16 = sbr.rel (!%p14_p5) target bundleno = 2 (0x2), region = 85 }

// kernel: pointnet_seg_forward.5
= control target key start
LH: loop header
LB: loop body
LE: loop exit
PB: predicated region body
PF: predicated region fallthrough
CT: control target
= control target key end

     0   :  { %12 = vsyncpa [#allocation3], 0  ;;  %s2179_s0 = inlined_call_operand.vmem [shape: f32[2,16,8], index: 0, kind: input, shape index: {}]   ;;  %s2180_s1 = inlined_call_operand.hbm [shape: f32[1,8,64], index: 1, kind: input, shape index: {}]   ;;  %s2181_s2 = inlined_call_operand.hbm [shape: f32[1,64], index: 2, kind: input, shape index: {}]   ;;  %s2182_s3 = inlined_call_operand.hbm [shape: f32[64,128], index: 3, kind: input, shape index: {}]   ;;  %s2183_s4 = inlined_call_operand.hbm [shape: f32[1,128], index: 4, kind: input, shape index: {}]   ;;  %s2184_s5 = inlined_call_operand.hbm [shape: f32[128,1024], index: 5, kind: input, shape index: {}]   ;;  %s2185_s6 = inlined_call_operand.hbm [shape: f32[1,1024], index: 6, kind: input, shape index: {}]   ;;  %s2186_s7 = inlined_call_operand.vmem [shape: f32[2,1,1024], index: 7, kind: output, shape index: {}]  }
   0x1   :  { %13 = vsyncpa [#allocation5], 0 }
   0x2   :  { %14 = vsyncpa [#allocation8], 0 }
   0x3   :  { %15 = vsyncpa [#allocation11], 0  ;;  %s1913_s24 = smov 0   ;;  %s1915_s25 = smov 0  }
   0x4   :  { %s1917_s26 = smov 0  }
   0x5 LB: > { %s1861_s27 = smov [#allocation4]   ;;  %s1351_s29 = sadd.s32 4294967295, %s1859_s26   ;;  %s1859_s26 = sphi %s1917_s26, %s21_s26   ;;  %s1855_s25 = sphi %s1915_s25, %s2199_s25   ;;  %s1851_s24 = sphi %s1913_s24, %s2198_s24  }
   0x6   : > { %s242_s28 = sshll.u32 %s1861_s27, 4  ;;  %p1353_p0 = scmp.ge.s32.totalorder %s1859_s26, 1  ;;  %s243_s28 = int_to_ptr.vmem [resolvable:$true] %s242_s28 }
   0x7   : > { %p218_p1 = scmp.lt.s32.totalorder %s1859_s26, 3  ;;  %p1931_p2 = scmp.eq.s32.totalorder %s1351_s29, 0 }
   0x8   : > { %s1862_s9 = smov [#allocation7]   ;;  %s33_s12 = sadd.s32 1, %s1855_s25 }
   0x9   : > { %s2190_s30 = scalar_select %p1931_p2, 1, 0 }
   0xa   : > { %p1935_p3 = pnand %p1353_p0, %p218_p1  ;;  %s266_s10 = sshll.u32 %s1862_s9, 4  ;;  %s1941_s10 = int_to_ptr.vmem [resolvable:$true] %s266_s10 }
   0xb   : > { %p1952_p6 = scmp.ge.s32.totalorder %s33_s12, 2  ;;  %s1653_s16 = scalar_lea.hbm %s2181_s2, 16 }
   0xc   : > { %s2191_s8 = scalar_select %p1935_p3, 1, 0 }
   0xd   : > { %p1585_p4 = pneg %p1935_p3  ;;  %p1654_p7 = scmp.ne.s32.totalorder %s2181_s2, %s1653_s16 }
   0xe   : > { %s2193_s13 = scalar_select %p1952_p6, 1, 0 }
   0xf   : > { %p1945_p5 = pnand %p1931_p2, %p1585_p4  ;;  %p1660_p11 = scmp.lt.u32.totalorder %s1653_s16, %s2181_s2 }
  0x11   : > { %p1964_p8 = pneg %p1945_p5 }
  0x13   : > { %p1656_p9 = pnand %p1964_p8, %p1654_p7 }
  0x15   : > { %p1657_p10 = pneg %p1656_p9 }
  0x17   : > { %p1662_p12 = pnand %p1660_p11, %p1657_p10 }
  0x19   : > { %1665 = shalt.err (!%p1662_p12)
}
  0x1a   : > { %s1666_s22 = scalar_lea.vmem %s243_s28, 16  ;;  %s1673_s23 = scalar_lea.vmem %s243_s28, 32 }
  0x1b   : > { %p1667_p13 = scmp.ne.s32.totalorder %s243_s28, %s1666_s22  ;;  %p1674_p4 = scmp.lt.s32.totalorder %s243_s28, %s243_s28 }
  0x1c   : > { %p1675_p2 = scmp.lt.s32.totalorder %s1673_s23, %s1666_s22 }
  0x1d   : > { %p1669_p0 = pnand %p1667_p13, %p1964_p8 }
  0x1e   : > { %p1676_p3 = por %p1675_p2, %p1674_p4 }
  0x1f   : > { %p1670_p1 = pneg %p1669_p0 }
  0x21   : > { %p1677_p6 = pnand %p1676_p3, %p1670_p1 }
  0x23   : > { %1680 = shalt.err (!%p1677_p6)
}
  0x24   : > { %1591 = dma.hbm_to_vmem [thread:$0]  (!%p1945_p5), %s2181_s2, 16, %s243_s28, [#allocation5]  }
  0x25   : > { %s1681_s15 = scalar_lea.hbm %s2183_s4, 16 }
  0x26   : > { %p1682_p7 = scmp.ne.s32.totalorder %s2183_s4, %s1681_s15  ;;  %p1688_p3 = scmp.lt.u32.totalorder %s1681_s15, %s2183_s4 }
  0x28   : > { %p1684_p9 = pnand %p1682_p7, %p1964_p8 }
  0x2a   : > { %p1685_p2 = pneg %p1684_p9 }
  0x2c   : > { %p1690_p6 = pnand %p1688_p3, %p1685_p2 }
  0x2e   : > { %1693 = shalt.err (!%p1690_p6)
}
  0x2f   : > { %s1694_s28 = scalar_lea.vmem %s1941_s10, 16  ;;  %s1701_s21 = scalar_lea.vmem %s1941_s10, 32 }
  0x30   : > { %p1695_p10 = scmp.ne.s32.totalorder %s1941_s10, %s1694_s28  ;;  %p1702_p13 = scmp.lt.s32.totalorder %s1941_s10, %s1941_s10 }
  0x31   : > { %p1703_p0 = scmp.lt.s32.totalorder %s1701_s21, %s1694_s28 }
  0x32   : > { %p1697_p11 = pnand %p1695_p10, %p1964_p8 }
  0x33   : > { %p1704_p1 = por %p1703_p0, %p1702_p13 }
  0x34   : > { %p1698_p12 = pneg %p1697_p11 }
  0x36   : > { %p1705_p4 = pnand %p1704_p1, %p1698_p12 }
  0x38   : > { %1708 = shalt.err (!%p1705_p4)
}
  0x39   : > { %1597 = dma.hbm_to_vmem [thread:$0]  (!%p1945_p5), %s2183_s4, 16, %s1941_s10, [#allocation8]  }
  0x3a   : > { %p2195_p7 = scmp.ne.s32.totalorder %s2193_s13, 0  ;;  %s1863_s27 = smov [#allocation2]  }
  0x3b   : > { %s231_s29 = sshll.u32 %s1863_s27, 4  ;;  %s1864_s9 = smov [#allocation6]   ;;  %s232_s29 = int_to_ptr.vmem [resolvable:$true] %s231_s29 }
  0x3c   : > { %s2201_s12 = smov (%p2195_p7, %s33_s12), 0  ;;  %s252_s14 = sshll.u32 %s1864_s9, 4  ;;  %s253_s14 = int_to_ptr.vmem [resolvable:$true] %s252_s14 }
  0x3d   : > { %s1709_s17 = scalar_lea.hbm %s2180_s1, 128 }
  0x3e   : > { %p1710_p9 = scmp.ne.s32.totalorder %s2180_s1, %s1709_s17  ;;  %p1716_p6 = scmp.lt.u32.totalorder %s1709_s17, %s2180_s1 }
  0x40   : > { %p1712_p2 = pnand %p1710_p9, %p1964_p8 }
  0x42   : > { %p1713_p3 = pneg %p1712_p2 }
  0x44   : > { %p1718_p10 = pnand %p1716_p6, %p1713_p3 }
  0x46   : > { %1721 = shalt.err (!%p1718_p10)
}
  0x47   : > { %s1722_s28 = scalar_lea.vmem %s232_s29, 128  ;;  %p1730_p0 = scmp.lt.s32.totalorder %s232_s29, %s232_s29 }
  0x48   : > { %p1723_p11 = scmp.ne.s32.totalorder %s232_s29, %s1722_s28  ;;  %p1731_p1 = scmp.lt.s32.totalorder %s1722_s28, %s1722_s28 }
  0x4a   : > { %p1725_p12 = pnand %p1723_p11, %p1964_p8  ;;  %p1732_p4 = por %p1731_p1, %p1730_p0 }
  0x4c   : > { %p1726_p13 = pneg %p1725_p12 }
  0x4e   : > { %p1733_p7 = pnand %p1732_p4, %p1726_p13 }
  0x50   : > { %1736 = shalt.err (!%p1733_p7)
}
  0x51   : > { %1588 = dma.hbm_to_vmem [thread:$0]  (!%p1945_p5), %s2180_s1, 128, %s232_s29, [#allocation3]  }
  0x52   : > { %s1737_s9 = scalar_lea.hbm %s2182_s3, 1024 }
  0x53   : > { %p1738_p9 = scmp.ne.s32.totalorder %s2182_s3, %s1737_s9  ;;  %p1744_p6 = scmp.lt.u32.totalorder %s1737_s9, %s2182_s3 }
  0x55   : > { %p1740_p2 = pnand %p1738_p9, %p1964_p8 }
  0x57   : > { %p1741_p3 = pneg %p1740_p2 }
  0x59   : > { %p1746_p10 = pnand %p1744_p6, %p1741_p3 }
  0x5b   : > { %1749 = shalt.err (!%p1746_p10)
}
  0x5c   : > { %s1750_s20 = scalar_lea.vmem %s253_s14, 1024  ;;  %p1758_p0 = scmp.lt.s32.totalorder %s253_s14, %s253_s14 }
  0x5d   : > { %p1751_p11 = scmp.ne.s32.totalorder %s253_s14, %s1750_s20  ;;  %p1759_p1 = scmp.lt.s32.totalorder %s1750_s20, %s1750_s20 }
  0x5f   : > { %p1753_p12 = pnand %p1751_p11, %p1964_p8  ;;  %p1760_p4 = por %p1759_p1, %p1758_p0 }
  0x61   : > { %p1754_p13 = pneg %p1753_p12 }
  0x63   : > { %p1761_p7 = pnand %p1760_p4, %p1754_p13 }
  0x65   : > { %1764 = shalt.err (!%p1761_p7)
}
  0x66   : > { %s1865_s29 = smov 128   ;;  %s1866_s10 = smov 8  }
  0x67   : > { %1594 = dma.hbm_to_vmem [thread:$0]  (!%p1945_p5), %s2182_s3, 1024, %s253_s14, [#allocation5], %s1865_s29, %s1865_s29, %s1866_s10  }
  0x68   : > { %s1867_s21 = smov [#allocation9]   ;;  %s1765_s9 = scalar_lea.hbm %s2184_s5, 16384 }
  0x69   : > { %s276_s22 = sshll.u32 %s1867_s21, 4  ;;  %p1766_p9 = scmp.ne.s32.totalorder %s2184_s5, %s1765_s9  ;;  %s277_s22 = int_to_ptr.vmem [resolvable:$true] %s276_s22 }
  0x6a   : > { %p1772_p6 = scmp.lt.u32.totalorder %s1765_s9, %s2184_s5 }
  0x6b   : > { %p1768_p2 = pnand %p1766_p9, %p1964_p8 }
  0x6d   : > { %p1769_p3 = pneg %p1768_p2 }
  0x6f   : > { %p1774_p10 = pnand %p1772_p6, %p1769_p3 }
  0x71   : > { %1777 = shalt.err (!%p1774_p10)
}
  0x72   : > { %s1778_s14 = scalar_lea.vmem %s277_s22, 16384  ;;  %p1786_p0 = scmp.lt.s32.totalorder %s277_s22, %s277_s22 }
  0x73   : > { %p1779_p11 = scmp.ne.s32.totalorder %s277_s22, %s1778_s14  ;;  %p1787_p1 = scmp.lt.s32.totalorder %s1778_s14, %s1778_s14 }
  0x75   : > { %p1781_p12 = pnand %p1779_p11, %p1964_p8  ;;  %p1788_p4 = por %p1787_p1, %p1786_p0 }
  0x77   : > { %p1782_p13 = pneg %p1781_p12 }
  0x79   : > { %p1789_p7 = pnand %p1788_p4, %p1782_p13 }
  0x7b   : > { %1792 = shalt.err (!%p1789_p7)
}
  0x7c   : > { %s1868_s20 = smov 1024   ;;  %s1869_s29 = smov 64  }
  0x7d   : > { %1600 = dma.hbm_to_vmem [thread:$0]  (!%p1945_p5), %s2184_s5, 16384, %s277_s22, [#allocation8], %s1868_s20, %s1868_s20, %s1869_s29  }
  0x7e   : > { %s1870_s28 = smov [#allocation10]   ;;  %s1793_s9 = scalar_lea.hbm %s2185_s6, 128 }
  0x7f   : > { %s290_s21 = sshll.u32 %s1870_s28, 4  ;;  %p1794_p9 = scmp.ne.s32.totalorder %s2185_s6, %s1793_s9  ;;  %s291_s21 = int_to_ptr.vmem [resolvable:$true] %s290_s21 }
  0x80   : > { %p1800_p6 = scmp.lt.u32.totalorder %s1793_s9, %s2185_s6 }
  0x81   : > { %p1796_p2 = pnand %p1794_p9, %p1964_p8 }
  0x83   : > { %p1797_p3 = pneg %p1796_p2 }
  0x85   : > { %p1802_p10 = pnand %p1800_p6, %p1797_p3 }
  0x87   : > { %1805 = shalt.err (!%p1802_p10)
}
  0x88   : > { %s1806_s22 = scalar_lea.vmem %s291_s21, 128  ;;  %p1814_p0 = scmp.lt.s32.totalorder %s291_s21, %s291_s21 }
  0x89   : > { %p1807_p11 = scmp.ne.s32.totalorder %s291_s21, %s1806_s22  ;;  %p1815_p1 = scmp.lt.s32.totalorder %s1806_s22, %s1806_s22 }
  0x8b   : > { %p1809_p12 = pnand %p1807_p11, %p1964_p8  ;;  %p1816_p4 = por %p1815_p1, %p1814_p0 }
  0x8d   : > { %p1810_p13 = pneg %p1809_p12 }
  0x8f   : > { %p1817_p7 = pnand %p1816_p4, %p1810_p13 }
  0x91   : > { %1820 = shalt.err (!%p1817_p7)
}
  0x92   : > { %1603 = dma.hbm_to_vmem [thread:$0]  (!%p1945_p5), %s2185_s6, 128, %s291_s21, [#allocation11]  }
  0x93   : > { %p2196_p9 = scmp.ne.s32.totalorder %s2191_s8, 0 }
  0x94   : > { %p2197_p2 = scmp.ne.s32.totalorder (!%p2196_p9), %s2190_s30, 0 }
  0x95   : > { %316 = sbr.rel (%p2196_p9) target bundleno = 883 (0x373), region = 48 }
  0x9c   : > { %1834 = dma.done.wait (%p2197_p2), [#allocation3], 128  }
  0x9d   : > { %1836 = vsyncadd (%p2197_p2), [#allocation3], 4294967168 }
  0x9e   : > { %1838 = dma.done.wait (%p2197_p2), [#allocation5], 1040  }
  0x9f   : > { %1840 = vsyncadd (%p2197_p2), [#allocation5], 4294966256 }
  0xa0   : > { %1842 = dma.done.wait (%p2197_p2), [#allocation8], 16400  }
  0xa1   : > { %1844 = vsyncadd (%p2197_p2), [#allocation8], 4294950896 }
  0xa2   : > { %1846 = dma.done.wait (%p2197_p2), [#allocation11], 128  }
  0xa3   : > { %1848 = vsyncadd (%p2197_p2), [#allocation11], 4294967168  ;;  %p372_p5 = scmp.lt.s32.totalorder %s1851_s24, 1  ;;  %vm400_vm0 = vcmask 64512   ;;  %v392_v0 = vld [vmem:[#allocation2] sm:$0xff]  ;;  %v484_v3 = vld [vmem:[#allocation6] sm:$0xff] }
  0xa4   : > { %1393 = vmatprep.subr.mxu0 %v392_v0  ;;  %v485_v4 = vld [vmem:[#allocation6 + $0x8] sm:$0xff]  ;;  %v486_v5 = vld [vmem:[#allocation6 + $0x10] sm:$0xff]  ;;  %v487_v7 = vld [vmem:[#allocation6 + $0x18] sm:$0xff]  ;;  %vm499_vm1 = vcmask 523264  }
  0xa5   : > { %s2203_s24 = smov (!%p372_p5, %s1851_s24), 1  ;;  %1394 = vmatpush3.msra.mxu0 %v392_v0  ;;  %v1417_v6 = vpack.c.bf16 %v485_v4, %v484_v3  ;;  %v1421_v8 = vpack.c.bf16 %v487_v7, %v486_v5  ;;  %v488_v9 = vld [vmem:[#allocation6 + $0x20] sm:$0xff]  ;;  %v489_v10 = vld [vmem:[#allocation6 + $0x28] sm:$0xff]  ;;  %v490_v12 = vld [vmem:[#allocation6 + $0x30] sm:$0xff] }
  0xa6   : > { %s1379_s8 = sshll.u32 %s2203_s24, 4  ;;  %v1425_v11 = vpack.c.bf16 %v489_v10, %v488_v9  ;;  %v491_v13 = vld [vmem:[#allocation6 + $0x38] sm:$0xff]  ;;  %v584_v15 = vld [vmem:[#allocation9 + $0x8] sm:$0xff]  ;;  %v583_v20 = vld [vmem:[#allocation9] sm:$0xff]  ;;  %s1370_s30 = sshll.u32 %s2203_s24, 3 }
  0xa7   : > { %s379_s29 = scalar_lea.vmem %s2179_s0, %s1379_s8  ;;  %1418 = vmatprep.subr.bf16.mxu1 %v1417_v6  ;;  %v1429_v14 = vpack.c.bf16 %v491_v13, %v490_v12  ;;  %v592_v16 = vld [vmem:[#allocation9 + $0x48] sm:$0xff]  ;;  %v586_v17 = vld [vmem:[#allocation9 + $0x18] sm:$0xff]  ;;  %v591_v21 = vld [vmem:[#allocation9 + $0x40] sm:$0xff]  ;;  %s384_s28 = scalar_lea.vmem %s2186_s7, %s1370_s30 }
  0xa8   : > { %v390_v1 = vld [vmem:[%s379_s29] sm:$0xff]  ;;  %v391_v2 = vld [vmem:[%s379_s29 + $0x8] sm:$0xff]  ;;  %1420 = vmatpush3.bf16.msra.mxu1 %v1417_v6  ;;  %v1433_v18 = vpack.c.bf16 %v592_v16, %v584_v15  ;;  %v594_v19 = vld [vmem:[#allocation9 + $0x58] sm:$0xff]  ;;  %v1435_v23 = vpack.c.bf16 %v591_v21, %v583_v20 }
  0xa9   : > { %1395 = vmatprep.mubr.msk.f32.mxu0 %vm400_vm0, %v390_v1  ;;  %1422 = vmatprep.subr.bf16.mxu1 %v1421_v8  ;;  %v1465_v22 = vpack.c.bf16 %v594_v19, %v586_v17  ;;  %v600_v24 = vld [vmem:[#allocation9 + $0x88] sm:$0xff]  ;;  %v599_v27 = vld [vmem:[#allocation9 + $0x80] sm:$0xff]  ;;  %v1371_v60 = vld [vmem:[#allocation4] ss:$0 sm:$0xff] }
  0xaa   : > { %1396 = vmatmul.mubr.msk.f32.vlgmr.msra.gmra.mrb[0].mxu0 %vm400_vm0, %v391_v2  ;;  %1434 = vmatprep.subr.bf16.mxu0 %v1433_v18  ;;  %v608_v25 = vld [vmem:[#allocation9 + $0xc8] sm:$0xff]  ;;  %v607_v28 = vld [vmem:[#allocation9 + $0xc0] sm:$0xff]  ;;  %v585_v0 = vld [vmem:[#allocation9 + $0x10] sm:$0xff] }
  0xab   : > { %1436 = vmatpush1.bf16.msra.mxu0 %v1435_v23  ;;  %v1437_v26 = vpack.c.bf16 %v608_v25, %v600_v24  ;;  %v1439_v29 = vpack.c.bf16 %v607_v28, %v599_v27  ;;  %v616_v30 = vld [vmem:[#allocation9 + $0x108] sm:$0xff]  ;;  %v615_v33 = vld [vmem:[#allocation9 + $0x100] sm:$0xff]  ;;  %v593_v1 = vld [vmem:[#allocation9 + $0x50] sm:$0xff] }
  0xac   : > { %1424 = vmatpush3.bf16.msra.mxu1 %v1421_v8  ;;  %v624_v31 = vld [vmem:[#allocation9 + $0x148] sm:$0xff]  ;;  %v623_v34 = vld [vmem:[#allocation9 + $0x140] sm:$0xff]  ;;  %v602_v3 = vld [vmem:[#allocation9 + $0x98] sm:$0xff]  ;;  %v1467_v6 = vpack.c.bf16 %v593_v1, %v585_v0 }
  0xad   : > { %1426 = vmatprep.subr.bf16.mxu1 %v1425_v11  ;;  %1438 = vmatprep.subr.bf16.mxu0 %v1437_v26  ;;  %v1441_v32 = vpack.c.bf16 %v624_v31, %v616_v30  ;;  %v1443_v35 = vpack.c.bf16 %v623_v34, %v615_v33  ;;  %v632_v36 = vld [vmem:[#allocation9 + $0x188] sm:$0xff]  ;;  %v631_v39 = vld [vmem:[#allocation9 + $0x180] sm:$0xff]  ;;  %v610_v4 = vld [vmem:[#allocation9 + $0xd8] sm:$0xff] }
  0xae   : > { %v640_v37 = vld [vmem:[#allocation9 + $0x1c8] sm:$0xff]  ;;  %v639_v40 = vld [vmem:[#allocation9 + $0x1c0] sm:$0xff]  ;;  %v1469_v8 = vpack.c.bf16 %v610_v4, %v602_v3  ;;  %v601_v9 = vld [vmem:[#allocation9 + $0x90] sm:$0xff] }
  0xaf   : > { %1440 = vmatpush1.bf16.msra.mxu0 %v1439_v29  ;;  %v1445_v38 = vpack.c.bf16 %v640_v37, %v632_v36  ;;  %v1447_v41 = vpack.c.bf16 %v639_v40, %v631_v39  ;;  %v648_v42 = vld [vmem:[#allocation9 + $0x208] sm:$0xff]  ;;  %v647_v45 = vld [vmem:[#allocation9 + $0x200] sm:$0xff]  ;;  %v609_v10 = vld [vmem:[#allocation9 + $0xd0] sm:$0xff] }
  0xb0   : > { %1428 = vmatpush3.bf16.msra.mxu1 %v1425_v11  ;;  %1442 = vmatprep.subr.bf16.mxu0 %v1441_v32  ;;  %v656_v43 = vld [vmem:[#allocation9 + $0x248] sm:$0xff]  ;;  %v655_v46 = vld [vmem:[#allocation9 + $0x240] sm:$0xff]  ;;  %v618_v11 = vld [vmem:[#allocation9 + $0x118] sm:$0xff]  ;;  %v1471_v13 = vpack.c.bf16 %v609_v10, %v601_v9 }
  0xb1   : > { %1430 = vmatprep.subr.bf16.mxu1 %v1429_v14  ;;  %v1449_v44 = vpack.c.bf16 %v656_v43, %v648_v42  ;;  %v1451_v47 = vpack.c.bf16 %v655_v46, %v647_v45  ;;  %v664_v48 = vld [vmem:[#allocation9 + $0x288] sm:$0xff]  ;;  %v663_v51 = vld [vmem:[#allocation9 + $0x280] sm:$0xff]  ;;  %v626_v12 = vld [vmem:[#allocation9 + $0x158] sm:$0xff] }
  0xb2   : > { %v672_v49 = vld [vmem:[#allocation9 + $0x2c8] sm:$0xff]  ;;  %v671_v52 = vld [vmem:[#allocation9 + $0x2c0] sm:$0xff]  ;;  %v617_v15 = vld [vmem:[#allocation9 + $0x110] sm:$0xff] }
  0xb3   : > { %1444 = vmatpush1.bf16.msra.mxu0 %v1443_v35  ;;  %v1453_v50 = vpack.c.bf16 %v672_v49, %v664_v48  ;;  %v1455_v53 = vpack.c.bf16 %v671_v52, %v663_v51  ;;  %v680_v54 = vld [vmem:[#allocation9 + $0x308] sm:$0xff]  ;;  %v679_v57 = vld [vmem:[#allocation9 + $0x300] sm:$0xff]  ;;  %v625_v16 = vld [vmem:[#allocation9 + $0x150] sm:$0xff] }
  0xb4   : > { %1432 = vmatpush3.bf16.msra.mxu1 %v1429_v14  ;;  %1446 = vmatprep.subr.bf16.mxu0 %v1445_v38  ;;  %v688_v55 = vld [vmem:[#allocation9 + $0x348] sm:$0xff]  ;;  %v687_v58 = vld [vmem:[#allocation9 + $0x340] sm:$0xff]  ;;  %v1473_v14 = vpack.c.bf16 %v626_v12, %v618_v11  ;;  %v634_v17 = vld [vmem:[#allocation9 + $0x198] sm:$0xff]  ;;  %v1475_v19 = vpack.c.bf16 %v625_v16, %v617_v15 }
  0xb5   : > { %1466 = vmatprep.subr.bf16.mxu1 %v1465_v22  ;;  %v1457_v56 = vpack.c.bf16 %v688_v55, %v680_v54  ;;  %v1459_v59 = vpack.c.bf16 %v687_v58, %v679_v57  ;;  %v642_v18 = vld [vmem:[#allocation9 + $0x1d8] sm:$0xff]  ;;  %v633_v21 = vld [vmem:[#allocation9 + $0x190] sm:$0xff]  ;;  %v696_v42 = vld [vmem:[#allocation9 + $0x388] sm:$0xff] }
  0xb6   : > { %v1477_v20 = vpack.c.bf16 %v642_v18, %v634_v17  ;;  %v641_v22 = vld [vmem:[#allocation9 + $0x1d0] sm:$0xff]  ;;  %v650_v23 = vld [vmem:[#allocation9 + $0x218] sm:$0xff]  ;;  %v704_v43 = vld [vmem:[#allocation9 + $0x3c8] sm:$0xff] }
  0xb7   : > { %1448 = vmatpush1.bf16.msra.mxu0 %v1447_v41  ;;  %v658_v24 = vld [vmem:[#allocation9 + $0x258] sm:$0xff]  ;;  %v1479_v25 = vpack.c.bf16 %v641_v22, %v633_v21  ;;  %v649_v27 = vld [vmem:[#allocation9 + $0x210] sm:$0xff]  ;;  %v1461_v45 = vpack.c.bf16 %v704_v43, %v696_v42  ;;  %v703_v48 = vld [vmem:[#allocation9 + $0x3c0] sm:$0xff] }
  0xb8   : > { %1450 = vmatprep.subr.bf16.mxu0 %v1449_v44  ;;  %v1481_v26 = vpack.c.bf16 %v658_v24, %v650_v23  ;;  %v657_v28 = vld [vmem:[#allocation9 + $0x250] sm:$0xff]  ;;  %v666_v29 = vld [vmem:[#allocation9 + $0x298] sm:$0xff]  ;;  %v588_v54 = vld [vmem:[#allocation9 + $0x28] sm:$0xff] }
  0xb9   : > { %v674_v30 = vld [vmem:[#allocation9 + $0x2d8] sm:$0xff]  ;;  %v1483_v31 = vpack.c.bf16 %v657_v28, %v649_v27  ;;  %v665_v33 = vld [vmem:[#allocation9 + $0x290] sm:$0xff]  ;;  %v596_v55 = vld [vmem:[#allocation9 + $0x68] sm:$0xff] }
  0xba   : > { %v1485_v32 = vpack.c.bf16 %v674_v30, %v666_v29  ;;  %v673_v34 = vld [vmem:[#allocation9 + $0x2d0] sm:$0xff]  ;;  %v682_v35 = vld [vmem:[#allocation9 + $0x318] sm:$0xff]  ;;  %v1497_v57 = vpack.c.bf16 %v596_v55, %v588_v54  ;;  %v595_v0 = vld [vmem:[#allocation9 + $0x60] sm:$0xff] }
  0xbb   : > { %1452 = vmatpush1.bf16.msra.mxu0 %v1451_v47  ;;  %v690_v36 = vld [vmem:[#allocation9 + $0x358] sm:$0xff]  ;;  %v1487_v37 = vpack.c.bf16 %v673_v34, %v665_v33  ;;  %v681_v39 = vld [vmem:[#allocation9 + $0x310] sm:$0xff]  ;;  %v695_v47 = vld [vmem:[#allocation9 + $0x380] sm:$0xff] }
  0xbc   : > { %1454 = vmatprep.subr.bf16.mxu0 %v1453_v50  ;;  %v1489_v38 = vpack.c.bf16 %v690_v36, %v682_v35  ;;  %v689_v40 = vld [vmem:[#allocation9 + $0x350] sm:$0xff]  ;;  %v698_v44 = vld [vmem:[#allocation9 + $0x398] sm:$0xff]  ;;  %v1463_v50 = vpack.c.bf16 %v703_v48, %v695_v47  ;;  %v604_v4 = vld [vmem:[#allocation9 + $0xa8] sm:$0xff] }
  0xbd   : > { %v1491_v41 = vpack.c.bf16 %v689_v40, %v681_v39  ;;  %v706_v46 = vld [vmem:[#allocation9 + $0x3d8] sm:$0xff]  ;;  %v697_v51 = vld [vmem:[#allocation9 + $0x390] sm:$0xff]  ;;  %v603_v11 = vld [vmem:[#allocation9 + $0xa0] sm:$0xff] }
  0xbe   : > { %v1493_v49 = vpack.c.bf16 %v706_v46, %v698_v44  ;;  %v705_v52 = vld [vmem:[#allocation9 + $0x3d0] sm:$0xff]  ;;  %v598_v58 = vld [vmem:[#allocation9 + $0x78] sm:$0xff]  ;;  %v611_v12 = vld [vmem:[#allocation9 + $0xe0] sm:$0xff] }
  0xbf   : > { %1456 = vmatpush1.bf16.msra.mxu0 %v1455_v53  ;;  %v1495_v53 = vpack.c.bf16 %v705_v52, %v697_v51  ;;  %v589_v1 = vld [vmem:[#allocation9 + $0x30] sm:$0xff]  ;;  %v620_v17 = vld [vmem:[#allocation9 + $0x128] sm:$0xff]  ;;  %v622_v21 = vld [vmem:[#allocation9 + $0x138] sm:$0xff]  ;;  %v1503_v23 = vpack.c.bf16 %v611_v12, %v603_v11 }
  0xc0   : > { %1458 = vmatprep.subr.bf16.mxu0 %v1457_v56  ;;  %v590_v56 = vld [vmem:[#allocation9 + $0x38] sm:$0xff]  ;;  %v605_v15 = vld [vmem:[#allocation9 + $0xb0] sm:$0xff]  ;;  %v644_v33 = vld [vmem:[#allocation9 + $0x1e8] sm:$0xff] }
  0xc1   : > { %v613_v16 = vld [vmem:[#allocation9 + $0xf0] sm:$0xff]  ;;  %v630_v22 = vld [vmem:[#allocation9 + $0x178] sm:$0xff]  ;;  %v643_v39 = vld [vmem:[#allocation9 + $0x1e0] sm:$0xff] }
  0xc2   : > { %v1535_v24 = vpack.c.bf16 %v613_v16, %v605_v15  ;;  %v1537_v29 = vpack.c.bf16 %v630_v22, %v622_v21  ;;  %v621_v30 = vld [vmem:[#allocation9 + $0x130] sm:$0xff]  ;;  %v638_v34 = vld [vmem:[#allocation9 + $0x1b8] sm:$0xff]  ;;  %v652_v44 = vld [vmem:[#allocation9 + $0x228] sm:$0xff] }
  0xc3   : > { %1460 = vmatpush1.bf16.msra.mxu0 %v1459_v59  ;;  %v1529_v59 = vpack.c.bf16 %v598_v58, %v590_v56  ;;  %v646_v35 = vld [vmem:[#allocation9 + $0x1f8] sm:$0xff]  ;;  %v637_v42 = vld [vmem:[#allocation9 + $0x1b0] sm:$0xff]  ;;  %v659_v51 = vld [vmem:[#allocation9 + $0x260] sm:$0xff] }
  0xc4   : > { %1462 = vmatprep.subr.bf16.mxu0 %v1461_v45  ;;  %v645_v43 = vld [vmem:[#allocation9 + $0x1f0] sm:$0xff]  ;;  %v660_v45 = vld [vmem:[#allocation9 + $0x268] sm:$0xff]  ;;  %v654_v46 = vld [vmem:[#allocation9 + $0x238] sm:$0xff] }
  0xc5   : > { %v662_v47 = vld [vmem:[#allocation9 + $0x278] sm:$0xff]  ;;  %v1513_v52 = vpack.c.bf16 %v660_v45, %v652_v44  ;;  %v653_v54 = vld [vmem:[#allocation9 + $0x230] sm:$0xff]  ;;  %v668_v56 = vld [vmem:[#allocation9 + $0x2a8] sm:$0xff] }
  0xc6   : > { %v661_v55 = vld [vmem:[#allocation9 + $0x270] sm:$0xff]  ;;  %v670_v58 = vld [vmem:[#allocation9 + $0x2b8] sm:$0xff]  ;;  %v683_v11 = vld [vmem:[#allocation9 + $0x320] sm:$0xff] }
  0xc7   : > { %1464 = vmatpush1.bf16.msra.mxu0 %v1463_v50  ;;  %v651_v50 = vld [vmem:[#allocation9 + $0x220] sm:$0xff]  ;;  %v685_v16 = vld [vmem:[#allocation9 + $0x330] sm:$0xff]  ;;  %v710_v21 = vld [vmem:[#allocation9 + $0x3f8] sm:$0xff] }
  0xc8   : > { %1498 = vmatprep.subr.bf16.mxu0 %v1497_v57  ;;  %v676_v57 = vld [vmem:[#allocation9 + $0x2e8] sm:$0xff]  ;;  %v691_v12 = vld [vmem:[#allocation9 + $0x360] sm:$0xff] }
  0xc9   : > { %v1523_v22 = vpack.c.bf16 %v691_v12, %v683_v11 }
 0x17d   : > { %v1397_v61 = vpop.f32.mrb[0].mxu0 }
 0x17e   : > { %v479_v62 = vadd.f32 %v1397_v61, %v1371_v60  ;;  %v473_v63 = vpop.f32.mrb[1].mxu0  ;;  %v1374_v61 = vld [vmem:[#allocation7] ss:$0 sm:$0xff] }
 0x17f   : > { %v474_v2 = vadd.f32 %v1371_v60, %v473_v63  ;;  %v1871_v60 = vmov 0.0  }
 0x180   : > { %v483_v7 = vmax.f32 %v479_v62, 0.0  ;;  %817 = vmatprep.mubr.f32.mxu0 %v1871_v60  ;;  %v587_v62 = vld [vmem:[#allocation9 + $0x20] sm:$0xff] }
 0x181   : > { %v482_v5 = vmax.f32 %v474_v2, 0.0  ;;  %v597_v2 = vld [vmem:[#allocation9 + $0x70] sm:$0xff]  ;;  %v1499_v9 = vpack.c.bf16 %v595_v0, %v587_v62  ;;  %v1547_v62 = vpack.c.bf16 %v661_v55, %v653_v54  ;;  %v675_v0 = vld [vmem:[#allocation9 + $0x2e0] sm:$0xff] }
 0x182   : > { %v1531_v10 = vpack.c.bf16 %v597_v2, %v589_v1  ;;  %v1517_v1 = vpack.c.bf16 %v676_v57, %v668_v56 }
 0x183   : > { %1414 = vmatprep.mubr.msk.f32.mxu1 %vm499_vm1, %v482_v5 }
 0x184   : > { %1415 = vmatmul.mubr.msk.f32.vlgmr.msra.gmra.mrb[0].mxu1 %vm499_vm1, %v483_v7  ;;  %v606_v7 = vld [vmem:[#allocation9 + $0xb8] sm:$0xff] }
 0x185   : > { %1468 = vmatpush1.bf16.msra.mxu1 %v1467_v6  ;;  %894 = vmatprep.mubr.f32.mxu1 %v1871_v60  ;;  %v612_v6 = vld [vmem:[#allocation9 + $0xe8] sm:$0xff] }
 0x186   : > { %1470 = vmatprep.subr.bf16.mxu1 %v1469_v8  ;;  %v614_v8 = vld [vmem:[#allocation9 + $0xf8] sm:$0xff]  ;;  %v1501_v18 = vpack.c.bf16 %v612_v6, %v604_v4  ;;  %v677_v4 = vld [vmem:[#allocation9 + $0x2f0] sm:$0xff]  ;;  %v692_v6 = vld [vmem:[#allocation9 + $0x368] sm:$0xff] }
 0x189   : > { %1472 = vmatpush1.bf16.msra.mxu1 %v1471_v13 }
 0x18a   : > { %1474 = vmatprep.subr.bf16.mxu1 %v1473_v14 }
 0x18d   : > { %1476 = vmatpush1.bf16.msra.mxu1 %v1475_v19  ;;  %v1533_v19 = vpack.c.bf16 %v614_v8, %v606_v7  ;;  %v686_v7 = vld [vmem:[#allocation9 + $0x338] sm:$0xff] }
 0x18e   : > { %1478 = vmatprep.subr.bf16.mxu1 %v1477_v20  ;;  %v628_v20 = vld [vmem:[#allocation9 + $0x168] sm:$0xff]  ;;  %v694_v8 = vld [vmem:[#allocation9 + $0x378] sm:$0xff] }
 0x18f   : > { %v1505_v28 = vpack.c.bf16 %v628_v20, %v620_v17  ;;  %v1553_v15 = vpack.c.bf16 %v694_v8, %v686_v7  ;;  %v693_v17 = vld [vmem:[#allocation9 + $0x370] sm:$0xff]  ;;  %v702_v20 = vld [vmem:[#allocation9 + $0x3b8] sm:$0xff] }
 0x191   : > { %1480 = vmatpush1.bf16.msra.mxu1 %v1479_v25  ;;  %v619_v25 = vld [vmem:[#allocation9 + $0x120] sm:$0xff] }
 0x192   : > { %1482 = vmatprep.subr.bf16.mxu1 %v1481_v26  ;;  %v627_v26 = vld [vmem:[#allocation9 + $0x160] sm:$0xff] }
 0x193   : > { %v1507_v36 = vpack.c.bf16 %v627_v26, %v619_v25  ;;  %v1557_v26 = vpack.c.bf16 %v710_v21, %v702_v20 }
 0x195   : > { %1484 = vmatpush1.bf16.msra.mxu1 %v1483_v31  ;;  %v629_v31 = vld [vmem:[#allocation9 + $0x170] sm:$0xff] }
 0x196   : > { %1486 = vmatprep.subr.bf16.mxu1 %v1485_v32  ;;  %v636_v32 = vld [vmem:[#allocation9 + $0x1a8] sm:$0xff] }
 0x197   : > { %v1509_v40 = vpack.c.bf16 %v644_v33, %v636_v32  ;;  %v713_v33 = vlaneseq }
 0x199   : > { %1488 = vmatpush1.bf16.msra.mxu1 %v1487_v37  ;;  %v1539_v37 = vpack.c.bf16 %v629_v31, %v621_v30  ;;  %v709_v30 = vld [vmem:[#allocation9 + $0x3f0] sm:$0xff] }
 0x19a   : > { %1490 = vmatprep.subr.bf16.mxu1 %v1489_v38  ;;  %v635_v38 = vld [vmem:[#allocation9 + $0x1a0] sm:$0xff] }
 0x19b   : > { %v1511_v48 = vpack.c.bf16 %v643_v39, %v635_v38 }
 0x19d   : > { %1492 = vmatpush1.bf16.msra.mxu1 %v1491_v41  ;;  %v1541_v41 = vpack.c.bf16 %v646_v35, %v638_v34  ;;  %v2128_v34 = vshrl.u32 %v713_v33, 7 }
 0x19e   : > { %1494 = vmatprep.subr.bf16.mxu1 %v1493_v49  ;;  %v1543_v49 = vpack.c.bf16 %v645_v43, %v637_v42 }
 0x19f   : > { %v715_v35 = vsub.s32 0, %v2128_v34  ;;  %v719_v38 = vsub.s32 1, %v2128_v34 }
 0x1a1   : > { %1496 = vmatpush1.bf16.msra.mxu1 %v1495_v53  ;;  %v1545_v53 = vpack.c.bf16 %v662_v47, %v654_v46 }
 0x1a2   : > { %1530 = vmatprep.subr.bf16.mxu1 %v1529_v59  ;;  %v678_v59 = vld [vmem:[#allocation9 + $0x2f8] sm:$0xff] }
 0x1a3   : > { %v1549_v2 = vpack.c.bf16 %v678_v59, %v670_v58 }
 0x257   : > { %v1416_v63 = vpop.f32.mrb[0].mxu1 }
 0x258   : > { %v572_v3 = vpop.f32.mrb[1].mxu1  ;;  %v578_v13 = vadd.f32 %v1416_v63, %v1374_v61  ;;  %v667_v63 = vld [vmem:[#allocation9 + $0x2a0] sm:$0xff] }
 0x259   : > { %v573_v5 = vadd.f32 %v1374_v61, %v572_v3  ;;  %v1515_v61 = vpack.c.bf16 %v659_v51, %v651_v50  ;;  %v669_v3 = vld [vmem:[#allocation9 + $0x2b0] sm:$0xff] }
 0x25a   : > { %v2114_v27 = vmax.f32 %v578_v13, 0.0 }
 0x25b   : > { %v2110_v14 = vmax.f32 %v573_v5, 0.0  ;;  %v684_v5 = vld [vmem:[#allocation9 + $0x328] sm:$0xff] }
 0x25c   : > { %v1521_v13 = vpack.c.bf16 %v692_v6, %v684_v5 }
 0x25d   : > { %818 = vmatmul.mubr.f32.vlgmr.msra.gmra.mrb[2].mxu0 %v2110_v14  ;;  %895 = vmatmul.mubr.f32.vlgmr.msra.gmra.mrb[2].mxu1 %v2110_v14 }
 0x25e   : > { %1500 = vmatpush1.bf16.msra.mxu0 %v1499_v9  ;;  %1532 = vmatpush1.bf16.msra.mxu1 %v1531_v10  ;;  %v1519_v9 = vpack.c.bf16 %v675_v0, %v667_v63  ;;  %v1551_v10 = vpack.c.bf16 %v677_v4, %v669_v3 }
 0x25f   : > { %823 = vmatprep.mubr.f32.mxu0 %v1871_v60  ;;  %900 = vmatprep.mubr.f32.mxu1 %v1871_v60 }
 0x260   : > { %1502 = vmatprep.subr.bf16.mxu0 %v1501_v18  ;;  %1534 = vmatprep.subr.bf16.mxu1 %v1533_v19  ;;  %v700_v18 = vld [vmem:[#allocation9 + $0x3a8] sm:$0xff] }
 0x261   : > { %824 = vmatmul.mubr.f32.gmra.mrb[4].mxu0 %v2114_v27  ;;  %901 = vmatmul.mubr.f32.gmra.mrb[4].mxu1 %v2114_v27  ;;  %v708_v19 = vld [vmem:[#allocation9 + $0x3e8] sm:$0xff] }
 0x262   : > { %1504 = vmatpush1.bf16.msra.mxu0 %v1503_v23  ;;  %1536 = vmatpush1.bf16.msra.mxu1 %v1535_v24  ;;  %v1555_v23 = vpack.c.bf16 %v693_v17, %v685_v16  ;;  %v699_v24 = vld [vmem:[#allocation9 + $0x3a0] sm:$0xff]  ;;  %v1525_v25 = vpack.c.bf16 %v708_v19, %v700_v18 }
 0x263   : > { %1506 = vmatprep.subr.bf16.mxu0 %v1505_v28  ;;  %1538 = vmatprep.subr.bf16.mxu1 %v1537_v29  ;;  %v707_v28 = vld [vmem:[#allocation9 + $0x3e0] sm:$0xff]  ;;  %v701_v29 = vld [vmem:[#allocation9 + $0x3b0] sm:$0xff] }
 0x264   : > { %971 = vmatprep.mubr.f32.mxu0 %v1871_v60  ;;  %1048 = vmatprep.mubr.f32.mxu1 %v1871_v60  ;;  %v1527_v31 = vpack.c.bf16 %v707_v28, %v699_v24  ;;  %v1559_v32 = vpack.c.bf16 %v709_v30, %v701_v29 }
 0x266   : > { %1508 = vmatpush1.bf16.msra.mxu0 %v1507_v36  ;;  %1540 = vmatpush1.bf16.msra.mxu1 %v1539_v37  ;;  %v723_v36 = vsub.s32 2, %v2128_v34  ;;  %v2132_v37 = vld [vmem:[#allocation10] sm:$0xff] }
 0x267   : > { %1510 = vmatprep.subr.bf16.mxu0 %v1509_v40  ;;  %1542 = vmatprep.subr.bf16.mxu1 %v1541_v41  ;;  %v716_v39 = vrot.slane %v2132_v37, %v715_v35 }
 0x26a   : > { %1512 = vmatpush1.bf16.msra.mxu0 %v1511_v48  ;;  %1544 = vmatpush1.bf16.msra.mxu1 %v1543_v49 }
 0x26b   : > { %1514 = vmatprep.subr.bf16.mxu0 %v1513_v52  ;;  %1546 = vmatprep.subr.bf16.mxu1 %v1545_v53 }
 0x26e   : > { %1516 = vmatpush1.bf16.msra.mxu0 %v1515_v61  ;;  %1548 = vmatpush1.bf16.msra.mxu1 %v1547_v62 }
 0x26f   : > { %1518 = vmatprep.subr.bf16.mxu0 %v1517_v1  ;;  %1550 = vmatprep.subr.bf16.mxu1 %v1549_v2 }
 0x272   : > { %1520 = vmatpush1.bf16.msra.mxu0 %v1519_v9  ;;  %1552 = vmatpush1.bf16.msra.mxu1 %v1551_v10 }
 0x273   : > { %1522 = vmatprep.subr.bf16.mxu0 %v1521_v13  ;;  %1554 = vmatprep.subr.bf16.mxu1 %v1553_v15  ;;  %v1872_v13 = vmov 1966171168  }
 0x274   : > { %v1176_v15 = vunpack.c.l.s4 %v1872_v13 }
 0x276   : > { %1524 = vmatpush1.bf16.msra.mxu0 %v1523_v22  ;;  %1556 = vmatpush1.bf16.msra.mxu1 %v1555_v23  ;;  %v1177_v24 = vunpack.c.0.s8 %v1176_v15 }
 0x277   : > { %1526 = vmatprep.subr.bf16.mxu0 %v1525_v25  ;;  %1558 = vmatprep.subr.bf16.mxu1 %v1557_v26 }
 0x278   : > { %v2141_v35 = vsub.s32 %v1177_v24, %v2128_v34 }
 0x27a   : > { %1528 = vmatpush1.bf16.msra.mxu0 %v1527_v31  ;;  %1560 = vmatpush1.bf16.msra.mxu1 %v1559_v32 }
 0x27d   : > { %972 = vmatmul.mubr.f32.vlgmr.msra.gmra.mrb[6].mxu0 %v2110_v14  ;;  %1049 = vmatmul.mubr.f32.vlgmr.msra.gmra.mrb[6].mxu1 %v2110_v14  ;;  %v727_v14 = vsub.s32 3, %v2128_v34 }
 0x27e   : > { %977 = vmatprep.mubr.f32.mxu0 %v1871_v60  ;;  %1054 = vmatprep.mubr.f32.mxu1 %v1871_v60  ;;  %v724_v60 = vrot.slane %v2132_v37, %v723_v36 }
 0x27f   : > { %v728_v42 = vrot.slane %v2132_v37, %v727_v14 }
 0x281   : > { %978 = vmatmul.mubr.f32.gmra.mrb[8].mxu0 %v2114_v27  ;;  %1055 = vmatmul.mubr.f32.gmra.mrb[8].mxu1 %v2114_v27  ;;  %v720_v27 = vrot.slane %v2132_v37, %v719_v38 }
 0x330   : > { %v819_v40 = vpop.f32.mrb[2].mxu0  ;;  %v896_v41 = vpop.f32.mrb[2].mxu1 }
 0x331   : > { %v821_v43 = vpop.f32.mrb[3].mxu0  ;;  %v898_v44 = vpop.f32.mrb[3].mxu1  ;;  %v820_v45 = vadd.f32 %v819_v40, %v716_v39  ;;  %v897_v46 = vadd.f32 %v896_v41, %v724_v60  ;;  %v731_v40 = vsub.s32 4, %v2128_v34  ;;  %v739_v41 = vsub.s32 6, %v2128_v34 }
 0x332   : > { %v822_v47 = vadd.f32 %v821_v43, %v720_v27  ;;  %v899_v48 = vadd.f32 %v898_v44, %v728_v42  ;;  %v743_v43 = vsub.s32 7, %v2128_v34 }
 0x333   : > { %v1061_v57 = vmax.f32 %v820_v45, 0.0  ;;  %v1063_v58 = vmax.f32 %v897_v46, 0.0  ;;  %v732_v44 = vrot.slane %v2132_v37, %v731_v40  ;;  %v740_v45 = vrot.slane %v2132_v37, %v739_v41 }
 0x334   : > { %v825_v49 = vpop.f32.mrb[4].mxu0  ;;  %v902_v50 = vpop.f32.mrb[4].mxu1  ;;  %v1062_v62 = vmax.f32 %v822_v47, 0.0  ;;  %v1064_v63 = vmax.f32 %v899_v48, 0.0 }
 0x335   : > { %v826_v51 = vadd.f32 %v825_v49, %v716_v39  ;;  %v903_v52 = vadd.f32 %v902_v50, %v724_v60  ;;  %v827_v53 = vpop.f32.mrb[5].mxu0  ;;  %v904_v54 = vpop.f32.mrb[5].mxu1  ;;  %v744_v49 = vrot.slane %v2132_v37, %v743_v43 }
 0x336   : > { %v828_v55 = vadd.f32 %v827_v53, %v720_v27  ;;  %v905_v56 = vadd.f32 %v904_v54, %v728_v42  ;;  %v735_v42 = vsub.s32 5, %v2128_v34 }
 0x337   : > { %v1069_v59 = vmax.f32 %v826_v51, 0.0  ;;  %v1071_v61 = vmax.f32 %v903_v52, 0.0 }
 0x338   : > { %v1070_v0 = vmax.f32 %v828_v55, 0.0  ;;  %v1072_v1 = vmax.f32 %v905_v56, 0.0  ;;  %v736_v48 = vrot.slane %v2132_v37, %v735_v42 }
 0x339   : > { %v1106_v2 = vmax.f32 %v1061_v57, %v1069_v59  ;;  %v1120_v3 = vmax.f32 %v1063_v58, %v1071_v61 }
 0x33a   : > { %v1113_v4 = vmax.f32 %v1062_v62, %v1070_v0  ;;  %v1127_v5 = vmax.f32 %v1064_v63, %v1072_v1 }
 0x33b   : > { %v1107_v6 = vrot.slane %v1106_v2, 4  ;;  %v1121_v7 = vrot.slane %v1120_v3, 4 }
 0x33c   : > { %v1114_v8 = vrot.slane %v1113_v4, 4  ;;  %v1128_v9 = vrot.slane %v1127_v5, 4 }
 0x33d   : > { %v1108_v10 = vmax.f32 %v1106_v2, %v1107_v6  ;;  %v1122_v11 = vmax.f32 %v1120_v3, %v1121_v7 }
 0x33e   : > { %v1115_v12 = vmax.f32 %v1113_v4, %v1114_v8  ;;  %v1129_v16 = vmax.f32 %v1127_v5, %v1128_v9 }
 0x33f   : > { %v1109_v17 = vrot.slane %v1108_v10, 2  ;;  %v1123_v18 = vrot.slane %v1122_v11, 2 }
 0x340   : > { %v1116_v19 = vrot.slane %v1115_v12, 2  ;;  %v1130_v20 = vrot.slane %v1129_v16, 2 }
 0x341   : > { %v1110_v21 = vmax.f32 %v1108_v10, %v1109_v17  ;;  %v1124_v22 = vmax.f32 %v1122_v11, %v1123_v18 }
 0x342   : > { %v1117_v23 = vmax.f32 %v1115_v12, %v1116_v19  ;;  %v1131_v25 = vmax.f32 %v1129_v16, %v1130_v20 }
 0x343   : > { %v1111_v26 = vrot.slane %v1110_v21, 1  ;;  %v1125_v28 = vrot.slane %v1124_v22, 1 }
 0x344   : > { %v1118_v29 = vrot.slane %v1117_v23, 1  ;;  %v1132_v30 = vrot.slane %v1131_v25, 1 }
 0x345   : > { %v1112_v31 = vmax.f32 %v1110_v21, %v1111_v26  ;;  %v1126_v32 = vmax.f32 %v1124_v22, %v1125_v28 }
 0x346   : > { %v1119_v33 = vmax.f32 %v1117_v23, %v1118_v29  ;;  %v1133_v36 = vmax.f32 %v1131_v25, %v1132_v30 }
 0x348   : > { %v1171_v38 = vcombine.low %v1112_v31, %v1119_v33  ;;  %v1172_v14 = vcombine.low %v1126_v32, %v1133_v36 }
 0x34a   : > { %v2144_v39 = vrot.slane %v1171_v38, %v2141_v35  ;;  %v2147_v60 = vrot.slane %v1172_v14, %v2141_v35 }
 0x34c   : > { %v1203_v27 = vcombine.low %v2144_v39, %v2147_v60 }
 0x350   : > { %v973_v46 = vpop.f32.mrb[6].mxu0  ;;  %v1050_v47 = vpop.f32.mrb[6].mxu1 }
 0x351   : > { %v975_v50 = vpop.f32.mrb[7].mxu0  ;;  %v1052_v51 = vpop.f32.mrb[7].mxu1  ;;  %v974_v52 = vadd.f32 %v973_v46, %v732_v44  ;;  %v1051_v53 = vadd.f32 %v1050_v47, %v740_v45 }
 0x352   : > { %v976_v54 = vadd.f32 %v975_v50, %v736_v48  ;;  %v1053_v55 = vadd.f32 %v1052_v51, %v744_v49 }
 0x353   : > { %v1065_v0 = vmax.f32 %v974_v52, 0.0  ;;  %v1067_v1 = vmax.f32 %v1051_v53, 0.0 }
 0x354   : > { %v979_v56 = vpop.f32.mrb[8].mxu0  ;;  %v1056_v57 = vpop.f32.mrb[8].mxu1  ;;  %v1066_v4 = vmax.f32 %v976_v54, 0.0  ;;  %v1068_v37 = vmax.f32 %v1053_v55, 0.0 }
 0x355   : > { %v980_v58 = vadd.f32 %v979_v56, %v732_v44  ;;  %v1057_v34 = vadd.f32 %v1056_v57, %v740_v45  ;;  %v981_v59 = vpop.f32.mrb[9].mxu0  ;;  %v1058_v61 = vpop.f32.mrb[9].mxu1  ;;  %v1211_v45 = vrot.slane %v1203_v27, %v2141_v35 }
 0x356   : > { %v982_v62 = vadd.f32 %v981_v59, %v736_v48  ;;  %v1059_v63 = vadd.f32 %v1058_v61, %v744_v49 }
 0x357   : > { %v1073_v2 = vmax.f32 %v980_v58, 0.0  ;;  %v1075_v3 = vmax.f32 %v1057_v34, 0.0 }
 0x358   : > { %v1074_v5 = vmax.f32 %v982_v62, 0.0  ;;  %v1076_v6 = vmax.f32 %v1059_v63, 0.0 }
 0x359   : > { %v1134_v7 = vmax.f32 %v1065_v0, %v1073_v2  ;;  %v1148_v8 = vmax.f32 %v1067_v1, %v1075_v3 }
 0x35a   : > { %v1141_v9 = vmax.f32 %v1066_v4, %v1074_v5  ;;  %v1155_v10 = vmax.f32 %v1068_v37, %v1076_v6 }
 0x35b   : > { %v1135_v11 = vrot.slane %v1134_v7, 4  ;;  %v1149_v12 = vrot.slane %v1148_v8, 4 }
 0x35c   : > { %v1142_v13 = vrot.slane %v1141_v9, 4  ;;  %v1156_v15 = vrot.slane %v1155_v10, 4 }
 0x35d   : > { %v1136_v16 = vmax.f32 %v1134_v7, %v1135_v11  ;;  %v1150_v17 = vmax.f32 %v1148_v8, %v1149_v12 }
 0x35e   : > { %v1143_v18 = vmax.f32 %v1141_v9, %v1142_v13  ;;  %v1157_v19 = vmax.f32 %v1155_v10, %v1156_v15 }
 0x35f   : > { %v1137_v20 = vrot.slane %v1136_v16, 2  ;;  %v1151_v21 = vrot.slane %v1150_v17, 2 }
 0x360   : > { %v1144_v22 = vrot.slane %v1143_v18, 2  ;;  %v1158_v23 = vrot.slane %v1157_v19, 2 }
 0x361   : > { %v1138_v24 = vmax.f32 %v1136_v16, %v1137_v20  ;;  %v1152_v25 = vmax.f32 %v1150_v17, %v1151_v21 }
 0x362   : > { %v1145_v26 = vmax.f32 %v1143_v18, %v1144_v22  ;;  %v1159_v28 = vmax.f32 %v1157_v19, %v1158_v23 }
 0x363   : > { %v1139_v29 = vrot.slane %v1138_v24, 1  ;;  %v1153_v30 = vrot.slane %v1152_v25, 1 }
 0x364   : > { %v1146_v31 = vrot.slane %v1145_v26, 1  ;;  %v1160_v32 = vrot.slane %v1159_v28, 1 }
 0x365   : > { %v1140_v33 = vmax.f32 %v1138_v24, %v1139_v29  ;;  %v1154_v36 = vmax.f32 %v1152_v25, %v1153_v30 }
 0x366   : > { %v1147_v38 = vmax.f32 %v1145_v26, %v1146_v31  ;;  %v1161_v14 = vmax.f32 %v1159_v28, %v1160_v32 }
 0x368   : > { %v1173_v40 = vcombine.low %v1140_v33, %v1147_v38  ;;  %v1174_v41 = vcombine.low %v1154_v36, %v1161_v14 }
 0x36a   : > { %v1195_v42 = vrot.slane %v1173_v40, %v2141_v35  ;;  %v1202_v43 = vrot.slane %v1174_v41, %v2141_v35 }
 0x36c   : > { %v1204_v44 = vcombine.low %v1195_v42, %v1202_v43 }
 0x36e   : > { %v1218_v46 = vrot.slane %v1204_v44, %v2141_v35 }
 0x370   : > { %v1219_v47 = vcombine.low %v1211_v45, %v1218_v46 }
 0x372   : > { %1222 = vst [vmem:[%s384_s28] sm:$0xff] %v1219_v47 }
 0x373 PF: > { %s21_s26 = sadd.s32 1, %s1859_s26   ;;  %s2198_s24 = smov %s1855_s25 }
 0x374   : > { %p18_p8 = scmp.ge.s32.totalorder %s21_s26, 4   ;;  %s2199_s25 = smov %s2201_s12 }
 0x376   :  { %20 = sbr.rel (!%p18_p8) target bundleno = 5 (0x5), region = 107 }
 0x37d   :  { %1242 = vsyncpa [#allocation3], 1 }
 0x37e   :  { %1244 = vsyncpa [#allocation3 + $0x1], 1 }
 0x37f   :  { %1245 = vsyncpa [#allocation5], 1 }
 0x380   :  { %1246 = vsyncpa [#allocation8], 1 }
 0x381   :  { %1247 = vsyncpa [#allocation11], 1 }

// kernel: pointnet_seg_forward.8
= control target key start
LH: loop header
LB: loop body
LE: loop exit
PB: predicated region body
PF: predicated region fallthrough
CT: control target
= control target key end

     0   :  { %s3338_s1 = inlined_call_operand.vmem [shape: f32[1024,512], index: 1, kind: input, shape index: {}]   ;;  %s3339_s0 = inlined_call_operand.vmem [shape: f32[2,1024], index: 0, kind: input, shape index: {}]   ;;  %s3340_s2 = inlined_call_operand.vmem [shape: f32[1,512], index: 2, kind: input, shape index: {}]   ;;  %s3341_s3 = inlined_call_operand.vmem [shape: f32[2,512], index: 3, kind: output, shape index: {}]  }
   0x1   :  { %v17_v0 = vld [vmem:[%s3338_s1 + $0x8] sm:$0xff]  ;;  %v19_v2 = vld [vmem:[%s3338_s1 + $0x18] sm:$0xff]  ;;  %v16_v5 = vld [vmem:[%s3338_s1] sm:$0xff] }
   0x2   :  { %v21_v1 = vld [vmem:[%s3338_s1 + $0x28] sm:$0xff]  ;;  %v23_v4 = vld [vmem:[%s3338_s1 + $0x38] sm:$0xff]  ;;  %v20_v6 = vld [vmem:[%s3338_s1 + $0x20] sm:$0xff] }
   0x3   :  { %v1189_v3 = vpack.c.bf16 %v21_v1, %v17_v0  ;;  %v1445_v7 = vpack.c.bf16 %v23_v4, %v19_v2  ;;  %v1191_v8 = vpack.c.bf16 %v20_v6, %v16_v5  ;;  %v18_v9 = vld [vmem:[%s3338_s1 + $0x10] sm:$0xff]  ;;  %v25_v11 = vld [vmem:[%s3338_s1 + $0x48] sm:$0xff]  ;;  %v27_v14 = vld [vmem:[%s3338_s1 + $0x58] sm:$0xff] }
   0x4   :  { %v22_v10 = vld [vmem:[%s3338_s1 + $0x30] sm:$0xff]  ;;  %v29_v13 = vld [vmem:[%s3338_s1 + $0x68] sm:$0xff]  ;;  %v31_v15 = vld [vmem:[%s3338_s1 + $0x78] sm:$0xff] }
   0x5   :  { %1190 = vmatprep.subr.bf16.mxu0 %v1189_v3  ;;  %v1447_v12 = vpack.c.bf16 %v22_v10, %v18_v9  ;;  %1446 = vmatprep.subr.bf16.mxu1 %v1445_v7  ;;  %v1193_v16 = vpack.c.bf16 %v29_v13, %v25_v11  ;;  %v1449_v17 = vpack.c.bf16 %v31_v15, %v27_v14  ;;  %v24_v18 = vld [vmem:[%s3338_s1 + $0x40] sm:$0xff]  ;;  %v26_v20 = vld [vmem:[%s3338_s1 + $0x50] sm:$0xff]  ;;  %v33_v23 = vld [vmem:[%s3338_s1 + $0x88] sm:$0xff] }
   0x6   :  { %1192 = vmatpush1.bf16.msra.mxu0 %v1191_v8  ;;  %v28_v19 = vld [vmem:[%s3338_s1 + $0x60] sm:$0xff]  ;;  %v30_v22 = vld [vmem:[%s3338_s1 + $0x70] sm:$0xff]  ;;  %v37_v24 = vld [vmem:[%s3338_s1 + $0xa8] sm:$0xff] }
   0x7   :  { %1448 = vmatpush1.bf16.msra.mxu1 %v1447_v12  ;;  %v1195_v21 = vpack.c.bf16 %v28_v19, %v24_v18  ;;  %1194 = vmatprep.subr.bf16.mxu0 %v1193_v16  ;;  %v1451_v25 = vpack.c.bf16 %v30_v22, %v26_v20  ;;  %v1197_v26 = vpack.c.bf16 %v37_v24, %v33_v23  ;;  %v35_v27 = vld [vmem:[%s3338_s1 + $0x98] sm:$0xff]  ;;  %v32_v29 = vld [vmem:[%s3338_s1 + $0x80] sm:$0xff]  ;;  %v34_v32 = vld [vmem:[%s3338_s1 + $0x90] sm:$0xff] }
   0x8   :  { %1450 = vmatprep.subr.bf16.mxu1 %v1449_v17  ;;  %v39_v28 = vld [vmem:[%s3338_s1 + $0xb8] sm:$0xff]  ;;  %v36_v31 = vld [vmem:[%s3338_s1 + $0xa0] sm:$0xff]  ;;  %v38_v33 = vld [vmem:[%s3338_s1 + $0xb0] sm:$0xff] }
   0x9   :  { %v1453_v30 = vpack.c.bf16 %v39_v28, %v35_v27  ;;  %v1199_v34 = vpack.c.bf16 %v36_v31, %v32_v29  ;;  %v41_v35 = vld [vmem:[%s3338_s1 + $0xc8] sm:$0xff]  ;;  %v43_v37 = vld [vmem:[%s3338_s1 + $0xd8] sm:$0xff]  ;;  %v1455_v38 = vpack.c.bf16 %v38_v33, %v34_v32  ;;  %v40_v41 = vld [vmem:[%s3338_s1 + $0xc0] sm:$0xff] }
   0xa   :  { %1196 = vmatpush1.bf16.msra.mxu0 %v1195_v21  ;;  %v45_v36 = vld [vmem:[%s3338_s1 + $0xe8] sm:$0xff]  ;;  %v47_v40 = vld [vmem:[%s3338_s1 + $0xf8] sm:$0xff]  ;;  %v44_v42 = vld [vmem:[%s3338_s1 + $0xe0] sm:$0xff] }
   0xb   :  { %1452 = vmatpush1.bf16.msra.mxu1 %v1451_v25  ;;  %1198 = vmatprep.subr.bf16.mxu0 %v1197_v26  ;;  %v1201_v39 = vpack.c.bf16 %v45_v36, %v41_v35  ;;  %v1457_v43 = vpack.c.bf16 %v47_v40, %v43_v37  ;;  %v42_v44 = vld [vmem:[%s3338_s1 + $0xd0] sm:$0xff]  ;;  %v49_v46 = vld [vmem:[%s3338_s1 + $0x108] sm:$0xff]  ;;  %v51_v48 = vld [vmem:[%s3338_s1 + $0x118] sm:$0xff]  ;;  %v1203_v50 = vpack.c.bf16 %v44_v42, %v40_v41 }
   0xc   :  { %1454 = vmatprep.subr.bf16.mxu1 %v1453_v30  ;;  %v46_v45 = vld [vmem:[%s3338_s1 + $0xf0] sm:$0xff]  ;;  %v53_v47 = vld [vmem:[%s3338_s1 + $0x128] sm:$0xff]  ;;  %v55_v49 = vld [vmem:[%s3338_s1 + $0x138] sm:$0xff] }
   0xd   :  { %v1459_v51 = vpack.c.bf16 %v46_v45, %v42_v44  ;;  %v1205_v52 = vpack.c.bf16 %v53_v47, %v49_v46  ;;  %v48_v53 = vld [vmem:[%s3338_s1 + $0x100] sm:$0xff]  ;;  %v50_v55 = vld [vmem:[%s3338_s1 + $0x110] sm:$0xff]  ;;  %v1461_v56 = vpack.c.bf16 %v55_v49, %v51_v48  ;;  %v57_v58 = vld [vmem:[%s3338_s1 + $0x148] sm:$0xff]  ;;  %v530_v46 = vlaneseq }
   0xe   :  { %1200 = vmatpush1.bf16.msra.mxu0 %v1199_v34  ;;  %v52_v54 = vld [vmem:[%s3338_s1 + $0x120] sm:$0xff]  ;;  %v54_v57 = vld [vmem:[%s3338_s1 + $0x130] sm:$0xff]  ;;  %v61_v59 = vld [vmem:[%s3338_s1 + $0x168] sm:$0xff]  ;;  %v1720_v47 = vmov 1983009808  }
   0xf   :  { %1456 = vmatpush1.bf16.msra.mxu1 %v1455_v38  ;;  %1202 = vmatprep.subr.bf16.mxu0 %v1201_v39  ;;  %v59_v60 = vld [vmem:[%s3338_s1 + $0x158] sm:$0xff]  ;;  %v1207_v62 = vpack.c.bf16 %v52_v54, %v48_v53  ;;  %v1463_v63 = vpack.c.bf16 %v54_v57, %v50_v55  ;;  %v1209_v0 = vpack.c.bf16 %v61_v59, %v57_v58  ;;  %v56_v1 = vld [vmem:[%s3338_s1 + $0x140] sm:$0xff]  ;;  %v58_v3 = vld [vmem:[%s3338_s1 + $0x150] sm:$0xff]  ;;  %v554_v48 = vunpack.c.l.s4 %v1720_v47 }
  0x10   :  { %1458 = vmatprep.subr.bf16.mxu1 %v1457_v43  ;;  %v63_v61 = vld [vmem:[%s3338_s1 + $0x178] sm:$0xff]  ;;  %v60_v2 = vld [vmem:[%s3338_s1 + $0x160] sm:$0xff]  ;;  %v62_v5 = vld [vmem:[%s3338_s1 + $0x170] sm:$0xff] }
  0x11   :  { %v1465_v4 = vpack.c.bf16 %v63_v61, %v59_v60  ;;  %v65_v6 = vld [vmem:[%s3338_s1 + $0x188] sm:$0xff]  ;;  %v67_v8 = vld [vmem:[%s3338_s1 + $0x198] sm:$0xff]  ;;  %v1211_v10 = vpack.c.bf16 %v60_v2, %v56_v1  ;;  %v1467_v11 = vpack.c.bf16 %v62_v5, %v58_v3  ;;  %v64_v13 = vld [vmem:[%s3338_s1 + $0x180] sm:$0xff]  ;;  %v1993_v61 = vshrl.u32 %v530_v46, 7 }
  0x12   :  { %1204 = vmatpush1.bf16.msra.mxu0 %v1203_v50  ;;  %v69_v7 = vld [vmem:[%s3338_s1 + $0x1a8] sm:$0xff]  ;;  %v71_v9 = vld [vmem:[%s3338_s1 + $0x1b8] sm:$0xff]  ;;  %v68_v14 = vld [vmem:[%s3338_s1 + $0x1a0] sm:$0xff] }
  0x13   :  { %1460 = vmatpush1.bf16.msra.mxu1 %v1459_v51  ;;  %1206 = vmatprep.subr.bf16.mxu0 %v1205_v52  ;;  %v1213_v12 = vpack.c.bf16 %v69_v7, %v65_v6  ;;  %v66_v15 = vld [vmem:[%s3338_s1 + $0x190] sm:$0xff]  ;;  %v1469_v16 = vpack.c.bf16 %v71_v9, %v67_v8  ;;  %v73_v18 = vld [vmem:[%s3338_s1 + $0x1c8] sm:$0xff]  ;;  %v75_v20 = vld [vmem:[%s3338_s1 + $0x1d8] sm:$0xff]  ;;  %v1215_v22 = vpack.c.bf16 %v68_v14, %v64_v13 }
  0x14   :  { %1462 = vmatprep.subr.bf16.mxu1 %v1461_v56  ;;  %v70_v17 = vld [vmem:[%s3338_s1 + $0x1b0] sm:$0xff]  ;;  %v77_v19 = vld [vmem:[%s3338_s1 + $0x1e8] sm:$0xff]  ;;  %v79_v21 = vld [vmem:[%s3338_s1 + $0x1f8] sm:$0xff] }
  0x15   :  { %v1471_v23 = vpack.c.bf16 %v70_v17, %v66_v15  ;;  %v1217_v24 = vpack.c.bf16 %v77_v19, %v73_v18  ;;  %v72_v25 = vld [vmem:[%s3338_s1 + $0x1c0] sm:$0xff]  ;;  %v74_v27 = vld [vmem:[%s3338_s1 + $0x1d0] sm:$0xff]  ;;  %v1473_v28 = vpack.c.bf16 %v79_v21, %v75_v20  ;;  %v81_v30 = vld [vmem:[%s3338_s1 + $0x208] sm:$0xff] }
  0x16   :  { %1208 = vmatpush1.bf16.msra.mxu0 %v1207_v62  ;;  %v76_v26 = vld [vmem:[%s3338_s1 + $0x1e0] sm:$0xff]  ;;  %v78_v29 = vld [vmem:[%s3338_s1 + $0x1f0] sm:$0xff]  ;;  %v85_v31 = vld [vmem:[%s3338_s1 + $0x228] sm:$0xff]  ;;  %v555_v62 = vunpack.c.0.s8 %v554_v48 }
  0x17   :  { %1464 = vmatpush1.bf16.msra.mxu1 %v1463_v63  ;;  %1210 = vmatprep.subr.bf16.mxu0 %v1209_v0  ;;  %v83_v32 = vld [vmem:[%s3338_s1 + $0x218] sm:$0xff]  ;;  %v1219_v34 = vpack.c.bf16 %v76_v26, %v72_v25  ;;  %v1475_v35 = vpack.c.bf16 %v78_v29, %v74_v27  ;;  %v1221_v36 = vpack.c.bf16 %v85_v31, %v81_v30  ;;  %v80_v37 = vld [vmem:[%s3338_s1 + $0x200] sm:$0xff]  ;;  %v82_v39 = vld [vmem:[%s3338_s1 + $0x210] sm:$0xff] }
  0x18   :  { %1466 = vmatprep.subr.bf16.mxu1 %v1465_v4  ;;  %v87_v33 = vld [vmem:[%s3338_s1 + $0x238] sm:$0xff]  ;;  %v84_v38 = vld [vmem:[%s3338_s1 + $0x220] sm:$0xff]  ;;  %v86_v41 = vld [vmem:[%s3338_s1 + $0x230] sm:$0xff] }
  0x19   :  { %v1477_v40 = vpack.c.bf16 %v87_v33, %v83_v32  ;;  %v89_v42 = vld [vmem:[%s3338_s1 + $0x248] sm:$0xff]  ;;  %v91_v44 = vld [vmem:[%s3338_s1 + $0x258] sm:$0xff]  ;;  %v1223_v49 = vpack.c.bf16 %v84_v38, %v80_v37  ;;  %v1479_v50 = vpack.c.bf16 %v86_v41, %v82_v39  ;;  %v88_v52 = vld [vmem:[%s3338_s1 + $0x240] sm:$0xff] }
  0x1a   :  { %1212 = vmatpush1.bf16.msra.mxu0 %v1211_v10  ;;  %v93_v43 = vld [vmem:[%s3338_s1 + $0x268] sm:$0xff]  ;;  %v95_v45 = vld [vmem:[%s3338_s1 + $0x278] sm:$0xff]  ;;  %v92_v53 = vld [vmem:[%s3338_s1 + $0x260] sm:$0xff] }
  0x1b   :  { %1468 = vmatpush1.bf16.msra.mxu1 %v1467_v11  ;;  %1214 = vmatprep.subr.bf16.mxu0 %v1213_v12  ;;  %v1225_v51 = vpack.c.bf16 %v93_v43, %v89_v42  ;;  %v90_v54 = vld [vmem:[%s3338_s1 + $0x250] sm:$0xff]  ;;  %v1481_v55 = vpack.c.bf16 %v95_v45, %v91_v44  ;;  %v97_v57 = vld [vmem:[%s3338_s1 + $0x288] sm:$0xff]  ;;  %v99_v59 = vld [vmem:[%s3338_s1 + $0x298] sm:$0xff]  ;;  %v1227_v63 = vpack.c.bf16 %v92_v53, %v88_v52 }
  0x1c   :  { %1470 = vmatprep.subr.bf16.mxu1 %v1469_v16  ;;  %v94_v56 = vld [vmem:[%s3338_s1 + $0x270] sm:$0xff]  ;;  %v101_v58 = vld [vmem:[%s3338_s1 + $0x2a8] sm:$0xff]  ;;  %v103_v60 = vld [vmem:[%s3338_s1 + $0x2b8] sm:$0xff]  ;;  %v2020_v11 = vsub.s32 %v555_v62, %v1993_v61 }
  0x1d   :  { %v1483_v0 = vpack.c.bf16 %v94_v56, %v90_v54  ;;  %v1229_v1 = vpack.c.bf16 %v101_v58, %v97_v57  ;;  %v96_v2 = vld [vmem:[%s3338_s1 + $0x280] sm:$0xff]  ;;  %v98_v4 = vld [vmem:[%s3338_s1 + $0x290] sm:$0xff]  ;;  %v1485_v5 = vpack.c.bf16 %v103_v60, %v99_v59  ;;  %v105_v7 = vld [vmem:[%s3338_s1 + $0x2c8] sm:$0xff] }
  0x1e   :  { %1216 = vmatpush1.bf16.msra.mxu0 %v1215_v22  ;;  %v100_v3 = vld [vmem:[%s3338_s1 + $0x2a0] sm:$0xff]  ;;  %v102_v6 = vld [vmem:[%s3338_s1 + $0x2b0] sm:$0xff]  ;;  %v109_v8 = vld [vmem:[%s3338_s1 + $0x2e8] sm:$0xff] }
  0x1f   :  { %1472 = vmatpush1.bf16.msra.mxu1 %v1471_v23  ;;  %1218 = vmatprep.subr.bf16.mxu0 %v1217_v24  ;;  %v107_v9 = vld [vmem:[%s3338_s1 + $0x2d8] sm:$0xff]  ;;  %v1231_v12 = vpack.c.bf16 %v100_v3, %v96_v2  ;;  %v104_v13 = vld [vmem:[%s3338_s1 + $0x2c0] sm:$0xff]  ;;  %v1487_v14 = vpack.c.bf16 %v102_v6, %v98_v4  ;;  %v1233_v15 = vpack.c.bf16 %v109_v8, %v105_v7  ;;  %v106_v17 = vld [vmem:[%s3338_s1 + $0x2d0] sm:$0xff] }
  0x20   :  { %1474 = vmatprep.subr.bf16.mxu1 %v1473_v28  ;;  %v111_v10 = vld [vmem:[%s3338_s1 + $0x2f8] sm:$0xff]  ;;  %v108_v16 = vld [vmem:[%s3338_s1 + $0x2e0] sm:$0xff]  ;;  %v110_v18 = vld [vmem:[%s3338_s1 + $0x2f0] sm:$0xff] }
  0x21   :  { %v1489_v19 = vpack.c.bf16 %v111_v10, %v107_v9  ;;  %v113_v20 = vld [vmem:[%s3338_s1 + $0x308] sm:$0xff]  ;;  %v2043_v22 = vld [vmem:[%s3339_s0] sm:$0xff]  ;;  %v115_v23 = vld [vmem:[%s3338_s1 + $0x318] sm:$0xff]  ;;  %v1235_v26 = vpack.c.bf16 %v108_v16, %v104_v13  ;;  %v1491_v27 = vpack.c.bf16 %v110_v18, %v106_v17 }
  0x22   :  { %1220 = vmatpush1.bf16.msra.mxu0 %v1219_v34  ;;  %v117_v21 = vld [vmem:[%s3338_s1 + $0x328] sm:$0xff]  ;;  %v119_v24 = vld [vmem:[%s3338_s1 + $0x338] sm:$0xff]  ;;  %v2053_v25 = vrot.slane %v2043_v22, %v2020_v11  ;;  %v112_v29 = vld [vmem:[%s3338_s1 + $0x300] sm:$0xff]  ;;  %v552_v8 = vcombine.high %v2043_v22, %v2043_v22 }
  0x23   :  { %1476 = vmatpush1.bf16.msra.mxu1 %v1475_v35  ;;  %1222 = vmatprep.subr.bf16.mxu0 %v1221_v36  ;;  %v1237_v28 = vpack.c.bf16 %v117_v21, %v113_v20  ;;  %v116_v30 = vld [vmem:[%s3338_s1 + $0x320] sm:$0xff]  ;;  %v114_v31 = vld [vmem:[%s3338_s1 + $0x310] sm:$0xff]  ;;  %v1493_v33 = vpack.c.bf16 %v119_v24, %v115_v23  ;;  %v121_v35 = vld [vmem:[%s3338_s1 + $0x348] sm:$0xff] }
  0x24   :  { %1478 = vmatprep.subr.bf16.mxu1 %v1477_v40  ;;  %v567_v32 = vcombine.high %v2053_v25, %v2053_v25  ;;  %v118_v34 = vld [vmem:[%s3338_s1 + $0x330] sm:$0xff]  ;;  %v125_v36 = vld [vmem:[%s3338_s1 + $0x368] sm:$0xff]  ;;  %v123_v37 = vld [vmem:[%s3338_s1 + $0x358] sm:$0xff]  ;;  %v1239_v39 = vpack.c.bf16 %v116_v30, %v112_v29  ;;  %v2174_v24 = vrot.slane %v552_v8, %v2020_v11 }
  0x25   :  { %v127_v38 = vld [vmem:[%s3338_s1 + $0x378] sm:$0xff]  ;;  %v1495_v40 = vpack.c.bf16 %v118_v34, %v114_v31  ;;  %v1241_v41 = vpack.c.bf16 %v125_v36, %v121_v35  ;;  %v120_v42 = vld [vmem:[%s3338_s1 + $0x340] sm:$0xff]  ;;  %v122_v44 = vld [vmem:[%s3338_s1 + $0x350] sm:$0xff] }
  0x26   :  { %1224 = vmatpush1.bf16.msra.mxu0 %v1223_v49  ;;  %658 = vmatprep.mubr.f32.mxu0 %v567_v32  ;;  %v124_v43 = vld [vmem:[%s3338_s1 + $0x360] sm:$0xff]  ;;  %v1497_v45 = vpack.c.bf16 %v127_v38, %v123_v37  ;;  %v126_v46 = vld [vmem:[%s3338_s1 + $0x370] sm:$0xff]  ;;  %v129_v47 = vld [vmem:[%s3338_s1 + $0x388] sm:$0xff]  ;;  %v568_v38 = vcombine.high %v2174_v24, %v2174_v24 }
  0x27   :  { %1480 = vmatpush1.bf16.msra.mxu1 %v1479_v50  ;;  %1226 = vmatprep.subr.bf16.mxu0 %v1225_v51  ;;  %v133_v48 = vld [vmem:[%s3338_s1 + $0x3a8] sm:$0xff]  ;;  %v131_v49 = vld [vmem:[%s3338_s1 + $0x398] sm:$0xff]  ;;  %v1243_v51 = vpack.c.bf16 %v124_v43, %v120_v42  ;;  %v1499_v52 = vpack.c.bf16 %v126_v46, %v122_v44  ;;  %v128_v54 = vld [vmem:[%s3338_s1 + $0x380] sm:$0xff] }
  0x28   :  { %1482 = vmatprep.subr.bf16.mxu1 %v1481_v55  ;;  %942 = vmatprep.mubr.f32.mxu1 %v567_v32  ;;  %v135_v50 = vld [vmem:[%s3338_s1 + $0x3b8] sm:$0xff]  ;;  %v1245_v53 = vpack.c.bf16 %v133_v48, %v129_v47  ;;  %v132_v55 = vld [vmem:[%s3338_s1 + $0x3a0] sm:$0xff]  ;;  %v130_v56 = vld [vmem:[%s3338_s1 + $0x390] sm:$0xff] }
  0x29   :  { %v1501_v57 = vpack.c.bf16 %v135_v50, %v131_v49  ;;  %v134_v58 = vld [vmem:[%s3338_s1 + $0x3b0] sm:$0xff]  ;;  %v137_v59 = vld [vmem:[%s3338_s1 + $0x3c8] sm:$0xff]  ;;  %v139_v62 = vld [vmem:[%s3338_s1 + $0x3d8] sm:$0xff] }
  0x2a   :  { %1228 = vmatpush1.bf16.msra.mxu0 %v1227_v63  ;;  %v141_v60 = vld [vmem:[%s3338_s1 + $0x3e8] sm:$0xff]  ;;  %v143_v63 = vld [vmem:[%s3338_s1 + $0x3f8] sm:$0xff]  ;;  %v136_v3 = vld [vmem:[%s3338_s1 + $0x3c0] sm:$0xff] }
  0x2b   :  { %1484 = vmatpush1.bf16.msra.mxu1 %v1483_v0  ;;  %1230 = vmatprep.subr.bf16.mxu0 %v1229_v1  ;;  %v1247_v0 = vpack.c.bf16 %v132_v55, %v128_v54  ;;  %v1503_v1 = vpack.c.bf16 %v134_v58, %v130_v56  ;;  %v1249_v2 = vpack.c.bf16 %v141_v60, %v137_v59  ;;  %v140_v4 = vld [vmem:[%s3338_s1 + $0x3e0] sm:$0xff]  ;;  %v142_v7 = vld [vmem:[%s3338_s1 + $0x3f0] sm:$0xff]  ;;  %v145_v9 = vld [vmem:[%s3338_s1 + $0x408] sm:$0xff] }
  0x2c   :  { %1486 = vmatprep.subr.bf16.mxu1 %v1485_v5  ;;  %v138_v5 = vld [vmem:[%s3338_s1 + $0x3d0] sm:$0xff]  ;;  %v1505_v6 = vpack.c.bf16 %v143_v63, %v139_v62  ;;  %v149_v10 = vld [vmem:[%s3338_s1 + $0x428] sm:$0xff]  ;;  %v151_v13 = vld [vmem:[%s3338_s1 + $0x438] sm:$0xff] }
  0x2d   :  { %v1253_v16 = vpack.c.bf16 %v149_v10, %v145_v9  ;;  %v144_v17 = vld [vmem:[%s3338_s1 + $0x400] sm:$0xff]  ;;  %v150_v21 = vld [vmem:[%s3338_s1 + $0x430] sm:$0xff]  ;;  %v153_v22 = vld [vmem:[%s3338_s1 + $0x448] sm:$0xff] }
  0x2e   :  { %1232 = vmatpush1.bf16.msra.mxu0 %v1231_v12  ;;  %v147_v12 = vld [vmem:[%s3338_s1 + $0x418] sm:$0xff]  ;;  %v148_v18 = vld [vmem:[%s3338_s1 + $0x420] sm:$0xff]  ;;  %v157_v23 = vld [vmem:[%s3338_s1 + $0x468] sm:$0xff] }
  0x2f   :  { %1488 = vmatpush1.bf16.msra.mxu1 %v1487_v14  ;;  %1234 = vmatprep.subr.bf16.mxu0 %v1233_v15  ;;  %v1251_v14 = vpack.c.bf16 %v140_v4, %v136_v3  ;;  %v1507_v15 = vpack.c.bf16 %v142_v7, %v138_v5  ;;  %v1509_v20 = vpack.c.bf16 %v151_v13, %v147_v12  ;;  %v152_v31 = vld [vmem:[%s3338_s1 + $0x440] sm:$0xff]  ;;  %v158_v35 = vld [vmem:[%s3338_s1 + $0x470] sm:$0xff]  ;;  %v161_v36 = vld [vmem:[%s3338_s1 + $0x488] sm:$0xff] }
  0x30   :  { %1490 = vmatprep.subr.bf16.mxu1 %v1489_v19  ;;  %v146_v19 = vld [vmem:[%s3338_s1 + $0x410] sm:$0xff]  ;;  %v1257_v30 = vpack.c.bf16 %v157_v23, %v153_v22  ;;  %v156_v32 = vld [vmem:[%s3338_s1 + $0x460] sm:$0xff]  ;;  %v165_v37 = vld [vmem:[%s3338_s1 + $0x4a8] sm:$0xff] }
  0x31   :  { %v1511_v29 = vpack.c.bf16 %v150_v21, %v146_v19  ;;  %v1261_v43 = vpack.c.bf16 %v165_v37, %v161_v36  ;;  %v160_v44 = vld [vmem:[%s3338_s1 + $0x480] sm:$0xff]  ;;  %v162_v46 = vld [vmem:[%s3338_s1 + $0x490] sm:$0xff]  ;;  %v169_v48 = vld [vmem:[%s3338_s1 + $0x4c8] sm:$0xff] }
  0x32   :  { %1236 = vmatpush1.bf16.msra.mxu0 %v1235_v26  ;;  %v155_v26 = vld [vmem:[%s3338_s1 + $0x458] sm:$0xff]  ;;  %v173_v49 = vld [vmem:[%s3338_s1 + $0x4e8] sm:$0xff]  ;;  %v168_v55 = vld [vmem:[%s3338_s1 + $0x4c0] sm:$0xff] }
  0x33   :  { %1492 = vmatpush1.bf16.msra.mxu1 %v1491_v27  ;;  %1238 = vmatprep.subr.bf16.mxu0 %v1237_v28  ;;  %v159_v27 = vld [vmem:[%s3338_s1 + $0x478] sm:$0xff]  ;;  %v1255_v28 = vpack.c.bf16 %v148_v18, %v144_v17  ;;  %v1265_v54 = vpack.c.bf16 %v173_v49, %v169_v48  ;;  %v172_v56 = vld [vmem:[%s3338_s1 + $0x4e0] sm:$0xff]  ;;  %v174_v59 = vld [vmem:[%s3338_s1 + $0x4f0] sm:$0xff] }
  0x34   :  { %1494 = vmatprep.subr.bf16.mxu1 %v1493_v33  ;;  %v154_v33 = vld [vmem:[%s3338_s1 + $0x450] sm:$0xff]  ;;  %v1513_v34 = vpack.c.bf16 %v159_v27, %v155_v26  ;;  %v171_v50 = vld [vmem:[%s3338_s1 + $0x4d8] sm:$0xff]  ;;  %v177_v60 = vld [vmem:[%s3338_s1 + $0x508] sm:$0xff] }
  0x35   :  { %v1515_v42 = vpack.c.bf16 %v158_v35, %v154_v33  ;;  %v181_v62 = vld [vmem:[%s3338_s1 + $0x528] sm:$0xff]  ;;  %v179_v63 = vld [vmem:[%s3338_s1 + $0x518] sm:$0xff]  ;;  %v176_v4 = vld [vmem:[%s3338_s1 + $0x500] sm:$0xff] }
  0x36   :  { %1240 = vmatpush1.bf16.msra.mxu0 %v1239_v39  ;;  %v163_v39 = vld [vmem:[%s3338_s1 + $0x498] sm:$0xff]  ;;  %v1269_v3 = vpack.c.bf16 %v181_v62, %v177_v60  ;;  %v180_v5 = vld [vmem:[%s3338_s1 + $0x520] sm:$0xff]  ;;  %v182_v8 = vld [vmem:[%s3338_s1 + $0x530] sm:$0xff] }
  0x37   :  { %1496 = vmatpush1.bf16.msra.mxu1 %v1495_v40  ;;  %1242 = vmatprep.subr.bf16.mxu0 %v1241_v41  ;;  %v167_v40 = vld [vmem:[%s3338_s1 + $0x4b8] sm:$0xff]  ;;  %v1259_v41 = vpack.c.bf16 %v156_v32, %v152_v31  ;;  %v185_v9 = vld [vmem:[%s3338_s1 + $0x548] sm:$0xff]  ;;  %v184_v17 = vld [vmem:[%s3338_s1 + $0x540] sm:$0xff] }
  0x38   :  { %1498 = vmatprep.subr.bf16.mxu1 %v1497_v45  ;;  %v164_v45 = vld [vmem:[%s3338_s1 + $0x4a0] sm:$0xff]  ;;  %v1517_v47 = vpack.c.bf16 %v167_v40, %v163_v39  ;;  %v189_v10 = vld [vmem:[%s3338_s1 + $0x568] sm:$0xff]  ;;  %v187_v12 = vld [vmem:[%s3338_s1 + $0x558] sm:$0xff] }
  0x39   :  { %v191_v13 = vld [vmem:[%s3338_s1 + $0x578] sm:$0xff]  ;;  %v188_v18 = vld [vmem:[%s3338_s1 + $0x560] sm:$0xff]  ;;  %v186_v19 = vld [vmem:[%s3338_s1 + $0x550] sm:$0xff] }
  0x3a   :  { %1244 = vmatpush1.bf16.msra.mxu0 %v1243_v51  ;;  %v175_v51 = vld [vmem:[%s3338_s1 + $0x4f8] sm:$0xff]  ;;  %v190_v21 = vld [vmem:[%s3338_s1 + $0x570] sm:$0xff]  ;;  %v193_v22 = vld [vmem:[%s3338_s1 + $0x588] sm:$0xff] }
  0x3b   :  { %1500 = vmatpush1.bf16.msra.mxu1 %v1499_v52  ;;  %1246 = vmatprep.subr.bf16.mxu0 %v1245_v53  ;;  %v1263_v52 = vpack.c.bf16 %v164_v45, %v160_v44  ;;  %v1521_v58 = vpack.c.bf16 %v175_v51, %v171_v50  ;;  %v197_v23 = vld [vmem:[%s3338_s1 + $0x5a8] sm:$0xff]  ;;  %v195_v26 = vld [vmem:[%s3338_s1 + $0x598] sm:$0xff]  ;;  %v192_v31 = vld [vmem:[%s3338_s1 + $0x580] sm:$0xff] }
  0x3c   :  { %1502 = vmatprep.subr.bf16.mxu1 %v1501_v57  ;;  %v170_v57 = vld [vmem:[%s3338_s1 + $0x4d0] sm:$0xff]  ;;  %v199_v27 = vld [vmem:[%s3338_s1 + $0x5b8] sm:$0xff]  ;;  %v196_v32 = vld [vmem:[%s3338_s1 + $0x5a0] sm:$0xff] }
  0x3d   :  { %v194_v33 = vld [vmem:[%s3338_s1 + $0x590] sm:$0xff]  ;;  %v201_v36 = vld [vmem:[%s3338_s1 + $0x5c8] sm:$0xff]  ;;  %v207_v39 = vld [vmem:[%s3338_s1 + $0x5f8] sm:$0xff]  ;;  %v1279_v40 = vpack.c.bf16 %v196_v32, %v192_v31 }
  0x3e   :  { %1248 = vmatpush1.bf16.msra.mxu0 %v1247_v0  ;;  %v183_v0 = vld [vmem:[%s3338_s1 + $0x538] sm:$0xff]  ;;  %v198_v35 = vld [vmem:[%s3338_s1 + $0x5b0] sm:$0xff]  ;;  %v205_v37 = vld [vmem:[%s3338_s1 + $0x5e8] sm:$0xff] }
  0x3f   :  { %1504 = vmatpush1.bf16.msra.mxu1 %v1503_v1  ;;  %1250 = vmatprep.subr.bf16.mxu0 %v1249_v2  ;;  %v1267_v1 = vpack.c.bf16 %v172_v56, %v168_v55  ;;  %v1523_v2 = vpack.c.bf16 %v174_v59, %v170_v57  ;;  %v1525_v7 = vpack.c.bf16 %v183_v0, %v179_v63  ;;  %v204_v44 = vld [vmem:[%s3338_s1 + $0x5e0] sm:$0xff]  ;;  %v202_v45 = vld [vmem:[%s3338_s1 + $0x5d0] sm:$0xff]  ;;  %v213_v48 = vld [vmem:[%s3338_s1 + $0x628] sm:$0xff] }
  0x40   :  { %1506 = vmatprep.subr.bf16.mxu1 %v1505_v6  ;;  %v178_v6 = vld [vmem:[%s3338_s1 + $0x510] sm:$0xff]  ;;  %v211_v49 = vld [vmem:[%s3338_s1 + $0x618] sm:$0xff]  ;;  %v212_v55 = vld [vmem:[%s3338_s1 + $0x620] sm:$0xff] }
  0x41   :  { %v215_v50 = vld [vmem:[%s3338_s1 + $0x638] sm:$0xff]  ;;  %v210_v56 = vld [vmem:[%s3338_s1 + $0x610] sm:$0xff]  ;;  %v217_v59 = vld [vmem:[%s3338_s1 + $0x648] sm:$0xff] }
  0x42   :  { %1252 = vmatpush1.bf16.msra.mxu0 %v1251_v14  ;;  %v1271_v14 = vpack.c.bf16 %v180_v5, %v176_v4  ;;  %v1541_v57 = vpack.c.bf16 %v215_v50, %v211_v49  ;;  %v221_v60 = vld [vmem:[%s3338_s1 + $0x668] sm:$0xff]  ;;  %v219_v62 = vld [vmem:[%s3338_s1 + $0x658] sm:$0xff]  ;;  %v220_v4 = vld [vmem:[%s3338_s1 + $0x660] sm:$0xff] }
  0x43   :  { %1508 = vmatpush1.bf16.msra.mxu1 %v1507_v15  ;;  %1254 = vmatprep.subr.bf16.mxu0 %v1253_v16  ;;  %v1527_v15 = vpack.c.bf16 %v182_v8, %v178_v6  ;;  %v1273_v16 = vpack.c.bf16 %v189_v10, %v185_v9  ;;  %v223_v63 = vld [vmem:[%s3338_s1 + $0x678] sm:$0xff]  ;;  %v218_v5 = vld [vmem:[%s3338_s1 + $0x650] sm:$0xff]  ;;  %v225_v8 = vld [vmem:[%s3338_s1 + $0x688] sm:$0xff] }
  0x44   :  { %1510 = vmatprep.subr.bf16.mxu1 %v1509_v20  ;;  %v1529_v20 = vpack.c.bf16 %v191_v13, %v187_v12  ;;  %v1545_v6 = vpack.c.bf16 %v223_v63, %v219_v62  ;;  %v229_v9 = vld [vmem:[%s3338_s1 + $0x6a8] sm:$0xff]  ;;  %v227_v10 = vld [vmem:[%s3338_s1 + $0x698] sm:$0xff]  ;;  %v236_v31 = vld [vmem:[%s3338_s1 + $0x6e0] sm:$0xff] }
  0x45   :  { %659 = vmatmul.mubr.f32.vlgmr.msra.gmra.mrb[0].mxu0 %v2053_v25  ;;  %v231_v12 = vld [vmem:[%s3338_s1 + $0x6b8] sm:$0xff]  ;;  %v234_v32 = vld [vmem:[%s3338_s1 + $0x6d0] sm:$0xff] }
  0x46   :  { %1256 = vmatpush1.bf16.msra.mxu0 %v1255_v28  ;;  %943 = vmatmul.mubr.f32.vlgmr.msra.gmra.mrb[0].mxu1 %v2053_v25  ;;  %v166_v25 = vld [vmem:[%s3338_s1 + $0x4b0] sm:$0xff]  ;;  %v1275_v28 = vpack.c.bf16 %v188_v18, %v184_v17  ;;  %v228_v17 = vld [vmem:[%s3338_s1 + $0x6a0] sm:$0xff]  ;;  %v255_v49 = vld [vmem:[%s3338_s1 + $0x778] sm:$0xff] }
  0x47   :  { %1512 = vmatpush1.bf16.msra.mxu1 %v1511_v29  ;;  %1258 = vmatprep.subr.bf16.mxu0 %v1257_v30  ;;  %v1519_v53 = vpack.c.bf16 %v166_v25, %v162_v46  ;;  %v1531_v29 = vpack.c.bf16 %v190_v21, %v186_v19  ;;  %v1277_v30 = vpack.c.bf16 %v197_v23, %v193_v22  ;;  %v209_v25 = vld [vmem:[%s3338_s1 + $0x608] sm:$0xff]  ;;  %v226_v18 = vld [vmem:[%s3338_s1 + $0x690] sm:$0xff]  ;;  %v235_v23 = vld [vmem:[%s3338_s1 + $0x6d8] sm:$0xff] }
  0x48   :  { %1514 = vmatprep.subr.bf16.mxu1 %v1513_v34  ;;  %729 = vmatprep.mubr.f32.mxu0 %v568_v38  ;;  %v1533_v34 = vpack.c.bf16 %v199_v27, %v195_v26  ;;  %v1549_v19 = vpack.c.bf16 %v231_v12, %v227_v10  ;;  %v233_v21 = vld [vmem:[%s3338_s1 + $0x6c8] sm:$0xff]  ;;  %v239_v26 = vld [vmem:[%s3338_s1 + $0x6f8] sm:$0xff] }
  0x49   :  { %1013 = vmatprep.mubr.f32.mxu1 %v568_v38  ;;  %v203_v38 = vld [vmem:[%s3338_s1 + $0x5d8] sm:$0xff]  ;;  %v237_v22 = vld [vmem:[%s3338_s1 + $0x6e8] sm:$0xff] }
  0x4a   :  { %1260 = vmatpush1.bf16.msra.mxu0 %v1259_v41  ;;  %v1535_v41 = vpack.c.bf16 %v198_v35, %v194_v33  ;;  %v1537_v46 = vpack.c.bf16 %v207_v39, %v203_v38  ;;  %v1553_v33 = vpack.c.bf16 %v239_v26, %v235_v23  ;;  %v241_v35 = vld [vmem:[%s3338_s1 + $0x708] sm:$0xff]  ;;  %v247_v38 = vld [vmem:[%s3338_s1 + $0x738] sm:$0xff] }
  0x4b   :  { %1516 = vmatpush1.bf16.msra.mxu1 %v1515_v42  ;;  %1262 = vmatprep.subr.bf16.mxu0 %v1261_v43  ;;  %v1281_v42 = vpack.c.bf16 %v205_v37, %v201_v36  ;;  %v200_v43 = vld [vmem:[%s3338_s1 + $0x5c0] sm:$0xff]  ;;  %v245_v36 = vld [vmem:[%s3338_s1 + $0x728] sm:$0xff]  ;;  %v243_v37 = vld [vmem:[%s3338_s1 + $0x718] sm:$0xff] }
  0x4c   :  { %1518 = vmatprep.subr.bf16.mxu1 %v1517_v47  ;;  %v206_v47 = vld [vmem:[%s3338_s1 + $0x5f0] sm:$0xff]  ;;  %v1283_v51 = vpack.c.bf16 %v204_v44, %v200_v43  ;;  %v244_v43 = vld [vmem:[%s3338_s1 + $0x720] sm:$0xff]  ;;  %v263_v62 = vld [vmem:[%s3338_s1 + $0x7b8] sm:$0xff] }
  0x4d   :  { %v242_v44 = vld [vmem:[%s3338_s1 + $0x710] sm:$0xff]  ;;  %v271_v10 = vld [vmem:[%s3338_s1 + $0x7f8] sm:$0xff] }
  0x4e   :  { %1264 = vmatpush1.bf16.msra.mxu0 %v1263_v52  ;;  %v1539_v52 = vpack.c.bf16 %v206_v47, %v202_v45  ;;  %v1557_v45 = vpack.c.bf16 %v247_v38, %v243_v37  ;;  %v249_v47 = vld [vmem:[%s3338_s1 + $0x748] sm:$0xff]  ;;  %v275_v23 = vld [vmem:[%s3338_s1 + $0x818] sm:$0xff] }
  0x4f   :  { %1520 = vmatpush1.bf16.msra.mxu1 %v1519_v53  ;;  %1266 = vmatprep.subr.bf16.mxu0 %v1265_v54  ;;  %v1285_v53 = vpack.c.bf16 %v213_v48, %v209_v25  ;;  %v208_v54 = vld [vmem:[%s3338_s1 + $0x600] sm:$0xff]  ;;  %v253_v25 = vld [vmem:[%s3338_s1 + $0x768] sm:$0xff]  ;;  %v251_v48 = vld [vmem:[%s3338_s1 + $0x758] sm:$0xff] }
  0x50   :  { %1522 = vmatprep.subr.bf16.mxu1 %v1521_v58  ;;  %v214_v58 = vld [vmem:[%s3338_s1 + $0x630] sm:$0xff]  ;;  %v1287_v0 = vpack.c.bf16 %v212_v55, %v208_v54  ;;  %v252_v54 = vld [vmem:[%s3338_s1 + $0x760] sm:$0xff]  ;;  %v279_v26 = vld [vmem:[%s3338_s1 + $0x838] sm:$0xff] }
  0x51   :  { %v250_v55 = vld [vmem:[%s3338_s1 + $0x750] sm:$0xff]  ;;  %v283_v38 = vld [vmem:[%s3338_s1 + $0x858] sm:$0xff] }
  0x52   :  { %1268 = vmatpush1.bf16.msra.mxu0 %v1267_v1  ;;  %v1543_v1 = vpack.c.bf16 %v214_v58, %v210_v56  ;;  %v1561_v56 = vpack.c.bf16 %v255_v49, %v251_v48  ;;  %v257_v58 = vld [vmem:[%s3338_s1 + $0x788] sm:$0xff] }
  0x53   :  { %1524 = vmatpush1.bf16.msra.mxu1 %v1523_v2  ;;  %1270 = vmatprep.subr.bf16.mxu0 %v1269_v3  ;;  %v1289_v2 = vpack.c.bf16 %v221_v60, %v217_v59  ;;  %v216_v3 = vld [vmem:[%s3338_s1 + $0x640] sm:$0xff]  ;;  %v261_v59 = vld [vmem:[%s3338_s1 + $0x7a8] sm:$0xff]  ;;  %v259_v60 = vld [vmem:[%s3338_s1 + $0x798] sm:$0xff] }
  0x54   :  { %1526 = vmatprep.subr.bf16.mxu1 %v1525_v7  ;;  %v222_v7 = vld [vmem:[%s3338_s1 + $0x670] sm:$0xff]  ;;  %v1291_v13 = vpack.c.bf16 %v220_v4, %v216_v3  ;;  %v260_v3 = vld [vmem:[%s3338_s1 + $0x7a0] sm:$0xff]  ;;  %v293_v48 = vld [vmem:[%s3338_s1 + $0x8a8] sm:$0xff] }
  0x55   :  { %v258_v4 = vld [vmem:[%s3338_s1 + $0x790] sm:$0xff] }
  0x56   :  { %1272 = vmatpush1.bf16.msra.mxu0 %v1271_v14  ;;  %v1547_v14 = vpack.c.bf16 %v222_v7, %v218_v5  ;;  %v1565_v5 = vpack.c.bf16 %v263_v62, %v259_v60  ;;  %v265_v7 = vld [vmem:[%s3338_s1 + $0x7c8] sm:$0xff]  ;;  %v299_v62 = vld [vmem:[%s3338_s1 + $0x8d8] sm:$0xff] }
  0x57   :  { %1528 = vmatpush1.bf16.msra.mxu1 %v1527_v15  ;;  %1274 = vmatprep.subr.bf16.mxu0 %v1273_v16  ;;  %v1293_v15 = vpack.c.bf16 %v229_v9, %v225_v8  ;;  %v224_v16 = vld [vmem:[%s3338_s1 + $0x680] sm:$0xff]  ;;  %v269_v8 = vld [vmem:[%s3338_s1 + $0x7e8] sm:$0xff]  ;;  %v267_v9 = vld [vmem:[%s3338_s1 + $0x7d8] sm:$0xff] }
  0x58   :  { %1530 = vmatprep.subr.bf16.mxu1 %v1529_v20  ;;  %v230_v20 = vld [vmem:[%s3338_s1 + $0x6b0] sm:$0xff]  ;;  %v1295_v27 = vpack.c.bf16 %v228_v17, %v224_v16  ;;  %v268_v16 = vld [vmem:[%s3338_s1 + $0x7e0] sm:$0xff]  ;;  %v301_v60 = vld [vmem:[%s3338_s1 + $0x8e8] sm:$0xff] }
  0x59   :  { %v266_v17 = vld [vmem:[%s3338_s1 + $0x7d0] sm:$0xff] }
  0x5a   :  { %1276 = vmatpush1.bf16.msra.mxu0 %v1275_v28  ;;  %v1551_v28 = vpack.c.bf16 %v230_v20, %v226_v18  ;;  %v1569_v18 = vpack.c.bf16 %v271_v10, %v267_v9  ;;  %v273_v20 = vld [vmem:[%s3338_s1 + $0x808] sm:$0xff]  ;;  %v307_v10 = vld [vmem:[%s3338_s1 + $0x918] sm:$0xff] }
  0x5b   :  { %1532 = vmatpush1.bf16.msra.mxu1 %v1531_v29  ;;  %1278 = vmatprep.subr.bf16.mxu0 %v1277_v30  ;;  %v1297_v29 = vpack.c.bf16 %v237_v22, %v233_v21  ;;  %v232_v30 = vld [vmem:[%s3338_s1 + $0x6c0] sm:$0xff]  ;;  %v277_v21 = vld [vmem:[%s3338_s1 + $0x828] sm:$0xff] }
  0x5c   :  { %1534 = vmatprep.subr.bf16.mxu1 %v1533_v34  ;;  %v238_v34 = vld [vmem:[%s3338_s1 + $0x6f0] sm:$0xff]  ;;  %v1299_v39 = vpack.c.bf16 %v236_v31, %v232_v30  ;;  %v2543_v22 = vld [vmem:[%s3339_s0 + $0x8] sm:$0xff]  ;;  %v272_v30 = vld [vmem:[%s3338_s1 + $0x800] sm:$0xff] }
  0x5d   :  { %v276_v31 = vld [vmem:[%s3338_s1 + $0x820] sm:$0xff]  ;;  %v2571_v37 = vrot.slane %v2543_v22, %v2020_v11  ;;  %v309_v9 = vld [vmem:[%s3338_s1 + $0x928] sm:$0xff] }
  0x5e   :  { %1280 = vmatpush1.bf16.msra.mxu0 %v1279_v40  ;;  %v1555_v40 = vpack.c.bf16 %v238_v34, %v234_v32  ;;  %v274_v32 = vld [vmem:[%s3338_s1 + $0x810] sm:$0xff] }
  0x5f   :  { %1536 = vmatpush1.bf16.msra.mxu1 %v1535_v41  ;;  %1282 = vmatprep.subr.bf16.mxu0 %v1281_v42  ;;  %v1301_v41 = vpack.c.bf16 %v245_v36, %v241_v35  ;;  %v240_v42 = vld [vmem:[%s3338_s1 + $0x700] sm:$0xff]  ;;  %v278_v34 = vld [vmem:[%s3338_s1 + $0x830] sm:$0xff]  ;;  %v281_v35 = vld [vmem:[%s3338_s1 + $0x848] sm:$0xff]  ;;  %v584_v49 = vcombine.high %v2571_v37, %v2571_v37 }
  0x60   :  { %1538 = vmatprep.subr.bf16.mxu1 %v1537_v46  ;;  %v246_v46 = vld [vmem:[%s3338_s1 + $0x730] sm:$0xff]  ;;  %v1303_v50 = vpack.c.bf16 %v244_v43, %v240_v42  ;;  %v285_v36 = vld [vmem:[%s3338_s1 + $0x868] sm:$0xff]  ;;  %v280_v43 = vld [vmem:[%s3338_s1 + $0x840] sm:$0xff] }
  0x61   :  { %v1321_v42 = vpack.c.bf16 %v285_v36, %v281_v35  ;;  %v318_v35 = vld [vmem:[%s3338_s1 + $0x970] sm:$0xff]  ;;  %v321_v36 = vld [vmem:[%s3338_s1 + $0x988] sm:$0xff] }
  0x62   :  { %1284 = vmatpush1.bf16.msra.mxu0 %v1283_v51  ;;  %v1559_v51 = vpack.c.bf16 %v246_v46, %v242_v44  ;;  %v284_v44 = vld [vmem:[%s3338_s1 + $0x860] sm:$0xff] }
  0x63   :  { %1540 = vmatpush1.bf16.msra.mxu1 %v1539_v52  ;;  %1286 = vmatprep.subr.bf16.mxu0 %v1285_v53  ;;  %v1305_v52 = vpack.c.bf16 %v253_v25, %v249_v47  ;;  %v248_v53 = vld [vmem:[%s3338_s1 + $0x740] sm:$0xff]  ;;  %v286_v47 = vld [vmem:[%s3338_s1 + $0x870] sm:$0xff]  ;;  %v289_v25 = vld [vmem:[%s3338_s1 + $0x888] sm:$0xff] }
  0x64   :  { %1542 = vmatprep.subr.bf16.mxu1 %v1541_v57  ;;  %v254_v57 = vld [vmem:[%s3338_s1 + $0x770] sm:$0xff]  ;;  %v1307_v63 = vpack.c.bf16 %v252_v54, %v248_v53  ;;  %v1325_v54 = vpack.c.bf16 %v293_v48, %v289_v25  ;;  %v329_v48 = vld [vmem:[%s3338_s1 + $0x9c8] sm:$0xff] }
  0x65   :  { %v326_v25 = vld [vmem:[%s3338_s1 + $0x9b0] sm:$0xff] }
  0x66   :  { %1288 = vmatpush1.bf16.msra.mxu0 %v1287_v0  ;;  %v1563_v0 = vpack.c.bf16 %v254_v57, %v250_v55  ;;  %v288_v55 = vld [vmem:[%s3338_s1 + $0x880] sm:$0xff]  ;;  %v290_v57 = vld [vmem:[%s3338_s1 + $0x890] sm:$0xff] }
  0x67   :  { %1544 = vmatpush1.bf16.msra.mxu1 %v1543_v1  ;;  %1290 = vmatprep.subr.bf16.mxu0 %v1289_v2  ;;  %v1309_v1 = vpack.c.bf16 %v261_v59, %v257_v58  ;;  %v256_v2 = vld [vmem:[%s3338_s1 + $0x780] sm:$0xff]  ;;  %v297_v59 = vld [vmem:[%s3338_s1 + $0x8c8] sm:$0xff] }
  0x68   :  { %1546 = vmatprep.subr.bf16.mxu1 %v1545_v6  ;;  %v262_v6 = vld [vmem:[%s3338_s1 + $0x7b0] sm:$0xff]  ;;  %v1311_v12 = vpack.c.bf16 %v260_v3, %v256_v2  ;;  %v1329_v2 = vpack.c.bf16 %v301_v60, %v297_v59  ;;  %v296_v3 = vld [vmem:[%s3338_s1 + $0x8c0] sm:$0xff]  ;;  %v337_v59 = vld [vmem:[%s3338_s1 + $0xa08] sm:$0xff] }
  0x69   :  { %v341_v60 = vld [vmem:[%s3338_s1 + $0xa28] sm:$0xff] }
  0x6a   :  { %1292 = vmatpush1.bf16.msra.mxu0 %v1291_v13  ;;  %v1567_v13 = vpack.c.bf16 %v262_v6, %v258_v4  ;;  %v300_v4 = vld [vmem:[%s3338_s1 + $0x8e0] sm:$0xff] }
  0x6b   :  { %1548 = vmatpush1.bf16.msra.mxu1 %v1547_v14  ;;  %1294 = vmatprep.subr.bf16.mxu0 %v1293_v15  ;;  %v1313_v14 = vpack.c.bf16 %v269_v8, %v265_v7  ;;  %v264_v15 = vld [vmem:[%s3338_s1 + $0x7c0] sm:$0xff]  ;;  %v302_v7 = vld [vmem:[%s3338_s1 + $0x8f0] sm:$0xff]  ;;  %v305_v8 = vld [vmem:[%s3338_s1 + $0x908] sm:$0xff] }
  0x6c   :  { %1550 = vmatprep.subr.bf16.mxu1 %v1549_v19  ;;  %v270_v19 = vld [vmem:[%s3338_s1 + $0x7f0] sm:$0xff] }
  0x6e   :  { %1296 = vmatpush1.bf16.msra.mxu0 %v1295_v27  ;;  %v1315_v27 = vpack.c.bf16 %v268_v16, %v264_v15  ;;  %v1333_v15 = vpack.c.bf16 %v309_v9, %v305_v8  ;;  %v304_v16 = vld [vmem:[%s3338_s1 + $0x900] sm:$0xff]  ;;  %v345_v8 = vld [vmem:[%s3338_s1 + $0xa48] sm:$0xff] }
  0x6f   :  { %1552 = vmatpush1.bf16.msra.mxu1 %v1551_v28  ;;  %1298 = vmatprep.subr.bf16.mxu0 %v1297_v29  ;;  %v1571_v28 = vpack.c.bf16 %v270_v19, %v266_v17  ;;  %v1317_v29 = vpack.c.bf16 %v277_v21, %v273_v20  ;;  %v308_v17 = vld [vmem:[%s3338_s1 + $0x920] sm:$0xff]  ;;  %v310_v20 = vld [vmem:[%s3338_s1 + $0x930] sm:$0xff]  ;;  %v313_v21 = vld [vmem:[%s3338_s1 + $0x948] sm:$0xff] }
  0x70   :  { %1554 = vmatprep.subr.bf16.mxu1 %v1553_v33  ;;  %v1573_v33 = vpack.c.bf16 %v279_v26, %v275_v23  ;;  %v317_v23 = vld [vmem:[%s3338_s1 + $0x968] sm:$0xff]  ;;  %v315_v26 = vld [vmem:[%s3338_s1 + $0x958] sm:$0xff] }
  0x71   :  { %v349_v9 = vld [vmem:[%s3338_s1 + $0xa68] sm:$0xff] }
  0x72   :  { %1300 = vmatpush1.bf16.msra.mxu0 %v1299_v39  ;;  %v287_v39 = vld [vmem:[%s3338_s1 + $0x878] sm:$0xff] }
  0x73   :  { %1556 = vmatpush1.bf16.msra.mxu1 %v1555_v40  ;;  %1302 = vmatprep.subr.bf16.mxu0 %v1301_v41  ;;  %v1319_v40 = vpack.c.bf16 %v276_v31, %v272_v30  ;;  %v1575_v41 = vpack.c.bf16 %v278_v34, %v274_v32  ;;  %v1577_v46 = vpack.c.bf16 %v287_v39, %v283_v38  ;;  %v312_v31 = vld [vmem:[%s3338_s1 + $0x940] sm:$0xff]  ;;  %v325_v38 = vld [vmem:[%s3338_s1 + $0x9a8] sm:$0xff]  ;;  %v323_v39 = vld [vmem:[%s3338_s1 + $0x998] sm:$0xff] }
  0x74   :  { %1558 = vmatprep.subr.bf16.mxu1 %v1557_v45  ;;  %v282_v45 = vld [vmem:[%s3338_s1 + $0x850] sm:$0xff]  ;;  %v1337_v30 = vpack.c.bf16 %v317_v23, %v313_v21  ;;  %v316_v32 = vld [vmem:[%s3338_s1 + $0x960] sm:$0xff]  ;;  %v353_v21 = vld [vmem:[%s3338_s1 + $0xa88] sm:$0xff] }
  0x75   :  { %v1579_v53 = vpack.c.bf16 %v286_v47, %v282_v45  ;;  %v324_v45 = vld [vmem:[%s3338_s1 + $0x9a0] sm:$0xff]  ;;  %v357_v23 = vld [vmem:[%s3338_s1 + $0xaa8] sm:$0xff] }
  0x76   :  { %1304 = vmatpush1.bf16.msra.mxu0 %v1303_v50  ;;  %v291_v50 = vld [vmem:[%s3338_s1 + $0x898] sm:$0xff] }
  0x77   :  { %1560 = vmatpush1.bf16.msra.mxu1 %v1559_v51  ;;  %1306 = vmatprep.subr.bf16.mxu0 %v1305_v52  ;;  %v295_v51 = vld [vmem:[%s3338_s1 + $0x8b8] sm:$0xff]  ;;  %v1323_v52 = vpack.c.bf16 %v284_v44, %v280_v43  ;;  %v1341_v43 = vpack.c.bf16 %v325_v38, %v321_v36  ;;  %v320_v44 = vld [vmem:[%s3338_s1 + $0x980] sm:$0xff]  ;;  %v361_v36 = vld [vmem:[%s3338_s1 + $0xac8] sm:$0xff] }
  0x78   :  { %1562 = vmatprep.subr.bf16.mxu1 %v1561_v56  ;;  %v292_v56 = vld [vmem:[%s3338_s1 + $0x8a0] sm:$0xff]  ;;  %v1581_v58 = vpack.c.bf16 %v295_v51, %v291_v50  ;;  %v331_v50 = vld [vmem:[%s3338_s1 + $0x9d8] sm:$0xff]  ;;  %v365_v38 = vld [vmem:[%s3338_s1 + $0xae8] sm:$0xff] }
  0x79   :  { %v335_v51 = vld [vmem:[%s3338_s1 + $0x9f8] sm:$0xff] }
  0x7a   :  { %1308 = vmatpush1.bf16.msra.mxu0 %v1307_v63  ;;  %v303_v63 = vld [vmem:[%s3338_s1 + $0x8f8] sm:$0xff] }
  0x7b   :  { %1564 = vmatpush1.bf16.msra.mxu1 %v1563_v0  ;;  %1310 = vmatprep.subr.bf16.mxu0 %v1309_v1  ;;  %v1327_v0 = vpack.c.bf16 %v292_v56, %v288_v55  ;;  %v1585_v6 = vpack.c.bf16 %v303_v63, %v299_v62  ;;  %v328_v55 = vld [vmem:[%s3338_s1 + $0x9c0] sm:$0xff]  ;;  %v339_v62 = vld [vmem:[%s3338_s1 + $0xa18] sm:$0xff] }
  0x7c   :  { %1566 = vmatprep.subr.bf16.mxu1 %v1565_v5  ;;  %v298_v5 = vld [vmem:[%s3338_s1 + $0x8d0] sm:$0xff]  ;;  %v332_v56 = vld [vmem:[%s3338_s1 + $0x9e0] sm:$0xff]  ;;  %v343_v63 = vld [vmem:[%s3338_s1 + $0xa38] sm:$0xff] }
  0x7e   :  { %1312 = vmatpush1.bf16.msra.mxu0 %v1311_v12  ;;  %v311_v12 = vld [vmem:[%s3338_s1 + $0x938] sm:$0xff] }
  0x7f   :  { %1568 = vmatpush1.bf16.msra.mxu1 %v1567_v13  ;;  %1314 = vmatprep.subr.bf16.mxu0 %v1313_v14  ;;  %v1331_v13 = vpack.c.bf16 %v300_v4, %v296_v3  ;;  %v1587_v14 = vpack.c.bf16 %v302_v7, %v298_v5  ;;  %v1589_v19 = vpack.c.bf16 %v311_v12, %v307_v10  ;;  %v336_v3 = vld [vmem:[%s3338_s1 + $0xa00] sm:$0xff]  ;;  %v338_v5 = vld [vmem:[%s3338_s1 + $0xa10] sm:$0xff]  ;;  %v347_v10 = vld [vmem:[%s3338_s1 + $0xa58] sm:$0xff] }
  0x80   :  { %1570 = vmatprep.subr.bf16.mxu1 %v1569_v18  ;;  %v306_v18 = vld [vmem:[%s3338_s1 + $0x910] sm:$0xff]  ;;  %v340_v4 = vld [vmem:[%s3338_s1 + $0xa20] sm:$0xff]  ;;  %v351_v12 = vld [vmem:[%s3338_s1 + $0xa78] sm:$0xff] }
  0x81   :  { %v342_v7 = vld [vmem:[%s3338_s1 + $0xa30] sm:$0xff] }
  0x82   :  { %1316 = vmatpush1.bf16.msra.mxu0 %v1315_v27  ;;  %v319_v27 = vld [vmem:[%s3338_s1 + $0x978] sm:$0xff] }
  0x83   :  { %1572 = vmatpush1.bf16.msra.mxu1 %v1571_v28  ;;  %1318 = vmatprep.subr.bf16.mxu0 %v1317_v29  ;;  %v1335_v28 = vpack.c.bf16 %v308_v17, %v304_v16  ;;  %v1591_v29 = vpack.c.bf16 %v310_v20, %v306_v18  ;;  %v1593_v34 = vpack.c.bf16 %v319_v27, %v315_v26  ;;  %v344_v16 = vld [vmem:[%s3338_s1 + $0xa40] sm:$0xff]  ;;  %v346_v18 = vld [vmem:[%s3338_s1 + $0xa50] sm:$0xff]  ;;  %v355_v26 = vld [vmem:[%s3338_s1 + $0xa98] sm:$0xff] }
  0x84   :  { %1574 = vmatprep.subr.bf16.mxu1 %v1573_v33  ;;  %v314_v33 = vld [vmem:[%s3338_s1 + $0x950] sm:$0xff]  ;;  %v348_v17 = vld [vmem:[%s3338_s1 + $0xa60] sm:$0xff]  ;;  %v359_v27 = vld [vmem:[%s3338_s1 + $0xab8] sm:$0xff] }
  0x85   :  { %730 = vmatmul.mubr.f32.vlgmr.msra.gmra.mrb[0].mxu0 %v2174_v24  ;;  %v350_v20 = vld [vmem:[%s3338_s1 + $0xa70] sm:$0xff] }
  0x86   :  { %1320 = vmatpush1.bf16.msra.mxu0 %v1319_v40  ;;  %1014 = vmatmul.mubr.f32.vlgmr.msra.gmra.mrb[0].mxu1 %v2174_v24  ;;  %v294_v24 = vld [vmem:[%s3338_s1 + $0x8b0] sm:$0xff]  ;;  %v327_v40 = vld [vmem:[%s3338_s1 + $0x9b8] sm:$0xff] }
  0x87   :  { %1576 = vmatpush1.bf16.msra.mxu1 %v1575_v41  ;;  %1322 = vmatprep.subr.bf16.mxu0 %v1321_v42  ;;  %v1583_v1 = vpack.c.bf16 %v294_v24, %v290_v57  ;;  %v1339_v41 = vpack.c.bf16 %v316_v32, %v312_v31  ;;  %v1595_v42 = vpack.c.bf16 %v318_v35, %v314_v33  ;;  %v330_v57 = vld [vmem:[%s3338_s1 + $0x9d0] sm:$0xff]  ;;  %v352_v31 = vld [vmem:[%s3338_s1 + $0xa80] sm:$0xff] }
  0x88   :  { %1578 = vmatprep.subr.bf16.mxu1 %v1577_v46  ;;  %800 = vmatprep.mubr.f32.mxu0 %v584_v49  ;;  %v322_v46 = vld [vmem:[%s3338_s1 + $0x990] sm:$0xff]  ;;  %v1597_v47 = vpack.c.bf16 %v327_v40, %v323_v39  ;;  %v356_v32 = vld [vmem:[%s3338_s1 + $0xaa0] sm:$0xff]  ;;  %v363_v39 = vld [vmem:[%s3338_s1 + $0xad8] sm:$0xff] }
  0x89   :  { %1084 = vmatprep.mubr.f32.mxu1 %v584_v49  ;;  %v333_v49 = vld [vmem:[%s3338_s1 + $0x9e8] sm:$0xff]  ;;  %v334_v24 = vld [vmem:[%s3338_s1 + $0x9f0] sm:$0xff]  ;;  %v367_v40 = vld [vmem:[%s3338_s1 + $0xaf8] sm:$0xff] }
  0x8a   :  { %1324 = vmatpush1.bf16.msra.mxu0 %v1323_v52  ;;  %v1343_v52 = vpack.c.bf16 %v324_v45, %v320_v44  ;;  %v354_v33 = vld [vmem:[%s3338_s1 + $0xa90] sm:$0xff]  ;;  %v360_v44 = vld [vmem:[%s3338_s1 + $0xac0] sm:$0xff] }
  0x8b   :  { %1580 = vmatpush1.bf16.msra.mxu1 %v1579_v53  ;;  %1326 = vmatprep.subr.bf16.mxu0 %v1325_v54  ;;  %v1599_v53 = vpack.c.bf16 %v326_v25, %v322_v46  ;;  %v1345_v54 = vpack.c.bf16 %v333_v49, %v329_v48  ;;  %v358_v35 = vld [vmem:[%s3338_s1 + $0xab0] sm:$0xff]  ;;  %v364_v45 = vld [vmem:[%s3338_s1 + $0xae0] sm:$0xff]  ;;  %v369_v48 = vld [vmem:[%s3338_s1 + $0xb08] sm:$0xff] }
  0x8c   :  { %1582 = vmatprep.subr.bf16.mxu1 %v1581_v58  ;;  %v1601_v58 = vpack.c.bf16 %v335_v51, %v331_v50  ;;  %v362_v46 = vld [vmem:[%s3338_s1 + $0xad0] sm:$0xff]  ;;  %v373_v49 = vld [vmem:[%s3338_s1 + $0xb28] sm:$0xff]  ;;  %v371_v50 = vld [vmem:[%s3338_s1 + $0xb18] sm:$0xff] }
  0x8d   :  { %v366_v25 = vld [vmem:[%s3338_s1 + $0xaf0] sm:$0xff]  ;;  %v375_v51 = vld [vmem:[%s3338_s1 + $0xb38] sm:$0xff] }
  0x8e   :  { %1328 = vmatpush1.bf16.msra.mxu0 %v1327_v0  ;;  %v1347_v0 = vpack.c.bf16 %v332_v56, %v328_v55  ;;  %v368_v55 = vld [vmem:[%s3338_s1 + $0xb00] sm:$0xff] }
  0x8f   :  { %1584 = vmatpush1.bf16.msra.mxu1 %v1583_v1  ;;  %1330 = vmatprep.subr.bf16.mxu0 %v1329_v2  ;;  %v1603_v1 = vpack.c.bf16 %v334_v24, %v330_v57  ;;  %v1349_v2 = vpack.c.bf16 %v341_v60, %v337_v59  ;;  %v372_v56 = vld [vmem:[%s3338_s1 + $0xb20] sm:$0xff]  ;;  %v370_v57 = vld [vmem:[%s3338_s1 + $0xb10] sm:$0xff]  ;;  %v377_v59 = vld [vmem:[%s3338_s1 + $0xb48] sm:$0xff] }
  0x90   :  { %1586 = vmatprep.subr.bf16.mxu1 %v1585_v6  ;;  %v1605_v6 = vpack.c.bf16 %v343_v63, %v339_v62  ;;  %v374_v24 = vld [vmem:[%s3338_s1 + $0xb30] sm:$0xff]  ;;  %v381_v60 = vld [vmem:[%s3338_s1 + $0xb68] sm:$0xff]  ;;  %v379_v62 = vld [vmem:[%s3338_s1 + $0xb58] sm:$0xff] }
  0x91   :  { %v383_v63 = vld [vmem:[%s3338_s1 + $0xb78] sm:$0xff] }
  0x92   :  { %1332 = vmatpush1.bf16.msra.mxu0 %v1331_v13  ;;  %v1351_v13 = vpack.c.bf16 %v340_v4, %v336_v3  ;;  %v376_v3 = vld [vmem:[%s3338_s1 + $0xb40] sm:$0xff] }
  0x93   :  { %1588 = vmatpush1.bf16.msra.mxu1 %v1587_v14  ;;  %1334 = vmatprep.subr.bf16.mxu0 %v1333_v15  ;;  %v1607_v14 = vpack.c.bf16 %v342_v7, %v338_v5  ;;  %v1353_v15 = vpack.c.bf16 %v349_v9, %v345_v8  ;;  %v380_v4 = vld [vmem:[%s3338_s1 + $0xb60] sm:$0xff]  ;;  %v378_v5 = vld [vmem:[%s3338_s1 + $0xb50] sm:$0xff]  ;;  %v385_v8 = vld [vmem:[%s3338_s1 + $0xb88] sm:$0xff] }
  0x94   :  { %1590 = vmatprep.subr.bf16.mxu1 %v1589_v19  ;;  %v1609_v19 = vpack.c.bf16 %v351_v12, %v347_v10  ;;  %v382_v7 = vld [vmem:[%s3338_s1 + $0xb70] sm:$0xff]  ;;  %v389_v9 = vld [vmem:[%s3338_s1 + $0xba8] sm:$0xff]  ;;  %v387_v10 = vld [vmem:[%s3338_s1 + $0xb98] sm:$0xff] }
  0x95   :  { %v391_v12 = vld [vmem:[%s3338_s1 + $0xbb8] sm:$0xff] }
  0x96   :  { %1336 = vmatpush1.bf16.msra.mxu0 %v1335_v28  ;;  %v1355_v28 = vpack.c.bf16 %v348_v17, %v344_v16  ;;  %v384_v16 = vld [vmem:[%s3338_s1 + $0xb80] sm:$0xff] }
  0x97   :  { %1592 = vmatpush1.bf16.msra.mxu1 %v1591_v29  ;;  %1338 = vmatprep.subr.bf16.mxu0 %v1337_v30  ;;  %v1611_v29 = vpack.c.bf16 %v350_v20, %v346_v18  ;;  %v1357_v30 = vpack.c.bf16 %v357_v23, %v353_v21  ;;  %v388_v17 = vld [vmem:[%s3338_s1 + $0xba0] sm:$0xff]  ;;  %v386_v18 = vld [vmem:[%s3338_s1 + $0xb90] sm:$0xff]  ;;  %v393_v21 = vld [vmem:[%s3338_s1 + $0xbc8] sm:$0xff] }
  0x98   :  { %1594 = vmatprep.subr.bf16.mxu1 %v1593_v34  ;;  %v1613_v34 = vpack.c.bf16 %v359_v27, %v355_v26  ;;  %v390_v20 = vld [vmem:[%s3338_s1 + $0xbb0] sm:$0xff]  ;;  %v397_v23 = vld [vmem:[%s3338_s1 + $0xbe8] sm:$0xff]  ;;  %v395_v26 = vld [vmem:[%s3338_s1 + $0xbd8] sm:$0xff] }
  0x99   :  { %v399_v27 = vld [vmem:[%s3338_s1 + $0xbf8] sm:$0xff] }
  0x9a   :  { %1340 = vmatpush1.bf16.msra.mxu0 %v1339_v41  ;;  %v1359_v41 = vpack.c.bf16 %v356_v32, %v352_v31  ;;  %v392_v31 = vld [vmem:[%s3338_s1 + $0xbc0] sm:$0xff] }
  0x9b   :  { %1596 = vmatpush1.bf16.msra.mxu1 %v1595_v42  ;;  %1342 = vmatprep.subr.bf16.mxu0 %v1341_v43  ;;  %v1615_v42 = vpack.c.bf16 %v358_v35, %v354_v33  ;;  %v1361_v43 = vpack.c.bf16 %v365_v38, %v361_v36  ;;  %v396_v32 = vld [vmem:[%s3338_s1 + $0xbe0] sm:$0xff]  ;;  %v394_v33 = vld [vmem:[%s3338_s1 + $0xbd0] sm:$0xff]  ;;  %v1633_v35 = vpack.c.bf16 %v399_v27, %v395_v26  ;;  %v401_v38 = vld [vmem:[%s3338_s1 + $0xc08] sm:$0xff] }
  0x9c   :  { %1598 = vmatprep.subr.bf16.mxu1 %v1597_v47  ;;  %v1617_v47 = vpack.c.bf16 %v367_v40, %v363_v39  ;;  %v398_v36 = vld [vmem:[%s3338_s1 + $0xbf0] sm:$0xff]  ;;  %v405_v39 = vld [vmem:[%s3338_s1 + $0xc28] sm:$0xff]  ;;  %v403_v40 = vld [vmem:[%s3338_s1 + $0xc18] sm:$0xff] }
  0x9d   :  { %v437_v26 = vld [vmem:[%s3338_s1 + $0xd28] sm:$0xff]  ;;  %v435_v27 = vld [vmem:[%s3338_s1 + $0xd18] sm:$0xff] }
  0x9e   :  { %1344 = vmatpush1.bf16.msra.mxu0 %v1343_v52  ;;  %v1363_v52 = vpack.c.bf16 %v364_v45, %v360_v44  ;;  %v400_v44 = vld [vmem:[%s3338_s1 + $0xc00] sm:$0xff] }
  0x9f   :  { %1600 = vmatpush1.bf16.msra.mxu1 %v1599_v53  ;;  %1346 = vmatprep.subr.bf16.mxu0 %v1345_v54  ;;  %v1619_v53 = vpack.c.bf16 %v366_v25, %v362_v46  ;;  %v1365_v54 = vpack.c.bf16 %v373_v49, %v369_v48  ;;  %v404_v45 = vld [vmem:[%s3338_s1 + $0xc20] sm:$0xff]  ;;  %v402_v46 = vld [vmem:[%s3338_s1 + $0xc10] sm:$0xff]  ;;  %v409_v48 = vld [vmem:[%s3338_s1 + $0xc48] sm:$0xff] }
  0xa0   :  { %1602 = vmatprep.subr.bf16.mxu1 %v1601_v58  ;;  %v1621_v58 = vpack.c.bf16 %v375_v51, %v371_v50  ;;  %v406_v25 = vld [vmem:[%s3338_s1 + $0xc30] sm:$0xff]  ;;  %v413_v49 = vld [vmem:[%s3338_s1 + $0xc68] sm:$0xff]  ;;  %v411_v51 = vld [vmem:[%s3338_s1 + $0xc58] sm:$0xff] }
  0xa2   :  { %1348 = vmatpush1.bf16.msra.mxu0 %v1347_v0  ;;  %v1367_v0 = vpack.c.bf16 %v372_v56, %v368_v55  ;;  %v1385_v55 = vpack.c.bf16 %v413_v49, %v409_v48  ;;  %v408_v56 = vld [vmem:[%s3338_s1 + $0xc40] sm:$0xff]  ;;  %v449_v48 = vld [vmem:[%s3338_s1 + $0xd88] sm:$0xff] }
  0xa3   :  { %1604 = vmatpush1.bf16.msra.mxu1 %v1603_v1  ;;  %1350 = vmatprep.subr.bf16.mxu0 %v1349_v2  ;;  %v1623_v1 = vpack.c.bf16 %v374_v24, %v370_v57  ;;  %v1369_v2 = vpack.c.bf16 %v381_v60, %v377_v59  ;;  %v412_v57 = vld [vmem:[%s3338_s1 + $0xc60] sm:$0xff]  ;;  %v414_v59 = vld [vmem:[%s3338_s1 + $0xc70] sm:$0xff]  ;;  %v417_v60 = vld [vmem:[%s3338_s1 + $0xc88] sm:$0xff] }
  0xa4   :  { %1606 = vmatprep.subr.bf16.mxu1 %v1605_v6  ;;  %v1625_v6 = vpack.c.bf16 %v383_v63, %v379_v62  ;;  %v421_v62 = vld [vmem:[%s3338_s1 + $0xca8] sm:$0xff] }
  0xa5   :  { %v453_v49 = vld [vmem:[%s3338_s1 + $0xda8] sm:$0xff] }
  0xa6   :  { %1352 = vmatpush1.bf16.msra.mxu0 %v1351_v13  ;;  %v1371_v13 = vpack.c.bf16 %v380_v4, %v376_v3  ;;  %v1389_v4 = vpack.c.bf16 %v421_v62, %v417_v60  ;;  %v457_v60 = vld [vmem:[%s3338_s1 + $0xdc8] sm:$0xff] }
  0xa7   :  { %1608 = vmatpush1.bf16.msra.mxu1 %v1607_v14  ;;  %1354 = vmatprep.subr.bf16.mxu0 %v1353_v15  ;;  %v1627_v14 = vpack.c.bf16 %v382_v7, %v378_v5  ;;  %v1373_v15 = vpack.c.bf16 %v389_v9, %v385_v8  ;;  %v416_v5 = vld [vmem:[%s3338_s1 + $0xc80] sm:$0xff]  ;;  %v418_v7 = vld [vmem:[%s3338_s1 + $0xc90] sm:$0xff]  ;;  %v425_v9 = vld [vmem:[%s3338_s1 + $0xcc8] sm:$0xff] }
  0xa8   :  { %1610 = vmatprep.subr.bf16.mxu1 %v1609_v19  ;;  %v1629_v19 = vpack.c.bf16 %v391_v12, %v387_v10  ;;  %v429_v10 = vld [vmem:[%s3338_s1 + $0xce8] sm:$0xff]  ;;  %v427_v12 = vld [vmem:[%s3338_s1 + $0xcd8] sm:$0xff] }
  0xa9   :  { %v461_v62 = vld [vmem:[%s3338_s1 + $0xde8] sm:$0xff] }
  0xaa   :  { %1356 = vmatpush1.bf16.msra.mxu0 %v1355_v28  ;;  %v1375_v28 = vpack.c.bf16 %v388_v17, %v384_v16  ;;  %v1393_v16 = vpack.c.bf16 %v429_v10, %v425_v9  ;;  %v424_v17 = vld [vmem:[%s3338_s1 + $0xcc0] sm:$0xff]  ;;  %v469_v9 = vld [vmem:[%s3338_s1 + $0xe28] sm:$0xff]  ;;  %v467_v10 = vld [vmem:[%s3338_s1 + $0xe18] sm:$0xff] }
  0xab   :  { %1612 = vmatpush1.bf16.msra.mxu1 %v1611_v29  ;;  %1358 = vmatprep.subr.bf16.mxu0 %v1357_v30  ;;  %v1631_v29 = vpack.c.bf16 %v390_v20, %v386_v18  ;;  %v1377_v30 = vpack.c.bf16 %v397_v23, %v393_v21  ;;  %v428_v18 = vld [vmem:[%s3338_s1 + $0xce0] sm:$0xff]  ;;  %v430_v21 = vld [vmem:[%s3338_s1 + $0xcf0] sm:$0xff]  ;;  %v433_v23 = vld [vmem:[%s3338_s1 + $0xd08] sm:$0xff] }
  0xac   :  { %1614 = vmatprep.subr.bf16.mxu1 %v1613_v34  ;;  %v569_v34 = vcombine.high %v2543_v22, %v2543_v22  ;;  %v407_v22 = vld [vmem:[%s3338_s1 + $0xc38] sm:$0xff] }
  0xae   :  { %1360 = vmatpush1.bf16.msra.mxu0 %v1359_v41  ;;  %v1379_v41 = vpack.c.bf16 %v396_v32, %v392_v31  ;;  %v2964_v50 = vrot.slane %v569_v34, %v2020_v11  ;;  %v1397_v31 = vpack.c.bf16 %v437_v26, %v433_v23  ;;  %v432_v32 = vld [vmem:[%s3338_s1 + $0xd00] sm:$0xff]  ;;  %v434_v34 = vld [vmem:[%s3338_s1 + $0xd10] sm:$0xff]  ;;  %v477_v23 = vld [vmem:[%s3338_s1 + $0xe68] sm:$0xff] }
  0xaf   :  { %1616 = vmatpush1.bf16.msra.mxu1 %v1615_v42  ;;  %1362 = vmatprep.subr.bf16.mxu0 %v1361_v43  ;;  %v1635_v42 = vpack.c.bf16 %v398_v36, %v394_v33  ;;  %v1381_v43 = vpack.c.bf16 %v405_v39, %v401_v38  ;;  %v436_v33 = vld [vmem:[%s3338_s1 + $0xd20] sm:$0xff]  ;;  %v438_v36 = vld [vmem:[%s3338_s1 + $0xd30] sm:$0xff]  ;;  %v441_v38 = vld [vmem:[%s3338_s1 + $0xd48] sm:$0xff] }
  0xb0   :  { %1618 = vmatprep.subr.bf16.mxu1 %v1617_v47  ;;  %v1637_v47 = vpack.c.bf16 %v407_v22, %v403_v40  ;;  %v585_v63 = vcombine.high %v2964_v50, %v2964_v50  ;;  %v445_v39 = vld [vmem:[%s3338_s1 + $0xd68] sm:$0xff]  ;;  %v443_v40 = vld [vmem:[%s3338_s1 + $0xd58] sm:$0xff] }
  0xb1   :  { %v447_v22 = vld [vmem:[%s3338_s1 + $0xd78] sm:$0xff] }
  0xb2   :  { %1364 = vmatpush1.bf16.msra.mxu0 %v1363_v52  ;;  %v415_v52 = vld [vmem:[%s3338_s1 + $0xc78] sm:$0xff] }
  0xb3   :  { %1620 = vmatpush1.bf16.msra.mxu1 %v1619_v53  ;;  %1366 = vmatprep.subr.bf16.mxu0 %v1365_v54  ;;  %v1383_v53 = vpack.c.bf16 %v404_v45, %v400_v44  ;;  %v1639_v54 = vpack.c.bf16 %v406_v25, %v402_v46  ;;  %v1641_v24 = vpack.c.bf16 %v415_v52, %v411_v51  ;;  %v440_v44 = vld [vmem:[%s3338_s1 + $0xd40] sm:$0xff]  ;;  %v442_v46 = vld [vmem:[%s3338_s1 + $0xd50] sm:$0xff]  ;;  %v451_v51 = vld [vmem:[%s3338_s1 + $0xd98] sm:$0xff] }
  0xb4   :  { %1622 = vmatprep.subr.bf16.mxu1 %v1621_v58  ;;  %v410_v58 = vld [vmem:[%s3338_s1 + $0xc50] sm:$0xff]  ;;  %v444_v45 = vld [vmem:[%s3338_s1 + $0xd60] sm:$0xff]  ;;  %v455_v52 = vld [vmem:[%s3338_s1 + $0xdb8] sm:$0xff] }
  0xb5   :  { %v1643_v3 = vpack.c.bf16 %v414_v59, %v410_v58  ;;  %v446_v25 = vld [vmem:[%s3338_s1 + $0xd70] sm:$0xff]  ;;  %v475_v26 = vld [vmem:[%s3338_s1 + $0xe58] sm:$0xff] }
  0xb6   :  { %1368 = vmatpush1.bf16.msra.mxu0 %v1367_v0  ;;  %v419_v0 = vld [vmem:[%s3338_s1 + $0xc98] sm:$0xff]  ;;  %v450_v58 = vld [vmem:[%s3338_s1 + $0xd90] sm:$0xff] }
  0xb7   :  { %1624 = vmatpush1.bf16.msra.mxu1 %v1623_v1  ;;  %1370 = vmatprep.subr.bf16.mxu0 %v1369_v2  ;;  %v423_v1 = vld [vmem:[%s3338_s1 + $0xcb8] sm:$0xff]  ;;  %v1387_v2 = vpack.c.bf16 %v412_v57, %v408_v56  ;;  %v448_v56 = vld [vmem:[%s3338_s1 + $0xd80] sm:$0xff]  ;;  %v454_v59 = vld [vmem:[%s3338_s1 + $0xdb0] sm:$0xff] }
  0xb8   :  { %1626 = vmatprep.subr.bf16.mxu1 %v1625_v6  ;;  %v420_v6 = vld [vmem:[%s3338_s1 + $0xca0] sm:$0xff]  ;;  %v1645_v8 = vpack.c.bf16 %v423_v1, %v419_v0  ;;  %v463_v0 = vld [vmem:[%s3338_s1 + $0xdf8] sm:$0xff] }
  0xb9   :  { %v452_v57 = vld [vmem:[%s3338_s1 + $0xda0] sm:$0xff] }
  0xba   :  { %1372 = vmatpush1.bf16.msra.mxu0 %v1371_v13  ;;  %v431_v13 = vld [vmem:[%s3338_s1 + $0xcf8] sm:$0xff]  ;;  %v1407_v1 = vpack.c.bf16 %v452_v57, %v448_v56  ;;  %v492_v56 = vld [vmem:[%s3338_s1 + $0xee0] sm:$0xff]  ;;  %v490_v57 = vld [vmem:[%s3338_s1 + $0xed0] sm:$0xff] }
  0xbb   :  { %1628 = vmatpush1.bf16.msra.mxu1 %v1627_v14  ;;  %1374 = vmatprep.subr.bf16.mxu0 %v1373_v15  ;;  %v1391_v14 = vpack.c.bf16 %v420_v6, %v416_v5  ;;  %v1649_v20 = vpack.c.bf16 %v431_v13, %v427_v12  ;;  %v460_v5 = vld [vmem:[%s3338_s1 + $0xde0] sm:$0xff]  ;;  %v458_v6 = vld [vmem:[%s3338_s1 + $0xdd0] sm:$0xff]  ;;  %v471_v12 = vld [vmem:[%s3338_s1 + $0xe38] sm:$0xff] }
  0xbc   :  { %1630 = vmatprep.subr.bf16.mxu1 %v1629_v19  ;;  %v426_v19 = vld [vmem:[%s3338_s1 + $0xcd0] sm:$0xff] }
  0xbe   :  { %1376 = vmatpush1.bf16.msra.mxu0 %v1375_v28  ;;  %v439_v28 = vld [vmem:[%s3338_s1 + $0xd38] sm:$0xff] }
  0xbf   :  { %1632 = vmatpush1.bf16.msra.mxu1 %v1631_v29  ;;  %1378 = vmatprep.subr.bf16.mxu0 %v1377_v30  ;;  %v1395_v29 = vpack.c.bf16 %v428_v18, %v424_v17  ;;  %v1651_v30 = vpack.c.bf16 %v430_v21, %v426_v19  ;;  %v468_v17 = vld [vmem:[%s3338_s1 + $0xe20] sm:$0xff]  ;;  %v466_v18 = vld [vmem:[%s3338_s1 + $0xe10] sm:$0xff]  ;;  %v1669_v19 = vpack.c.bf16 %v471_v12, %v467_v10  ;;  %v473_v21 = vld [vmem:[%s3338_s1 + $0xe48] sm:$0xff] }
  0xc0   :  { %1634 = vmatprep.subr.bf16.mxu1 %v1633_v35  ;;  %v1653_v35 = vpack.c.bf16 %v439_v28, %v435_v27  ;;  %v479_v27 = vld [vmem:[%s3338_s1 + $0xe78] sm:$0xff] }
  0xc1   :  { %v511_v10 = vld [vmem:[%s3338_s1 + $0xf78] sm:$0xff] }
  0xc2   :  { %1380 = vmatpush1.bf16.msra.mxu0 %v1379_v41  ;;  %v1399_v41 = vpack.c.bf16 %v436_v33, %v432_v32  ;;  %v476_v32 = vld [vmem:[%s3338_s1 + $0xe60] sm:$0xff]  ;;  %v474_v33 = vld [vmem:[%s3338_s1 + $0xe50] sm:$0xff] }
  0xc3   :  { %1636 = vmatpush1.bf16.msra.mxu1 %v1635_v42  ;;  %1382 = vmatprep.subr.bf16.mxu0 %v1381_v43  ;;  %v1655_v42 = vpack.c.bf16 %v438_v36, %v434_v34  ;;  %v1401_v43 = vpack.c.bf16 %v445_v39, %v441_v38  ;;  %v1673_v34 = vpack.c.bf16 %v479_v27, %v475_v26  ;;  %v481_v36 = vld [vmem:[%s3338_s1 + $0xe88] sm:$0xff]  ;;  %v483_v39 = vld [vmem:[%s3338_s1 + $0xe98] sm:$0xff] }
  0xc4   :  { %1638 = vmatprep.subr.bf16.mxu1 %v1637_v47  ;;  %v1657_v47 = vpack.c.bf16 %v447_v22, %v443_v40  ;;  %v485_v38 = vld [vmem:[%s3338_s1 + $0xea8] sm:$0xff]  ;;  %v487_v40 = vld [vmem:[%s3338_s1 + $0xeb8] sm:$0xff] }
  0xc5   :  { %801 = vmatmul.mubr.f32.vlgmr.msra.gmra.mrb[0].mxu0 %v2571_v37  ;;  %v519_v26 = vld [vmem:[%s3338_s1 + $0xfb8] sm:$0xff] }
  0xc6   :  { %1384 = vmatpush1.bf16.msra.mxu0 %v1383_v53  ;;  %1085 = vmatmul.mubr.f32.vlgmr.msra.gmra.mrb[0].mxu1 %v2571_v37  ;;  %v422_v37 = vld [vmem:[%s3338_s1 + $0xcb0] sm:$0xff]  ;;  %v1403_v53 = vpack.c.bf16 %v444_v45, %v440_v44  ;;  %v484_v44 = vld [vmem:[%s3338_s1 + $0xea0] sm:$0xff] }
  0xc7   :  { %1640 = vmatpush1.bf16.msra.mxu1 %v1639_v54  ;;  %1386 = vmatprep.subr.bf16.mxu0 %v1385_v55  ;;  %v1647_v15 = vpack.c.bf16 %v422_v37, %v418_v7  ;;  %v1659_v54 = vpack.c.bf16 %v446_v25, %v442_v46  ;;  %v1405_v55 = vpack.c.bf16 %v453_v49, %v449_v48  ;;  %v465_v37 = vld [vmem:[%s3338_s1 + $0xe08] sm:$0xff]  ;;  %v482_v45 = vld [vmem:[%s3338_s1 + $0xe90] sm:$0xff]  ;;  %v491_v49 = vld [vmem:[%s3338_s1 + $0xed8] sm:$0xff] }
  0xc8   :  { %1642 = vmatprep.subr.bf16.mxu1 %v1641_v24  ;;  %871 = vmatprep.mubr.f32.mxu0 %v585_v63  ;;  %v1661_v24 = vpack.c.bf16 %v455_v52, %v451_v51  ;;  %v1677_v46 = vpack.c.bf16 %v487_v40, %v483_v39  ;;  %v489_v25 = vld [vmem:[%s3338_s1 + $0xec8] sm:$0xff]  ;;  %v495_v51 = vld [vmem:[%s3338_s1 + $0xef8] sm:$0xff] }
  0xc9   :  { %1155 = vmatprep.mubr.f32.mxu1 %v585_v63  ;;  %v459_v63 = vld [vmem:[%s3338_s1 + $0xdd8] sm:$0xff]  ;;  %v493_v48 = vld [vmem:[%s3338_s1 + $0xee8] sm:$0xff] }
  0xca   :  { %1388 = vmatpush1.bf16.msra.mxu0 %v1387_v2  ;;  %v1663_v2 = vpack.c.bf16 %v454_v59, %v450_v58  ;;  %v1665_v7 = vpack.c.bf16 %v463_v0, %v459_v63  ;;  %v1681_v58 = vpack.c.bf16 %v495_v51, %v491_v49  ;;  %v497_v59 = vld [vmem:[%s3338_s1 + $0xf08] sm:$0xff]  ;;  %v503_v63 = vld [vmem:[%s3338_s1 + $0xf38] sm:$0xff]  ;;  %v528_v49 = vld [vmem:[%s3340_s2] sm:$0xf]  ;;  %v540_v51 = vsub.s32 2, %v1993_v61 }
  0xcb   :  { %1644 = vmatpush1.bf16.msra.mxu1 %v1643_v3  ;;  %1390 = vmatprep.subr.bf16.mxu0 %v1389_v4  ;;  %v1409_v3 = vpack.c.bf16 %v461_v62, %v457_v60  ;;  %v456_v4 = vld [vmem:[%s3338_s1 + $0xdc0] sm:$0xff]  ;;  %v501_v60 = vld [vmem:[%s3338_s1 + $0xf28] sm:$0xff]  ;;  %v499_v62 = vld [vmem:[%s3338_s1 + $0xf18] sm:$0xff] }
  0xcc   :  { %1646 = vmatprep.subr.bf16.mxu1 %v1645_v8  ;;  %v462_v8 = vld [vmem:[%s3338_s1 + $0xdf0] sm:$0xff]  ;;  %v1411_v13 = vpack.c.bf16 %v460_v5, %v456_v4  ;;  %v500_v4 = vld [vmem:[%s3338_s1 + $0xf20] sm:$0xff]  ;;  %v527_v39 = vld [vmem:[%s3338_s1 + $0xff8] sm:$0xff] }
  0xcd   :  { %v498_v5 = vld [vmem:[%s3338_s1 + $0xf10] sm:$0xff] }
  0xce   :  { %1392 = vmatpush1.bf16.msra.mxu0 %v1391_v14  ;;  %v1667_v14 = vpack.c.bf16 %v462_v8, %v458_v6  ;;  %v1685_v6 = vpack.c.bf16 %v503_v63, %v499_v62  ;;  %v505_v8 = vld [vmem:[%s3338_s1 + $0xf48] sm:$0xff] }
  0xcf   :  { %1648 = vmatpush1.bf16.msra.mxu1 %v1647_v15  ;;  %1394 = vmatprep.subr.bf16.mxu0 %v1393_v16  ;;  %v1413_v15 = vpack.c.bf16 %v469_v9, %v465_v37  ;;  %v464_v16 = vld [vmem:[%s3338_s1 + $0xe00] sm:$0xff]  ;;  %v509_v37 = vld [vmem:[%s3338_s1 + $0xf68] sm:$0xff]  ;;  %v507_v9 = vld [vmem:[%s3338_s1 + $0xf58] sm:$0xff] }
  0xd0   :  { %1650 = vmatprep.subr.bf16.mxu1 %v1649_v20  ;;  %v470_v20 = vld [vmem:[%s3338_s1 + $0xe30] sm:$0xff]  ;;  %v1415_v28 = vpack.c.bf16 %v468_v17, %v464_v16  ;;  %v508_v16 = vld [vmem:[%s3338_s1 + $0xf60] sm:$0xff] }
  0xd1   :  { %v506_v17 = vld [vmem:[%s3338_s1 + $0xf50] sm:$0xff] }
  0xd2   :  { %1396 = vmatpush1.bf16.msra.mxu0 %v1395_v29  ;;  %v1671_v29 = vpack.c.bf16 %v470_v20, %v466_v18  ;;  %v1689_v18 = vpack.c.bf16 %v511_v10, %v507_v9  ;;  %v513_v20 = vld [vmem:[%s3338_s1 + $0xf88] sm:$0xff] }
  0xd3   :  { %1652 = vmatpush1.bf16.msra.mxu1 %v1651_v30  ;;  %1398 = vmatprep.subr.bf16.mxu0 %v1397_v31  ;;  %v1417_v30 = vpack.c.bf16 %v477_v23, %v473_v21  ;;  %v472_v31 = vld [vmem:[%s3338_s1 + $0xe40] sm:$0xff]  ;;  %v517_v21 = vld [vmem:[%s3338_s1 + $0xfa8] sm:$0xff]  ;;  %v515_v23 = vld [vmem:[%s3338_s1 + $0xf98] sm:$0xff] }
  0xd4   :  { %1654 = vmatprep.subr.bf16.mxu1 %v1653_v35  ;;  %v478_v35 = vld [vmem:[%s3338_s1 + $0xe70] sm:$0xff]  ;;  %v1419_v22 = vpack.c.bf16 %v476_v32, %v472_v31  ;;  %v516_v31 = vld [vmem:[%s3338_s1 + $0xfa0] sm:$0xff] }
  0xd5   :  { %v514_v32 = vld [vmem:[%s3338_s1 + $0xf90] sm:$0xff] }
  0xd6   :  { %1400 = vmatpush1.bf16.msra.mxu0 %v1399_v41  ;;  %v1675_v41 = vpack.c.bf16 %v478_v35, %v474_v33  ;;  %v1693_v33 = vpack.c.bf16 %v519_v26, %v515_v23  ;;  %v521_v35 = vld [vmem:[%s3338_s1 + $0xfc8] sm:$0xff] }
  0xd7   :  { %1656 = vmatpush1.bf16.msra.mxu1 %v1655_v42  ;;  %1402 = vmatprep.subr.bf16.mxu0 %v1401_v43  ;;  %v1421_v42 = vpack.c.bf16 %v485_v38, %v481_v36  ;;  %v480_v43 = vld [vmem:[%s3338_s1 + $0xe80] sm:$0xff]  ;;  %v525_v36 = vld [vmem:[%s3338_s1 + $0xfe8] sm:$0xff]  ;;  %v523_v38 = vld [vmem:[%s3338_s1 + $0xfd8] sm:$0xff] }
  0xd8   :  { %1658 = vmatprep.subr.bf16.mxu1 %v1657_v47  ;;  %v486_v47 = vld [vmem:[%s3338_s1 + $0xeb0] sm:$0xff]  ;;  %v1423_v52 = vpack.c.bf16 %v484_v44, %v480_v43  ;;  %v524_v43 = vld [vmem:[%s3338_s1 + $0xfe0] sm:$0xff]  ;;  %v1697_v44 = vpack.c.bf16 %v527_v39, %v523_v38 }
  0xda   :  { %1404 = vmatpush1.bf16.msra.mxu0 %v1403_v53  ;;  %v1679_v53 = vpack.c.bf16 %v486_v47, %v482_v45  ;;  %v522_v45 = vld [vmem:[%s3338_s1 + $0xfd0] sm:$0xff] }
  0xdb   :  { %1660 = vmatpush1.bf16.msra.mxu1 %v1659_v54  ;;  %1406 = vmatprep.subr.bf16.mxu0 %v1405_v55  ;;  %v1425_v54 = vpack.c.bf16 %v493_v48, %v489_v25  ;;  %v488_v55 = vld [vmem:[%s3338_s1 + $0xec0] sm:$0xff]  ;;  %v532_v48 = vsub.s32 0, %v1993_v61 }
  0xdc   :  { %1662 = vmatprep.subr.bf16.mxu1 %v1661_v24  ;;  %v494_v24 = vld [vmem:[%s3338_s1 + $0xef0] sm:$0xff]  ;;  %v1427_v0 = vpack.c.bf16 %v492_v56, %v488_v55  ;;  %v541_v55 = vrot.slane %v528_v49, %v540_v51 }
  0xde   :  { %1408 = vmatpush1.bf16.msra.mxu0 %v1407_v1  ;;  %v1683_v1 = vpack.c.bf16 %v494_v24, %v490_v57 }
  0xdf   :  { %1664 = vmatpush1.bf16.msra.mxu1 %v1663_v2  ;;  %1410 = vmatprep.subr.bf16.mxu0 %v1409_v3  ;;  %v1429_v2 = vpack.c.bf16 %v501_v60, %v497_v59  ;;  %v496_v3 = vld [vmem:[%s3338_s1 + $0xf00] sm:$0xff] }
  0xe0   :  { %1666 = vmatprep.subr.bf16.mxu1 %v1665_v7  ;;  %v502_v7 = vld [vmem:[%s3338_s1 + $0xf30] sm:$0xff]  ;;  %v1431_v12 = vpack.c.bf16 %v500_v4, %v496_v3 }
  0xe2   :  { %1412 = vmatpush1.bf16.msra.mxu0 %v1411_v13  ;;  %v1687_v13 = vpack.c.bf16 %v502_v7, %v498_v5 }
  0xe3   :  { %1668 = vmatpush1.bf16.msra.mxu1 %v1667_v14  ;;  %1414 = vmatprep.subr.bf16.mxu0 %v1413_v15  ;;  %v1433_v14 = vpack.c.bf16 %v509_v37, %v505_v8  ;;  %v504_v15 = vld [vmem:[%s3338_s1 + $0xf40] sm:$0xff] }
  0xe4   :  { %1670 = vmatprep.subr.bf16.mxu1 %v1669_v19  ;;  %v510_v19 = vld [vmem:[%s3338_s1 + $0xf70] sm:$0xff]  ;;  %v1435_v27 = vpack.c.bf16 %v508_v16, %v504_v15 }
  0xe6   :  { %1416 = vmatpush1.bf16.msra.mxu0 %v1415_v28  ;;  %v1691_v28 = vpack.c.bf16 %v510_v19, %v506_v17 }
  0xe7   :  { %1672 = vmatpush1.bf16.msra.mxu1 %v1671_v29  ;;  %1418 = vmatprep.subr.bf16.mxu0 %v1417_v30  ;;  %v1437_v29 = vpack.c.bf16 %v517_v21, %v513_v20  ;;  %v512_v30 = vld [vmem:[%s3338_s1 + $0xf80] sm:$0xff] }
  0xe8   :  { %1674 = vmatprep.subr.bf16.mxu1 %v1673_v34  ;;  %v518_v34 = vld [vmem:[%s3338_s1 + $0xfb0] sm:$0xff]  ;;  %v1439_v40 = vpack.c.bf16 %v516_v31, %v512_v30 }
  0xea   :  { %1420 = vmatpush1.bf16.msra.mxu0 %v1419_v22  ;;  %v1695_v22 = vpack.c.bf16 %v518_v34, %v514_v32 }
  0xeb   :  { %1676 = vmatpush1.bf16.msra.mxu1 %v1675_v41  ;;  %1422 = vmatprep.subr.bf16.mxu0 %v1421_v42  ;;  %v1441_v41 = vpack.c.bf16 %v525_v36, %v521_v35  ;;  %v520_v42 = vld [vmem:[%s3338_s1 + $0xfc0] sm:$0xff] }
  0xec   :  { %1678 = vmatprep.subr.bf16.mxu1 %v1677_v46  ;;  %v526_v46 = vld [vmem:[%s3338_s1 + $0xff0] sm:$0xff]  ;;  %v1443_v47 = vpack.c.bf16 %v524_v43, %v520_v42 }
  0xed   :  { %v1699_v25 = vpack.c.bf16 %v526_v46, %v522_v45 }
  0xee   :  { %1424 = vmatpush1.bf16.msra.mxu0 %v1423_v52  ;;  %v536_v52 = vsub.s32 1, %v1993_v61 }
  0xef   :  { %1680 = vmatpush1.bf16.msra.mxu1 %v1679_v53  ;;  %1426 = vmatprep.subr.bf16.mxu0 %v1425_v54  ;;  %v544_v53 = vsub.s32 3, %v1993_v61  ;;  %v533_v54 = vrot.slane %v528_v49, %v532_v48 }
  0xf0   :  { %1682 = vmatprep.subr.bf16.mxu1 %v1681_v58  ;;  %v537_v56 = vrot.slane %v528_v49, %v536_v52 }
  0xf1   :  { %v545_v57 = vrot.slane %v528_v49, %v544_v53 }
  0xf2   :  { %1428 = vmatpush1.bf16.msra.mxu0 %v1427_v0 }
  0xf3   :  { %1684 = vmatpush1.bf16.msra.mxu1 %v1683_v1  ;;  %1430 = vmatprep.subr.bf16.mxu0 %v1429_v2 }
  0xf4   :  { %1686 = vmatprep.subr.bf16.mxu1 %v1685_v6 }
  0xf6   :  { %1432 = vmatpush1.bf16.msra.mxu0 %v1431_v12 }
  0xf7   :  { %1688 = vmatpush1.bf16.msra.mxu1 %v1687_v13  ;;  %1434 = vmatprep.subr.bf16.mxu0 %v1433_v14 }
  0xf8   :  { %1690 = vmatprep.subr.bf16.mxu1 %v1689_v18 }
  0xfa   :  { %1436 = vmatpush1.bf16.msra.mxu0 %v1435_v27 }
  0xfb   :  { %1692 = vmatpush1.bf16.msra.mxu1 %v1691_v28  ;;  %1438 = vmatprep.subr.bf16.mxu0 %v1437_v29 }
  0xfc   :  { %1694 = vmatprep.subr.bf16.mxu1 %v1693_v33 }
  0xfe   :  { %1440 = vmatpush1.bf16.msra.mxu0 %v1439_v40 }
  0xff   :  { %1696 = vmatpush1.bf16.msra.mxu1 %v1695_v22  ;;  %1442 = vmatprep.subr.bf16.mxu0 %v1441_v41 }
 0x100   :  { %1698 = vmatprep.subr.bf16.mxu1 %v1697_v44 }
 0x102   :  { %1444 = vmatpush1.bf16.msra.mxu0 %v1443_v47 }
 0x103   :  { %1700 = vmatpush1.bf16.msra.mxu1 %v1699_v25 }
 0x105   :  { %872 = vmatmul.mubr.f32.vlgmr.msra.gmra.mrb[0].mxu0 %v2964_v50 }
 0x106   :  { %1156 = vmatmul.mubr.f32.vlgmr.msra.gmra.mrb[0].mxu1 %v2964_v50 }
 0x1d8   :  { %v873_v58 = vpop.f32.mrb[0].mxu0 }
 0x1d9   :  { %v1701_v24 = vadd.f32 %v873_v58, %v533_v54  ;;  %v1157_v59 = vpop.f32.mrb[0].mxu1  ;;  %v875_v50 = vpop.f32.mrb[1].mxu0 }
 0x1da   :  { %v1703_v60 = vadd.f32 %v1157_v59, %v541_v55  ;;  %v1702_v62 = vadd.f32 %v875_v50, %v537_v56  ;;  %v1159_v63 = vpop.f32.mrb[1].mxu1 }
 0x1db   :  { %v1704_v0 = vadd.f32 %v1159_v63, %v545_v57 }
 0x1dc   :  { %v1166_v1 = vcombine.low %v1701_v24, %v1702_v62 }
 0x1dd   :  { %v1167_v2 = vcombine.low %v1703_v60, %v1704_v0 }
 0x1de   :  { %v1174_v3 = vrot.slane %v1166_v1, %v2020_v11 }
 0x1df   :  { %v1181_v4 = vrot.slane %v1167_v2, %v2020_v11 }
 0x1e1   :  { %v1182_v5 = vcombine.low %v1174_v3, %v1181_v4 }
 0x1e3   :  { %1184 = vst [vmem:[%s3341_s3] sm:$0xff] %v1182_v5 }

// kernel: pointnet_seg_forward.6
= control target key start
LH: loop header
LB: loop body
LE: loop exit
PB: predicated region body
PF: predicated region fallthrough
CT: control target
= control target key end

     0   :  { %12 = vsyncpa [#allocation3], 0  ;;  %s2751_s0 = inlined_call_operand.vmem [shape: f32[2,1024], index: 0, kind: input, shape index: {}]   ;;  %s2752_s1 = inlined_call_operand.hbm [shape: f32[1024,512], index: 1, kind: input, shape index: {}]   ;;  %s2753_s2 = inlined_call_operand.hbm [shape: f32[1,512], index: 2, kind: input, shape index: {}]   ;;  %s2754_s3 = inlined_call_operand.hbm [shape: f32[512,256], index: 3, kind: input, shape index: {}]   ;;  %s2755_s4 = inlined_call_operand.hbm [shape: f32[1,256], index: 4, kind: input, shape index: {}]   ;;  %s2756_s5 = inlined_call_operand.hbm [shape: f32[256,128], index: 5, kind: input, shape index: {}]   ;;  %s2757_s6 = inlined_call_operand.hbm [shape: f32[1,128], index: 6, kind: input, shape index: {}]   ;;  %s2758_s7 = inlined_call_operand.vmem [shape: f32[2,128], index: 7, kind: output, shape index: {}]  }
   0x1   :  { %13 = vsyncpa [#allocation5], 0 }
   0x2   :  { %14 = vsyncpa [#allocation8], 0 }
   0x3   :  { %15 = vsyncpa [#allocation11], 0  ;;  %s2539_s24 = smov [#allocation4]   ;;  %s2540_s26 = smov [#allocation7]  }
   0x4   :  { %s36_s25 = sshll.u32 %s2539_s24, 4  ;;  %s58_s27 = sshll.u32 %s2540_s26, 4  ;;  %s37_s25 = int_to_ptr.vmem [resolvable:$true] %s36_s25  ;;  %s59_s27 = int_to_ptr.vmem [resolvable:$true] %s58_s27 }
   0x5   :  { %s2399_s30 = scalar_lea.hbm %s2753_s2, 64 }
   0x6   :  { %p2400_p0 = scmp.ne.s32.totalorder %s2753_s2, %s2399_s30  ;;  %p2403_p1 = scmp.lt.u32.totalorder %s2399_s30, %s2753_s2 }
   0x8   :  { %p2405_p2 = pnand %p2403_p1, %p2400_p0 }
   0xa   :  { %2408 = shalt.err (!%p2405_p2)
}
   0xb   :  { %s2409_s12 = scalar_lea.vmem %s37_s25, 64  ;;  %p2414_p4 = scmp.lt.s32.totalorder %s37_s25, %s37_s25 }
   0xc   :  { %p2410_p3 = scmp.ne.s32.totalorder %s37_s25, %s2409_s12  ;;  %p2415_p5 = scmp.lt.s32.totalorder %s2409_s12, %s2409_s12 }
   0xe   :  { %p2416_p6 = por %p2415_p5, %p2414_p4 }
  0x10   :  { %p2417_p7 = pnand %p2416_p6, %p2410_p3 }
  0x12   :  { %2420 = shalt.err (!%p2417_p7)
}
  0x13   :  { %39 = dma.hbm_to_vmem [thread:$0]  %s2753_s2, 64, %s37_s25, [#allocation5]  }
  0x14   :  { %s2421_s17 = scalar_lea.hbm %s2755_s4, 32 }
  0x15   :  { %p2422_p8 = scmp.ne.s32.totalorder %s2755_s4, %s2421_s17  ;;  %p2425_p9 = scmp.lt.u32.totalorder %s2421_s17, %s2755_s4 }
  0x17   :  { %p2427_p10 = pnand %p2425_p9, %p2422_p8 }
  0x19   :  { %2430 = shalt.err (!%p2427_p10)
}
  0x1a   :  { %s2431_s22 = scalar_lea.vmem %s59_s27, 32  ;;  %p2436_p12 = scmp.lt.s32.totalorder %s59_s27, %s59_s27 }
  0x1b   :  { %p2432_p11 = scmp.ne.s32.totalorder %s59_s27, %s2431_s22  ;;  %p2437_p13 = scmp.lt.s32.totalorder %s2431_s22, %s2431_s22 }
  0x1d   :  { %p2438_p0 = por %p2437_p13, %p2436_p12 }
  0x1f   :  { %p2439_p1 = pnand %p2438_p0, %p2432_p11 }
  0x21   :  { %2442 = shalt.err (!%p2439_p1)
}
  0x22   :  { %61 = dma.hbm_to_vmem [thread:$0]  %s2755_s4, 32, %s59_s27, [#allocation8]  }
  0x23   :  { %s2541_s24 = smov [#allocation2]   ;;  %s2443_s29 = scalar_lea.hbm %s2752_s1, 65536 }
  0x24   :  { %s23_s25 = sshll.u32 %s2541_s24, 4  ;;  %p2444_p2 = scmp.ne.s32.totalorder %s2752_s1, %s2443_s29  ;;  %s24_s25 = int_to_ptr.vmem [resolvable:$true] %s23_s25 }
  0x25   :  { %p2447_p3 = scmp.lt.u32.totalorder %s2443_s29, %s2752_s1 }
  0x27   :  { %p2449_p4 = pnand %p2447_p3, %p2444_p2 }
  0x29   :  { %2452 = shalt.err (!%p2449_p4)
}
  0x2a   :  { %s2453_s11 = scalar_lea.vmem %s24_s25, 65536  ;;  %p2458_p6 = scmp.lt.s32.totalorder %s24_s25, %s24_s25 }
  0x2b   :  { %p2454_p5 = scmp.ne.s32.totalorder %s24_s25, %s2453_s11  ;;  %p2459_p7 = scmp.lt.s32.totalorder %s2453_s11, %s2453_s11 }
  0x2d   :  { %p2460_p8 = por %p2459_p7, %p2458_p6 }
  0x2f   :  { %p2461_p9 = pnand %p2460_p8, %p2454_p5 }
  0x31   :  { %2464 = shalt.err (!%p2461_p9)
}
  0x32   :  { %s2542_s4 = smov 512   ;;  %s2543_s27 = smov 32  }
  0x33   :  { %29 = dma.hbm_to_vmem [thread:$0]  %s2752_s1, 65536, %s24_s25, [#allocation3], %s2542_s4, %s2542_s4, %s2543_s27  }
  0x34   :  { %s2544_s14 = smov [#allocation6]   ;;  %s2465_s18 = scalar_lea.hbm %s2754_s3, 16384 }
  0x35   :  { %s45_s15 = sshll.u32 %s2544_s14, 4  ;;  %p2466_p10 = scmp.ne.s32.totalorder %s2754_s3, %s2465_s18  ;;  %s46_s15 = int_to_ptr.vmem [resolvable:$true] %s45_s15 }
  0x36   :  { %p2469_p11 = scmp.lt.u32.totalorder %s2465_s18, %s2754_s3 }
  0x38   :  { %p2471_p12 = pnand %p2469_p11, %p2466_p10 }
  0x3a   :  { %2474 = shalt.err (!%p2471_p12)
}
  0x3b   :  { %s2475_s2 = scalar_lea.vmem %s46_s15, 16384  ;;  %p2480_p0 = scmp.lt.s32.totalorder %s46_s15, %s46_s15 }
  0x3c   :  { %p2476_p13 = scmp.ne.s32.totalorder %s46_s15, %s2475_s2  ;;  %p2481_p1 = scmp.lt.s32.totalorder %s2475_s2, %s2475_s2 }
  0x3e   :  { %p2482_p2 = por %p2481_p1, %p2480_p0 }
  0x40   :  { %p2483_p3 = pnand %p2482_p2, %p2476_p13 }
  0x42   :  { %2486 = shalt.err (!%p2483_p3)
}
  0x43   :  { %s2545_s1 = smov 256   ;;  %s2546_s23 = smov 16  }
  0x44   :  { %51 = dma.hbm_to_vmem [thread:$0]  %s2754_s3, 16384, %s46_s15, [#allocation5], %s2545_s1, %s2545_s1, %s2546_s23  }
  0x45   :  { %s2547_s26 = smov [#allocation9]   ;;  %s2487_s8 = scalar_lea.hbm %s2756_s5, 4096 }
  0x46   :  { %s67_s28 = sshll.u32 %s2547_s26, 4  ;;  %p2488_p4 = scmp.ne.s32.totalorder %s2756_s5, %s2487_s8  ;;  %s68_s28 = int_to_ptr.vmem [resolvable:$true] %s67_s28 }
  0x47   :  { %p2491_p5 = scmp.lt.u32.totalorder %s2487_s8, %s2756_s5 }
  0x49   :  { %p2493_p6 = pnand %p2491_p5, %p2488_p4 }
  0x4b   :  { %2496 = shalt.err (!%p2493_p6)
}
  0x4c   :  { %s2497_s27 = scalar_lea.vmem %s68_s28, 4096  ;;  %p2502_p8 = scmp.lt.s32.totalorder %s68_s28, %s68_s28 }
  0x4d   :  { %p2498_p7 = scmp.ne.s32.totalorder %s68_s28, %s2497_s27  ;;  %p2503_p9 = scmp.lt.s32.totalorder %s2497_s27, %s2497_s27 }
  0x4f   :  { %p2504_p10 = por %p2503_p9, %p2502_p8 }
  0x51   :  { %p2505_p11 = pnand %p2504_p10, %p2498_p7 }
  0x53   :  { %2508 = shalt.err (!%p2505_p11)
}
  0x54   :  { %s2548_s3 = smov 128   ;;  %s2549_s12 = smov 8  }
  0x55   :  { %73 = dma.hbm_to_vmem [thread:$0]  %s2756_s5, 4096, %s68_s28, [#allocation8], %s2548_s3, %s2548_s3, %s2549_s12  }
  0x56   :  { %s2550_s15 = smov [#allocation10]   ;;  %s2509_s19 = scalar_lea.hbm %s2757_s6, 16 }
  0x57   :  { %s80_s16 = sshll.u32 %s2550_s15, 4  ;;  %p2510_p12 = scmp.ne.s32.totalorder %s2757_s6, %s2509_s19  ;;  %s81_s16 = int_to_ptr.vmem [resolvable:$true] %s80_s16 }
  0x58   :  { %p2513_p13 = scmp.lt.u32.totalorder %s2509_s19, %s2757_s6 }
  0x5a   :  { %p2515_p0 = pnand %p2513_p13, %p2510_p12 }
  0x5c   :  { %2518 = shalt.err (!%p2515_p0)
}
  0x5d   :  { %s2519_s1 = scalar_lea.vmem %s81_s16, 16  ;;  %s2523_s5 = scalar_lea.vmem %s81_s16, 32 }
  0x5e   :  { %p2520_p1 = scmp.ne.s32.totalorder %s81_s16, %s2519_s1  ;;  %p2524_p2 = scmp.lt.s32.totalorder %s81_s16, %s81_s16 }
  0x5f   :  { %p2525_p3 = scmp.lt.s32.totalorder %s2523_s5, %s2519_s1 }
  0x61   :  { %p2526_p4 = por %p2525_p3, %p2524_p2 }
  0x63   :  { %p2527_p5 = pnand %p2526_p4, %p2520_p1 }
  0x65   :  { %2530 = shalt.err (!%p2527_p5)
}
  0x66   :  { %83 = dma.hbm_to_vmem [thread:$0]  %s2757_s6, 16, %s81_s16, [#allocation11]  }
  0x67   :  { %2531 = dma.done.wait [#allocation3], 65536  }
  0x68   :  { %2532 = vsyncadd [#allocation3], 4294901760 }
  0x69   :  { %2533 = dma.done.wait [#allocation5], 16448  }
  0x6a   :  { %2534 = vsyncadd [#allocation5], 4294950848 }
  0x6b   :  { %2535 = dma.done.wait [#allocation8], 4128  }
  0x6c   :  { %2536 = vsyncadd [#allocation8], 4294963168 }
  0x6d   :  { %2537 = dma.done.wait [#allocation11], 16  }
  0x6e   :  { %2538 = vsyncadd [#allocation11], 4294967280  ;;  %v105_v0 = vld [vmem:[#allocation2 + $0x8] sm:$0xff]  ;;  %v104_v5 = vld [vmem:[#allocation2] sm:$0xff] }
  0x6f   :  { %v109_v1 = vld [vmem:[#allocation2 + $0x28] sm:$0xff]  ;;  %v108_v6 = vld [vmem:[#allocation2 + $0x20] sm:$0xff] }
  0x70   :  { %v233_v2 = vld [vmem:[#allocation2 + $0x408] sm:$0xff]  ;;  %v1692_v3 = vpack.c.bf16 %v109_v1, %v105_v0  ;;  %v1694_v8 = vpack.c.bf16 %v108_v6, %v104_v5  ;;  %v232_v9 = vld [vmem:[#allocation2 + $0x400] sm:$0xff] }
  0x71   :  { %v237_v4 = vld [vmem:[#allocation2 + $0x428] sm:$0xff]  ;;  %v236_v10 = vld [vmem:[#allocation2 + $0x420] sm:$0xff] }
  0x72   :  { %v1756_v7 = vpack.c.bf16 %v237_v4, %v233_v2  ;;  %v113_v11 = vld [vmem:[#allocation2 + $0x48] sm:$0xff]  ;;  %1693 = vmatprep.subr.bf16.mxu1 %v1692_v3  ;;  %v1758_v12 = vpack.c.bf16 %v236_v10, %v232_v9  ;;  %v112_v18 = vld [vmem:[#allocation2 + $0x40] sm:$0xff] }
  0x73   :  { %v117_v13 = vld [vmem:[#allocation2 + $0x68] sm:$0xff]  ;;  %1695 = vmatpush1.bf16.msra.mxu1 %v1694_v8  ;;  %v116_v19 = vld [vmem:[#allocation2 + $0x60] sm:$0xff] }
  0x74   :  { %v241_v14 = vld [vmem:[#allocation2 + $0x448] sm:$0xff]  ;;  %1757 = vmatprep.subr.bf16.mxu0 %v1756_v7  ;;  %v1696_v16 = vpack.c.bf16 %v117_v13, %v113_v11  ;;  %v240_v20 = vld [vmem:[#allocation2 + $0x440] sm:$0xff]  ;;  %v1698_v21 = vpack.c.bf16 %v116_v19, %v112_v18 }
  0x75   :  { %v245_v15 = vld [vmem:[#allocation2 + $0x468] sm:$0xff]  ;;  %1759 = vmatpush1.bf16.msra.mxu0 %v1758_v12  ;;  %v244_v22 = vld [vmem:[#allocation2 + $0x460] sm:$0xff] }
  0x76   :  { %v1760_v17 = vpack.c.bf16 %v245_v15, %v241_v14  ;;  %v121_v23 = vld [vmem:[#allocation2 + $0x88] sm:$0xff]  ;;  %1697 = vmatprep.subr.bf16.mxu1 %v1696_v16  ;;  %v1762_v25 = vpack.c.bf16 %v244_v22, %v240_v20  ;;  %v120_v29 = vld [vmem:[#allocation2 + $0x80] sm:$0xff] }
  0x77   :  { %v125_v24 = vld [vmem:[#allocation2 + $0xa8] sm:$0xff]  ;;  %v124_v31 = vld [vmem:[#allocation2 + $0xa0] sm:$0xff]  ;;  %1699 = vmatpush1.bf16.msra.mxu1 %v1698_v21 }
  0x78   :  { %1761 = vmatprep.subr.bf16.mxu0 %v1760_v17  ;;  %v1700_v26 = vpack.c.bf16 %v125_v24, %v121_v23  ;;  %v249_v27 = vld [vmem:[#allocation2 + $0x488] sm:$0xff]  ;;  %v248_v32 = vld [vmem:[#allocation2 + $0x480] sm:$0xff]  ;;  %v1702_v34 = vpack.c.bf16 %v124_v31, %v120_v29 }
  0x79   :  { %v253_v28 = vld [vmem:[#allocation2 + $0x4a8] sm:$0xff]  ;;  %v252_v33 = vld [vmem:[#allocation2 + $0x4a0] sm:$0xff]  ;;  %1763 = vmatpush1.bf16.msra.mxu0 %v1762_v25 }
  0x7a   :  { %v1764_v30 = vpack.c.bf16 %v253_v28, %v249_v27  ;;  %v129_v35 = vld [vmem:[#allocation2 + $0xc8] sm:$0xff]  ;;  %1701 = vmatprep.subr.bf16.mxu1 %v1700_v26  ;;  %v1766_v38 = vpack.c.bf16 %v252_v33, %v248_v32  ;;  %v128_v41 = vld [vmem:[#allocation2 + $0xc0] sm:$0xff] }
  0x7b   :  { %v133_v36 = vld [vmem:[#allocation2 + $0xe8] sm:$0xff]  ;;  %v132_v42 = vld [vmem:[#allocation2 + $0xe0] sm:$0xff]  ;;  %1703 = vmatpush1.bf16.msra.mxu1 %v1702_v34 }
  0x7c   :  { %v257_v37 = vld [vmem:[#allocation2 + $0x4c8] sm:$0xff]  ;;  %v1704_v39 = vpack.c.bf16 %v133_v36, %v129_v35  ;;  %1765 = vmatprep.subr.bf16.mxu0 %v1764_v30  ;;  %v256_v44 = vld [vmem:[#allocation2 + $0x4c0] sm:$0xff]  ;;  %v1706_v50 = vpack.c.bf16 %v132_v42, %v128_v41 }
  0x7d   :  { %v261_v40 = vld [vmem:[#allocation2 + $0x4e8] sm:$0xff]  ;;  %v260_v45 = vld [vmem:[#allocation2 + $0x4e0] sm:$0xff]  ;;  %1767 = vmatpush1.bf16.msra.mxu0 %v1766_v38 }
  0x7e   :  { %v1768_v43 = vpack.c.bf16 %v261_v40, %v257_v37  ;;  %v137_v46 = vld [vmem:[#allocation2 + $0x108] sm:$0xff]  ;;  %1705 = vmatprep.subr.bf16.mxu1 %v1704_v39  ;;  %v1770_v51 = vpack.c.bf16 %v260_v45, %v256_v44  ;;  %v136_v53 = vld [vmem:[#allocation2 + $0x100] sm:$0xff] }
  0x7f   :  { %v141_v47 = vld [vmem:[#allocation2 + $0x128] sm:$0xff]  ;;  %v140_v54 = vld [vmem:[#allocation2 + $0x120] sm:$0xff]  ;;  %1707 = vmatpush1.bf16.msra.mxu1 %v1706_v50 }
  0x80   :  { %v265_v48 = vld [vmem:[#allocation2 + $0x508] sm:$0xff]  ;;  %v1708_v52 = vpack.c.bf16 %v141_v47, %v137_v46  ;;  %v264_v55 = vld [vmem:[#allocation2 + $0x500] sm:$0xff]  ;;  %1769 = vmatprep.subr.bf16.mxu0 %v1768_v43  ;;  %v1710_v62 = vpack.c.bf16 %v140_v54, %v136_v53  ;;  %v618_v46 = vlaneseq  ;;  %v2551_v47 = vmov 1983009808  }
  0x81   :  { %v269_v49 = vld [vmem:[#allocation2 + $0x528] sm:$0xff]  ;;  %v268_v57 = vld [vmem:[#allocation2 + $0x520] sm:$0xff]  ;;  %1771 = vmatpush1.bf16.msra.mxu0 %v1770_v51 }
  0x82   :  { %v1772_v56 = vpack.c.bf16 %v269_v49, %v265_v48  ;;  %v145_v58 = vld [vmem:[#allocation2 + $0x148] sm:$0xff]  ;;  %1709 = vmatprep.subr.bf16.mxu1 %v1708_v52  ;;  %v1774_v63 = vpack.c.bf16 %v268_v57, %v264_v55  ;;  %v144_v1 = vld [vmem:[#allocation2 + $0x140] sm:$0xff]  ;;  %v642_v48 = vunpack.c.l.s4 %v2551_v47 }
  0x83   :  { %v149_v59 = vld [vmem:[#allocation2 + $0x168] sm:$0xff]  ;;  %v148_v2 = vld [vmem:[#allocation2 + $0x160] sm:$0xff]  ;;  %1711 = vmatpush1.bf16.msra.mxu1 %v1710_v62 }
  0x84   :  { %v273_v60 = vld [vmem:[#allocation2 + $0x548] sm:$0xff]  ;;  %v1712_v0 = vpack.c.bf16 %v149_v59, %v145_v58  ;;  %v272_v3 = vld [vmem:[#allocation2 + $0x540] sm:$0xff]  ;;  %1773 = vmatprep.subr.bf16.mxu0 %v1772_v56  ;;  %v1714_v10 = vpack.c.bf16 %v148_v2, %v144_v1  ;;  %v643_v62 = vunpack.c.0.s8 %v642_v48 }
  0x85   :  { %v277_v61 = vld [vmem:[#allocation2 + $0x568] sm:$0xff]  ;;  %v276_v5 = vld [vmem:[#allocation2 + $0x560] sm:$0xff]  ;;  %1775 = vmatpush1.bf16.msra.mxu0 %v1774_v63 }
  0x86   :  { %v1776_v4 = vpack.c.bf16 %v277_v61, %v273_v60  ;;  %v153_v6 = vld [vmem:[#allocation2 + $0x188] sm:$0xff]  ;;  %1713 = vmatprep.subr.bf16.mxu1 %v1712_v0  ;;  %v1778_v11 = vpack.c.bf16 %v276_v5, %v272_v3  ;;  %v152_v13 = vld [vmem:[#allocation2 + $0x180] sm:$0xff]  ;;  %v2664_v61 = vshrl.u32 %v618_v46, 7 }
  0x87   :  { %v157_v7 = vld [vmem:[#allocation2 + $0x1a8] sm:$0xff]  ;;  %v156_v14 = vld [vmem:[#allocation2 + $0x1a0] sm:$0xff]  ;;  %1715 = vmatpush1.bf16.msra.mxu1 %v1714_v10 }
  0x88   :  { %v281_v8 = vld [vmem:[#allocation2 + $0x588] sm:$0xff]  ;;  %v1716_v12 = vpack.c.bf16 %v157_v7, %v153_v6  ;;  %v280_v15 = vld [vmem:[#allocation2 + $0x580] sm:$0xff]  ;;  %1777 = vmatprep.subr.bf16.mxu0 %v1776_v4  ;;  %v1718_v22 = vpack.c.bf16 %v156_v14, %v152_v13 }
  0x89   :  { %v285_v9 = vld [vmem:[#allocation2 + $0x5a8] sm:$0xff]  ;;  %v284_v17 = vld [vmem:[#allocation2 + $0x5a0] sm:$0xff]  ;;  %1779 = vmatpush1.bf16.msra.mxu0 %v1778_v11  ;;  %v2667_v11 = vsub.s32 %v643_v62, %v2664_v61 }
  0x8a   :  { %v1780_v16 = vpack.c.bf16 %v285_v9, %v281_v8  ;;  %v161_v18 = vld [vmem:[#allocation2 + $0x1c8] sm:$0xff]  ;;  %1717 = vmatprep.subr.bf16.mxu1 %v1716_v12  ;;  %v1782_v23 = vpack.c.bf16 %v284_v17, %v280_v15  ;;  %v160_v25 = vld [vmem:[#allocation2 + $0x1c0] sm:$0xff] }
  0x8b   :  { %v165_v19 = vld [vmem:[#allocation2 + $0x1e8] sm:$0xff]  ;;  %v164_v26 = vld [vmem:[#allocation2 + $0x1e0] sm:$0xff]  ;;  %1719 = vmatpush1.bf16.msra.mxu1 %v1718_v22  ;;  %v102_v22 = vld [vmem:[%s2751_s0] sm:$0xff] }
  0x8c   :  { %v289_v20 = vld [vmem:[#allocation2 + $0x5c8] sm:$0xff]  ;;  %v1720_v24 = vpack.c.bf16 %v165_v19, %v161_v18  ;;  %v288_v27 = vld [vmem:[#allocation2 + $0x5c0] sm:$0xff]  ;;  %1781 = vmatprep.subr.bf16.mxu0 %v1780_v16  ;;  %v1722_v34 = vpack.c.bf16 %v164_v26, %v160_v25  ;;  %v2673_v25 = vrot.slane %v102_v22, %v2667_v11  ;;  %v640_v26 = vcombine.high %v102_v22, %v102_v22 }
  0x8d   :  { %v293_v21 = vld [vmem:[#allocation2 + $0x5e8] sm:$0xff]  ;;  %v292_v29 = vld [vmem:[#allocation2 + $0x5e0] sm:$0xff]  ;;  %1783 = vmatpush1.bf16.msra.mxu0 %v1782_v23 }
  0x8e   :  { %v1784_v28 = vpack.c.bf16 %v293_v21, %v289_v20  ;;  %v169_v30 = vld [vmem:[#allocation2 + $0x208] sm:$0xff]  ;;  %1721 = vmatprep.subr.bf16.mxu1 %v1720_v24  ;;  %v1786_v35 = vpack.c.bf16 %v292_v29, %v288_v27  ;;  %v168_v37 = vld [vmem:[#allocation2 + $0x200] sm:$0xff] }
  0x8f   :  { %v173_v31 = vld [vmem:[#allocation2 + $0x228] sm:$0xff]  ;;  %v172_v38 = vld [vmem:[#allocation2 + $0x220] sm:$0xff]  ;;  %1723 = vmatpush1.bf16.msra.mxu1 %v1722_v34  ;;  %v2680_v34 = vrot.slane %v640_v26, %v2667_v11  ;;  %v119_v26 = vld [vmem:[#allocation2 + $0x78] sm:$0xff] }
  0x90   :  { %v297_v32 = vld [vmem:[#allocation2 + $0x608] sm:$0xff]  ;;  %v1724_v36 = vpack.c.bf16 %v173_v31, %v169_v30  ;;  %v296_v39 = vld [vmem:[#allocation2 + $0x600] sm:$0xff]  ;;  %1785 = vmatprep.subr.bf16.mxu0 %v1784_v28  ;;  %v1726_v49 = vpack.c.bf16 %v172_v38, %v168_v37 }
  0x91   :  { %v301_v33 = vld [vmem:[#allocation2 + $0x628] sm:$0xff]  ;;  %v300_v41 = vld [vmem:[#allocation2 + $0x620] sm:$0xff]  ;;  %1787 = vmatpush1.bf16.msra.mxu0 %v1786_v35 }
  0x92   :  { %v1788_v40 = vpack.c.bf16 %v301_v33, %v297_v32  ;;  %v177_v42 = vld [vmem:[#allocation2 + $0x248] sm:$0xff]  ;;  %1725 = vmatprep.subr.bf16.mxu1 %v1724_v36  ;;  %v1790_v50 = vpack.c.bf16 %v300_v41, %v296_v39  ;;  %v176_v52 = vld [vmem:[#allocation2 + $0x240] sm:$0xff]  ;;  %v2677_v33 = vcombine.high %v2673_v25, %v2673_v25  ;;  %v2685_v41 = vcombine.high %v2680_v34, %v2680_v34 }
  0x93   :  { %v181_v43 = vld [vmem:[#allocation2 + $0x268] sm:$0xff]  ;;  %v180_v53 = vld [vmem:[#allocation2 + $0x260] sm:$0xff]  ;;  %1727 = vmatpush1.bf16.msra.mxu1 %v1726_v49 }
  0x94   :  { %v305_v44 = vld [vmem:[#allocation2 + $0x648] sm:$0xff]  ;;  %v1728_v51 = vpack.c.bf16 %v181_v43, %v177_v42  ;;  %v304_v54 = vld [vmem:[#allocation2 + $0x640] sm:$0xff]  ;;  %1789 = vmatprep.subr.bf16.mxu0 %v1788_v40  ;;  %v1730_v63 = vpack.c.bf16 %v180_v53, %v176_v52  ;;  %746 = vmatprep.mubr.f32.mxu1 %v2677_v33 }
  0x95   :  { %v309_v45 = vld [vmem:[#allocation2 + $0x668] sm:$0xff]  ;;  %v308_v56 = vld [vmem:[#allocation2 + $0x660] sm:$0xff]  ;;  %1791 = vmatpush1.bf16.msra.mxu0 %v1790_v50  ;;  %817 = vmatprep.mubr.f32.mxu0 %v2685_v41 }
  0x96   :  { %v1792_v55 = vpack.c.bf16 %v309_v45, %v305_v44  ;;  %v185_v57 = vld [vmem:[#allocation2 + $0x288] sm:$0xff]  ;;  %1729 = vmatprep.subr.bf16.mxu1 %v1728_v51  ;;  %v1794_v0 = vpack.c.bf16 %v308_v56, %v304_v54  ;;  %v184_v2 = vld [vmem:[#allocation2 + $0x280] sm:$0xff] }
  0x97   :  { %v189_v58 = vld [vmem:[#allocation2 + $0x2a8] sm:$0xff]  ;;  %v188_v3 = vld [vmem:[#allocation2 + $0x2a0] sm:$0xff]  ;;  %1731 = vmatpush1.bf16.msra.mxu1 %v1730_v63 }
  0x98   :  { %v313_v59 = vld [vmem:[#allocation2 + $0x688] sm:$0xff]  ;;  %v1732_v1 = vpack.c.bf16 %v189_v58, %v185_v57  ;;  %v312_v4 = vld [vmem:[#allocation2 + $0x680] sm:$0xff]  ;;  %1793 = vmatprep.subr.bf16.mxu0 %v1792_v55  ;;  %v1734_v12 = vpack.c.bf16 %v188_v3, %v184_v2 }
  0x99   :  { %v317_v60 = vld [vmem:[#allocation2 + $0x6a8] sm:$0xff]  ;;  %v316_v6 = vld [vmem:[#allocation2 + $0x6a0] sm:$0xff]  ;;  %1795 = vmatpush1.bf16.msra.mxu0 %v1794_v0 }
  0x9a   :  { %v1796_v5 = vpack.c.bf16 %v317_v60, %v313_v59  ;;  %v193_v7 = vld [vmem:[#allocation2 + $0x2c8] sm:$0xff]  ;;  %v192_v13 = vld [vmem:[#allocation2 + $0x2c0] sm:$0xff]  ;;  %1733 = vmatprep.subr.bf16.mxu1 %v1732_v1  ;;  %v1798_v14 = vpack.c.bf16 %v316_v6, %v312_v4 }
  0x9b   :  { %v197_v8 = vld [vmem:[#allocation2 + $0x2e8] sm:$0xff]  ;;  %v196_v16 = vld [vmem:[#allocation2 + $0x2e0] sm:$0xff]  ;;  %1735 = vmatpush1.bf16.msra.mxu1 %v1734_v12  ;;  %v107_v12 = vld [vmem:[#allocation2 + $0x18] sm:$0xff] }
  0x9c   :  { %v321_v9 = vld [vmem:[#allocation2 + $0x6c8] sm:$0xff]  ;;  %v1736_v15 = vpack.c.bf16 %v197_v8, %v193_v7  ;;  %v320_v17 = vld [vmem:[#allocation2 + $0x6c0] sm:$0xff]  ;;  %1797 = vmatprep.subr.bf16.mxu0 %v1796_v5  ;;  %v1738_v27 = vpack.c.bf16 %v196_v16, %v192_v13  ;;  %v111_v13 = vld [vmem:[#allocation2 + $0x38] sm:$0xff] }
  0x9d   :  { %v325_v10 = vld [vmem:[#allocation2 + $0x6e8] sm:$0xff]  ;;  %v324_v18 = vld [vmem:[#allocation2 + $0x6e0] sm:$0xff]  ;;  %1799 = vmatpush1.bf16.msra.mxu0 %v1798_v14 }
  0x9e   :  { %v1800_v19 = vpack.c.bf16 %v325_v10, %v321_v9  ;;  %v201_v20 = vld [vmem:[#allocation2 + $0x308] sm:$0xff]  ;;  %v1802_v28 = vpack.c.bf16 %v324_v18, %v320_v17  ;;  %1737 = vmatprep.subr.bf16.mxu1 %v1736_v15  ;;  %v200_v30 = vld [vmem:[#allocation2 + $0x300] sm:$0xff]  ;;  %v1948_v18 = vpack.c.bf16 %v111_v13, %v107_v12  ;;  %v147_v13 = vld [vmem:[#allocation2 + $0x158] sm:$0xff] }
  0x9f   :  { %v205_v21 = vld [vmem:[#allocation2 + $0x328] sm:$0xff]  ;;  %v204_v31 = vld [vmem:[#allocation2 + $0x320] sm:$0xff]  ;;  %1739 = vmatpush1.bf16.msra.mxu1 %v1738_v27 }
  0xa0   :  { %v329_v23 = vld [vmem:[#allocation2 + $0x708] sm:$0xff]  ;;  %v1740_v29 = vpack.c.bf16 %v205_v21, %v201_v20  ;;  %v328_v32 = vld [vmem:[#allocation2 + $0x700] sm:$0xff]  ;;  %1801 = vmatprep.subr.bf16.mxu0 %v1800_v19  ;;  %v1742_v42 = vpack.c.bf16 %v204_v31, %v200_v30  ;;  %v106_v20 = vld [vmem:[#allocation2 + $0x10] sm:$0xff] }
  0xa1   :  { %v333_v24 = vld [vmem:[#allocation2 + $0x728] sm:$0xff]  ;;  %v332_v36 = vld [vmem:[#allocation2 + $0x720] sm:$0xff]  ;;  %1803 = vmatpush1.bf16.msra.mxu0 %v1802_v28  ;;  %v110_v21 = vld [vmem:[#allocation2 + $0x30] sm:$0xff] }
  0xa2   :  { %v1804_v35 = vpack.c.bf16 %v333_v24, %v329_v23  ;;  %v209_v37 = vld [vmem:[#allocation2 + $0x348] sm:$0xff]  ;;  %1741 = vmatprep.subr.bf16.mxu1 %v1740_v29  ;;  %v1806_v43 = vpack.c.bf16 %v332_v36, %v328_v32  ;;  %v208_v45 = vld [vmem:[#allocation2 + $0x340] sm:$0xff]  ;;  %v115_v24 = vld [vmem:[#allocation2 + $0x58] sm:$0xff]  ;;  %v1950_v29 = vpack.c.bf16 %v110_v21, %v106_v20 }
  0xa3   :  { %v213_v38 = vld [vmem:[#allocation2 + $0x368] sm:$0xff]  ;;  %v212_v46 = vld [vmem:[#allocation2 + $0x360] sm:$0xff]  ;;  %1743 = vmatpush1.bf16.msra.mxu1 %v1742_v42  ;;  %v1952_v31 = vpack.c.bf16 %v119_v26, %v115_v24  ;;  %v118_v36 = vld [vmem:[#allocation2 + $0x70] sm:$0xff] }
  0xa4   :  { %v337_v39 = vld [vmem:[#allocation2 + $0x748] sm:$0xff]  ;;  %v1744_v44 = vpack.c.bf16 %v213_v38, %v209_v37  ;;  %v336_v47 = vld [vmem:[#allocation2 + $0x740] sm:$0xff]  ;;  %1805 = vmatprep.subr.bf16.mxu0 %v1804_v35  ;;  %v1746_v54 = vpack.c.bf16 %v212_v46, %v208_v45  ;;  %v114_v35 = vld [vmem:[#allocation2 + $0x50] sm:$0xff] }
  0xa5   :  { %v341_v40 = vld [vmem:[#allocation2 + $0x768] sm:$0xff]  ;;  %v340_v49 = vld [vmem:[#allocation2 + $0x760] sm:$0xff]  ;;  %1807 = vmatpush1.bf16.msra.mxu0 %v1806_v43  ;;  %v146_v21 = vld [vmem:[#allocation2 + $0x150] sm:$0xff] }
  0xa6   :  { %v1808_v48 = vpack.c.bf16 %v341_v40, %v337_v39  ;;  %v217_v50 = vld [vmem:[#allocation2 + $0x388] sm:$0xff]  ;;  %1745 = vmatprep.subr.bf16.mxu1 %v1744_v44  ;;  %v1810_v55 = vpack.c.bf16 %v340_v49, %v336_v47  ;;  %v216_v57 = vld [vmem:[#allocation2 + $0x380] sm:$0xff]  ;;  %v123_v39 = vld [vmem:[#allocation2 + $0x98] sm:$0xff]  ;;  %v1954_v44 = vpack.c.bf16 %v118_v36, %v114_v35 }
  0xa7   :  { %v221_v51 = vld [vmem:[#allocation2 + $0x3a8] sm:$0xff]  ;;  %v220_v58 = vld [vmem:[#allocation2 + $0x3a0] sm:$0xff]  ;;  %1747 = vmatpush1.bf16.msra.mxu1 %v1746_v54  ;;  %v127_v40 = vld [vmem:[#allocation2 + $0xb8] sm:$0xff] }
  0xa8   :  { %v345_v52 = vld [vmem:[#allocation2 + $0x788] sm:$0xff]  ;;  %v1748_v56 = vpack.c.bf16 %v221_v51, %v217_v50  ;;  %v344_v59 = vld [vmem:[#allocation2 + $0x780] sm:$0xff]  ;;  %1809 = vmatprep.subr.bf16.mxu0 %v1808_v48  ;;  %v1750_v3 = vpack.c.bf16 %v220_v58, %v216_v57  ;;  %v1956_v46 = vpack.c.bf16 %v127_v40, %v123_v39  ;;  %v122_v48 = vld [vmem:[#allocation2 + $0x90] sm:$0xff] }
  0xa9   :  { %v349_v53 = vld [vmem:[#allocation2 + $0x7a8] sm:$0xff]  ;;  %v348_v62 = vld [vmem:[#allocation2 + $0x7a0] sm:$0xff]  ;;  %1811 = vmatpush1.bf16.msra.mxu0 %v1810_v55  ;;  %v126_v49 = vld [vmem:[#allocation2 + $0xb0] sm:$0xff] }
  0xaa   :  { %v1812_v60 = vpack.c.bf16 %v349_v53, %v345_v52  ;;  %v225_v63 = vld [vmem:[#allocation2 + $0x3c8] sm:$0xff]  ;;  %1749 = vmatprep.subr.bf16.mxu1 %v1748_v56  ;;  %v1814_v4 = vpack.c.bf16 %v348_v62, %v344_v59  ;;  %v224_v6 = vld [vmem:[#allocation2 + $0x3c0] sm:$0xff]  ;;  %v131_v52 = vld [vmem:[#allocation2 + $0xd8] sm:$0xff]  ;;  %v1958_v56 = vpack.c.bf16 %v126_v49, %v122_v48 }
  0xab   :  { %v229_v0 = vld [vmem:[#allocation2 + $0x3e8] sm:$0xff]  ;;  %v228_v7 = vld [vmem:[#allocation2 + $0x3e0] sm:$0xff]  ;;  %1751 = vmatpush1.bf16.msra.mxu1 %v1750_v3  ;;  %v135_v53 = vld [vmem:[#allocation2 + $0xf8] sm:$0xff] }
  0xac   :  { %v353_v1 = vld [vmem:[#allocation2 + $0x7c8] sm:$0xff]  ;;  %v1752_v5 = vpack.c.bf16 %v229_v0, %v225_v63  ;;  %v352_v8 = vld [vmem:[#allocation2 + $0x7c0] sm:$0xff]  ;;  %1813 = vmatprep.subr.bf16.mxu0 %v1812_v60  ;;  %v1754_v16 = vpack.c.bf16 %v228_v7, %v224_v6  ;;  %v1960_v58 = vpack.c.bf16 %v135_v53, %v131_v52  ;;  %v130_v60 = vld [vmem:[#allocation2 + $0xd0] sm:$0xff] }
  0xad   :  { %v357_v2 = vld [vmem:[#allocation2 + $0x7e8] sm:$0xff]  ;;  %v356_v10 = vld [vmem:[#allocation2 + $0x7e0] sm:$0xff]  ;;  %1815 = vmatpush1.bf16.msra.mxu0 %v1814_v4  ;;  %v134_v62 = vld [vmem:[#allocation2 + $0xf0] sm:$0xff] }
  0xae   :  { %v1816_v9 = vpack.c.bf16 %v357_v2, %v353_v1  ;;  %v361_v14 = vld [vmem:[#allocation2 + $0x808] sm:$0xff]  ;;  %1753 = vmatprep.subr.bf16.mxu1 %v1752_v5  ;;  %v1818_v17 = vpack.c.bf16 %v356_v10, %v352_v8  ;;  %v360_v19 = vld [vmem:[#allocation2 + $0x800] sm:$0xff]  ;;  %v139_v1 = vld [vmem:[#allocation2 + $0x118] sm:$0xff] }
  0xaf   :  { %v365_v15 = vld [vmem:[#allocation2 + $0x828] sm:$0xff]  ;;  %v364_v23 = vld [vmem:[#allocation2 + $0x820] sm:$0xff]  ;;  %1755 = vmatpush1.bf16.msra.mxu1 %v1754_v16  ;;  %v143_v2 = vld [vmem:[#allocation2 + $0x138] sm:$0xff] }
  0xb0   :  { %1817 = vmatprep.subr.bf16.mxu0 %v1816_v9  ;;  %v1820_v22 = vpack.c.bf16 %v365_v15, %v361_v14  ;;  %v369_v27 = vld [vmem:[#allocation2 + $0x848] sm:$0xff]  ;;  %1949 = vmatprep.subr.bf16.mxu1 %v1948_v18  ;;  %v1822_v30 = vpack.c.bf16 %v364_v23, %v360_v19  ;;  %v368_v32 = vld [vmem:[#allocation2 + $0x840] sm:$0xff]  ;;  %v1964_v6 = vpack.c.bf16 %v143_v2, %v139_v1  ;;  %v138_v8 = vld [vmem:[#allocation2 + $0x110] sm:$0xff] }
  0xb1   :  { %v373_v28 = vld [vmem:[#allocation2 + $0x868] sm:$0xff]  ;;  %1819 = vmatpush1.bf16.msra.mxu0 %v1818_v17  ;;  %v372_v38 = vld [vmem:[#allocation2 + $0x860] sm:$0xff]  ;;  %v142_v9 = vld [vmem:[#allocation2 + $0x130] sm:$0xff] }
  0xb2   :  { %1821 = vmatprep.subr.bf16.mxu0 %v1820_v22  ;;  %v1824_v37 = vpack.c.bf16 %v373_v28, %v369_v27  ;;  %747 = vmatmul.mubr.f32.vlgmr.msra.gmra.mrb[0].mxu1 %v2673_v25  ;;  %v377_v42 = vld [vmem:[#allocation2 + $0x888] sm:$0xff]  ;;  %v1826_v45 = vpack.c.bf16 %v372_v38, %v368_v32  ;;  %v376_v47 = vld [vmem:[#allocation2 + $0x880] sm:$0xff]  ;;  %v151_v14 = vld [vmem:[#allocation2 + $0x178] sm:$0xff]  ;;  %v1966_v17 = vpack.c.bf16 %v142_v9, %v138_v8 }
  0xb3   :  { %v381_v43 = vld [vmem:[#allocation2 + $0x8a8] sm:$0xff]  ;;  %1951 = vmatpush1.bf16.msra.mxu1 %v1950_v29  ;;  %v380_v51 = vld [vmem:[#allocation2 + $0x8a0] sm:$0xff]  ;;  %1030 = vmatprep.mubr.f32.mxu1 %v2677_v33  ;;  %v1962_v33 = vpack.c.bf16 %v134_v62, %v130_v60  ;;  %v1968_v19 = vpack.c.bf16 %v151_v14, %v147_v13  ;;  %v150_v22 = vld [vmem:[#allocation2 + $0x170] sm:$0xff] }
  0xb4   :  { %818 = vmatmul.mubr.f32.vlgmr.msra.gmra.mrb[0].mxu0 %v2680_v34  ;;  %1953 = vmatprep.subr.bf16.mxu1 %v1952_v31  ;;  %v1828_v50 = vpack.c.bf16 %v381_v43, %v377_v42  ;;  %v385_v54 = vld [vmem:[#allocation2 + $0x8c8] sm:$0xff]  ;;  %v1830_v57 = vpack.c.bf16 %v380_v51, %v376_v47  ;;  %v384_v59 = vld [vmem:[#allocation2 + $0x8c0] sm:$0xff]  ;;  %v155_v26 = vld [vmem:[#allocation2 + $0x198] sm:$0xff] }
  0xb5   :  { %1823 = vmatpush1.bf16.msra.mxu0 %v1822_v30  ;;  %v389_v55 = vld [vmem:[#allocation2 + $0x8e8] sm:$0xff]  ;;  %v388_v0 = vld [vmem:[#allocation2 + $0x8e0] sm:$0xff]  ;;  %v159_v27 = vld [vmem:[#allocation2 + $0x1b8] sm:$0xff]  ;;  %v1970_v30 = vpack.c.bf16 %v150_v22, %v146_v21 }
  0xb6   :  { %1825 = vmatprep.subr.bf16.mxu0 %v1824_v37  ;;  %v1832_v63 = vpack.c.bf16 %v389_v55, %v385_v54  ;;  %v393_v3 = vld [vmem:[#allocation2 + $0x908] sm:$0xff]  ;;  %v1834_v5 = vpack.c.bf16 %v388_v0, %v384_v59  ;;  %v392_v7 = vld [vmem:[#allocation2 + $0x900] sm:$0xff]  ;;  %v1972_v35 = vpack.c.bf16 %v159_v27, %v155_v26  ;;  %v154_v36 = vld [vmem:[#allocation2 + $0x190] sm:$0xff] }
  0xb7   :  { %1955 = vmatpush1.bf16.msra.mxu1 %v1954_v44  ;;  %v397_v4 = vld [vmem:[#allocation2 + $0x928] sm:$0xff]  ;;  %v396_v12 = vld [vmem:[#allocation2 + $0x920] sm:$0xff]  ;;  %v158_v37 = vld [vmem:[#allocation2 + $0x1b0] sm:$0xff] }
  0xb8   :  { %1957 = vmatprep.subr.bf16.mxu1 %v1956_v46  ;;  %v1836_v10 = vpack.c.bf16 %v397_v4, %v393_v3  ;;  %v401_v15 = vld [vmem:[#allocation2 + $0x948] sm:$0xff]  ;;  %v1838_v18 = vpack.c.bf16 %v396_v12, %v392_v7  ;;  %v400_v20 = vld [vmem:[#allocation2 + $0x940] sm:$0xff]  ;;  %v2694_v38 = vld [vmem:[%s2751_s0 + $0x8] sm:$0xff]  ;;  %v1974_v47 = vpack.c.bf16 %v158_v37, %v154_v36 }
  0xb9   :  { %1827 = vmatpush1.bf16.msra.mxu0 %v1826_v45  ;;  %v405_v16 = vld [vmem:[#allocation2 + $0x968] sm:$0xff]  ;;  %v404_v24 = vld [vmem:[#allocation2 + $0x960] sm:$0xff]  ;;  %v163_v42 = vld [vmem:[#allocation2 + $0x1d8] sm:$0xff]  ;;  %v2698_v44 = vrot.slane %v2694_v38, %v2667_v11 }
  0xba   :  { %1829 = vmatprep.subr.bf16.mxu0 %v1828_v50  ;;  %v1840_v23 = vpack.c.bf16 %v405_v16, %v401_v15  ;;  %v409_v28 = vld [vmem:[#allocation2 + $0x988] sm:$0xff]  ;;  %v408_v31 = vld [vmem:[#allocation2 + $0x980] sm:$0xff]  ;;  %v1842_v32 = vpack.c.bf16 %v404_v24, %v400_v20  ;;  %v167_v43 = vld [vmem:[#allocation2 + $0x1f8] sm:$0xff] }
  0xbb   :  { %1959 = vmatpush1.bf16.msra.mxu1 %v1958_v56  ;;  %v413_v29 = vld [vmem:[#allocation2 + $0x9a8] sm:$0xff]  ;;  %v412_v40 = vld [vmem:[#allocation2 + $0x9a0] sm:$0xff]  ;;  %v2702_v48 = vcombine.high %v2698_v44, %v2698_v44  ;;  %v1976_v50 = vpack.c.bf16 %v167_v43, %v163_v42  ;;  %v162_v52 = vld [vmem:[#allocation2 + $0x1d0] sm:$0xff] }
  0xbc   :  { %1961 = vmatprep.subr.bf16.mxu1 %v1960_v58  ;;  %v1844_v39 = vpack.c.bf16 %v413_v29, %v409_v28  ;;  %v417_v45 = vld [vmem:[#allocation2 + $0x9c8] sm:$0xff]  ;;  %v1846_v49 = vpack.c.bf16 %v412_v40, %v408_v31  ;;  %v416_v51 = vld [vmem:[#allocation2 + $0x9c0] sm:$0xff]  ;;  %v166_v53 = vld [vmem:[#allocation2 + $0x1f0] sm:$0xff] }
  0xbd   :  { %1831 = vmatpush1.bf16.msra.mxu0 %v1830_v57  ;;  %v421_v46 = vld [vmem:[#allocation2 + $0x9e8] sm:$0xff]  ;;  %v420_v55 = vld [vmem:[#allocation2 + $0x9e0] sm:$0xff]  ;;  %v171_v56 = vld [vmem:[#allocation2 + $0x218] sm:$0xff]  ;;  %888 = vmatprep.mubr.f32.mxu0 %v2702_v48  ;;  %v1978_v60 = vpack.c.bf16 %v166_v53, %v162_v52 }
  0xbe   :  { %1833 = vmatprep.subr.bf16.mxu0 %v1832_v63  ;;  %v1848_v54 = vpack.c.bf16 %v421_v46, %v417_v45  ;;  %v175_v57 = vld [vmem:[#allocation2 + $0x238] sm:$0xff]  ;;  %v425_v58 = vld [vmem:[#allocation2 + $0xa08] sm:$0xff]  ;;  %v1850_v62 = vpack.c.bf16 %v420_v55, %v416_v51  ;;  %v424_v0 = vld [vmem:[#allocation2 + $0xa00] sm:$0xff] }
  0xbf   :  { %1963 = vmatpush1.bf16.msra.mxu1 %v1962_v33  ;;  %v429_v59 = vld [vmem:[#allocation2 + $0xa28] sm:$0xff]  ;;  %v1980_v63 = vpack.c.bf16 %v175_v57, %v171_v56  ;;  %v170_v1 = vld [vmem:[#allocation2 + $0x210] sm:$0xff]  ;;  %v428_v4 = vld [vmem:[#allocation2 + $0xa20] sm:$0xff] }
  0xc0   :  { %1965 = vmatprep.subr.bf16.mxu1 %v1964_v6  ;;  %v174_v2 = vld [vmem:[#allocation2 + $0x230] sm:$0xff]  ;;  %v1852_v3 = vpack.c.bf16 %v429_v59, %v425_v58  ;;  %v179_v33 = vld [vmem:[#allocation2 + $0x258] sm:$0xff]  ;;  %v433_v6 = vld [vmem:[#allocation2 + $0xa48] sm:$0xff]  ;;  %v1854_v9 = vpack.c.bf16 %v428_v4, %v424_v0 }
  0xc1   :  { %1835 = vmatpush1.bf16.msra.mxu0 %v1834_v5  ;;  %v183_v5 = vld [vmem:[#allocation2 + $0x278] sm:$0xff]  ;;  %v437_v7 = vld [vmem:[#allocation2 + $0xa68] sm:$0xff]  ;;  %v1982_v8 = vpack.c.bf16 %v174_v2, %v170_v1  ;;  %v432_v12 = vld [vmem:[#allocation2 + $0xa40] sm:$0xff] }
  0xc2   :  { %1837 = vmatprep.subr.bf16.mxu0 %v1836_v10  ;;  %v1984_v10 = vpack.c.bf16 %v183_v5, %v179_v33  ;;  %v178_v13 = vld [vmem:[#allocation2 + $0x250] sm:$0xff]  ;;  %v1856_v15 = vpack.c.bf16 %v437_v7, %v433_v6  ;;  %v436_v16 = vld [vmem:[#allocation2 + $0xa60] sm:$0xff]  ;;  %v445_v20 = vld [vmem:[#allocation2 + $0xaa8] sm:$0xff] }
  0xc3   :  { %1967 = vmatpush1.bf16.msra.mxu1 %v1966_v17  ;;  %v182_v14 = vld [vmem:[#allocation2 + $0x270] sm:$0xff]  ;;  %v187_v17 = vld [vmem:[#allocation2 + $0x298] sm:$0xff]  ;;  %v1858_v22 = vpack.c.bf16 %v436_v16, %v432_v12  ;;  %v440_v24 = vld [vmem:[#allocation2 + $0xa80] sm:$0xff] }
  0xc4   :  { %1969 = vmatprep.subr.bf16.mxu1 %v1968_v19  ;;  %v441_v19 = vld [vmem:[#allocation2 + $0xa88] sm:$0xff]  ;;  %v1986_v21 = vpack.c.bf16 %v182_v14, %v178_v13  ;;  %v186_v26 = vld [vmem:[#allocation2 + $0x290] sm:$0xff]  ;;  %v444_v29 = vld [vmem:[#allocation2 + $0xaa0] sm:$0xff] }
  0xc5   :  { %1839 = vmatpush1.bf16.msra.mxu0 %v1838_v18  ;;  %v191_v18 = vld [vmem:[#allocation2 + $0x2b8] sm:$0xff]  ;;  %v190_v27 = vld [vmem:[#allocation2 + $0x2b0] sm:$0xff]  ;;  %v1860_v28 = vpack.c.bf16 %v445_v20, %v441_v19  ;;  %v1862_v37 = vpack.c.bf16 %v444_v29, %v440_v24  ;;  %v448_v40 = vld [vmem:[#allocation2 + $0xac0] sm:$0xff] }
  0xc6   :  { %1841 = vmatprep.subr.bf16.mxu0 %v1840_v23  ;;  %v1988_v23 = vpack.c.bf16 %v191_v18, %v187_v17  ;;  %v199_v31 = vld [vmem:[#allocation2 + $0x2f8] sm:$0xff]  ;;  %v1990_v36 = vpack.c.bf16 %v190_v27, %v186_v26  ;;  %v194_v42 = vld [vmem:[#allocation2 + $0x2d0] sm:$0xff]  ;;  %v452_v46 = vld [vmem:[#allocation2 + $0xae0] sm:$0xff] }
  0xc7   :  { %1971 = vmatpush1.bf16.msra.mxu1 %v1970_v30  ;;  %v195_v30 = vld [vmem:[#allocation2 + $0x2d8] sm:$0xff]  ;;  %v198_v43 = vld [vmem:[#allocation2 + $0x2f0] sm:$0xff]  ;;  %v461_v51 = vld [vmem:[#allocation2 + $0xb28] sm:$0xff]  ;;  %v1866_v53 = vpack.c.bf16 %v452_v46, %v448_v40 }
  0xc8   :  { %1973 = vmatprep.subr.bf16.mxu1 %v1972_v35  ;;  %v453_v35 = vld [vmem:[#allocation2 + $0xae8] sm:$0xff]  ;;  %v1994_v52 = vpack.c.bf16 %v198_v43, %v194_v42  ;;  %v456_v55 = vld [vmem:[#allocation2 + $0xb00] sm:$0xff]  ;;  %v202_v56 = vld [vmem:[#allocation2 + $0x310] sm:$0xff] }
  0xc9   :  { %1843 = vmatpush1.bf16.msra.mxu0 %v1842_v32  ;;  %v449_v32 = vld [vmem:[#allocation2 + $0xac8] sm:$0xff]  ;;  %v206_v57 = vld [vmem:[#allocation2 + $0x330] sm:$0xff]  ;;  %v460_v59 = vld [vmem:[#allocation2 + $0xb20] sm:$0xff] }
  0xca   :  { %1845 = vmatprep.subr.bf16.mxu0 %v1844_v39  ;;  %v1992_v39 = vpack.c.bf16 %v199_v31, %v195_v30  ;;  %v1864_v45 = vpack.c.bf16 %v453_v35, %v449_v32  ;;  %v469_v0 = vld [vmem:[#allocation2 + $0xb68] sm:$0xff]  ;;  %v1998_v1 = vpack.c.bf16 %v206_v57, %v202_v56  ;;  %v1870_v2 = vpack.c.bf16 %v460_v59, %v456_v55  ;;  %v464_v4 = vld [vmem:[#allocation2 + $0xb40] sm:$0xff]  ;;  %v210_v33 = vld [vmem:[#allocation2 + $0x350] sm:$0xff] }
  0xcb   :  { %1975 = vmatpush1.bf16.msra.mxu1 %v1974_v47  ;;  %v203_v47 = vld [vmem:[#allocation2 + $0x318] sm:$0xff]  ;;  %v214_v5 = vld [vmem:[#allocation2 + $0x370] sm:$0xff]  ;;  %v468_v7 = vld [vmem:[#allocation2 + $0xb60] sm:$0xff] }
  0xcc   :  { %1977 = vmatprep.subr.bf16.mxu1 %v1976_v50  ;;  %v457_v50 = vld [vmem:[#allocation2 + $0xb08] sm:$0xff]  ;;  %v2002_v13 = vpack.c.bf16 %v214_v5, %v210_v33  ;;  %v1874_v14 = vpack.c.bf16 %v468_v7, %v464_v4  ;;  %v472_v16 = vld [vmem:[#allocation2 + $0xb80] sm:$0xff]  ;;  %v218_v17 = vld [vmem:[#allocation2 + $0x390] sm:$0xff] }
  0xcd   :  { %1847 = vmatpush1.bf16.msra.mxu0 %v1846_v49  ;;  %v207_v49 = vld [vmem:[#allocation2 + $0x338] sm:$0xff]  ;;  %v1868_v58 = vpack.c.bf16 %v461_v51, %v457_v50  ;;  %v477_v12 = vld [vmem:[#allocation2 + $0xba8] sm:$0xff]  ;;  %v222_v18 = vld [vmem:[#allocation2 + $0x3b0] sm:$0xff] }
  0xce   :  { %1849 = vmatprep.subr.bf16.mxu0 %v1848_v54  ;;  %v1996_v54 = vpack.c.bf16 %v207_v49, %v203_v47  ;;  %v476_v20 = vld [vmem:[#allocation2 + $0xba0] sm:$0xff]  ;;  %v485_v24 = vld [vmem:[#allocation2 + $0xbe8] sm:$0xff]  ;;  %v2006_v26 = vpack.c.bf16 %v222_v18, %v218_v17  ;;  %v226_v30 = vld [vmem:[#allocation2 + $0x3d0] sm:$0xff] }
  0xcf   :  { %1979 = vmatpush1.bf16.msra.mxu1 %v1978_v60  ;;  %v211_v60 = vld [vmem:[#allocation2 + $0x358] sm:$0xff]  ;;  %v1878_v27 = vpack.c.bf16 %v476_v20, %v472_v16  ;;  %v480_v29 = vld [vmem:[#allocation2 + $0xbc0] sm:$0xff]  ;;  %v230_v31 = vld [vmem:[#allocation2 + $0x3f0] sm:$0xff] }
  0xd0   :  { %1981 = vmatprep.subr.bf16.mxu1 %v1980_v63  ;;  %v465_v63 = vld [vmem:[#allocation2 + $0xb48] sm:$0xff]  ;;  %v484_v35 = vld [vmem:[#allocation2 + $0xbe0] sm:$0xff]  ;;  %v2010_v43 = vpack.c.bf16 %v230_v31, %v226_v30  ;;  %v234_v49 = vld [vmem:[#allocation2 + $0x410] sm:$0xff] }
  0xd1   :  { %1851 = vmatpush1.bf16.msra.mxu0 %v1850_v62  ;;  %v215_v62 = vld [vmem:[#allocation2 + $0x378] sm:$0xff]  ;;  %v1872_v6 = vpack.c.bf16 %v469_v0, %v465_v63  ;;  %v489_v40 = vld [vmem:[#allocation2 + $0xc08] sm:$0xff]  ;;  %v488_v47 = vld [vmem:[#allocation2 + $0xc00] sm:$0xff] }
  0xd2   :  { %1853 = vmatprep.subr.bf16.mxu0 %v1852_v3  ;;  %v2000_v3 = vpack.c.bf16 %v215_v62, %v211_v60  ;;  %v493_v42 = vld [vmem:[#allocation2 + $0xc28] sm:$0xff]  ;;  %v238_v50 = vld [vmem:[#allocation2 + $0x430] sm:$0xff]  ;;  %v496_v60 = vld [vmem:[#allocation2 + $0xc40] sm:$0xff] }
  0xd3   :  { %1983 = vmatpush1.bf16.msra.mxu1 %v1982_v8  ;;  %v219_v8 = vld [vmem:[#allocation2 + $0x398] sm:$0xff]  ;;  %v1884_v51 = vpack.c.bf16 %v493_v42, %v489_v40  ;;  %v501_v56 = vld [vmem:[#allocation2 + $0xc68] sm:$0xff]  ;;  %v2014_v57 = vpack.c.bf16 %v238_v50, %v234_v49  ;;  %v242_v62 = vld [vmem:[#allocation2 + $0x450] sm:$0xff] }
  0xd4   :  { %1985 = vmatprep.subr.bf16.mxu1 %v1984_v10  ;;  %v473_v10 = vld [vmem:[#allocation2 + $0xb88] sm:$0xff]  ;;  %v246_v63 = vld [vmem:[#allocation2 + $0x470] sm:$0xff]  ;;  %v512_v20 = vld [vmem:[#allocation2 + $0xcc0] sm:$0xff] }
  0xd5   :  { %1855 = vmatpush1.bf16.msra.mxu0 %v1854_v9  ;;  %v223_v9 = vld [vmem:[#allocation2 + $0x3b8] sm:$0xff]  ;;  %v1876_v19 = vpack.c.bf16 %v477_v12, %v473_v10  ;;  %v505_v4 = vld [vmem:[#allocation2 + $0xc88] sm:$0xff]  ;;  %v2018_v5 = vpack.c.bf16 %v246_v63, %v242_v62  ;;  %v254_v10 = vld [vmem:[#allocation2 + $0x4b0] sm:$0xff] }
  0xd6   :  { %1857 = vmatprep.subr.bf16.mxu0 %v1856_v15  ;;  %v2004_v15 = vpack.c.bf16 %v223_v9, %v219_v8  ;;  %v509_v33 = vld [vmem:[#allocation2 + $0xca8] sm:$0xff]  ;;  %v504_v8 = vld [vmem:[#allocation2 + $0xc80] sm:$0xff]  ;;  %v250_v9 = vld [vmem:[#allocation2 + $0x490] sm:$0xff] }
  0xd7   :  { %1987 = vmatpush1.bf16.msra.mxu1 %v1986_v21  ;;  %v227_v21 = vld [vmem:[#allocation2 + $0x3d8] sm:$0xff]  ;;  %v1892_v12 = vpack.c.bf16 %v509_v33, %v505_v4  ;;  %v517_v16 = vld [vmem:[#allocation2 + $0xce8] sm:$0xff]  ;;  %v2022_v17 = vpack.c.bf16 %v254_v10, %v250_v9  ;;  %v528_v50 = vld [vmem:[#allocation2 + $0xd40] sm:$0xff] }
  0xd8   :  { %1989 = vmatprep.subr.bf16.mxu1 %v1988_v23  ;;  %v481_v23 = vld [vmem:[#allocation2 + $0xbc8] sm:$0xff]  ;;  %v275_v40 = vld [vmem:[#allocation2 + $0x558] sm:$0xff]  ;;  %v536_v63 = vld [vmem:[#allocation2 + $0xd80] sm:$0xff] }
  0xd9   :  { %1859 = vmatpush1.bf16.msra.mxu0 %v1858_v22  ;;  %v231_v22 = vld [vmem:[#allocation2 + $0x3f8] sm:$0xff]  ;;  %v1880_v32 = vpack.c.bf16 %v485_v24, %v481_v23  ;;  %v516_v24 = vld [vmem:[#allocation2 + $0xce0] sm:$0xff] }
  0xda   :  { %1861 = vmatprep.subr.bf16.mxu0 %v1860_v28  ;;  %v2008_v28 = vpack.c.bf16 %v231_v22, %v227_v21  ;;  %v258_v21 = vld [vmem:[#allocation2 + $0x4d0] sm:$0xff]  ;;  %v279_v42 = vld [vmem:[#allocation2 + $0x578] sm:$0xff]  ;;  %v544_v10 = vld [vmem:[#allocation2 + $0xdc0] sm:$0xff] }
  0xdb   :  { %1991 = vmatpush1.bf16.msra.mxu1 %v1990_v36  ;;  %v235_v36 = vld [vmem:[#allocation2 + $0x418] sm:$0xff]  ;;  %v262_v22 = vld [vmem:[#allocation2 + $0x4f0] sm:$0xff]  ;;  %v2032_v49 = vpack.c.bf16 %v279_v42, %v275_v40  ;;  %v564_v42 = vld [vmem:[#allocation2 + $0xe60] sm:$0xff] }
  0xdc   :  { %1993 = vmatprep.subr.bf16.mxu1 %v1992_v39  ;;  %v657_v39 = vcombine.high %v2694_v38, %v2694_v38  ;;  %v497_v38 = vld [vmem:[#allocation2 + $0xc48] sm:$0xff]  ;;  %v2026_v30 = vpack.c.bf16 %v262_v22, %v258_v21  ;;  %v291_v4 = vld [vmem:[#allocation2 + $0x5d8] sm:$0xff]  ;;  %v552_v22 = vld [vmem:[#allocation2 + $0xe00] sm:$0xff] }
  0xdd   :  { %1863 = vmatpush1.bf16.msra.mxu0 %v1862_v37  ;;  %v239_v37 = vld [vmem:[#allocation2 + $0x438] sm:$0xff]  ;;  %v1888_v0 = vpack.c.bf16 %v501_v56, %v497_v38 }
  0xde   :  { %1865 = vmatprep.subr.bf16.mxu0 %v1864_v45  ;;  %v1882_v45 = vpack.c.bf16 %v484_v35, %v480_v29  ;;  %v2012_v46 = vpack.c.bf16 %v239_v37, %v235_v36  ;;  %v2708_v55 = vrot.slane %v657_v39, %v2667_v11  ;;  %v525_v29 = vld [vmem:[#allocation2 + $0xd28] sm:$0xff]  ;;  %v266_v35 = vld [vmem:[#allocation2 + $0x510] sm:$0xff]  ;;  %v524_v39 = vld [vmem:[#allocation2 + $0xd20] sm:$0xff] }
  0xdf   :  { %1995 = vmatpush1.bf16.msra.mxu1 %v1994_v52  ;;  %v492_v52 = vld [vmem:[#allocation2 + $0xc20] sm:$0xff]  ;;  %v270_v36 = vld [vmem:[#allocation2 + $0x530] sm:$0xff]  ;;  %v283_v38 = vld [vmem:[#allocation2 + $0x598] sm:$0xff] }
  0xe0   :  { %1997 = vmatprep.subr.bf16.mxu1 %v1996_v54  ;;  %v247_v54 = vld [vmem:[#allocation2 + $0x478] sm:$0xff]  ;;  %v2712_v11 = vcombine.high %v2708_v55, %v2708_v55 }
  0xe1   :  { %1867 = vmatpush1.bf16.msra.mxu0 %v1866_v53  ;;  %v243_v53 = vld [vmem:[#allocation2 + $0x458] sm:$0xff] }
  0xe2   :  { %1869 = vmatprep.subr.bf16.mxu0 %v1868_v58  ;;  %v1886_v58 = vpack.c.bf16 %v492_v52, %v488_v47  ;;  %v2016_v59 = vpack.c.bf16 %v247_v54, %v243_v53  ;;  %v278_v52 = vld [vmem:[#allocation2 + $0x570] sm:$0xff]  ;;  %v532_v54 = vld [vmem:[#allocation2 + $0xd60] sm:$0xff]  ;;  %v287_v56 = vld [vmem:[#allocation2 + $0x5b8] sm:$0xff] }
  0xe3   :  { %1999 = vmatpush1.bf16.msra.mxu1 %v1998_v1  ;;  %v500_v1 = vld [vmem:[#allocation2 + $0xc60] sm:$0xff]  ;;  %v2036_v62 = vpack.c.bf16 %v287_v56, %v283_v38  ;;  %v295_v33 = vld [vmem:[#allocation2 + $0x5f8] sm:$0xff] }
  0xe4   :  { %2001 = vmatprep.subr.bf16.mxu1 %v2000_v3  ;;  %v255_v3 = vld [vmem:[#allocation2 + $0x4b8] sm:$0xff]  ;;  %v2040_v9 = vpack.c.bf16 %v295_v33, %v291_v4  ;;  %v572_v56 = vld [vmem:[#allocation2 + $0xea0] sm:$0xff] }
  0xe5   :  { %1871 = vmatpush1.bf16.msra.mxu0 %v1870_v2  ;;  %v251_v2 = vld [vmem:[#allocation2 + $0x498] sm:$0xff]  ;;  %v580_v33 = vld [vmem:[#allocation2 + $0xee0] sm:$0xff] }
  0xe6   :  { %1873 = vmatprep.subr.bf16.mxu0 %v1872_v6  ;;  %v1890_v6 = vpack.c.bf16 %v500_v1, %v496_v60  ;;  %v2020_v7 = vpack.c.bf16 %v255_v3, %v251_v2  ;;  %v1906_v60 = vpack.c.bf16 %v532_v54, %v528_v50  ;;  %v286_v1 = vld [vmem:[#allocation2 + $0x5b0] sm:$0xff]  ;;  %v540_v3 = vld [vmem:[#allocation2 + $0xda0] sm:$0xff] }
  0xe7   :  { %2003 = vmatpush1.bf16.msra.mxu1 %v2002_v13  ;;  %v508_v13 = vld [vmem:[#allocation2 + $0xca0] sm:$0xff]  ;;  %v318_v54 = vld [vmem:[#allocation2 + $0x6b0] sm:$0xff] }
  0xe8   :  { %2005 = vmatprep.subr.bf16.mxu1 %v2004_v15  ;;  %v263_v15 = vld [vmem:[#allocation2 + $0x4f8] sm:$0xff]  ;;  %v1894_v18 = vpack.c.bf16 %v508_v13, %v504_v8  ;;  %v1910_v8 = vpack.c.bf16 %v540_v3, %v536_v63  ;;  %v294_v13 = vld [vmem:[#allocation2 + $0x5f0] sm:$0xff] }
  0xe9   :  { %1875 = vmatpush1.bf16.msra.mxu0 %v1874_v14  ;;  %v259_v14 = vld [vmem:[#allocation2 + $0x4d8] sm:$0xff]  ;;  %v326_v3 = vld [vmem:[#allocation2 + $0x6f0] sm:$0xff] }
  0xea   :  { %1877 = vmatprep.subr.bf16.mxu0 %v1876_v19  ;;  %v2024_v19 = vpack.c.bf16 %v263_v15, %v259_v14  ;;  %v548_v15 = vld [vmem:[#allocation2 + $0xde0] sm:$0xff] }
  0xeb   :  { %2007 = vmatpush1.bf16.msra.mxu1 %v2006_v26  ;;  %v267_v26 = vld [vmem:[#allocation2 + $0x518] sm:$0xff] }
  0xec   :  { %2009 = vmatprep.subr.bf16.mxu1 %v2008_v28  ;;  %v521_v28 = vld [vmem:[#allocation2 + $0xd08] sm:$0xff] }
  0xed   :  { %1879 = vmatpush1.bf16.msra.mxu0 %v1878_v27  ;;  %v271_v27 = vld [vmem:[#allocation2 + $0x538] sm:$0xff]  ;;  %v1900_v37 = vpack.c.bf16 %v525_v29, %v521_v28 }
  0xee   :  { %1881 = vmatprep.subr.bf16.mxu0 %v1880_v32  ;;  %v2028_v31 = vpack.c.bf16 %v271_v27, %v267_v26  ;;  %v520_v32 = vld [vmem:[#allocation2 + $0xd00] sm:$0xff]  ;;  %v307_v28 = vld [vmem:[#allocation2 + $0x658] sm:$0xff] }
  0xef   :  { %2011 = vmatpush1.bf16.msra.mxu1 %v2010_v43  ;;  %v529_v43 = vld [vmem:[#allocation2 + $0xd48] sm:$0xff]  ;;  %v1902_v47 = vpack.c.bf16 %v524_v39, %v520_v32  ;;  %v556_v27 = vld [vmem:[#allocation2 + $0xe20] sm:$0xff]  ;;  %v311_v29 = vld [vmem:[#allocation2 + $0x678] sm:$0xff] }
  0xf0   :  { %2013 = vmatprep.subr.bf16.mxu1 %v2012_v46  ;;  %v2030_v46 = vpack.c.bf16 %v270_v36, %v266_v35  ;;  %v1918_v32 = vpack.c.bf16 %v556_v27, %v552_v22  ;;  %v2048_v35 = vpack.c.bf16 %v311_v29, %v307_v28  ;;  %v560_v36 = vld [vmem:[#allocation2 + $0xe40] sm:$0xff]  ;;  %v310_v39 = vld [vmem:[#allocation2 + $0x670] sm:$0xff] }
  0xf1   :  { %1883 = vmatpush1.bf16.msra.mxu0 %v1882_v45  ;;  %v533_v45 = vld [vmem:[#allocation2 + $0xd68] sm:$0xff]  ;;  %v1922_v50 = vpack.c.bf16 %v564_v42, %v560_v36  ;;  %v342_v27 = vld [vmem:[#allocation2 + $0x770] sm:$0xff]  ;;  %v596_v29 = vld [vmem:[#allocation2 + $0xf60] sm:$0xff] }
  0xf2   :  { %1885 = vmatprep.subr.bf16.mxu0 %v1884_v51  ;;  %1031 = vmatmul.mubr.f32.vlgmr.msra.gmra.mrb[2].mxu1 %v2673_v25  ;;  %v513_v25 = vld [vmem:[#allocation2 + $0xcc8] sm:$0xff]  ;;  %v274_v51 = vld [vmem:[#allocation2 + $0x550] sm:$0xff]  ;;  %v1904_v53 = vpack.c.bf16 %v533_v45, %v529_v43  ;;  %v315_v43 = vld [vmem:[#allocation2 + $0x698] sm:$0xff] }
  0xf3   :  { %2015 = vmatpush1.bf16.msra.mxu1 %v2014_v57  ;;  %1101 = vmatprep.mubr.f32.mxu1 %v2685_v41  ;;  %v1896_v23 = vpack.c.bf16 %v517_v16, %v513_v25  ;;  %v1898_v41 = vpack.c.bf16 %v516_v24, %v512_v20  ;;  %v537_v57 = vld [vmem:[#allocation2 + $0xd88] sm:$0xff]  ;;  %v299_v25 = vld [vmem:[#allocation2 + $0x618] sm:$0xff]  ;;  %v1914_v20 = vpack.c.bf16 %v548_v15, %v544_v10  ;;  %v302_v24 = vld [vmem:[#allocation2 + $0x630] sm:$0xff] }
  0xf4   :  { %889 = vmatmul.mubr.f32.vlgmr.msra.gmra.mrb[0].mxu0 %v2698_v44  ;;  %2017 = vmatprep.subr.bf16.mxu1 %v2016_v59  ;;  %v2034_v59 = vpack.c.bf16 %v278_v52, %v274_v51  ;;  %v303_v16 = vld [vmem:[#allocation2 + $0x638] sm:$0xff]  ;;  %v568_v52 = vld [vmem:[#allocation2 + $0xe80] sm:$0xff]  ;;  %v334_v15 = vld [vmem:[#allocation2 + $0x730] sm:$0xff] }
  0xf5   :  { %1887 = vmatpush1.bf16.msra.mxu0 %v1886_v58  ;;  %959 = vmatprep.mubr.f32.mxu0 %v2712_v11  ;;  %v541_v58 = vld [vmem:[#allocation2 + $0xda8] sm:$0xff]  ;;  %v2044_v21 = vpack.c.bf16 %v303_v16, %v299_v25  ;;  %v319_v45 = vld [vmem:[#allocation2 + $0x6b8] sm:$0xff]  ;;  %v1926_v63 = vpack.c.bf16 %v572_v56, %v568_v52  ;;  %v588_v16 = vld [vmem:[#allocation2 + $0xf20] sm:$0xff] }
  0xf6   :  { %1889 = vmatprep.subr.bf16.mxu0 %v1888_v0  ;;  %v282_v0 = vld [vmem:[#allocation2 + $0x590] sm:$0xff]  ;;  %v1908_v2 = vpack.c.bf16 %v541_v58, %v537_v57  ;;  %v2052_v51 = vpack.c.bf16 %v319_v45, %v315_v43  ;;  %v323_v57 = vld [vmem:[#allocation2 + $0x6d8] sm:$0xff]  ;;  %v604_v45 = vld [vmem:[#allocation2 + $0xfa0] sm:$0xff] }
  0xf7   :  { %2019 = vmatpush1.bf16.msra.mxu1 %v2018_v5  ;;  %v545_v5 = vld [vmem:[#allocation2 + $0xdc8] sm:$0xff]  ;;  %v327_v58 = vld [vmem:[#allocation2 + $0x6f8] sm:$0xff]  ;;  %v350_v42 = vld [vmem:[#allocation2 + $0x7b0] sm:$0xff] }
  0xf8   :  { %2021 = vmatprep.subr.bf16.mxu1 %v2020_v7  ;;  %v2038_v7 = vpack.c.bf16 %v286_v1, %v282_v0  ;;  %v2056_v0 = vpack.c.bf16 %v327_v58, %v323_v57  ;;  %v576_v1 = vld [vmem:[#allocation2 + $0xec0] sm:$0xff]  ;;  %v358_v56 = vld [vmem:[#allocation2 + $0x7f0] sm:$0xff] }
  0xf9   :  { %1891 = vmatpush1.bf16.msra.mxu0 %v1890_v6  ;;  %v549_v6 = vld [vmem:[#allocation2 + $0xde8] sm:$0xff]  ;;  %v1930_v10 = vpack.c.bf16 %v580_v33, %v576_v1  ;;  %v612_v58 = vld [vmem:[#allocation2 + $0xfe0] sm:$0xff]  ;;  %v362_v1 = vld [vmem:[#allocation2 + $0x810] sm:$0xff] }
  0xfa   :  { %1893 = vmatprep.subr.bf16.mxu0 %v1892_v12  ;;  %v290_v12 = vld [vmem:[#allocation2 + $0x5d0] sm:$0xff]  ;;  %v1912_v14 = vpack.c.bf16 %v549_v6, %v545_v5  ;;  %v331_v5 = vld [vmem:[#allocation2 + $0x718] sm:$0xff] }
  0xfb   :  { %2023 = vmatpush1.bf16.msra.mxu1 %v2022_v17  ;;  %v553_v17 = vld [vmem:[#allocation2 + $0xe08] sm:$0xff]  ;;  %v335_v6 = vld [vmem:[#allocation2 + $0x738] sm:$0xff] }
  0xfc   :  { %2025 = vmatprep.subr.bf16.mxu1 %v2024_v19  ;;  %v2042_v19 = vpack.c.bf16 %v294_v13, %v290_v12  ;;  %v2060_v12 = vpack.c.bf16 %v335_v6, %v331_v5  ;;  %v584_v13 = vld [vmem:[#allocation2 + $0xf00] sm:$0xff]  ;;  %v370_v6 = vld [vmem:[#allocation2 + $0x850] sm:$0xff] }
  0xfd   :  { %1895 = vmatpush1.bf16.msra.mxu0 %v1894_v18  ;;  %v557_v18 = vld [vmem:[#allocation2 + $0xe28] sm:$0xff]  ;;  %v1934_v22 = vpack.c.bf16 %v588_v16, %v584_v13 }
  0xfe   :  { %1897 = vmatprep.subr.bf16.mxu0 %v1896_v23  ;;  %v298_v23 = vld [vmem:[#allocation2 + $0x610] sm:$0xff]  ;;  %v1916_v26 = vpack.c.bf16 %v557_v18, %v553_v17  ;;  %v339_v17 = vld [vmem:[#allocation2 + $0x758] sm:$0xff] }
  0xff   :  { %2027 = vmatpush1.bf16.msra.mxu1 %v2026_v30  ;;  %v561_v30 = vld [vmem:[#allocation2 + $0xe48] sm:$0xff]  ;;  %v343_v18 = vld [vmem:[#allocation2 + $0x778] sm:$0xff] }
 0x100   :  { %2029 = vmatprep.subr.bf16.mxu1 %v2028_v31  ;;  %v2046_v31 = vpack.c.bf16 %v302_v24, %v298_v23  ;;  %v2064_v23 = vpack.c.bf16 %v343_v18, %v339_v17  ;;  %v592_v24 = vld [vmem:[#allocation2 + $0xf40] sm:$0xff]  ;;  %v1255_v13 = vld [vmem:[#allocation6 + $0x8] sm:$0xff]  ;;  %v1256_v17 = vld [vmem:[#allocation6 + $0x10] sm:$0xff] }
 0x101   :  { %1899 = vmatpush1.bf16.msra.mxu0 %v1898_v41  ;;  %v565_v41 = vld [vmem:[#allocation2 + $0xe68] sm:$0xff]  ;;  %v1938_v36 = vpack.c.bf16 %v596_v29, %v592_v24 }
 0x102   :  { %1901 = vmatprep.subr.bf16.mxu0 %v1900_v37  ;;  %v306_v37 = vld [vmem:[#allocation2 + $0x650] sm:$0xff]  ;;  %v1920_v40 = vpack.c.bf16 %v565_v41, %v561_v30  ;;  %v347_v30 = vld [vmem:[#allocation2 + $0x798] sm:$0xff] }
 0x103   :  { %2031 = vmatpush1.bf16.msra.mxu1 %v2030_v46  ;;  %v569_v46 = vld [vmem:[#allocation2 + $0xe88] sm:$0xff]  ;;  %v351_v41 = vld [vmem:[#allocation2 + $0x7b8] sm:$0xff] }
 0x104   :  { %2033 = vmatprep.subr.bf16.mxu1 %v2032_v49  ;;  %v2050_v49 = vpack.c.bf16 %v310_v39, %v306_v37  ;;  %v2068_v37 = vpack.c.bf16 %v351_v41, %v347_v30  ;;  %v600_v39 = vld [vmem:[#allocation2 + $0xf80] sm:$0xff]  ;;  %v1259_v18 = vld [vmem:[#allocation6 + $0x28] sm:$0xff] }
 0x105   :  { %1903 = vmatpush1.bf16.msra.mxu0 %v1902_v47  ;;  %v573_v47 = vld [vmem:[#allocation2 + $0xea8] sm:$0xff]  ;;  %v1942_v52 = vpack.c.bf16 %v604_v45, %v600_v39  ;;  %v386_v41 = vld [vmem:[#allocation2 + $0x8d0] sm:$0xff]  ;;  %v1269_v39 = vld [vmem:[#allocation6 + $0x78] sm:$0xff] }
 0x106   :  { %1905 = vmatprep.subr.bf16.mxu0 %v1904_v53  ;;  %v314_v53 = vld [vmem:[#allocation2 + $0x690] sm:$0xff]  ;;  %v1924_v38 = vpack.c.bf16 %v573_v47, %v569_v46  ;;  %v355_v46 = vld [vmem:[#allocation2 + $0x7d8] sm:$0xff] }
 0x107   :  { %2035 = vmatpush1.bf16.msra.mxu1 %v2034_v59  ;;  %v577_v59 = vld [vmem:[#allocation2 + $0xec8] sm:$0xff]  ;;  %v359_v47 = vld [vmem:[#allocation2 + $0x7f8] sm:$0xff] }
 0x108   :  { %2037 = vmatprep.subr.bf16.mxu1 %v2036_v62  ;;  %v2054_v62 = vpack.c.bf16 %v318_v54, %v314_v53  ;;  %v2072_v53 = vpack.c.bf16 %v359_v47, %v355_v46  ;;  %v608_v54 = vld [vmem:[#allocation2 + $0xfc0] sm:$0xff]  ;;  %v1263_v24 = vld [vmem:[#allocation6 + $0x48] sm:$0xff] }
 0x109   :  { %1907 = vmatpush1.bf16.msra.mxu0 %v1906_v60  ;;  %v581_v60 = vld [vmem:[#allocation2 + $0xee8] sm:$0xff]  ;;  %v394_v46 = vld [vmem:[#allocation2 + $0x910] sm:$0xff] }
 0x10a   :  { %1909 = vmatprep.subr.bf16.mxu0 %v1908_v2  ;;  %v322_v2 = vld [vmem:[#allocation2 + $0x6d0] sm:$0xff]  ;;  %v1928_v4 = vpack.c.bf16 %v581_v60, %v577_v59  ;;  %v363_v59 = vld [vmem:[#allocation2 + $0x818] sm:$0xff] }
 0x10b   :  { %2039 = vmatpush1.bf16.msra.mxu1 %v2038_v7  ;;  %v585_v7 = vld [vmem:[#allocation2 + $0xf08] sm:$0xff]  ;;  %v367_v60 = vld [vmem:[#allocation2 + $0x838] sm:$0xff] }
 0x10c   :  { %2041 = vmatprep.subr.bf16.mxu1 %v2040_v9  ;;  %v2058_v9 = vpack.c.bf16 %v326_v3, %v322_v2  ;;  %v366_v2 = vld [vmem:[#allocation2 + $0x830] sm:$0xff]  ;;  %v371_v3 = vld [vmem:[#allocation2 + $0x858] sm:$0xff] }
 0x10d   :  { %1911 = vmatpush1.bf16.msra.mxu0 %v1910_v8  ;;  %v589_v8 = vld [vmem:[#allocation2 + $0xf28] sm:$0xff]  ;;  %v2078_v33 = vpack.c.bf16 %v366_v2, %v362_v1  ;;  %v406_v1 = vld [vmem:[#allocation2 + $0x970] sm:$0xff] }
 0x10e   :  { %1913 = vmatprep.subr.bf16.mxu0 %v1912_v14  ;;  %v330_v14 = vld [vmem:[#allocation2 + $0x710] sm:$0xff]  ;;  %v1932_v25 = vpack.c.bf16 %v589_v8, %v585_v7  ;;  %v379_v8 = vld [vmem:[#allocation2 + $0x898] sm:$0xff] }
 0x10f   :  { %2043 = vmatpush1.bf16.msra.mxu1 %v2042_v19  ;;  %v593_v19 = vld [vmem:[#allocation2 + $0xf48] sm:$0xff]  ;;  %v374_v7 = vld [vmem:[#allocation2 + $0x870] sm:$0xff] }
 0x110   :  { %2045 = vmatprep.subr.bf16.mxu1 %v2044_v21  ;;  %v2062_v21 = vpack.c.bf16 %v334_v15, %v330_v14  ;;  %v1257_v14 = vld [vmem:[#allocation6 + $0x18] sm:$0xff]  ;;  %v1254_v15 = vld [vmem:[#allocation6] sm:$0xff]  ;;  %v1275_v2 = vld [vmem:[#allocation6 + $0xa8] sm:$0xff] }
 0x111   :  { %1915 = vmatpush1.bf16.msra.mxu0 %v1914_v20  ;;  %v597_v20 = vld [vmem:[#allocation2 + $0xf68] sm:$0xff]  ;;  %v2204_v16 = vpack.c.bf16 %v1257_v14, %v1255_v13  ;;  %v414_v13 = vld [vmem:[#allocation2 + $0x9b0] sm:$0xff] }
 0x112   :  { %1917 = vmatprep.subr.bf16.mxu0 %v1916_v26  ;;  %v338_v26 = vld [vmem:[#allocation2 + $0x750] sm:$0xff]  ;;  %v1936_v28 = vpack.c.bf16 %v597_v20, %v593_v19  ;;  %v1261_v19 = vld [vmem:[#allocation6 + $0x38] sm:$0xff] }
 0x113   :  { %2047 = vmatpush1.bf16.msra.mxu1 %v2046_v31  ;;  %v601_v31 = vld [vmem:[#allocation2 + $0xf88] sm:$0xff] }
 0x114   :  { %2049 = vmatprep.subr.bf16.mxu1 %v2048_v35  ;;  %v2066_v35 = vpack.c.bf16 %v342_v27, %v338_v26  ;;  %v387_v26 = vld [vmem:[#allocation2 + $0x8d8] sm:$0xff]  ;;  %v1279_v14 = vld [vmem:[#allocation6 + $0xc8] sm:$0xff] }
 0x115   :  { %1919 = vmatpush1.bf16.msra.mxu0 %v1918_v32  ;;  %v605_v32 = vld [vmem:[#allocation2 + $0xfa8] sm:$0xff]  ;;  %v391_v27 = vld [vmem:[#allocation2 + $0x8f8] sm:$0xff] }
 0x116   :  { %1921 = vmatprep.subr.bf16.mxu0 %v1920_v40  ;;  %v346_v40 = vld [vmem:[#allocation2 + $0x790] sm:$0xff]  ;;  %v1940_v43 = vpack.c.bf16 %v605_v32, %v601_v31  ;;  %v1262_v32 = vld [vmem:[#allocation6 + $0x40] sm:$0xff] }
 0x117   :  { %2051 = vmatpush1.bf16.msra.mxu1 %v2050_v49  ;;  %v609_v49 = vld [vmem:[#allocation2 + $0xfc8] sm:$0xff] }
 0x118   :  { %2053 = vmatprep.subr.bf16.mxu1 %v2052_v51  ;;  %v2070_v51 = vpack.c.bf16 %v350_v42, %v346_v40  ;;  %v395_v40 = vld [vmem:[#allocation2 + $0x918] sm:$0xff] }
 0x119   :  { %1923 = vmatpush1.bf16.msra.mxu0 %v1922_v50  ;;  %v613_v50 = vld [vmem:[#allocation2 + $0xfe8] sm:$0xff]  ;;  %v399_v42 = vld [vmem:[#allocation2 + $0x938] sm:$0xff] }
 0x11a   :  { %1925 = vmatprep.subr.bf16.mxu0 %v1924_v38  ;;  %v354_v38 = vld [vmem:[#allocation2 + $0x7d0] sm:$0xff]  ;;  %v1944_v57 = vpack.c.bf16 %v613_v50, %v609_v49  ;;  %v1266_v49 = vld [vmem:[#allocation6 + $0x60] sm:$0xff] }
 0x11b   :  { %2055 = vmatpush1.bf16.msra.mxu1 %v2054_v62  ;;  %v2074_v62 = vpack.c.bf16 %v358_v56, %v354_v38  ;;  %v1268_v50 = vld [vmem:[#allocation6 + $0x70] sm:$0xff] }
 0x11c   :  { %2057 = vmatprep.subr.bf16.mxu1 %v2056_v0  ;;  %v2076_v0 = vpack.c.bf16 %v367_v60, %v363_v59  ;;  %v403_v38 = vld [vmem:[#allocation2 + $0x958] sm:$0xff]  ;;  %v402_v59 = vld [vmem:[#allocation2 + $0x950] sm:$0xff] }
 0x11d   :  { %1927 = vmatpush1.bf16.msra.mxu0 %v1926_v63  ;;  %v1946_v63 = vpack.c.bf16 %v612_v58, %v608_v54  ;;  %v1273_v54 = vld [vmem:[#allocation6 + $0x98] sm:$0xff] }
 0x11e   :  { %1929 = vmatprep.subr.bf16.mxu0 %v1928_v4  ;;  %v375_v4 = vld [vmem:[#allocation2 + $0x878] sm:$0xff] }
 0x11f   :  { %2059 = vmatpush1.bf16.msra.mxu1 %v2058_v9  ;;  %v2080_v5 = vpack.c.bf16 %v375_v4, %v371_v3  ;;  %v383_v9 = vld [vmem:[#allocation2 + $0x8b8] sm:$0xff] }
 0x120   :  { %2061 = vmatprep.subr.bf16.mxu1 %v2060_v12  ;;  %v382_v12 = vld [vmem:[#allocation2 + $0x8b0] sm:$0xff]  ;;  %v2084_v20 = vpack.c.bf16 %v383_v9, %v379_v8  ;;  %v407_v56 = vld [vmem:[#allocation2 + $0x978] sm:$0xff]  ;;  %v1274_v9 = vld [vmem:[#allocation6 + $0xa0] sm:$0xff] }
 0x121   :  { %1931 = vmatpush1.bf16.msra.mxu0 %v1930_v10  ;;  %v378_v10 = vld [vmem:[#allocation2 + $0x890] sm:$0xff]  ;;  %v1277_v3 = vld [vmem:[#allocation6 + $0xb8] sm:$0xff] }
 0x122   :  { %1933 = vmatprep.subr.bf16.mxu0 %v1932_v25  ;;  %v2082_v25 = vpack.c.bf16 %v374_v7, %v370_v6  ;;  %v2086_v30 = vpack.c.bf16 %v382_v12, %v378_v10  ;;  %v411_v4 = vld [vmem:[#allocation2 + $0x998] sm:$0xff]  ;;  %v2098_v6 = vpack.c.bf16 %v406_v1, %v402_v59  ;;  %v410_v7 = vld [vmem:[#allocation2 + $0x990] sm:$0xff]  ;;  %v2224_v8 = vpack.c.bf16 %v1277_v3, %v1275_v2 }
 0x123   :  { %2063 = vmatpush1.bf16.msra.mxu1 %v2062_v21  ;;  %v2206_v21 = vpack.c.bf16 %v1256_v17, %v1254_v15  ;;  %v1276_v10 = vld [vmem:[#allocation6 + $0xb0] sm:$0xff]  ;;  %v1281_v15 = vld [vmem:[#allocation6 + $0xd8] sm:$0xff]  ;;  %v1295_v2 = vld [vmem:[#allocation6 + $0x148] sm:$0xff] }
 0x124   :  { %2065 = vmatprep.subr.bf16.mxu1 %v2064_v23  ;;  %v1260_v23 = vld [vmem:[#allocation6 + $0x30] sm:$0xff]  ;;  %v2226_v17 = vpack.c.bf16 %v1276_v10, %v1274_v9  ;;  %v1297_v3 = vld [vmem:[#allocation6 + $0x158] sm:$0xff]  ;;  %v1294_v9 = vld [vmem:[#allocation6 + $0x140] sm:$0xff] }
 0x125   :  { %1935 = vmatpush1.bf16.msra.mxu0 %v1934_v22  ;;  %v2208_v22 = vpack.c.bf16 %v1261_v19, %v1259_v18  ;;  %v2102_v18 = vpack.c.bf16 %v414_v13, %v410_v7  ;;  %v418_v19 = vld [vmem:[#allocation2 + $0x9d0] sm:$0xff] }
 0x126   :  { %1937 = vmatprep.subr.bf16.mxu0 %v1936_v28  ;;  %v1265_v28 = vld [vmem:[#allocation6 + $0x58] sm:$0xff]  ;;  %v442_v59 = vld [vmem:[#allocation2 + $0xa90] sm:$0xff] }
 0x127   :  { %2067 = vmatpush1.bf16.msra.mxu1 %v2066_v35  ;;  %v2212_v31 = vpack.c.bf16 %v1265_v28, %v1263_v24  ;;  %v1264_v35 = vld [vmem:[#allocation6 + $0x50] sm:$0xff]  ;;  %v1283_v24 = vld [vmem:[#allocation6 + $0xe8] sm:$0xff] }
 0x128   :  { %2069 = vmatprep.subr.bf16.mxu1 %v2068_v37  ;;  %v1267_v37 = vld [vmem:[#allocation6 + $0x68] sm:$0xff]  ;;  %v431_v28 = vld [vmem:[#allocation2 + $0xa38] sm:$0xff] }
 0x129   :  { %1939 = vmatpush1.bf16.msra.mxu0 %v1938_v36  ;;  %v390_v36 = vld [vmem:[#allocation2 + $0x8f0] sm:$0xff]  ;;  %v2216_v47 = vpack.c.bf16 %v1269_v39, %v1267_v37  ;;  %v1289_v39 = vld [vmem:[#allocation6 + $0x118] sm:$0xff] }
 0x12a   :  { %1941 = vmatprep.subr.bf16.mxu0 %v1940_v43  ;;  %v2214_v43 = vpack.c.bf16 %v1264_v35, %v1262_v32  ;;  %v2090_v45 = vpack.c.bf16 %v390_v36, %v386_v41  ;;  %v426_v41 = vld [vmem:[#allocation2 + $0xa10] sm:$0xff]  ;;  %v1282_v32 = vld [vmem:[#allocation6 + $0xe0] sm:$0xff] }
 0x12b   :  { %2071 = vmatpush1.bf16.msra.mxu1 %v2070_v51  ;;  %v2092_v51 = vpack.c.bf16 %v399_v42, %v395_v40  ;;  %v1284_v35 = vld [vmem:[#allocation6 + $0xf0] sm:$0xff]  ;;  %v1287_v37 = vld [vmem:[#allocation6 + $0x108] sm:$0xff] }
 0x12c   :  { %2073 = vmatprep.subr.bf16.mxu1 %v2072_v53  ;;  %v1271_v53 = vld [vmem:[#allocation6 + $0x88] sm:$0xff]  ;;  %v435_v40 = vld [vmem:[#allocation2 + $0xa58] sm:$0xff] }
 0x12d   :  { %1943 = vmatpush1.bf16.msra.mxu0 %v1942_v52  ;;  %v398_v52 = vld [vmem:[#allocation2 + $0x930] sm:$0xff]  ;;  %v2220_v60 = vpack.c.bf16 %v1273_v54, %v1271_v53  ;;  %v439_v42 = vld [vmem:[#allocation2 + $0xa78] sm:$0xff] }
 0x12e   :  { %1945 = vmatprep.subr.bf16.mxu0 %v1944_v57  ;;  %v2218_v57 = vpack.c.bf16 %v1268_v50, %v1266_v49  ;;  %v2094_v58 = vpack.c.bf16 %v398_v52, %v394_v46  ;;  %v430_v36 = vld [vmem:[#allocation2 + $0xa30] sm:$0xff]  ;;  %v1286_v49 = vld [vmem:[#allocation6 + $0x100] sm:$0xff]  ;;  %v1293_v54 = vld [vmem:[#allocation6 + $0x138] sm:$0xff] }
 0x12f   :  { %2075 = vmatpush1.bf16.msra.mxu1 %v2074_v62  ;;  %v1270_v62 = vld [vmem:[#allocation6 + $0x80] sm:$0xff]  ;;  %v434_v46 = vld [vmem:[#allocation2 + $0xa50] sm:$0xff] }
 0x130   :  { %2077 = vmatprep.subr.bf16.mxu1 %v2076_v0  ;;  %v2096_v0 = vpack.c.bf16 %v407_v56, %v403_v38  ;;  %v1288_v50 = vld [vmem:[#allocation6 + $0x110] sm:$0xff]  ;;  %v1291_v53 = vld [vmem:[#allocation6 + $0x128] sm:$0xff] }
 0x131   :  { %1947 = vmatpush1.bf16.msra.mxu0 %v1946_v63  ;;  %v1272_v63 = vld [vmem:[#allocation6 + $0x90] sm:$0xff] }
 0x132   :  { %1102 = vmatmul.mubr.f32.vlgmr.msra.gmra.mrb[2].mxu1 %v2680_v34  ;;  %v1258_v34 = vld [vmem:[#allocation6 + $0x20] sm:$0xff]  ;;  %2205 = vmatprep.subr.bf16.mxu0 %v2204_v16  ;;  %v423_v16 = vld [vmem:[#allocation2 + $0x9f8] sm:$0xff]  ;;  %v438_v52 = vld [vmem:[#allocation2 + $0xa70] sm:$0xff] }
 0x133   :  { %2079 = vmatpush1.bf16.msra.mxu1 %v2078_v33  ;;  %1172 = vmatprep.mubr.f32.mxu1 %v2702_v48  ;;  %v2210_v29 = vpack.c.bf16 %v1260_v23, %v1258_v34  ;;  %v2088_v48 = vpack.c.bf16 %v391_v27, %v387_v26  ;;  %v415_v33 = vld [vmem:[#allocation2 + $0x9b8] sm:$0xff]  ;;  %v422_v23 = vld [vmem:[#allocation2 + $0x9f0] sm:$0xff] }
 0x134   :  { %960 = vmatmul.mubr.f32.vlgmr.msra.gmra.mrb[0].mxu0 %v2708_v55  ;;  %2081 = vmatprep.subr.bf16.mxu1 %v2080_v5  ;;  %v2222_v5 = vpack.c.bf16 %v1272_v63, %v1270_v62  ;;  %v2100_v12 = vpack.c.bf16 %v415_v33, %v411_v4  ;;  %v1285_v26 = vld [vmem:[#allocation6 + $0xf8] sm:$0xff]  ;;  %v1290_v62 = vld [vmem:[#allocation6 + $0x120] sm:$0xff]  ;;  %v1292_v63 = vld [vmem:[#allocation6 + $0x130] sm:$0xff] }
 0x135   :  { %2207 = vmatpush1.bf16.msra.mxu0 %v2206_v21  ;;  %v1278_v21 = vld [vmem:[#allocation6 + $0xc0] sm:$0xff]  ;;  %v427_v27 = vld [vmem:[#allocation2 + $0xa18] sm:$0xff]  ;;  %v446_v1 = vld [vmem:[#allocation2 + $0xab0] sm:$0xff] }
 0x136   :  { %2209 = vmatprep.subr.bf16.mxu0 %v2208_v22  ;;  %v1280_v22 = vld [vmem:[#allocation6 + $0xd0] sm:$0xff] }
 0x137   :  { %2083 = vmatpush1.bf16.msra.mxu1 %v2082_v25  ;;  %v419_v25 = vld [vmem:[#allocation2 + $0x9d8] sm:$0xff]  ;;  %v450_v7 = vld [vmem:[#allocation2 + $0xad0] sm:$0xff] }
 0x138   :  { %2085 = vmatprep.subr.bf16.mxu1 %v2084_v20  ;;  %v2228_v20 = vpack.c.bf16 %v1281_v15, %v1279_v14  ;;  %v2104_v34 = vpack.c.bf16 %v423_v16, %v419_v25  ;;  %v443_v38 = vld [vmem:[#allocation2 + $0xa98] sm:$0xff]  ;;  %v454_v13 = vld [vmem:[#allocation2 + $0xaf0] sm:$0xff] }
 0x139   :  { %2211 = vmatpush1.bf16.msra.mxu0 %v2210_v29  ;;  %v2230_v29 = vpack.c.bf16 %v1280_v22, %v1278_v21  ;;  %v447_v56 = vld [vmem:[#allocation2 + $0xab8] sm:$0xff]  ;;  %v1299_v14 = vld [vmem:[#allocation6 + $0x168] sm:$0xff]  ;;  %v1298_v21 = vld [vmem:[#allocation6 + $0x160] sm:$0xff] }
 0x13a   :  { %2213 = vmatprep.subr.bf16.mxu0 %v2212_v31  ;;  %v2232_v31 = vpack.c.bf16 %v1285_v26, %v1283_v24  ;;  %v451_v4 = vld [vmem:[#allocation2 + $0xad8] sm:$0xff]  ;;  %v1303_v24 = vld [vmem:[#allocation6 + $0x188] sm:$0xff] }
 0x13b   :  { %2087 = vmatpush1.bf16.msra.mxu1 %v2086_v30  ;;  %v2106_v30 = vpack.c.bf16 %v422_v23, %v418_v19  ;;  %v455_v33 = vld [vmem:[#allocation2 + $0xaf8] sm:$0xff]  ;;  %v458_v19 = vld [vmem:[#allocation2 + $0xb10] sm:$0xff] }
 0x13c   :  { %2089 = vmatprep.subr.bf16.mxu1 %v2088_v48  ;;  %v2108_v48 = vpack.c.bf16 %v431_v28, %v427_v27  ;;  %v1296_v10 = vld [vmem:[#allocation6 + $0x150] sm:$0xff]  ;;  %v1301_v15 = vld [vmem:[#allocation6 + $0x178] sm:$0xff] }
 0x13d   :  { %2215 = vmatpush1.bf16.msra.mxu0 %v2214_v43  ;;  %v2234_v43 = vpack.c.bf16 %v1284_v35, %v1282_v32  ;;  %v459_v25 = vld [vmem:[#allocation2 + $0xb18] sm:$0xff]  ;;  %v462_v23 = vld [vmem:[#allocation2 + $0xb30] sm:$0xff]  ;;  %v1302_v32 = vld [vmem:[#allocation6 + $0x180] sm:$0xff] }
 0x13e   :  { %2217 = vmatprep.subr.bf16.mxu0 %v2216_v47  ;;  %v2236_v47 = vpack.c.bf16 %v1289_v39, %v1287_v37  ;;  %v463_v16 = vld [vmem:[#allocation2 + $0xb38] sm:$0xff]  ;;  %v1307_v37 = vld [vmem:[#allocation6 + $0x1a8] sm:$0xff] }
 0x13f   :  { %2091 = vmatpush1.bf16.msra.mxu1 %v2090_v45  ;;  %v2110_v45 = vpack.c.bf16 %v430_v36, %v426_v41  ;;  %v1300_v22 = vld [vmem:[#allocation6 + $0x170] sm:$0xff]  ;;  %v1305_v26 = vld [vmem:[#allocation6 + $0x198] sm:$0xff] }
 0x140   :  { %2093 = vmatprep.subr.bf16.mxu1 %v2092_v51  ;;  %v2112_v51 = vpack.c.bf16 %v439_v42, %v435_v40  ;;  %v467_v27 = vld [vmem:[#allocation2 + $0xb58] sm:$0xff]  ;;  %v466_v41 = vld [vmem:[#allocation2 + $0xb50] sm:$0xff] }
 0x141   :  { %2219 = vmatpush1.bf16.msra.mxu0 %v2218_v57  ;;  %v2238_v57 = vpack.c.bf16 %v1288_v50, %v1286_v49  ;;  %v471_v28 = vld [vmem:[#allocation2 + $0xb78] sm:$0xff]  ;;  %v470_v36 = vld [vmem:[#allocation2 + $0xb70] sm:$0xff]  ;;  %v1306_v49 = vld [vmem:[#allocation6 + $0x1a0] sm:$0xff] }
 0x142   :  { %2221 = vmatprep.subr.bf16.mxu0 %v2220_v60  ;;  %v2240_v60 = vpack.c.bf16 %v1293_v54, %v1291_v53  ;;  %v1304_v35 = vld [vmem:[#allocation6 + $0x190] sm:$0xff]  ;;  %v1309_v39 = vld [vmem:[#allocation6 + $0x1b8] sm:$0xff]  ;;  %v1311_v53 = vld [vmem:[#allocation6 + $0x1c8] sm:$0xff] }
 0x143   :  { %2095 = vmatpush1.bf16.msra.mxu1 %v2094_v58  ;;  %v2114_v58 = vpack.c.bf16 %v438_v52, %v434_v46  ;;  %v475_v40 = vld [vmem:[#allocation2 + $0xb98] sm:$0xff]  ;;  %v474_v46 = vld [vmem:[#allocation2 + $0xb90] sm:$0xff] }
 0x144   :  { %2097 = vmatprep.subr.bf16.mxu1 %v2096_v0  ;;  %v2116_v0 = vpack.c.bf16 %v447_v56, %v443_v38  ;;  %v479_v42 = vld [vmem:[#allocation2 + $0xbb8] sm:$0xff]  ;;  %v478_v52 = vld [vmem:[#allocation2 + $0xbb0] sm:$0xff] }
 0x145   :  { %2223 = vmatpush1.bf16.msra.mxu0 %v2222_v5  ;;  %v2242_v5 = vpack.c.bf16 %v1292_v63, %v1290_v62  ;;  %v1308_v50 = vld [vmem:[#allocation6 + $0x1b0] sm:$0xff]  ;;  %v1313_v54 = vld [vmem:[#allocation6 + $0x1d8] sm:$0xff] }
 0x146   :  { %2225 = vmatprep.subr.bf16.mxu0 %v2224_v8  ;;  %v2244_v8 = vpack.c.bf16 %v1297_v3, %v1295_v2  ;;  %v483_v38 = vld [vmem:[#allocation2 + $0xbd8] sm:$0xff]  ;;  %v482_v62 = vld [vmem:[#allocation2 + $0xbd0] sm:$0xff] }
 0x147   :  { %2099 = vmatpush1.bf16.msra.mxu1 %v2098_v6  ;;  %v2118_v6 = vpack.c.bf16 %v446_v1, %v442_v59  ;;  %v487_v56 = vld [vmem:[#allocation2 + $0xbf8] sm:$0xff]  ;;  %v2260_v59 = vpack.c.bf16 %v1313_v54, %v1311_v53  ;;  %v486_v63 = vld [vmem:[#allocation2 + $0xbf0] sm:$0xff]  ;;  %v1314_v54 = vld [vmem:[#allocation6 + $0x1e0] sm:$0xff] }
 0x148   :  { %2101 = vmatprep.subr.bf16.mxu1 %v2100_v12  ;;  %v2120_v12 = vpack.c.bf16 %v455_v33, %v451_v4  ;;  %v495_v1 = vld [vmem:[#allocation2 + $0xc38] sm:$0xff]  ;;  %v2138_v2 = vpack.c.bf16 %v486_v63, %v482_v62  ;;  %v490_v4 = vld [vmem:[#allocation2 + $0xc10] sm:$0xff] }
 0x149   :  { %2227 = vmatpush1.bf16.msra.mxu0 %v2226_v17  ;;  %v2246_v17 = vpack.c.bf16 %v1296_v10, %v1294_v9  ;;  %v494_v33 = vld [vmem:[#allocation2 + $0xc30] sm:$0xff]  ;;  %v559_v62 = vld [vmem:[#allocation2 + $0xe38] sm:$0xff] }
 0x14a   :  { %2229 = vmatprep.subr.bf16.mxu0 %v2228_v20  ;;  %v2248_v20 = vpack.c.bf16 %v1301_v15, %v1299_v14  ;;  %v498_v9 = vld [vmem:[#allocation2 + $0xc50] sm:$0xff] }
 0x14b   :  { %2103 = vmatpush1.bf16.msra.mxu1 %v2102_v18  ;;  %v2122_v18 = vpack.c.bf16 %v454_v13, %v450_v7  ;;  %v2142_v7 = vpack.c.bf16 %v494_v33, %v490_v4  ;;  %v502_v10 = vld [vmem:[#allocation2 + $0xc70] sm:$0xff]  ;;  %v511_v13 = vld [vmem:[#allocation2 + $0xcb8] sm:$0xff] }
 0x14c   :  { %2105 = vmatprep.subr.bf16.mxu1 %v2104_v34  ;;  %v2124_v34 = vpack.c.bf16 %v463_v16, %v459_v25  ;;  %v2146_v14 = vpack.c.bf16 %v502_v10, %v498_v9  ;;  %v506_v25 = vld [vmem:[#allocation2 + $0xc90] sm:$0xff]  ;;  %v567_v4 = vld [vmem:[#allocation2 + $0xe78] sm:$0xff] }
 0x14d   :  { %2231 = vmatpush1.bf16.msra.mxu0 %v2230_v29  ;;  %v2250_v29 = vpack.c.bf16 %v1300_v22, %v1298_v21  ;;  %v510_v16 = vld [vmem:[#allocation2 + $0xcb0] sm:$0xff] }
 0x14e   :  { %2233 = vmatprep.subr.bf16.mxu0 %v2232_v31  ;;  %v2252_v31 = vpack.c.bf16 %v1305_v26, %v1303_v24  ;;  %v514_v21 = vld [vmem:[#allocation2 + $0xcd0] sm:$0xff] }
 0x14f   :  { %2107 = vmatpush1.bf16.msra.mxu1 %v2106_v30  ;;  %v2126_v30 = vpack.c.bf16 %v462_v23, %v458_v19  ;;  %v2150_v19 = vpack.c.bf16 %v510_v16, %v506_v25  ;;  %v518_v22 = vld [vmem:[#allocation2 + $0xcf0] sm:$0xff]  ;;  %v527_v23 = vld [vmem:[#allocation2 + $0xd38] sm:$0xff] }
 0x150   :  { %2109 = vmatprep.subr.bf16.mxu1 %v2108_v48  ;;  %v2128_v48 = vpack.c.bf16 %v471_v28, %v467_v27  ;;  %v522_v26 = vld [vmem:[#allocation2 + $0xd10] sm:$0xff]  ;;  %v531_v27 = vld [vmem:[#allocation2 + $0xd58] sm:$0xff] }
 0x151   :  { %2235 = vmatpush1.bf16.msra.mxu0 %v2234_v43  ;;  %v2254_v43 = vpack.c.bf16 %v1304_v35, %v1302_v32  ;;  %v535_v28 = vld [vmem:[#allocation2 + $0xd78] sm:$0xff]  ;;  %v1319_v33 = vld [vmem:[#allocation6 + $0x208] sm:$0xff] }
 0x152   :  { %2237 = vmatprep.subr.bf16.mxu0 %v2236_v47  ;;  %v2256_v47 = vpack.c.bf16 %v1309_v39, %v1307_v37  ;;  %v539_v32 = vld [vmem:[#allocation2 + $0xd98] sm:$0xff]  ;;  %v562_v9 = vld [vmem:[#allocation2 + $0xe50] sm:$0xff] }
 0x153   :  { %2111 = vmatpush1.bf16.msra.mxu1 %v2110_v45  ;;  %v2130_v45 = vpack.c.bf16 %v470_v36, %v466_v41  ;;  %v530_v41 = vld [vmem:[#allocation2 + $0xd50] sm:$0xff]  ;;  %v543_v35 = vld [vmem:[#allocation2 + $0xdb8] sm:$0xff]  ;;  %v1310_v36 = vld [vmem:[#allocation6 + $0x1c0] sm:$0xff] }
 0x154   :  { %2113 = vmatprep.subr.bf16.mxu1 %v2112_v51  ;;  %v2132_v51 = vpack.c.bf16 %v479_v42, %v475_v40  ;;  %v1312_v37 = vld [vmem:[#allocation6 + $0x1d0] sm:$0xff]  ;;  %v2164_v39 = vpack.c.bf16 %v543_v35, %v539_v32 }
 0x155   :  { %2239 = vmatpush1.bf16.msra.mxu0 %v2238_v57  ;;  %v2258_v57 = vpack.c.bf16 %v1308_v50, %v1306_v49  ;;  %v538_v40 = vld [vmem:[#allocation2 + $0xd90] sm:$0xff]  ;;  %v603_v32 = vld [vmem:[#allocation2 + $0xf98] sm:$0xff] }
 0x156   :  { %2241 = vmatprep.subr.bf16.mxu0 %v2240_v60  ;;  %v2136_v60 = vpack.c.bf16 %v487_v56, %v483_v38  ;;  %v542_v42 = vld [vmem:[#allocation2 + $0xdb0] sm:$0xff]  ;;  %v607_v35 = vld [vmem:[#allocation2 + $0xfb8] sm:$0xff] }
 0x157   :  { %2115 = vmatpush1.bf16.msra.mxu1 %v2114_v58  ;;  %v2134_v58 = vpack.c.bf16 %v478_v52, %v474_v46  ;;  %v547_v46 = vld [vmem:[#allocation2 + $0xdd8] sm:$0xff]  ;;  %v1315_v50 = vld [vmem:[#allocation6 + $0x1e8] sm:$0xff]  ;;  %v2166_v52 = vpack.c.bf16 %v542_v42, %v538_v40 }
 0x158   :  { %2117 = vmatprep.subr.bf16.mxu1 %v2116_v0  ;;  %v491_v0 = vld [vmem:[#allocation2 + $0xc18] sm:$0xff]  ;;  %v566_v10 = vld [vmem:[#allocation2 + $0xe70] sm:$0xff] }
 0x159   :  { %2243 = vmatpush1.bf16.msra.mxu0 %v2242_v5  ;;  %v2140_v3 = vpack.c.bf16 %v495_v1, %v491_v0  ;;  %v499_v5 = vld [vmem:[#allocation2 + $0xc58] sm:$0xff]  ;;  %v554_v1 = vld [vmem:[#allocation2 + $0xe10] sm:$0xff] }
 0x15a   :  { %2245 = vmatprep.subr.bf16.mxu0 %v2244_v8  ;;  %v1316_v38 = vld [vmem:[#allocation6 + $0x1f0] sm:$0xff] }
 0x15b   :  { %2119 = vmatpush1.bf16.msra.mxu1 %v2118_v6  ;;  %v503_v6 = vld [vmem:[#allocation2 + $0xc78] sm:$0xff]  ;;  %v570_v25 = vld [vmem:[#allocation2 + $0xe90] sm:$0xff] }
 0x15c   :  { %2121 = vmatprep.subr.bf16.mxu1 %v2120_v12  ;;  %v2144_v8 = vpack.c.bf16 %v503_v6, %v499_v5  ;;  %v507_v12 = vld [vmem:[#allocation2 + $0xc98] sm:$0xff]  ;;  %v574_v16 = vld [vmem:[#allocation2 + $0xeb0] sm:$0xff] }
 0x15d   :  { %2247 = vmatpush1.bf16.msra.mxu0 %v2246_v17  ;;  %v2148_v15 = vpack.c.bf16 %v511_v13, %v507_v12  ;;  %v515_v17 = vld [vmem:[#allocation2 + $0xcd8] sm:$0xff] }
 0x15e   :  { %2249 = vmatprep.subr.bf16.mxu0 %v2248_v20  ;;  %v1321_v5 = vld [vmem:[#allocation6 + $0x218] sm:$0xff] }
 0x15f   :  { %2123 = vmatpush1.bf16.msra.mxu1 %v2122_v18  ;;  %v519_v18 = vld [vmem:[#allocation2 + $0xcf8] sm:$0xff]  ;;  %v2268_v6 = vpack.c.bf16 %v1321_v5, %v1319_v33  ;;  %v1322_v33 = vld [vmem:[#allocation6 + $0x220] sm:$0xff] }
 0x160   :  { %2125 = vmatprep.subr.bf16.mxu1 %v2124_v34  ;;  %v2152_v20 = vpack.c.bf16 %v519_v18, %v515_v17  ;;  %v523_v34 = vld [vmem:[#allocation2 + $0xd18] sm:$0xff] }
 0x161   :  { %2251 = vmatpush1.bf16.msra.mxu0 %v2250_v29  ;;  %v2156_v24 = vpack.c.bf16 %v527_v23, %v523_v34  ;;  %v571_v12 = vld [vmem:[#allocation2 + $0xe98] sm:$0xff] }
 0x162   :  { %2253 = vmatprep.subr.bf16.mxu0 %v2252_v31  ;;  %v534_v31 = vld [vmem:[#allocation2 + $0xd70] sm:$0xff]  ;;  %v575_v13 = vld [vmem:[#allocation2 + $0xeb8] sm:$0xff] }
 0x163   :  { %2127 = vmatpush1.bf16.msra.mxu1 %v2126_v30  ;;  %v2160_v30 = vpack.c.bf16 %v535_v28, %v531_v27  ;;  %v579_v17 = vld [vmem:[#allocation2 + $0xed8] sm:$0xff] }
 0x164   :  { %2129 = vmatprep.subr.bf16.mxu1 %v2128_v48  ;;  %v2162_v48 = vpack.c.bf16 %v534_v31, %v530_v41  ;;  %v583_v18 = vld [vmem:[#allocation2 + $0xef8] sm:$0xff]  ;;  %v594_v41 = vld [vmem:[#allocation2 + $0xf50] sm:$0xff] }
 0x165   :  { %2255 = vmatpush1.bf16.msra.mxu0 %v2254_v43  ;;  %v2262_v43 = vpack.c.bf16 %v1312_v37, %v1310_v36  ;;  %v587_v34 = vld [vmem:[#allocation2 + $0xf18] sm:$0xff]  ;;  %v598_v31 = vld [vmem:[#allocation2 + $0xf70] sm:$0xff]  ;;  %v2196_v36 = vpack.c.bf16 %v607_v35, %v603_v32  ;;  %v1330_v32 = vld [vmem:[#allocation6 + $0x260] sm:$0xff] }
 0x166   :  { %2257 = vmatprep.subr.bf16.mxu0 %v2256_v47  ;;  %v551_v47 = vld [vmem:[#allocation2 + $0xdf8] sm:$0xff]  ;;  %v602_v37 = vld [vmem:[#allocation2 + $0xf90] sm:$0xff] }
 0x167   :  { %2131 = vmatpush1.bf16.msra.mxu1 %v2130_v45  ;;  %v2168_v56 = vpack.c.bf16 %v551_v47, %v547_v46  ;;  %v591_v23 = vld [vmem:[#allocation2 + $0xf38] sm:$0xff]  ;;  %v610_v47 = vld [vmem:[#allocation2 + $0xfd0] sm:$0xff] }
 0x168   :  { %2133 = vmatprep.subr.bf16.mxu1 %v2132_v51  ;;  %v1317_v51 = vld [vmem:[#allocation6 + $0x1f8] sm:$0xff]  ;;  %v1332_v35 = vld [vmem:[#allocation6 + $0x270] sm:$0xff] }
 0x169   :  { %2259 = vmatpush1.bf16.msra.mxu0 %v2258_v57  ;;  %v2264_v53 = vpack.c.bf16 %v1317_v51, %v1315_v50  ;;  %v546_v57 = vld [vmem:[#allocation2 + $0xdd0] sm:$0xff]  ;;  %v595_v27 = vld [vmem:[#allocation2 + $0xf58] sm:$0xff] }
 0x16a   :  { %2261 = vmatprep.subr.bf16.mxu0 %v2260_v59  ;;  %v2266_v59 = vpack.c.bf16 %v1316_v38, %v1314_v54  ;;  %v599_v28 = vld [vmem:[#allocation2 + $0xf78] sm:$0xff]  ;;  %v614_v50 = vld [vmem:[#allocation2 + $0xff0] sm:$0xff]  ;;  %v624_v54 = vsub.s32 1, %v2664_v61 }
 0x16b   :  { %2135 = vmatpush1.bf16.msra.mxu1 %v2134_v58  ;;  %v550_v58 = vld [vmem:[#allocation2 + $0xdf0] sm:$0xff]  ;;  %v611_v40 = vld [vmem:[#allocation2 + $0xfd8] sm:$0xff]  ;;  %v2202_v51 = vpack.c.bf16 %v614_v50, %v610_v47 }
 0x16c   :  { %2137 = vmatprep.subr.bf16.mxu1 %v2136_v60  ;;  %v555_v60 = vld [vmem:[#allocation2 + $0xe18] sm:$0xff]  ;;  %v2170_v63 = vpack.c.bf16 %v550_v58, %v546_v57  ;;  %v1563_v47 = vld [vmem:[#allocation9 + $0xc8] sm:$0xff] }
 0x16d   :  { %2263 = vmatpush1.bf16.msra.mxu0 %v2262_v43  ;;  %v2172_v0 = vpack.c.bf16 %v559_v62, %v555_v60  ;;  %v615_v42 = vld [vmem:[#allocation2 + $0xff8] sm:$0xff]  ;;  %v1318_v62 = vld [vmem:[#allocation6 + $0x200] sm:$0xff] }
 0x16e   :  { %2265 = vmatprep.subr.bf16.mxu0 %v2264_v53  ;;  %v2200_v46 = vpack.c.bf16 %v615_v42, %v611_v40  ;;  %v2729_v53 = vld [vmem:[#allocation4] sm:$0xf]  ;;  %v1544_v40 = vld [vmem:[#allocation9 + $0x30] sm:$0xff] }
 0x16f   :  { %2139 = vmatpush1.bf16.msra.mxu1 %v2138_v2  ;;  %v558_v2 = vld [vmem:[#allocation2 + $0xe30] sm:$0xff]  ;;  %v1545_v42 = vld [vmem:[#allocation9 + $0x38] sm:$0xff] }
 0x170   :  { %2141 = vmatprep.subr.bf16.mxu1 %v2140_v3  ;;  %v563_v3 = vld [vmem:[#allocation2 + $0xe58] sm:$0xff] }
 0x171   :  { %2267 = vmatpush1.bf16.msra.mxu0 %v2266_v59 }
 0x172   :  { %1173 = vmatmul.mubr.f32.vlgmr.msra.gmra.mrb[2].mxu1 %v2698_v44  ;;  %v2154_v44 = vpack.c.bf16 %v518_v22, %v514_v21  ;;  %2269 = vmatprep.subr.bf16.mxu0 %v2268_v6  ;;  %v578_v21 = vld [vmem:[#allocation2 + $0xed0] sm:$0xff] }
 0x173   :  { %2143 = vmatpush1.bf16.msra.mxu1 %v2142_v7  ;;  %1243 = vmatprep.mubr.f32.mxu1 %v2712_v11  ;;  %v526_v11 = vld [vmem:[#allocation2 + $0xd30] sm:$0xff]  ;;  %v2174_v7 = vpack.c.bf16 %v558_v2, %v554_v1  ;;  %v1325_v2 = vld [vmem:[#allocation6 + $0x238] sm:$0xff] }
 0x174   :  { %2145 = vmatprep.subr.bf16.mxu1 %v2144_v8  ;;  %v2158_v29 = vpack.c.bf16 %v526_v11, %v522_v26  ;;  %v2176_v8 = vpack.c.bf16 %v567_v4, %v563_v3  ;;  %v582_v22 = vld [vmem:[#allocation2 + $0xef0] sm:$0xff] }
 0x175   :  { %v586_v26 = vld [vmem:[#allocation2 + $0xf10] sm:$0xff] }
 0x176   :  { %v590_v11 = vld [vmem:[#allocation2 + $0xf30] sm:$0xff] }
 0x177   :  { %2147 = vmatpush1.bf16.msra.mxu1 %v2146_v14  ;;  %v2178_v14 = vpack.c.bf16 %v566_v10, %v562_v9  ;;  %v1323_v1 = vld [vmem:[#allocation6 + $0x228] sm:$0xff]  ;;  %v1329_v9 = vld [vmem:[#allocation6 + $0x258] sm:$0xff] }
 0x178   :  { %2149 = vmatprep.subr.bf16.mxu1 %v2148_v15  ;;  %v2180_v15 = vpack.c.bf16 %v575_v13, %v571_v12  ;;  %v2272_v6 = vpack.c.bf16 %v1325_v2, %v1323_v1  ;;  %v1555_v10 = vld [vmem:[#allocation9 + $0x88] sm:$0xff]  ;;  %v1338_v2 = vld [vmem:[#allocation6 + $0x2a0] sm:$0xff] }
 0x179   :  { %v1539_v13 = vld [vmem:[#allocation9 + $0x8] sm:$0xff] }
 0x17b   :  { %2151 = vmatpush1.bf16.msra.mxu1 %v2150_v19  ;;  %v2182_v19 = vpack.c.bf16 %v574_v16, %v570_v25 }
 0x17c   :  { %2153 = vmatprep.subr.bf16.mxu1 %v2152_v20  ;;  %v2184_v20 = vpack.c.bf16 %v583_v18, %v579_v17  ;;  %v1540_v18 = vld [vmem:[#allocation9 + $0x10] sm:$0xff] }
 0x17f   :  { %2155 = vmatpush1.bf16.msra.mxu1 %v2154_v44  ;;  %v2186_v44 = vpack.c.bf16 %v582_v22, %v578_v21  ;;  %v1326_v22 = vld [vmem:[#allocation6 + $0x240] sm:$0xff] }
 0x180   :  { %2157 = vmatprep.subr.bf16.mxu1 %v2156_v24  ;;  %v2188_v24 = vpack.c.bf16 %v591_v23, %v587_v34  ;;  %v1328_v34 = vld [vmem:[#allocation6 + $0x250] sm:$0xff] }
 0x181   :  { %v1559_v23 = vld [vmem:[#allocation9 + $0xa8] sm:$0xff] }
 0x183   :  { %2159 = vmatpush1.bf16.msra.mxu1 %v2158_v29  ;;  %v2190_v29 = vpack.c.bf16 %v590_v11, %v586_v26 }
 0x184   :  { %2161 = vmatprep.subr.bf16.mxu1 %v2160_v30  ;;  %v2192_v30 = vpack.c.bf16 %v599_v28, %v595_v27  ;;  %v1542_v27 = vld [vmem:[#allocation9 + $0x20] sm:$0xff]  ;;  %v1543_v28 = vld [vmem:[#allocation9 + $0x28] sm:$0xff] }
 0x185   :  { %v2723_v45 = vpop.f32.mrb[0].mxu1 }
 0x186   :  { %v2725_v49 = vpop.f32.mrb[1].mxu1 }
 0x187   :  { %2163 = vmatpush1.bf16.msra.mxu1 %v2162_v48  ;;  %v2194_v48 = vpack.c.bf16 %v598_v31, %v594_v41  ;;  %v1561_v41 = vld [vmem:[#allocation9 + $0xb8] sm:$0xff] }
 0x188   :  { %2165 = vmatprep.subr.bf16.mxu1 %v2164_v39  ;;  %v606_v39 = vld [vmem:[#allocation2 + $0xfb0] sm:$0xff] }
 0x189   :  { %v2198_v43 = vpack.c.bf16 %v606_v39, %v602_v37  ;;  %v2342_v37 = vpack.c.bf16 %v1543_v28, %v1542_v27 }
 0x18b   :  { %2167 = vmatpush1.bf16.msra.mxu1 %v2166_v52  ;;  %v620_v52 = vsub.s32 0, %v2664_v61 }
 0x18c   :  { %2169 = vmatprep.subr.bf16.mxu1 %v2168_v56  ;;  %v625_v56 = vrot.slane %v2729_v53, %v624_v54 }
 0x18d   :  { %v621_v38 = vrot.slane %v2729_v53, %v620_v52 }
 0x18e   :  { %v751_v58 = vadd.f32 %v2725_v49, %v625_v56  ;;  %v1538_v49 = vld [vmem:[#allocation9] sm:$0xff] }
 0x18f   :  { %2171 = vmatpush1.bf16.msra.mxu1 %v2170_v63  ;;  %v749_v57 = vadd.f32 %v2723_v45, %v621_v38  ;;  %v1320_v63 = vld [vmem:[#allocation6 + $0x210] sm:$0xff]  ;;  %v1554_v45 = vld [vmem:[#allocation9 + $0x80] sm:$0xff]  ;;  %v2334_v16 = vpack.c.bf16 %v1539_v13, %v1538_v49 }
 0x190   :  { %2173 = vmatprep.subr.bf16.mxu1 %v2172_v0  ;;  %v2270_v4 = vpack.c.bf16 %v1320_v63, %v1318_v62  ;;  %v2332_v12 = vpack.c.bf16 %v1555_v10, %v1554_v45  ;;  %v1336_v38 = vld [vmem:[#allocation6 + $0x290] sm:$0xff]  ;;  %v1339_v56 = vld [vmem:[#allocation6 + $0x2a8] sm:$0xff] }
 0x191   :  { %v1564_v63 = vld [vmem:[#allocation9 + $0xd0] sm:$0xff]  ;;  %v1566_v45 = vld [vmem:[#allocation9 + $0xe0] sm:$0xff]  ;;  %v1567_v10 = vld [vmem:[#allocation9 + $0xe8] sm:$0xff] }
 0x192   :  { %v1344_v13 = vld [vmem:[#allocation6 + $0x2d0] sm:$0xff] }
 0x193   :  { %2175 = vmatpush1.bf16.msra.mxu1 %v2174_v7  ;;  %v1324_v7 = vld [vmem:[#allocation6 + $0x230] sm:$0xff] }
 0x194   :  { %2177 = vmatprep.subr.bf16.mxu1 %v2176_v8  ;;  %v1327_v8 = vld [vmem:[#allocation6 + $0x248] sm:$0xff]  ;;  %v2274_v25 = vpack.c.bf16 %v1324_v7, %v1322_v33  ;;  %v1345_v33 = vld [vmem:[#allocation6 + $0x2d8] sm:$0xff] }
 0x195   :  { %v2276_v21 = vpack.c.bf16 %v1329_v9, %v1327_v8  ;;  %v1548_v7 = vld [vmem:[#allocation9 + $0x50] sm:$0xff]  ;;  %v1549_v8 = vld [vmem:[#allocation9 + $0x58] sm:$0xff] }
 0x197   :  { %2179 = vmatpush1.bf16.msra.mxu1 %v2178_v14  ;;  %v1556_v14 = vld [vmem:[#allocation9 + $0x90] sm:$0xff] }
 0x198   :  { %2181 = vmatprep.subr.bf16.mxu1 %v2180_v15  ;;  %v1557_v15 = vld [vmem:[#allocation9 + $0x98] sm:$0xff] }
 0x199   :  { %v2336_v17 = vpack.c.bf16 %v1557_v15, %v1556_v14  ;;  %v1347_v14 = vld [vmem:[#allocation6 + $0x2e8] sm:$0xff]  ;;  %v1349_v15 = vld [vmem:[#allocation6 + $0x2f8] sm:$0xff] }
 0x19b   :  { %2183 = vmatpush1.bf16.msra.mxu1 %v2182_v19  ;;  %v1541_v19 = vld [vmem:[#allocation9 + $0x18] sm:$0xff] }
 0x19c   :  { %2185 = vmatprep.subr.bf16.mxu1 %v2184_v20  ;;  %v1558_v20 = vld [vmem:[#allocation9 + $0xa0] sm:$0xff]  ;;  %v2338_v26 = vpack.c.bf16 %v1541_v19, %v1540_v18  ;;  %v2296_v18 = vpack.c.bf16 %v1349_v15, %v1347_v14 }
 0x19d   :  { %v2340_v11 = vpack.c.bf16 %v1559_v23, %v1558_v20  ;;  %v1346_v19 = vld [vmem:[#allocation6 + $0x2e0] sm:$0xff]  ;;  %v1348_v20 = vld [vmem:[#allocation6 + $0x2f0] sm:$0xff] }
 0x19f   :  { %2187 = vmatpush1.bf16.msra.mxu1 %v2186_v44  ;;  %v1331_v44 = vld [vmem:[#allocation6 + $0x268] sm:$0xff] }
 0x1a0   :  { %2189 = vmatprep.subr.bf16.mxu1 %v2188_v24  ;;  %v1333_v24 = vld [vmem:[#allocation6 + $0x278] sm:$0xff] }
 0x1a1   :  { %v2280_v31 = vpack.c.bf16 %v1333_v24, %v1331_v44  ;;  %v1350_v44 = vld [vmem:[#allocation6 + $0x300] sm:$0xff]  ;;  %v1352_v24 = vld [vmem:[#allocation6 + $0x310] sm:$0xff] }
 0x1a2   :  { %v2302_v27 = vpack.c.bf16 %v1352_v24, %v1350_v44  ;;  %v1552_v24 = vld [vmem:[#allocation9 + $0x70] sm:$0xff] }
 0x1a3   :  { %2191 = vmatpush1.bf16.msra.mxu1 %v2190_v29  ;;  %v2278_v29 = vpack.c.bf16 %v1328_v34, %v1326_v22  ;;  %v1353_v22 = vld [vmem:[#allocation6 + $0x318] sm:$0xff]  ;;  %v2298_v34 = vpack.c.bf16 %v1348_v20, %v1346_v19  ;;  %v1550_v20 = vld [vmem:[#allocation9 + $0x60] sm:$0xff] }
 0x1a4   :  { %2193 = vmatprep.subr.bf16.mxu1 %v2192_v30  ;;  %v1560_v30 = vld [vmem:[#allocation9 + $0xb0] sm:$0xff] }
 0x1a5   :  { %v2344_v39 = vpack.c.bf16 %v1561_v41, %v1560_v30  ;;  %v1356_v30 = vld [vmem:[#allocation6 + $0x330] sm:$0xff]  ;;  %v1359_v41 = vld [vmem:[#allocation6 + $0x348] sm:$0xff] }
 0x1a7   :  { %2195 = vmatpush1.bf16.msra.mxu1 %v2194_v48  ;;  %v1335_v48 = vld [vmem:[#allocation6 + $0x288] sm:$0xff] }
 0x1a8   :  { %2197 = vmatprep.subr.bf16.mxu1 %v2196_v36  ;;  %v1337_v36 = vld [vmem:[#allocation6 + $0x298] sm:$0xff] }
 0x1a9   :  { %v2284_v50 = vpack.c.bf16 %v1337_v36, %v1335_v48  ;;  %v1358_v48 = vld [vmem:[#allocation6 + $0x340] sm:$0xff]  ;;  %v1360_v36 = vld [vmem:[#allocation6 + $0x350] sm:$0xff] }
 0x1ab   :  { %2199 = vmatpush1.bf16.msra.mxu1 %v2198_v43  ;;  %v2282_v43 = vpack.c.bf16 %v1332_v35, %v1330_v32 }
 0x1ac   :  { %2201 = vmatprep.subr.bf16.mxu1 %v2200_v46  ;;  %v1562_v46 = vld [vmem:[#allocation9 + $0xc0] sm:$0xff] }
 0x1af   :  { %2203 = vmatpush1.bf16.msra.mxu1 %v2202_v51  ;;  %v1334_v51 = vld [vmem:[#allocation6 + $0x280] sm:$0xff] }
 0x1b0   :  { %2333 = vmatprep.subr.bf16.mxu1 %v2332_v12  ;;  %v2286_v62 = vpack.c.bf16 %v1336_v38, %v1334_v51  ;;  %v1342_v12 = vld [vmem:[#allocation6 + $0x2c0] sm:$0xff] }
 0x1b2   :  { %1244 = vmatmul.mubr.f32.vlgmr.msra.gmra.mrb[2].mxu1 %v2708_v55 }
 0x1b3   :  { %2335 = vmatpush3.bf16.msra.mxu1 %v2334_v16  ;;  %v2356_v16 = vpack.c.bf16 %v1567_v10, %v1566_v45  ;;  %v1380_v45 = vld [vmem:[#allocation6 + $0x3f0] sm:$0xff] }
 0x1b4   :  { %2337 = vmatprep.subr.bf16.mxu1 %v2336_v17  ;;  %v2294_v17 = vpack.c.bf16 %v1344_v13, %v1342_v12  ;;  %v632_v12 = vsub.s32 3, %v2664_v61 }
 0x1b6   :  { %v633_v14 = vrot.slane %v2729_v53, %v632_v12 }
 0x1b7   :  { %2339 = vmatpush3.bf16.msra.mxu1 %v2338_v26  ;;  %v1355_v26 = vld [vmem:[#allocation6 + $0x328] sm:$0xff] }
 0x1b8   :  { %2341 = vmatprep.subr.bf16.mxu1 %v2340_v11  ;;  %v1357_v11 = vld [vmem:[#allocation6 + $0x338] sm:$0xff] }
 0x1b9   :  { %v2304_v28 = vpack.c.bf16 %v1357_v11, %v1355_v26  ;;  %v1553_v26 = vld [vmem:[#allocation9 + $0x78] sm:$0xff] }
 0x1ba   :  { %v2362_v11 = vpack.c.bf16 %v1553_v26, %v1552_v24 }
 0x1bb   :  { %2343 = vmatpush3.bf16.msra.mxu1 %v2342_v37  ;;  %v1363_v37 = vld [vmem:[#allocation6 + $0x368] sm:$0xff] }
 0x1bc   :  { %2345 = vmatprep.subr.bf16.mxu1 %v2344_v39  ;;  %v1365_v39 = vld [vmem:[#allocation6 + $0x378] sm:$0xff] }
 0x207   :  { %v961_v59 = vpop.f32.mrb[0].mxu0 }
 0x208   :  { %v2365_v55 = vadd.f32 %v961_v59, %v749_v57  ;;  %v963_v60 = vpop.f32.mrb[1].mxu0  ;;  %v1341_v57 = vld [vmem:[#allocation6 + $0x2b8] sm:$0xff]  ;;  %v2348_v59 = vpack.c.bf16 %v1563_v47, %v1562_v46  ;;  %v1364_v46 = vld [vmem:[#allocation6 + $0x370] sm:$0xff]  ;;  %v1367_v47 = vld [vmem:[#allocation6 + $0x388] sm:$0xff] }
 0x209   :  { %v2367_v0 = vadd.f32 %v963_v60, %v751_v58  ;;  %v2346_v58 = vpack.c.bf16 %v1545_v42, %v1544_v40  ;;  %v1547_v60 = vld [vmem:[#allocation9 + $0x48] sm:$0xff]  ;;  %v2288_v1 = vpack.c.bf16 %v1341_v57, %v1339_v56  ;;  %v2310_v40 = vpack.c.bf16 %v1360_v36, %v1358_v48  ;;  %v1366_v56 = vld [vmem:[#allocation6 + $0x380] sm:$0xff] }
 0x20a   :  { %v1250_v5 = vmax.f32 %v2365_v55, 0.0  ;;  %v1546_v55 = vld [vmem:[#allocation9 + $0x40] sm:$0xff]  ;;  %v2312_v42 = vpack.c.bf16 %v1365_v39, %v1363_v37  ;;  %v1368_v57 = vld [vmem:[#allocation6 + $0x390] sm:$0xff] }
 0x20b   :  { %v1251_v3 = vmax.f32 %v2367_v0, 0.0  ;;  %v1565_v0 = vld [vmem:[#allocation9 + $0xd8] sm:$0xff]  ;;  %2347 = vmatpush3.bf16.msra.mxu1 %v2346_v58  ;;  %v1371_v58 = vld [vmem:[#allocation6 + $0x3a8] sm:$0xff]  ;;  %v1656_v36 = vld [vmem:[#allocation10] ss:$0 sm:$0xff] }
 0x20c   :  { %2349 = vmatprep.subr.bf16.mxu1 %v2348_v59  ;;  %v1373_v59 = vld [vmem:[#allocation6 + $0x3b8] sm:$0xff] }
 0x20d   :  { %1458 = vmatprep.mubr.f32.mxu0 %v1251_v3  ;;  %v1340_v3 = vld [vmem:[#allocation6 + $0x2b0] sm:$0xff] }
 0x20e   :  { %1459 = vmatmul.mubr.f32.vlgmr.msra.gmra.mrb[2].mxu0 %v1250_v5  ;;  %v2350_v5 = vpack.c.bf16 %v1547_v60, %v1546_v55  ;;  %v2290_v9 = vpack.c.bf16 %v1340_v3, %v1338_v2  ;;  %v2318_v55 = vpack.c.bf16 %v1368_v57, %v1366_v56  ;;  %v2320_v60 = vpack.c.bf16 %v1373_v59, %v1371_v58 }
 0x20f   :  { %2271 = vmatpush1.bf16.msra.mxu0 %v2270_v4  ;;  %v1343_v4 = vld [vmem:[#allocation6 + $0x2c8] sm:$0xff] }
 0x210   :  { %2273 = vmatprep.subr.bf16.mxu0 %v2272_v6  ;;  %v2352_v6 = vpack.c.bf16 %v1565_v0, %v1564_v63  ;;  %v2292_v49 = vpack.c.bf16 %v1345_v33, %v1343_v4  ;;  %2351 = vmatpush3.bf16.msra.mxu1 %v2350_v5  ;;  %v1372_v63 = vld [vmem:[#allocation6 + $0x3b0] sm:$0xff]  ;;  %v1375_v0 = vld [vmem:[#allocation6 + $0x3c8] sm:$0xff]  ;;  %v1374_v4 = vld [vmem:[#allocation6 + $0x3c0] sm:$0xff] }
 0x211   :  { %v1376_v33 = vld [vmem:[#allocation6 + $0x3d0] sm:$0xff]  ;;  %v1379_v5 = vld [vmem:[#allocation6 + $0x3e8] sm:$0xff] }
 0x212   :  { %2353 = vmatprep.subr.bf16.mxu1 %v2352_v6  ;;  %v1381_v6 = vld [vmem:[#allocation6 + $0x3f8] sm:$0xff] }
 0x213   :  { %2275 = vmatpush1.bf16.msra.mxu0 %v2274_v25  ;;  %v2354_v25 = vpack.c.bf16 %v1549_v8, %v1548_v7  ;;  %v2326_v7 = vpack.c.bf16 %v1376_v33, %v1374_v4  ;;  %v2328_v8 = vpack.c.bf16 %v1381_v6, %v1379_v5 }
 0x214   :  { %2277 = vmatprep.subr.bf16.mxu0 %v2276_v21  ;;  %v1351_v21 = vld [vmem:[#allocation6 + $0x308] sm:$0xff] }
 0x215   :  { %2355 = vmatpush3.bf16.msra.mxu1 %v2354_v25  ;;  %v2300_v23 = vpack.c.bf16 %v1353_v22, %v1351_v21  ;;  %v1551_v21 = vld [vmem:[#allocation9 + $0x68] sm:$0xff] }
 0x216   :  { %2357 = vmatprep.subr.bf16.mxu1 %v2356_v16  ;;  %v2358_v22 = vpack.c.bf16 %v1551_v21, %v1550_v20 }
 0x217   :  { %2279 = vmatpush1.bf16.msra.mxu0 %v2278_v29  ;;  %v1354_v29 = vld [vmem:[#allocation6 + $0x320] sm:$0xff] }
 0x218   :  { %2281 = vmatprep.subr.bf16.mxu0 %v2280_v31  ;;  %v1361_v31 = vld [vmem:[#allocation6 + $0x358] sm:$0xff]  ;;  %v2306_v32 = vpack.c.bf16 %v1356_v30, %v1354_v29 }
 0x219   :  { %v2308_v35 = vpack.c.bf16 %v1361_v31, %v1359_v41  ;;  %2359 = vmatpush3.bf16.msra.mxu1 %v2358_v22 }
 0x21b   :  { %2283 = vmatpush1.bf16.msra.mxu0 %v2282_v43  ;;  %v1362_v43 = vld [vmem:[#allocation6 + $0x360] sm:$0xff] }
 0x21c   :  { %2285 = vmatprep.subr.bf16.mxu0 %v2284_v50  ;;  %v1369_v50 = vld [vmem:[#allocation6 + $0x398] sm:$0xff]  ;;  %v2314_v51 = vpack.c.bf16 %v1364_v46, %v1362_v43 }
 0x21d   :  { %v2316_v38 = vpack.c.bf16 %v1369_v50, %v1367_v47 }
 0x21f   :  { %2287 = vmatpush1.bf16.msra.mxu0 %v2286_v62  ;;  %v1370_v62 = vld [vmem:[#allocation6 + $0x3a0] sm:$0xff] }
 0x220   :  { %2289 = vmatprep.subr.bf16.mxu0 %v2288_v1  ;;  %v1377_v1 = vld [vmem:[#allocation6 + $0x3d8] sm:$0xff]  ;;  %v2322_v2 = vpack.c.bf16 %v1372_v63, %v1370_v62 }
 0x221   :  { %v2324_v3 = vpack.c.bf16 %v1377_v1, %v1375_v0 }
 0x223   :  { %2291 = vmatpush1.bf16.msra.mxu0 %v2290_v9  ;;  %v1378_v9 = vld [vmem:[#allocation6 + $0x3e0] sm:$0xff] }
 0x224   :  { %2293 = vmatprep.subr.bf16.mxu0 %v2292_v49  ;;  %v2330_v10 = vpack.c.bf16 %v1380_v45, %v1378_v9  ;;  %v628_v49 = vsub.s32 2, %v2664_v61 }
 0x226   :  { %v629_v13 = vrot.slane %v2729_v53, %v628_v49  ;;  %v1382_v53 = vld [vmem:[#allocation7] sm:$0x3] }
 0x227   :  { %2295 = vmatpush1.bf16.msra.mxu0 %v2294_v17 }
 0x228   :  { %2297 = vmatprep.subr.bf16.mxu0 %v2296_v18 }
 0x22b   :  { %2299 = vmatpush1.bf16.msra.mxu0 %v2298_v34  ;;  %v1568_v34 = vld [vmem:[#allocation9 + $0xf0] sm:$0xff] }
 0x22c   :  { %2301 = vmatprep.subr.bf16.mxu0 %v2300_v23  ;;  %v1569_v23 = vld [vmem:[#allocation9 + $0xf8] sm:$0xff] }
 0x22d   :  { %v2360_v44 = vpack.c.bf16 %v1569_v23, %v1568_v34 }
 0x22f   :  { %2303 = vmatpush1.bf16.msra.mxu0 %v2302_v27  ;;  %2361 = vmatprep.subr.bf16.mxu1 %v2360_v44  ;;  %v1387_v27 = vrot.slane %v1382_v53, %v620_v52 }
 0x230   :  { %2305 = vmatprep.subr.bf16.mxu0 %v2304_v28  ;;  %2363 = vmatpush3.bf16.msra.mxu1 %v2362_v11  ;;  %v1391_v28 = vrot.slane %v1382_v53, %v624_v54 }
 0x233   :  { %2307 = vmatpush1.bf16.msra.mxu0 %v2306_v32 }
 0x234   :  { %2309 = vmatprep.subr.bf16.mxu0 %v2308_v35 }
 0x237   :  { %2311 = vmatpush1.bf16.msra.mxu0 %v2310_v40 }
 0x238   :  { %2313 = vmatprep.subr.bf16.mxu0 %v2312_v42 }
 0x23b   :  { %2315 = vmatpush1.bf16.msra.mxu0 %v2314_v51 }
 0x23c   :  { %2317 = vmatprep.subr.bf16.mxu0 %v2316_v38 }
 0x23f   :  { %2319 = vmatpush1.bf16.msra.mxu0 %v2318_v55 }
 0x240   :  { %2321 = vmatprep.subr.bf16.mxu0 %v2320_v60 }
 0x243   :  { %2323 = vmatpush1.bf16.msra.mxu0 %v2322_v2 }
 0x244   :  { %2325 = vmatprep.subr.bf16.mxu0 %v2324_v3 }
 0x247   :  { %2327 = vmatpush1.bf16.msra.mxu0 %v2326_v7 }
 0x248   :  { %2329 = vmatprep.subr.bf16.mxu0 %v2328_v8 }
 0x24b   :  { %2331 = vmatpush1.bf16.msra.mxu0 %v2330_v10 }
 0x285   :  { %v1245_v15 = vpop.f32.mrb[2].mxu1 }
 0x286   :  { %v2368_v25 = vadd.f32 %v1245_v15, %v629_v13  ;;  %v1247_v16 = vpop.f32.mrb[3].mxu1 }
 0x287   :  { %v2369_v17 = vadd.f32 %v1247_v16, %v633_v14 }
 0x288   :  { %v1252_v19 = vmax.f32 %v2368_v25, 0.0 }
 0x289   :  { %v1253_v18 = vmax.f32 %v2369_v17, 0.0 }
 0x28b   :  { %1529 = vmatprep.mubr.f32.mxu0 %v1253_v18 }
 0x28c   :  { %1530 = vmatmul.mubr.f32.vlgmr.msra.gmra.mrb[2].mxu0 %v1252_v19 }
 0x35f   :  { %v1531_v29 = vpop.f32.mrb[2].mxu0 }
 0x360   :  { %v2370_v30 = vadd.f32 %v1531_v29, %v1387_v27  ;;  %v1533_v41 = vpop.f32.mrb[3].mxu0 }
 0x361   :  { %v2371_v31 = vadd.f32 %v1533_v41, %v1391_v28 }
 0x362   :  { %v1536_v35 = vmax.f32 %v2370_v30, 0.0 }
 0x363   :  { %v1537_v32 = vmax.f32 %v2371_v31, 0.0 }
 0x365   :  { %1641 = vmatprep.mubr.f32.mxu1 %v1537_v32 }
 0x366   :  { %1642 = vmatmul.mubr.f32.vlgmr.msra.gmra.mrb[4].mxu1 %v1536_v35 }
 0x439   :  { %v1689_v48 = vpop.f32.mrb[4].mxu1 }
 0x43a   :  { %v1690_v37 = vpop.f32.mrb[5].mxu1 }
 0x43b   :  { %v1691_v39 = vadd.f32 %v1690_v37, %v1689_v48 }
 0x43d   :  { %v1644_v40 = vadd.f32 %v1691_v39, %v1656_v36 }
 0x43f   :  { %1647 = vst [vmem:[%s2758_s7] sm:$0x3] %v1644_v40 }
 0x440   :  { %1652 = vsyncpa [#allocation3], 1 }
 0x441   :  { %1653 = vsyncpa [#allocation5], 1 }
 0x442   :  { %1654 = vsyncpa [#allocation8], 1 }
 0x443   :  { %1655 = vsyncpa [#allocation11], 1 }

// kernel: pointnet_seg_forward.9
= control target key start
LH: loop header
LB: loop body
LE: loop exit
PB: predicated region body
PF: predicated region fallthrough
CT: control target
= control target key end

     0   :  { %s1904_s17 = smov 0   ;;  %s1906_s18 = smov 0   ;;  %s2639_s0 = inlined_call_operand.vmem [shape: f32[2,16,8], index: 0, kind: input, shape index: {}]   ;;  %s2640_s1 = inlined_call_operand.vmem [shape: f32[2,8,64], index: 1, kind: input, shape index: {}]   ;;  %s2641_s2 = inlined_call_operand.vmem [shape: f32[1,64], index: 2, kind: input, shape index: {}]   ;;  %s2642_s3 = inlined_call_operand.vmem [shape: f32[2,1,512], index: 3, kind: input, shape index: {}]   ;;  %s2643_s4 = inlined_call_operand.vmem [shape: f32[64,512], index: 4, kind: input, shape index: {}]   ;;  %s2644_s5 = inlined_call_operand.vmem [shape: f32[512,256], index: 5, kind: input, shape index: {}]   ;;  %s2645_s6 = inlined_call_operand.vmem [shape: f32[1,256], index: 6, kind: input, shape index: {}]   ;;  %s2646_s7 = inlined_call_operand.vmem [shape: f32[256,128], index: 7, kind: input, shape index: {}]   ;;  %s2647_s8 = inlined_call_operand.vmem [shape: f32[1,128], index: 8, kind: input, shape index: {}]   ;;  %s2648_s9 = inlined_call_operand.vmem [shape: f32[128,128], index: 9, kind: input, shape index: {}]   ;;  %s2649_s10 = inlined_call_operand.vmem [shape: f32[1,128], index: 10, kind: input, shape index: {}]   ;;  %s2650_s11 = inlined_call_operand.vmem [shape: f32[2,16,128], index: 11, kind: output, shape index: {}]  }
   0x1   :  { %s1908_s19 = smov 0  }
   0x2 LB: > { %s33_s20 = sadd.s32 1, %s1837_s18  ;;  %p1435_p0 = scmp.ge.s32.totalorder %s1841_s19, 1  ;;  %s1841_s19 = sphi %s1908_s19, %s21_s19   ;;  %s1837_s18 = sphi %s1906_s18, %s2652_s18   ;;  %s1833_s17 = sphi %s1904_s17, %s2651_s17  }
   0x3   : > { %p35_p1 = scmp.ge.s32.totalorder %s33_s20, 2  ;;  %p376_p2 = scmp.lt.s32.totalorder %s1841_s19, 3 }
   0x5   : > { %s2654_s20 = smov (%p35_p1, %s33_s20), 0  ;;  %p377_p3 = pnand %p1435_p0, %p376_p2 }
   0x6   : > { %p433_p4 = scmp.lt.s32.totalorder (!%p377_p3), %s1833_s17, 1  ;;  %v555_v0 = vld [vmem:[%s2643_s4 + $0x8] sm:$0xff] (!%p377_p3)  ;;  %v554_v2 = vld [vmem:[%s2643_s4] sm:$0xff] (!%p377_p3)  ;;  %vm470_vm0 = vcmask (!%p377_p3), 64512   ;;  %v557_v27 = vld [vmem:[%s2643_s4 + $0x18] sm:$0xff] (!%p377_p3)  ;;  %v1843_v30 = vmov (!%p377_p3), 0.0  }
   0x7   : > { %380 = sbr.rel (%p377_p3) target bundleno = 1497 (0x5d9), region = 64  ;;  %v559_v1 = vld [vmem:[%s2643_s4 + $0x28] sm:$0xff] (!%p377_p3)  ;;  %v558_v3 = vld [vmem:[%s2643_s4 + $0x20] sm:$0xff] (!%p377_p3)  ;;  %v561_v28 = vld [vmem:[%s2643_s4 + $0x38] sm:$0xff] (!%p377_p3)  ;;  %vm608_vm1 = vcmask (!%p377_p3), 523264  }
   0x8   : > { %v563_v4 = vld [vmem:[%s2643_s4 + $0x48] sm:$0xff] (!%p377_p3)  ;;  %v1554_v6 = vpack.c.bf16 (!%p377_p3), %v559_v1, %v555_v0  ;;  %v1556_v10 = vpack.c.bf16 (!%p377_p3), %v558_v3, %v554_v2  ;;  %v562_v12 = vld [vmem:[%s2643_s4 + $0x40] sm:$0xff] (!%p377_p3)  ;;  %v1570_v29 = vpack.c.bf16 (!%p377_p3), %v561_v28, %v557_v27  ;;  %v780_v32 = vld [vmem:[%s2644_s5 + $0x18] sm:$0xff] (!%p377_p3) }
   0x9   : > { %v567_v5 = vld [vmem:[%s2643_s4 + $0x68] sm:$0xff] (!%p377_p3)  ;;  %v566_v13 = vld [vmem:[%s2643_s4 + $0x60] sm:$0xff] (!%p377_p3)  ;;  %v779_v35 = vld [vmem:[%s2644_s5 + $0x10] sm:$0xff] (!%p377_p3) }
   0xa   : > { %v1558_v11 = vpack.c.bf16 (!%p377_p3), %v567_v5, %v563_v4  ;;  %v571_v14 = vld [vmem:[%s2643_s4 + $0x88] sm:$0xff] (!%p377_p3)  ;;  %v1560_v16 = vpack.c.bf16 (!%p377_p3), %v566_v13, %v562_v12  ;;  %v570_v18 = vld [vmem:[%s2643_s4 + $0x80] sm:$0xff] (!%p377_p3)  ;;  %v784_v37 = vld [vmem:[%s2644_s5 + $0x38] sm:$0xff] (!%p377_p3) }
   0xb   : > { %v575_v15 = vld [vmem:[%s2643_s4 + $0xa8] sm:$0xff] (!%p377_p3)  ;;  %v574_v19 = vld [vmem:[%s2643_s4 + $0xa0] sm:$0xff] (!%p377_p3)  ;;  %v783_v41 = vld [vmem:[%s2644_s5 + $0x30] sm:$0xff] (!%p377_p3) }
   0xc   : > { %v1562_v17 = vpack.c.bf16 (!%p377_p3), %v575_v15, %v571_v14  ;;  %v1564_v20 = vpack.c.bf16 (!%p377_p3), %v574_v19, %v570_v18  ;;  %v579_v21 = vld [vmem:[%s2643_s4 + $0xc8] sm:$0xff] (!%p377_p3)  ;;  %v578_v24 = vld [vmem:[%s2643_s4 + $0xc0] sm:$0xff] (!%p377_p3)  ;;  %v788_v43 = vld [vmem:[%s2644_s5 + $0x58] sm:$0xff] (!%p377_p3) }
   0xd   : > { %v583_v22 = vld [vmem:[%s2643_s4 + $0xe8] sm:$0xff] (!%p377_p3)  ;;  %v582_v25 = vld [vmem:[%s2643_s4 + $0xe0] sm:$0xff] (!%p377_p3)  ;;  %v787_v47 = vld [vmem:[%s2644_s5 + $0x50] sm:$0xff] (!%p377_p3) }
   0xe   : > { %s2656_s17 = smov (!%p433_p4, %s1833_s17), 1  ;;  %v1566_v23 = vpack.c.bf16 %v583_v22, %v579_v21  ;;  %v1568_v26 = vpack.c.bf16 %v582_v25, %v578_v24  ;;  %v778_v31 = vld [vmem:[%s2644_s5 + $0x8] sm:$0xff]  ;;  %v777_v33 = vld [vmem:[%s2644_s5] sm:$0xff]  ;;  %v792_v49 = vld [vmem:[%s2644_s5 + $0x78] sm:$0xff] }
   0xf   : > { %s1438_s29 = sshll.u32 %s2656_s17, 3  ;;  %s1453_s30 = sshll.u32 %s2656_s17, 4  ;;  %v1586_v34 = vpack.c.bf16 %v780_v32, %v778_v31  ;;  %v782_v36 = vld [vmem:[%s2644_s5 + $0x28] sm:$0xff]  ;;  %v1588_v38 = vpack.c.bf16 %v779_v35, %v777_v33  ;;  %v781_v40 = vld [vmem:[%s2644_s5 + $0x20] sm:$0xff]  ;;  %v791_v53 = vld [vmem:[%s2644_s5 + $0x70] sm:$0xff] }
  0x10   : > { %s445_s22 = scalar_lea.vmem %s2640_s1, %s1438_s29  ;;  %s440_s25 = scalar_lea.vmem %s2639_s0, %s1453_s30  ;;  %v1590_v39 = vpack.c.bf16 %v784_v37, %v782_v36  ;;  %v786_v42 = vld [vmem:[%s2644_s5 + $0x48] sm:$0xff]  ;;  %v1592_v44 = vpack.c.bf16 %v783_v41, %v781_v40  ;;  %v785_v46 = vld [vmem:[%s2644_s5 + $0x40] sm:$0xff]  ;;  %v796_v55 = vld [vmem:[%s2644_s5 + $0x98] sm:$0xff] }
  0x11   : > { %v462_v7 = vld [vmem:[%s445_s22] sm:$0xff]  ;;  %v461_v9 = vld [vmem:[%s440_s25 + $0x8] sm:$0xff]  ;;  %1587 = vmatprep.subr.bf16.mxu1 %v1586_v34  ;;  %v1594_v45 = vpack.c.bf16 %v788_v43, %v786_v42  ;;  %v1596_v50 = vpack.c.bf16 %v787_v47, %v785_v46  ;;  %v795_v59 = vld [vmem:[%s2644_s5 + $0x90] sm:$0xff]  ;;  %s1439_s26 = sshll.u32 %s2656_s17, 2  ;;  %s458_s24 = scalar_lea.vmem %s2650_s11, %s1453_s30 }
  0x12   : > { %v460_v8 = vld [vmem:[%s440_s25] sm:$0xff]  ;;  %1514 = vmatprep.subr.mxu0 %v462_v7  ;;  %1589 = vmatpush1.bf16.msra.mxu1 %v1588_v38  ;;  %v790_v48 = vld [vmem:[%s2644_s5 + $0x68] sm:$0xff]  ;;  %v800_v61 = vld [vmem:[%s2644_s5 + $0xb8] sm:$0xff]  ;;  %s449_s29 = scalar_lea.vmem %s2642_s3, %s1439_s26 }
  0x13   : > { %1516 = vmatprep.mubr.msk.f32.mxu0 %vm470_vm0, %v460_v8  ;;  %1515 = vmatpush3.msra.mxu0 %v462_v7  ;;  %v1598_v51 = vpack.c.bf16 %v792_v49, %v790_v48  ;;  %v789_v52 = vld [vmem:[%s2644_s5 + $0x60] sm:$0xff]  ;;  %v794_v54 = vld [vmem:[%s2644_s5 + $0x88] sm:$0xff]  ;;  %v799_v1 = vld [vmem:[%s2644_s5 + $0xb0] sm:$0xff] }
  0x14   : > { %1517 = vmatmul.mubr.msk.f32.vlgmr.msra.gmra.mrb[0].mxu0 %vm470_vm0, %v461_v9  ;;  %1555 = vmatprep.subr.bf16.mxu0 %v1554_v6  ;;  %v1600_v56 = vpack.c.bf16 %v791_v53, %v789_v52  ;;  %v1602_v57 = vpack.c.bf16 %v796_v55, %v794_v54  ;;  %v793_v58 = vld [vmem:[%s2644_s5 + $0x80] sm:$0xff]  ;;  %v798_v60 = vld [vmem:[%s2644_s5 + $0xa8] sm:$0xff]  ;;  %v804_v3 = vld [vmem:[%s2644_s5 + $0xd8] sm:$0xff] }
  0x15   : > { %1557 = vmatpush1.bf16.msra.mxu0 %v1556_v10  ;;  %679 = vmatprep.mubr.f32.mxu0 %v1843_v30  ;;  %v1604_v62 = vpack.c.bf16 %v795_v59, %v793_v58  ;;  %v1606_v63 = vpack.c.bf16 %v800_v61, %v798_v60  ;;  %v797_v0 = vld [vmem:[%s2644_s5 + $0xa0] sm:$0xff]  ;;  %v802_v2 = vld [vmem:[%s2644_s5 + $0xc8] sm:$0xff]  ;;  %v803_v7 = vld [vmem:[%s2644_s5 + $0xd0] sm:$0xff] }
  0x16   : > { %1559 = vmatprep.subr.bf16.mxu0 %v1558_v11  ;;  %1591 = vmatprep.subr.bf16.mxu1 %v1590_v39  ;;  %v1608_v4 = vpack.c.bf16 %v799_v1, %v797_v0  ;;  %v1610_v5 = vpack.c.bf16 %v804_v3, %v802_v2  ;;  %v801_v6 = vld [vmem:[%s2644_s5 + $0xc0] sm:$0xff]  ;;  %v806_v8 = vld [vmem:[%s2644_s5 + $0xe8] sm:$0xff]  ;;  %v808_v9 = vld [vmem:[%s2644_s5 + $0xf8] sm:$0xff] }
  0x17   : > { %1593 = vmatpush1.bf16.msra.mxu1 %v1592_v44  ;;  %v1612_v10 = vpack.c.bf16 %v803_v7, %v801_v6  ;;  %v1614_v11 = vpack.c.bf16 %v808_v9, %v806_v8  ;;  %v805_v12 = vld [vmem:[%s2644_s5 + $0xe0] sm:$0xff]  ;;  %v807_v13 = vld [vmem:[%s2644_s5 + $0xf0] sm:$0xff]  ;;  %v810_v14 = vld [vmem:[%s2644_s5 + $0x108] sm:$0xff] }
  0x18   : > { %1595 = vmatprep.subr.bf16.mxu1 %v1594_v45  ;;  %v812_v15 = vld [vmem:[%s2644_s5 + $0x118] sm:$0xff]  ;;  %v809_v18 = vld [vmem:[%s2644_s5 + $0x100] sm:$0xff]  ;;  %v811_v19 = vld [vmem:[%s2644_s5 + $0x110] sm:$0xff] }
  0x19   : > { %1561 = vmatpush1.bf16.msra.mxu0 %v1560_v16  ;;  %v1616_v16 = vpack.c.bf16 %v807_v13, %v805_v12  ;;  %v816_v21 = vld [vmem:[%s2644_s5 + $0x138] sm:$0xff]  ;;  %v1620_v22 = vpack.c.bf16 %v811_v19, %v809_v18  ;;  %v813_v24 = vld [vmem:[%s2644_s5 + $0x120] sm:$0xff]  ;;  %v815_v25 = vld [vmem:[%s2644_s5 + $0x130] sm:$0xff] }
  0x1a   : > { %1563 = vmatprep.subr.bf16.mxu0 %v1562_v17  ;;  %v1618_v17 = vpack.c.bf16 %v812_v15, %v810_v14  ;;  %v820_v27 = vld [vmem:[%s2644_s5 + $0x158] sm:$0xff]  ;;  %v1624_v28 = vpack.c.bf16 %v815_v25, %v813_v24  ;;  %v817_v31 = vld [vmem:[%s2644_s5 + $0x140] sm:$0xff]  ;;  %v819_v32 = vld [vmem:[%s2644_s5 + $0x150] sm:$0xff] }
  0x1b   : > { %1597 = vmatpush1.bf16.msra.mxu1 %v1596_v50  ;;  %v822_v33 = vld [vmem:[%s2644_s5 + $0x168] sm:$0xff]  ;;  %v824_v34 = vld [vmem:[%s2644_s5 + $0x178] sm:$0xff]  ;;  %v1628_v35 = vpack.c.bf16 %v819_v32, %v817_v31  ;;  %v821_v37 = vld [vmem:[%s2644_s5 + $0x160] sm:$0xff] }
  0x1c   : > { %1599 = vmatprep.subr.bf16.mxu1 %v1598_v51  ;;  %v1630_v36 = vpack.c.bf16 %v824_v34, %v822_v33  ;;  %v823_v38 = vld [vmem:[%s2644_s5 + $0x170] sm:$0xff]  ;;  %v826_v39 = vld [vmem:[%s2644_s5 + $0x188] sm:$0xff]  ;;  %v828_v40 = vld [vmem:[%s2644_s5 + $0x198] sm:$0xff] }
  0x1d   : > { %1565 = vmatpush1.bf16.msra.mxu0 %v1564_v20  ;;  %v814_v20 = vld [vmem:[%s2644_s5 + $0x128] sm:$0xff]  ;;  %v1632_v41 = vpack.c.bf16 %v823_v38, %v821_v37  ;;  %v1634_v42 = vpack.c.bf16 %v828_v40, %v826_v39  ;;  %v825_v43 = vld [vmem:[%s2644_s5 + $0x180] sm:$0xff]  ;;  %v827_v44 = vld [vmem:[%s2644_s5 + $0x190] sm:$0xff] }
  0x1e   : > { %1567 = vmatprep.subr.bf16.mxu0 %v1566_v23  ;;  %v1622_v23 = vpack.c.bf16 %v816_v21, %v814_v20  ;;  %v830_v45 = vld [vmem:[%s2644_s5 + $0x1a8] sm:$0xff]  ;;  %v832_v46 = vld [vmem:[%s2644_s5 + $0x1b8] sm:$0xff]  ;;  %v1636_v47 = vpack.c.bf16 %v827_v44, %v825_v43  ;;  %v829_v49 = vld [vmem:[%s2644_s5 + $0x1a0] sm:$0xff] }
  0x1f   : > { %1601 = vmatpush1.bf16.msra.mxu1 %v1600_v56  ;;  %v1638_v48 = vpack.c.bf16 %v832_v46, %v830_v45  ;;  %v831_v50 = vld [vmem:[%s2644_s5 + $0x1b0] sm:$0xff]  ;;  %v834_v51 = vld [vmem:[%s2644_s5 + $0x1c8] sm:$0xff]  ;;  %v836_v52 = vld [vmem:[%s2644_s5 + $0x1d8] sm:$0xff] }
  0x20   : > { %1603 = vmatprep.subr.bf16.mxu1 %v1602_v57  ;;  %v1640_v53 = vpack.c.bf16 %v831_v50, %v829_v49  ;;  %v1642_v54 = vpack.c.bf16 %v836_v52, %v834_v51  ;;  %v833_v55 = vld [vmem:[%s2644_s5 + $0x1c0] sm:$0xff]  ;;  %v835_v56 = vld [vmem:[%s2644_s5 + $0x1d0] sm:$0xff]  ;;  %v569_v0 = vld [vmem:[%s2643_s4 + $0x78] sm:$0xff] }
  0x21   : > { %1569 = vmatpush1.bf16.msra.mxu0 %v1568_v26  ;;  %v818_v26 = vld [vmem:[%s2644_s5 + $0x148] sm:$0xff]  ;;  %v1644_v57 = vpack.c.bf16 %v835_v56, %v833_v55  ;;  %v1442_v58 = vld [vmem:[%s2641_s2] ss:$0 sm:$0xff]  ;;  %v556_v60 = vld [vmem:[%s2643_s4 + $0x10] sm:$0xff] }
  0x22   : > { %1571 = vmatprep.subr.bf16.mxu0 %v1570_v29  ;;  %v1626_v29 = vpack.c.bf16 %v820_v27, %v818_v26  ;;  %v560_v61 = vld [vmem:[%s2643_s4 + $0x30] sm:$0xff]  ;;  %v573_v8 = vld [vmem:[%s2643_s4 + $0x98] sm:$0xff]  ;;  %v837_v25 = vld [vmem:[%s2644_s5 + $0x1e0] sm:$0xff] }
  0x23   : > { %1605 = vmatpush1.bf16.msra.mxu1 %v1604_v62  ;;  %v1572_v2 = vpack.c.bf16 %v560_v61, %v556_v60  ;;  %v564_v6 = vld [vmem:[%s2643_s4 + $0x50] sm:$0xff]  ;;  %v577_v9 = vld [vmem:[%s2643_s4 + $0xb8] sm:$0xff]  ;;  %v842_v27 = vld [vmem:[%s2644_s5 + $0x208] sm:$0xff] }
  0x24   : > { %1607 = vmatprep.subr.bf16.mxu1 %v1606_v63  ;;  %v565_v63 = vld [vmem:[%s2643_s4 + $0x58] sm:$0xff]  ;;  %v568_v7 = vld [vmem:[%s2643_s4 + $0x70] sm:$0xff]  ;;  %v1578_v12 = vpack.c.bf16 %v577_v9, %v573_v8  ;;  %v1091_v31 = vld [vmem:[%s2646_s7 + $0x80] sm:$0xff] }
  0x25   : > { %v572_v13 = vld [vmem:[%s2643_s4 + $0x90] sm:$0xff]  ;;  %v581_v15 = vld [vmem:[%s2643_s4 + $0xd8] sm:$0xff]  ;;  %v1092_v32 = vld [vmem:[%s2646_s7 + $0x88] sm:$0xff] }
  0x26   : > { %v576_v14 = vld [vmem:[%s2643_s4 + $0xb0] sm:$0xff]  ;;  %v1075_v33 = vld [vmem:[%s2646_s7] sm:$0xff]  ;;  %v1714_v34 = vpack.c.bf16 %v1092_v32, %v1091_v31  ;;  %v1094_v37 = vld [vmem:[%s2646_s7 + $0x98] sm:$0xff] }
  0x27   : > { %1609 = vmatpush1.bf16.msra.mxu1 %v1608_v4  ;;  %v580_v19 = vld [vmem:[%s2643_s4 + $0xd0] sm:$0xff]  ;;  %v1096_v43 = vld [vmem:[%s2646_s7 + $0xa8] sm:$0xff]  ;;  %v1079_v46 = vld [vmem:[%s2646_s7 + $0x20] sm:$0xff] }
  0x28   : > { %1611 = vmatprep.subr.bf16.mxu1 %v1610_v5  ;;  %v1574_v5 = vpack.c.bf16 %v569_v0, %v565_v63  ;;  %v584_v20 = vld [vmem:[%s2643_s4 + $0xf0] sm:$0xff]  ;;  %v1098_v49 = vld [vmem:[%s2646_s7 + $0xb8] sm:$0xff]  ;;  %v1100_v55 = vld [vmem:[%s2646_s7 + $0xc8] sm:$0xff] }
  0x29   : > { %v1584_v21 = vpack.c.bf16 %v584_v20, %v580_v19  ;;  %v839_v26 = vld [vmem:[%s2644_s5 + $0x1f0] sm:$0xff]  ;;  %v1102_v61 = vld [vmem:[%s2646_s7 + $0xd8] sm:$0xff]  ;;  %v2327_v9 = vld [vmem:[%s449_s29] sm:$0xf] }
  0x2a   : > { %v1077_v40 = vld [vmem:[%s2646_s7 + $0x10] sm:$0xff]  ;;  %v846_v19 = vld [vmem:[%s2644_s5 + $0x228] sm:$0xff]  ;;  %v848_v20 = vld [vmem:[%s2644_s5 + $0x238] sm:$0xff] }
  0x2b   : > { %1613 = vmatpush1.bf16.msra.mxu1 %v1612_v10  ;;  %v1576_v10 = vpack.c.bf16 %v568_v7, %v564_v6  ;;  %v1081_v52 = vld [vmem:[%s2646_s7 + $0x30] sm:$0xff]  ;;  %v588_v6 = vlaneseq  ;;  %v850_v31 = vld [vmem:[%s2644_s5 + $0x248] sm:$0xff]  ;;  %v852_v32 = vld [vmem:[%s2644_s5 + $0x258] sm:$0xff] }
  0x2c   : > { %1615 = vmatprep.subr.bf16.mxu1 %v1614_v11  ;;  %v1101_v60 = vld [vmem:[%s2646_s7 + $0xd0] sm:$0xff] }
  0x2d   : > { %v1734_v63 = vpack.c.bf16 %v1102_v61, %v1101_v60  ;;  %v1085_v0 = vld [vmem:[%s2646_s7 + $0x50] sm:$0xff]  ;;  %v2321_v7 = vshrl.u32 %v588_v6, 7 }
  0x2f   : > { %1617 = vmatpush1.bf16.msra.mxu1 %v1616_v16  ;;  %v585_v16 = vld [vmem:[%s2643_s4 + $0xf8] sm:$0xff]  ;;  %v590_v8 = vsub.s32 0, %v2321_v7 }
  0x30   : > { %1619 = vmatprep.subr.bf16.mxu1 %v1618_v17  ;;  %v1580_v17 = vpack.c.bf16 %v576_v14, %v572_v13  ;;  %v1582_v18 = vpack.c.bf16 %v585_v16, %v581_v15  ;;  %v841_v16 = vld [vmem:[%s2644_s5 + $0x200] sm:$0xff] }
  0x33   : > { %1621 = vmatpush1.bf16.msra.mxu1 %v1620_v22  ;;  %v838_v22 = vld [vmem:[%s2644_s5 + $0x1e8] sm:$0xff] }
  0x34   : > { %1623 = vmatprep.subr.bf16.mxu1 %v1622_v23  ;;  %v840_v23 = vld [vmem:[%s2644_s5 + $0x1f8] sm:$0xff] }
  0x35   : > { %v1646_v24 = vpack.c.bf16 %v840_v23, %v838_v22 }
  0x37   : > { %1625 = vmatpush1.bf16.msra.mxu1 %v1624_v28  ;;  %v844_v28 = vld [vmem:[%s2644_s5 + $0x218] sm:$0xff] }
  0x38   : > { %1627 = vmatprep.subr.bf16.mxu1 %v1626_v29  ;;  %v1650_v29 = vpack.c.bf16 %v844_v28, %v842_v27  ;;  %v845_v27 = vld [vmem:[%s2644_s5 + $0x220] sm:$0xff]  ;;  %v847_v28 = vld [vmem:[%s2644_s5 + $0x230] sm:$0xff] }
  0x3b   : > { %1629 = vmatpush1.bf16.msra.mxu1 %v1628_v35  ;;  %v1076_v35 = vld [vmem:[%s2646_s7 + $0x8] sm:$0xff] }
  0x3c   : > { %1631 = vmatprep.subr.bf16.mxu1 %v1630_v36  ;;  %v1093_v36 = vld [vmem:[%s2646_s7 + $0x90] sm:$0xff]  ;;  %v1716_v38 = vpack.c.bf16 %v1076_v35, %v1075_v33 }
  0x3d   : > { %v1718_v39 = vpack.c.bf16 %v1094_v37, %v1093_v36  ;;  %v1658_v36 = vpack.c.bf16 %v852_v32, %v850_v31  ;;  %v849_v37 = vld [vmem:[%s2644_s5 + $0x240] sm:$0xff]  ;;  %v884_v31 = vld [vmem:[%s2644_s5 + $0x358] sm:$0xff] }
  0x3f   : > { %1633 = vmatpush1.bf16.msra.mxu1 %v1632_v41  ;;  %v1078_v41 = vld [vmem:[%s2646_s7 + $0x18] sm:$0xff] }
  0x40   : > { %1635 = vmatprep.subr.bf16.mxu1 %v1634_v42  ;;  %v1095_v42 = vld [vmem:[%s2646_s7 + $0xa0] sm:$0xff]  ;;  %v1720_v44 = vpack.c.bf16 %v1078_v41, %v1077_v40  ;;  %v854_v40 = vld [vmem:[%s2644_s5 + $0x268] sm:$0xff]  ;;  %v856_v41 = vld [vmem:[%s2644_s5 + $0x278] sm:$0xff] }
  0x41   : > { %v1722_v45 = vpack.c.bf16 %v1096_v43, %v1095_v42  ;;  %v1662_v43 = vpack.c.bf16 %v856_v41, %v854_v40  ;;  %v885_v40 = vld [vmem:[%s2644_s5 + $0x360] sm:$0xff]  ;;  %v887_v41 = vld [vmem:[%s2644_s5 + $0x370] sm:$0xff] }
  0x43   : > { %1637 = vmatpush1.bf16.msra.mxu1 %v1636_v47  ;;  %v1080_v47 = vld [vmem:[%s2646_s7 + $0x28] sm:$0xff] }
  0x44   : > { %1639 = vmatprep.subr.bf16.mxu1 %v1638_v48  ;;  %v1097_v48 = vld [vmem:[%s2646_s7 + $0xb0] sm:$0xff]  ;;  %v1724_v50 = vpack.c.bf16 %v1080_v47, %v1079_v46  ;;  %v858_v47 = vld [vmem:[%s2644_s5 + $0x288] sm:$0xff] }
  0x45   : > { %v1726_v51 = vpack.c.bf16 %v1098_v49, %v1097_v48  ;;  %v860_v48 = vld [vmem:[%s2644_s5 + $0x298] sm:$0xff] }
  0x47   : > { %1641 = vmatpush1.bf16.msra.mxu1 %v1640_v53  ;;  %v1082_v53 = vld [vmem:[%s2646_s7 + $0x38] sm:$0xff] }
  0x48   : > { %1643 = vmatprep.subr.bf16.mxu1 %v1642_v54  ;;  %v1099_v54 = vld [vmem:[%s2646_s7 + $0xc0] sm:$0xff]  ;;  %v1728_v56 = vpack.c.bf16 %v1082_v53, %v1081_v52  ;;  %v1666_v52 = vpack.c.bf16 %v860_v48, %v858_v47  ;;  %v891_v48 = vld [vmem:[%s2644_s5 + $0x390] sm:$0xff] }
  0x49   : > { %v857_v53 = vld [vmem:[%s2644_s5 + $0x280] sm:$0xff] }
  0x4a   : > { %v889_v47 = vld [vmem:[%s2644_s5 + $0x380] sm:$0xff] }
  0x4b   : > { %1645 = vmatpush1.bf16.msra.mxu1 %v1644_v57  ;;  %v1730_v57 = vpack.c.bf16 %v1100_v55, %v1099_v54  ;;  %v859_v54 = vld [vmem:[%s2644_s5 + $0x290] sm:$0xff] }
  0x4c   : > { %1647 = vmatprep.subr.bf16.mxu1 %v1646_v24  ;;  %v1668_v60 = vpack.c.bf16 %v859_v54, %v857_v53  ;;  %v893_v54 = vld [vmem:[%s2644_s5 + $0x3a0] sm:$0xff] }
  0xe7   : > { %v1518_v59 = vpop.f32.mrb[0].mxu0 }
  0xe8   : > { %v543_v62 = vpop.f32.mrb[1].mxu0  ;;  %v549_v3 = vadd.f32 %v1518_v59, %v1442_v58  ;;  %v1084_v59 = vld [vmem:[%s2646_s7 + $0x48] sm:$0xff] }
  0xe9   : > { %v544_v1 = vadd.f32 %v1442_v58, %v543_v62  ;;  %v1083_v58 = vld [vmem:[%s2646_s7 + $0x40] sm:$0xff] }
  0xea   : > { %v553_v11 = vmax.f32 %v549_v3, 0.0  ;;  %v1732_v62 = vpack.c.bf16 %v1084_v59, %v1083_v58  ;;  %v1104_v3 = vld [vmem:[%s2646_s7 + $0xe8] sm:$0xff] }
  0xeb   : > { %v552_v4 = vmax.f32 %v544_v1, 0.0  ;;  %v1086_v1 = vld [vmem:[%s2646_s7 + $0x58] sm:$0xff] }
  0xed   : > { %1445 = vmatmul.mubr.msk.f32.vlgmr.msra.gmra.mrb[2].mxu0 %vm608_vm1, %v552_v4 }
  0xee   : > { %1573 = vmatpush1.bf16.msra.mxu0 %v1572_v2  ;;  %685 = vmatprep.mubr.f32.mxu0 %v1843_v30  ;;  %v1103_v2 = vld [vmem:[%s2646_s7 + $0xe0] sm:$0xff] }
  0xef   : > { %1575 = vmatprep.subr.bf16.mxu0 %v1574_v5  ;;  %v1738_v5 = vpack.c.bf16 %v1104_v3, %v1103_v2  ;;  %v868_v2 = vld [vmem:[%s2644_s5 + $0x2d8] sm:$0xff] }
  0xf1   : > { %1446 = vmatmul.mubr.msk.f32.gmra.mrb[4].mxu0 %vm608_vm1, %v553_v11 }
  0xf2   : > { %1577 = vmatpush1.bf16.msra.mxu0 %v1576_v10  ;;  %756 = vmatprep.mubr.f32.mxu0 %v1843_v30  ;;  %v594_v10 = vsub.s32 1, %v2321_v7 }
  0xf3   : > { %1579 = vmatprep.subr.bf16.mxu0 %v1578_v12 }
  0xf4   : > { %v595_v12 = vrot.slane %v2327_v9, %v594_v10 }
  0xf6   : > { %1581 = vmatpush1.bf16.msra.mxu0 %v1580_v17  ;;  %v843_v17 = vld [vmem:[%s2644_s5 + $0x210] sm:$0xff] }
  0xf7   : > { %1583 = vmatprep.subr.bf16.mxu0 %v1582_v18  ;;  %v1652_v23 = vpack.c.bf16 %v843_v17, %v841_v16  ;;  %v869_v16 = vld [vmem:[%s2644_s5 + $0x2e0] sm:$0xff]  ;;  %v871_v17 = vld [vmem:[%s2644_s5 + $0x2f0] sm:$0xff] }
  0xfa   : > { %1585 = vmatpush1.bf16.msra.mxu0 %v1584_v21 }
  0xfb   : > { %1715 = vmatprep.subr.bf16.mxu0 %v1714_v34  ;;  %v1656_v34 = vpack.c.bf16 %v847_v28, %v845_v27  ;;  %v877_v27 = vld [vmem:[%s2644_s5 + $0x320] sm:$0xff]  ;;  %v879_v28 = vld [vmem:[%s2644_s5 + $0x330] sm:$0xff] }
  0xfc   : > { %v1688_v32 = vpack.c.bf16 %v879_v28, %v877_v27 }
  0xfd   : > { %1447 = vmatmul.mubr.msk.f32.vlgmr.msra.gmra.mrb[6].mxu0 %vm608_vm1, %v552_v4  ;;  %v1736_v4 = vpack.c.bf16 %v1086_v1, %v1085_v0  ;;  %v863_v0 = vld [vmem:[%s2644_s5 + $0x2b0] sm:$0xff]  ;;  %v866_v1 = vld [vmem:[%s2644_s5 + $0x2c8] sm:$0xff] }
  0xfe   : > { %762 = vmatprep.mubr.f32.mxu0 %v1843_v30  ;;  %v1648_v30 = vpack.c.bf16 %v839_v26, %v837_v25  ;;  %1717 = vmatpush3.bf16.msra.mxu0 %v1716_v38  ;;  %v851_v38 = vld [vmem:[%s2644_s5 + $0x250] sm:$0xff] }
  0xff   : > { %1719 = vmatprep.subr.bf16.mxu0 %v1718_v39  ;;  %v602_v39 = vsub.s32 3, %v2321_v7  ;;  %v1660_v42 = vpack.c.bf16 %v851_v38, %v849_v37  ;;  %v888_v37 = vld [vmem:[%s2644_s5 + $0x378] sm:$0xff] }
 0x100   : > { %1649 = vmatpush1.bf16.msra.mxu1 %v1648_v30  ;;  %v1654_v30 = vpack.c.bf16 %v848_v20, %v846_v19  ;;  %v876_v19 = vld [vmem:[%s2644_s5 + $0x318] sm:$0xff]  ;;  %v1680_v20 = vpack.c.bf16 %v871_v17, %v869_v16 }
 0x101   : > { %1448 = vmatmul.mubr.msk.f32.gmra.mrb[8].mxu0 %vm608_vm1, %v553_v11  ;;  %1651 = vmatprep.subr.bf16.mxu1 %v1650_v29  ;;  %v591_v11 = vrot.slane %v2327_v9, %v590_v8  ;;  %v2380_v46 = vrot.slane %v2327_v9, %v602_v39 }
 0x102   : > { %1721 = vmatpush3.bf16.msra.mxu0 %v1720_v44  ;;  %v853_v44 = vld [vmem:[%s2644_s5 + $0x260] sm:$0xff] }
 0x103   : > { %1723 = vmatprep.subr.bf16.mxu0 %v1722_v45  ;;  %v855_v45 = vld [vmem:[%s2644_s5 + $0x270] sm:$0xff] }
 0x106   : > { %1725 = vmatpush3.bf16.msra.mxu0 %v1724_v50  ;;  %v1664_v50 = vpack.c.bf16 %v855_v45, %v853_v44  ;;  %v1696_v44 = vpack.c.bf16 %v887_v41, %v885_v40  ;;  %v1196_v41 = vld [vmem:[%s2648_s9 + $0x28] sm:$0xff] }
 0x107   : > { %1727 = vmatprep.subr.bf16.mxu0 %v1726_v51 }
 0x10a   : > { %1729 = vmatpush3.bf16.msra.mxu0 %v1728_v56  ;;  %v862_v56 = vld [vmem:[%s2644_s5 + $0x2a8] sm:$0xff] }
 0x10b   : > { %1731 = vmatprep.subr.bf16.mxu0 %v1730_v57  ;;  %v864_v57 = vld [vmem:[%s2644_s5 + $0x2b8] sm:$0xff] }
 0x10e   : > { %1733 = vmatpush3.bf16.msra.mxu0 %v1732_v62  ;;  %v1670_v62 = vpack.c.bf16 %v864_v57, %v862_v56  ;;  %v898_v56 = vld [vmem:[%s2644_s5 + $0x3c8] sm:$0xff]  ;;  %v900_v57 = vld [vmem:[%s2644_s5 + $0x3d8] sm:$0xff] }
 0x10f   : > { %1735 = vmatprep.subr.bf16.mxu0 %v1734_v63  ;;  %v861_v63 = vld [vmem:[%s2644_s5 + $0x2a0] sm:$0xff] }
 0x110   : > { %v1672_v3 = vpack.c.bf16 %v863_v0, %v861_v63  ;;  %v897_v63 = vld [vmem:[%s2644_s5 + $0x3c0] sm:$0xff]  ;;  %v899_v0 = vld [vmem:[%s2644_s5 + $0x3d0] sm:$0xff] }
 0x112   : > { %1737 = vmatpush3.bf16.msra.mxu0 %v1736_v4  ;;  %v1674_v4 = vpack.c.bf16 %v868_v2, %v866_v1  ;;  %v902_v1 = vld [vmem:[%s2644_s5 + $0x3e8] sm:$0xff]  ;;  %v904_v2 = vld [vmem:[%s2644_s5 + $0x3f8] sm:$0xff] }
 0x113   : > { %1739 = vmatprep.subr.bf16.mxu0 %v1738_v5  ;;  %v865_v5 = vld [vmem:[%s2644_s5 + $0x2c0] sm:$0xff] }
 0x1c0   : > { %v681_v13 = vpop.f32.mrb[2].mxu0 }
 0x1c1   : > { %v682_v14 = vadd.f32 %v681_v13, %v591_v11  ;;  %v683_v15 = vpop.f32.mrb[3].mxu0  ;;  %v872_v13 = vld [vmem:[%s2644_s5 + $0x2f8] sm:$0xff] }
 0x1c2   : > { %v684_v18 = vadd.f32 %v683_v15, %v595_v12 }
 0x1c3   : > { %v769_v24 = vmax.f32 %v682_v14, 0.0 }
 0x1c4   : > { %v687_v21 = vpop.f32.mrb[4].mxu0  ;;  %v770_v22 = vmax.f32 %v684_v18, 0.0  ;;  %v874_v18 = vld [vmem:[%s2644_s5 + $0x308] sm:$0xff] }
 0x1c5   : > { %v688_v25 = vadd.f32 %v687_v21, %v591_v11  ;;  %v689_v26 = vpop.f32.mrb[5].mxu0  ;;  %v867_v11 = vld [vmem:[%s2644_s5 + $0x2d0] sm:$0xff]  ;;  %v1682_v21 = vpack.c.bf16 %v876_v19, %v874_v18  ;;  %v1087_v19 = vld [vmem:[%s2646_s7 + $0x60] sm:$0xff] }
 0x1c6   : > { %v690_v29 = vadd.f32 %v689_v26, %v595_v12  ;;  %981 = vmatprep.mubr.f32.mxu1 %v770_v22  ;;  %v870_v12 = vld [vmem:[%s2644_s5 + $0x2e8] sm:$0xff]  ;;  %v1676_v14 = vpack.c.bf16 %v867_v11, %v865_v5  ;;  %v873_v22 = vld [vmem:[%s2644_s5 + $0x300] sm:$0xff]  ;;  %v1710_v5 = vpack.c.bf16 %v904_v2, %v902_v1 }
 0x1c7   : > { %982 = vmatmul.mubr.f32.vlgmr.msra.gmra.mrb[0].mxu1 %v769_v24  ;;  %v773_v35 = vmax.f32 %v688_v25, 0.0  ;;  %v1678_v15 = vpack.c.bf16 %v872_v13, %v870_v12  ;;  %v878_v24 = vld [vmem:[%s2644_s5 + $0x328] sm:$0xff]  ;;  %v880_v25 = vld [vmem:[%s2644_s5 + $0x338] sm:$0xff]  ;;  %v901_v11 = vld [vmem:[%s2644_s5 + $0x3e0] sm:$0xff] }
 0x1c8   : > { %v774_v33 = vmax.f32 %v690_v29, 0.0  ;;  %1653 = vmatpush1.bf16.msra.mxu1 %v1652_v23  ;;  %v875_v23 = vld [vmem:[%s2644_s5 + $0x310] sm:$0xff]  ;;  %v882_v29 = vld [vmem:[%s2644_s5 + $0x348] sm:$0xff]  ;;  %v1449_v1 = vld [vmem:[%s2647_s8] ss:$0 sm:$0xff] }
 0x1c9   : > { %1655 = vmatprep.subr.bf16.mxu1 %v1654_v30  ;;  %v1684_v26 = vpack.c.bf16 %v875_v23, %v873_v22  ;;  %v1686_v30 = vpack.c.bf16 %v880_v25, %v878_v24  ;;  %v903_v12 = vld [vmem:[%s2644_s5 + $0x3f0] sm:$0xff]  ;;  %v1090_v22 = vld [vmem:[%s2646_s7 + $0x78] sm:$0xff]  ;;  %v1191_v24 = vld [vmem:[%s2648_s9] sm:$0xff] }
 0x1ca   : > { %987 = vmatprep.mubr.f32.mxu1 %v774_v33  ;;  %v1690_v33 = vpack.c.bf16 %v884_v31, %v882_v29  ;;  %v1712_v13 = vpack.c.bf16 %v903_v12, %v901_v11  ;;  %v1192_v25 = vld [vmem:[%s2648_s9 + $0x8] sm:$0xff] }
 0x1cb   : > { %988 = vmatmul.mubr.f32.gmra.mrb[2].mxu1 %v773_v35  ;;  %v883_v35 = vld [vmem:[%s2644_s5 + $0x350] sm:$0xff] }
 0x1cc   : > { %1657 = vmatpush1.bf16.msra.mxu1 %v1656_v34  ;;  %v881_v34 = vld [vmem:[%s2644_s5 + $0x340] sm:$0xff] }
 0x1cd   : > { %1659 = vmatprep.subr.bf16.mxu1 %v1658_v36  ;;  %v886_v36 = vld [vmem:[%s2644_s5 + $0x368] sm:$0xff]  ;;  %v1692_v38 = vpack.c.bf16 %v883_v35, %v881_v34  ;;  %v1193_v34 = vld [vmem:[%s2648_s9 + $0x10] sm:$0xff]  ;;  %v1194_v35 = vld [vmem:[%s2648_s9 + $0x18] sm:$0xff] }
 0x1ce   : > { %v1694_v39 = vpack.c.bf16 %v888_v37, %v886_v36  ;;  %v1750_v40 = vpack.c.bf16 %v1194_v35, %v1193_v34 }
 0x1d0   : > { %v2388_v49 = vpop.f32.mrb[6].mxu0  ;;  %1661 = vmatpush1.bf16.msra.mxu1 %v1660_v42  ;;  %v890_v42 = vld [vmem:[%s2644_s5 + $0x388] sm:$0xff] }
 0x1d1   : > { %v760_v51 = vpop.f32.mrb[7].mxu0  ;;  %1663 = vmatprep.subr.bf16.mxu1 %v1662_v43  ;;  %v892_v43 = vld [vmem:[%s2644_s5 + $0x398] sm:$0xff] }
 0x1d2   : > { %v761_v55 = vadd.f32 %v760_v51, %v2380_v46  ;;  %v1698_v45 = vpack.c.bf16 %v892_v43, %v890_v42  ;;  %v896_v51 = vld [vmem:[%s2644_s5 + $0x3b8] sm:$0xff] }
 0x1d4   : > { %v772_v58 = vmax.f32 %v761_v55, 0.0  ;;  %v2403_v59 = vpop.f32.mrb[8].mxu0  ;;  %1665 = vmatpush1.bf16.msra.mxu1 %v1664_v50  ;;  %v894_v50 = vld [vmem:[%s2644_s5 + $0x3a8] sm:$0xff]  ;;  %v895_v55 = vld [vmem:[%s2644_s5 + $0x3b0] sm:$0xff] }
 0x1d5   : > { %v2405_v61 = vpop.f32.mrb[9].mxu0  ;;  %1667 = vmatprep.subr.bf16.mxu1 %v1666_v52  ;;  %v1700_v52 = vpack.c.bf16 %v891_v48, %v889_v47  ;;  %v1702_v53 = vpack.c.bf16 %v896_v51, %v894_v50  ;;  %v1198_v47 = vld [vmem:[%s2648_s9 + $0x38] sm:$0xff]  ;;  %v1199_v50 = vld [vmem:[%s2648_s9 + $0x40] sm:$0xff]  ;;  %v1200_v51 = vld [vmem:[%s2648_s9 + $0x48] sm:$0xff] }
 0x1d6   : > { %1058 = vmatprep.mubr.f32.mxu1 %v772_v58  ;;  %v1704_v58 = vpack.c.bf16 %v895_v55, %v893_v54  ;;  %v1202_v54 = vld [vmem:[%s2648_s9 + $0x58] sm:$0xff] }
 0x1d8   : > { %1669 = vmatpush1.bf16.msra.mxu1 %v1668_v60  ;;  %v598_v60 = vsub.s32 2, %v2321_v7 }
 0x1d9   : > { %1671 = vmatprep.subr.bf16.mxu1 %v1670_v62  ;;  %v1706_v62 = vpack.c.bf16 %v900_v57, %v898_v56  ;;  %v1203_v56 = vld [vmem:[%s2648_s9 + $0x60] sm:$0xff]  ;;  %v1204_v57 = vld [vmem:[%s2648_s9 + $0x68] sm:$0xff] }
 0x1dc   : > { %1673 = vmatpush1.bf16.msra.mxu1 %v1672_v3  ;;  %v1708_v3 = vpack.c.bf16 %v899_v0, %v897_v63 }
 0x1dd   : > { %1675 = vmatprep.subr.bf16.mxu1 %v1674_v4  ;;  %v599_v4 = vrot.slane %v2327_v9, %v598_v60  ;;  %v1205_v60 = vld [vmem:[%s2648_s9 + $0x70] sm:$0xff] }
 0x1df   : > { %v765_v16 = vadd.f32 %v2403_v59, %v599_v4  ;;  %v1106_v59 = vld [vmem:[%s2646_s7 + $0xf8] sm:$0xff] }
 0x1e0   : > { %1677 = vmatpush1.bf16.msra.mxu1 %v1676_v14  ;;  %v759_v14 = vadd.f32 %v2388_v49, %v599_v4  ;;  %v1088_v49 = vld [vmem:[%s2646_s7 + $0x68] sm:$0xff] }
 0x1e1   : > { %1679 = vmatprep.subr.bf16.mxu1 %v1678_v15  ;;  %v767_v15 = vadd.f32 %v2405_v61, %v2380_v46  ;;  %v775_v18 = vmax.f32 %v765_v16, 0.0  ;;  %v1105_v46 = vld [vmem:[%s2646_s7 + $0xf0] sm:$0xff]  ;;  %v1450_v16 = vld [vmem:[%s2649_s10] ss:$0 sm:$0xff] }
 0x1e2   : > { %v771_v9 = vmax.f32 %v759_v14, 0.0  ;;  %v1742_v61 = vpack.c.bf16 %v1106_v59, %v1105_v46 }
 0x1e3   : > { %v776_v17 = vmax.f32 %v767_v15, 0.0 }
 0x1e4   : > { %1681 = vmatpush1.bf16.msra.mxu1 %v1680_v20  ;;  %v1740_v20 = vpack.c.bf16 %v1088_v49, %v1087_v19 }
 0x1e5   : > { %1683 = vmatprep.subr.bf16.mxu1 %v1682_v21  ;;  %v1089_v21 = vld [vmem:[%s2646_s7 + $0x70] sm:$0xff] }
 0x1e6   : > { %1741 = vmatpush3.bf16.msra.mxu0 %v1740_v20  ;;  %v1744_v23 = vpack.c.bf16 %v1090_v22, %v1089_v21 }
 0x1e7   : > { %1743 = vmatprep.subr.bf16.mxu0 %v1742_v61 }
 0x1e8   : > { %1685 = vmatpush1.bf16.msra.mxu1 %v1684_v26  ;;  %v1746_v26 = vpack.c.bf16 %v1192_v25, %v1191_v24 }
 0x1e9   : > { %1687 = vmatprep.subr.bf16.mxu1 %v1686_v30  ;;  %v905_v30 = vld [vmem:[%s2645_s6] sm:$0x3] }
 0x1ea   : > { %1745 = vmatpush3.bf16.msra.mxu0 %v1744_v23  ;;  %v910_v27 = vrot.slane %v905_v30, %v590_v8  ;;  %v914_v28 = vrot.slane %v905_v30, %v594_v10  ;;  %v1195_v10 = vld [vmem:[%s2648_s9 + $0x20] sm:$0xff] }
 0x1eb   : > { %1747 = vmatprep.subr.bf16.mxu0 %v1746_v26 }
 0x1ec   : > { %1689 = vmatpush1.bf16.msra.mxu1 %v1688_v32 }
 0x1ed   : > { %1691 = vmatprep.subr.bf16.mxu1 %v1690_v33 }
 0x1f0   : > { %1693 = vmatpush1.bf16.msra.mxu1 %v1692_v38 }
 0x1f1   : > { %1695 = vmatprep.subr.bf16.mxu1 %v1694_v39 }
 0x1f4   : > { %1697 = vmatpush1.bf16.msra.mxu1 %v1696_v44  ;;  %v1754_v44 = vpack.c.bf16 %v1196_v41, %v1195_v10 }
 0x1f5   : > { %1699 = vmatprep.subr.bf16.mxu1 %v1698_v45  ;;  %v1197_v45 = vld [vmem:[%s2648_s9 + $0x30] sm:$0xff] }
 0x1f6   : > { %v1758_v48 = vpack.c.bf16 %v1198_v47, %v1197_v45 }
 0x1f8   : > { %1701 = vmatpush1.bf16.msra.mxu1 %v1700_v52  ;;  %v1762_v52 = vpack.c.bf16 %v1200_v51, %v1199_v50 }
 0x1f9   : > { %1703 = vmatprep.subr.bf16.mxu1 %v1702_v53  ;;  %v1201_v53 = vld [vmem:[%s2648_s9 + $0x50] sm:$0xff] }
 0x1fa   : > { %v1766_v55 = vpack.c.bf16 %v1202_v54, %v1201_v53 }
 0x1fc   : > { %1705 = vmatpush1.bf16.msra.mxu1 %v1704_v58  ;;  %v1770_v58 = vpack.c.bf16 %v1204_v57, %v1203_v56 }
 0x1fd   : > { %1707 = vmatprep.subr.bf16.mxu1 %v1706_v62  ;;  %v1206_v62 = vld [vmem:[%s2648_s9 + $0x78] sm:$0xff] }
 0x1fe   : > { %v1774_v63 = vpack.c.bf16 %v1206_v62, %v1205_v60 }
 0x200   : > { %1709 = vmatpush1.bf16.msra.mxu1 %v1708_v3 }
 0x201   : > { %1711 = vmatprep.subr.bf16.mxu1 %v1710_v5 }
 0x204   : > { %1713 = vmatpush1.bf16.msra.mxu1 %v1712_v13 }
 0x207   : > { %1059 = vmatmul.mubr.f32.vlgmr.msra.gmra.mrb[0].mxu1 %v771_v9  ;;  %v1290_v9 = vand.u32 127, %v588_v6 }
 0x208   : > { %1064 = vmatprep.mubr.f32.mxu1 %v776_v17 }
 0x209   : > { %vm1291_vm2 = vcmp.lt.s32.totalorder %v1290_v9, 4 }
 0x20b   : > { %1065 = vmatmul.mubr.f32.gmra.mrb[2].mxu1 %v775_v18 }
 0x2da   : > { %v1060_v29 = vpop.f32.mrb[0].mxu1 }
 0x2db   : > { %v1778_v31 = vadd.f32 %v1060_v29, %v910_v27  ;;  %v1062_v32 = vpop.f32.mrb[1].mxu1 }
 0x2dc   : > { %v1779_v33 = vadd.f32 %v1062_v32, %v914_v28 }
 0x2dd   : > { %v1071_v38 = vmax.f32 %v1778_v31, 0.0 }
 0x2de   : > { %v1072_v36 = vmax.f32 %v1779_v33, 0.0  ;;  %v1066_v37 = vpop.f32.mrb[2].mxu1 }
 0x2df   : > { %v1780_v39 = vadd.f32 %v1066_v37, %v910_v27  ;;  %v1068_v8 = vpop.f32.mrb[3].mxu1 }
 0x2e0   : > { %v1781_v7 = vadd.f32 %v1068_v8, %v914_v28  ;;  %1178 = vmatprep.mubr.f32.mxu0 %v1072_v36 }
 0x2e1   : > { %1179 = vmatmul.mubr.f32.vlgmr.msra.gmra.mrb[10].mxu0 %v1071_v38  ;;  %v1073_v43 = vmax.f32 %v1780_v39, 0.0 }
 0x2e2   : > { %v1074_v42 = vmax.f32 %v1781_v7, 0.0  ;;  %1749 = vmatpush3.bf16.msra.mxu0 %v1746_v26 }
 0x2e3   : > { %1751 = vmatprep.subr.bf16.mxu0 %v1750_v40 }
 0x2e4   : > { %1183 = vmatprep.mubr.f32.mxu0 %v1074_v42 }
 0x2e5   : > { %1184 = vmatmul.mubr.f32.gmra.mrb[12].mxu0 %v1073_v43 }
 0x2e6   : > { %1753 = vmatpush3.bf16.msra.mxu0 %v1750_v40 }
 0x2e7   : > { %1755 = vmatprep.subr.bf16.mxu0 %v1754_v44 }
 0x2ea   : > { %1757 = vmatpush3.bf16.msra.mxu0 %v1754_v44 }
 0x2eb   : > { %1759 = vmatprep.subr.bf16.mxu0 %v1758_v48 }
 0x2ee   : > { %1761 = vmatpush3.bf16.msra.mxu0 %v1758_v48 }
 0x2ef   : > { %1763 = vmatprep.subr.bf16.mxu0 %v1762_v52 }
 0x2f2   : > { %1765 = vmatpush3.bf16.msra.mxu0 %v1762_v52 }
 0x2f3   : > { %1767 = vmatprep.subr.bf16.mxu0 %v1766_v55 }
 0x2f6   : > { %1769 = vmatpush3.bf16.msra.mxu0 %v1766_v55 }
 0x2f7   : > { %1771 = vmatprep.subr.bf16.mxu0 %v1770_v58 }
 0x2fa   : > { %1773 = vmatpush3.bf16.msra.mxu0 %v1770_v58 }
 0x2fb   : > { %1775 = vmatprep.subr.bf16.mxu0 %v1774_v63 }
 0x2fe   : > { %1777 = vmatpush3.bf16.msra.mxu0 %v1774_v63 }
 0x3b4   : > { %v1490_v0 = vpop.f32.mrb[10].mxu0 }
 0x3b5   : > { %v1491_v2 = vpop.f32.mrb[11].mxu0 }
 0x3b6   : > { %v1492_v3 = vadd.f32 %v1491_v2, %v1490_v0 }
 0x3b8   : > { %v1181_v4 = vadd.f32 %v1492_v3, %v1449_v1  ;;  %v1493_v5 = vpop.f32.mrb[12].mxu0 }
 0x3b9   : > { %v1494_v11 = vpop.f32.mrb[13].mxu0 }
 0x3ba   : > { %v1189_v12 = vmax.f32 %v1181_v4, 0.0  ;;  %v1495_v13 = vadd.f32 %v1494_v11, %v1493_v5 }
 0x3bc   : > { %v1186_v14 = vadd.f32 %v1495_v13, %v1449_v1  ;;  %1551 = vmatprep.mubr.f32.mxu0 %v1189_v12 }
 0x3be   : > { %v1190_v15 = vmax.f32 %v1186_v14, 0.0 }
 0x3c0   : > { %1552 = vmatmul.mubr.f32.vlgmr.msra.gmra.mrb[14].mxu0 %v1190_v15 }
 0x493   : > { %v1553_v17 = vpop.f32.mrb[14].mxu0 }
 0x494   : > { %v1280_v18 = vpop.f32.mrb[15].mxu0  ;;  %v1286_v49 = vadd.f32 %v1553_v17, %v1450_v16 }
 0x495   : > { %v1281_v19 = vadd.f32 %v1450_v16, %v1280_v18 }
 0x496   : > { %v1293_v46 = vsel %vm1291_vm2, %v1286_v49, -inf }
 0x497   : > { %v1292_v20 = vsel %vm1291_vm2, %v1281_v19, -inf }
 0x498   : > { %1294 = vmax.xlane.f32.xlu0 %v1292_v20 }
 0x49c   : > { %1296 = vmax.xlane.f32.xlu0 %v1293_v46 }
 0x525   : > { %v1295_v59 = vpop.xlane.xlu0 %1294 }
 0x526   : > { %v1298_v61 = vsub.f32 %v1281_v19, %v1295_v59 }
 0x528   : > { %v1300_v21 = vmul.f32 1.442695, %v1298_v61 }
 0x529   : > { %v1297_v22 = vpop.xlane.xlu0 %1296 }
 0x52a   : > { %1811 = vpow2.f32 %v1300_v21  ;;  %v1299_v6 = vsub.f32 %v1286_v49, %v1297_v22 }
 0x52c   : > { %v1302_v23 = vmul.f32 1.442695, %v1299_v6 }
 0x52e   : > { %1813 = vpow2.f32 %v1302_v23 }
 0x534   : > { %v1812_v24 = vpop.eup %1811 }
 0x535   : > { %v1304_v25 = vsel %vm1291_vm2, %v1812_v24, 0.0 }
 0x536   : > { %1306 = vadd.xlane.f32.xlu1 %v1304_v25 }
 0x538   : > { %v1814_v26 = vpop.eup %1813 }
 0x539   : > { %v1305_v30 = vsel %vm1291_vm2, %v1814_v26, 0.0 }
 0x53a   : > { %1308 = vadd.xlane.f32.xlu1 %v1305_v30 }
 0x5c3   : > { %v1307_v27 = vpop.xlane.xlu1 %1306 }
 0x5c4   : > { %1815 = vlog2.f32 %v1307_v27 }
 0x5c7   : > { %v1309_v28 = vpop.xlane.xlu1 %1308 }
 0x5c8   : > { %1817 = vlog2.f32 %v1309_v28 }
 0x5ce   : > { %v1816_v29 = vpop.eup %1815 }
 0x5cf   : > { %v1311_v31 = vmul.f32 0.6931472, %v1816_v29 }
 0x5d1   : > { %v1314_v32 = vsub.f32 %v1298_v61, %v1311_v31 }
 0x5d2   : > { %v1818_v33 = vpop.eup %1817 }
 0x5d3   : > { %v1316_v34 = vsel %vm1291_vm2, %v1314_v32, 0.0  ;;  %v1313_v35 = vmul.f32 0.6931472, %v1818_v33 }
 0x5d4   : > { %1318 = vst [vmem:[%s458_s24] sm:$0xff] %v1316_v34 }
 0x5d5   : > { %v1315_v36 = vsub.f32 %v1299_v6, %v1313_v35 }
 0x5d7   : > { %v1317_v37 = vsel %vm1291_vm2, %v1315_v36, 0.0 }
 0x5d8   : > { %1319 = vst [vmem:[%s458_s24 + $0x8] sm:$0xff] %v1317_v37 }
 0x5d9 PF: > { %s21_s19 = sadd.s32 1, %s1841_s19   ;;  %s2651_s17 = smov %s1837_s18 }
 0x5da   : > { %p18_p5 = scmp.ge.s32.totalorder %s21_s19, 4   ;;  %s2652_s18 = smov %s2654_s20 }
 0x5dc   :  { %20 = sbr.rel (!%p18_p5) target bundleno = 2 (0x2), region = 100 }

</bundles_post_ra>
